<compile_context>
chip_gen: v5e
topology: v5e:2x2
jax: 0.10.0
libtpu: 0.0.40
codegen_flags: <defaults>
</compile_context>

<pallas_src>
import functools

import jax
import jax.numpy as jnp
from jax import lax
from jax.experimental import pallas as pl
from jax.experimental.pallas import tpu as pltpu

EPS = 1e-5  # PyTorch BatchNorm2d default eps


def _vmem_limit(per_step_bytes):
  """Scoped-VMEM request: double-buffered blocks + headroom, capped at 3/4 of
  the chip's physical VMEM (v7x has only 64 MiB per TensorCore)."""
  try:
    cap = int(pltpu.get_tpu_info().vmem_capacity_bytes)
  except Exception:  # pragma: no cover - conservative fallback
    cap = 128 * 1024 * 1024
  hard_cap = (cap * 3) // 4
  return int(min(hard_cap, max(16 * 1024 * 1024, 4 * per_step_bytes)))


def _zero_pad_border(pad_ref, ph, pw, h, w):
  """Zero only the padding border strips of a (Hp, Wp, C) VMEM scratch."""
  hp, wp, c = pad_ref.shape
  dt = pad_ref.dtype
  if ph > 0:
    pad_ref[0:ph, :, :] = jnp.zeros((ph, wp, c), dt)
  if hp - ph - h > 0:
    pad_ref[ph + h:hp, :, :] = jnp.zeros((hp - ph - h, wp, c), dt)
  if pw > 0:
    pad_ref[:, 0:pw, :] = jnp.zeros((hp, pw, c), dt)
  if wp - pw - w > 0:
    pad_ref[:, pw + w:wp, :] = jnp.zeros((hp, wp - pw - w, c), dt)


def _im2col_conv(pad_ref, patches_ref, w_ref, out_h, out_w, stride):
  """3x3 conv over a padded bf16 VMEM scratch as ONE MXU matmul.

  The 9 shifted windows are staged (plain stores, no lane-axis concatenate)
  into a bf16 (out_h, out_w, 9*C) scratch, then a single
  (out_h*out_w, 9*C) @ (9*C, Cout) matmul runs with f32 accumulation.
  """
  c = pad_ref.shape[-1]
  for kh in range(3):
    for kw in range(3):
      tap = kh * 3 + kw
      if stride == 1:
        win = pad_ref[kh:kh + out_h, kw:kw + out_w, :]
      else:
        # Hardware-strided read: exactly out_h/out_w elements, no over-read.
        win = pad_ref[pl.ds(kh, out_h, stride), pl.ds(kw, out_w, stride), :]
      patches_ref[:, :, tap * c:(tap + 1) * c] = win
  patches = patches_ref[...].reshape(out_h * out_w, 9 * c)
  return jnp.dot(patches, w_ref[...], preferred_element_type=jnp.float32)


# --------------------------------- kernels -----------------------------------
def _moments_kernel(x_ref, sum_ref, sumsq_ref):
  """Per-batch-element channel sum / sum-of-squares (single pass)."""
  _, h, w, c = x_ref.shape
  x2 = x_ref[...].reshape(h * w, c)
  sum_ref[...] = jnp.sum(x2, axis=0, keepdims=True).reshape(1, 1, c)
  sumsq_ref[...] = jnp.sum(x2 * x2, axis=0, keepdims=True).reshape(1, 1, c)


def _conv0_block_kernel(*refs, stride, has_shortcut, out_h, out_w):
  if has_shortcut:
    (x_ref, sc0_ref, sh0_ref, w0_ref, ws_ref,
     conv0_ref, res_ref, sum1_ref, sumsq1_ref, vpad_ref, patches_ref) = refs
  else:
    (x_ref, sc0_ref, sh0_ref, w0_ref,
     conv0_ref, sum1_ref, sumsq1_ref, vpad_ref, patches_ref) = refs

  _, h, w, cin = x_ref.shape
  cout = conv0_ref.shape[-1]
  p0 = 1 if stride == 1 else 0     # pad (1,1,1,1) for s=1, (0,1,0,1) for s=2

  # BN0 folded per-channel scale/shift + ReLU; ONE bf16 cast of the activation.
  x2 = x_ref[...].reshape(h * w, cin)
  a0_bf = jnp.maximum(x2 * sc0_ref[...] + sh0_ref[...],
                      0.0).astype(jnp.bfloat16)

  # Zero-padded bf16 activation in VMEM scratch: zero only the border strips,
  # then overwrite the interior.
  _zero_pad_border(vpad_ref, p0, p0, h, w)
  vpad_ref[p0:p0 + h, p0:p0 + w, :] = a0_bf.reshape(h, w, cin)

  # conv_0: one im2col matmul (bf16 in / f32 acc).
  conv0 = _im2col_conv(vpad_ref, patches_ref, w0_ref, out_h, out_w, stride)
  conv0_ref[...] = conv0.astype(conv0_ref.dtype).reshape(1, out_h * out_w, cout)

  # Partial batch statistics of the conv_0 output (for BN1), single pass (f32).
  sum1_ref[...] = jnp.sum(conv0, axis=0, keepdims=True).reshape(1, 1, cout)
  sumsq1_ref[...] = jnp.sum(conv0 * conv0, axis=0,
                            keepdims=True).reshape(1, 1, cout)

  # 1x1-conv shortcut branch (only when in_planes != out_planes).
  if has_shortcut:
    if stride == 1:
      a0_s = a0_bf
    else:
      a0_s = vpad_ref[pl.ds(0, out_h, stride),
                      pl.ds(0, out_w, stride), :].reshape(out_h * out_w, cin)
    res = jnp.dot(a0_s, ws_ref[...], preferred_element_type=jnp.float32)
    res_ref[...] = res.astype(res_ref.dtype).reshape(1, out_h * out_w, cout)
  # Identity shortcut: nothing is written -- pass 3 reads x directly.


def _conv1_block_kernel(c0_ref, res_ref, sc1_ref, sh1_ref, w1_ref,
                        out_ref, vpad_ref, patches_ref, *, out_h, out_w):
  cout = out_ref.shape[-1]
  howo = out_h * out_w

  # BN1 folded scale/shift + ReLU; one bf16 cast of the activation.
  c0 = c0_ref[...].reshape(howo, cout)
  a1_bf = jnp.maximum(c0 * sc1_ref[...] + sh1_ref[...],
                      0.0).astype(jnp.bfloat16)

  # 3x3 / stride-1 / pad-1 conv as one im2col matmul.
  _zero_pad_border(vpad_ref, 1, 1, out_h, out_w)
  vpad_ref[1:1 + out_h, 1:1 + out_w, :] = a1_bf.reshape(out_h, out_w, cout)
  y = _im2col_conv(vpad_ref, patches_ref, w1_ref, out_h, out_w, 1)

  # Residual add (res_ref is either the bf16 shortcut result or the raw f32 x
  # block on the identity path; both flatten to (howo, cout)).
  res = res_ref[...].astype(jnp.float32).reshape(howo, cout)
  out_ref[...] = (y + res).reshape(1, howo, cout)


# --------------------------------- wrapper -----------------------------------
@functools.partial(jax.jit, static_argnames=('stride', 'has_shortcut'))
def wide_resnet_block(x_nchw, params, *, stride, has_shortcut):
  """Pallas implementation of `_Block.forward` (training-mode BatchNorm)."""
  if stride not in (1, 2):
    raise ValueError('Unsupported `stride`.')
  x = jnp.transpose(x_nchw, (0, 2, 3, 1)).astype(jnp.float32)   # NCHW -> NHWC
  n, h, w, cin = x.shape
  cout = params['w1'].shape[-1]
  if not has_shortcut:
    assert cin == cout and stride == 1, (
        'identity shortcut requires in_planes == out_planes and stride == 1')
  if stride == 2:
    assert h % 2 == 0 and w % 2 == 0, 'stride-2 path expects even H, W'

  hp = h + 2 if stride == 1 else h + 1
  wp = w + 2 if stride == 1 else w + 1
  ho = (hp - 3) // stride + 1
  wo = (wp - 3) // stride + 1
  f32 = jnp.float32
  bf16 = jnp.bfloat16

  # -------- pass 1: per-batch-element partial moments of x (for BN0) --------
  sum0, sumsq0 = pl.pallas_call(
      _moments_kernel,
      out_shape=(jax.ShapeDtypeStruct((n, 1, cin), f32),
                 jax.ShapeDtypeStruct((n, 1, cin), f32)),
      grid=(n,),
      in_specs=[pl.BlockSpec((1, h, w, cin), lambda i: (i, 0, 0, 0))],
      out_specs=(pl.BlockSpec((1, 1, cin), lambda i: (i, 0, 0)),
                 pl.BlockSpec((1, 1, cin), lambda i: (i, 0, 0))),
      compiler_params=pltpu.CompilerParams(
          dimension_semantics=("parallel",),
          vmem_limit_bytes=_vmem_limit(h * w * cin * 4)),
      cost_estimate=pl.CostEstimate(
          flops=3 * n * h * w * cin, transcendentals=0,
          bytes_accessed=n * h * w * cin * 4),
  )(x)
  cnt0 = float(n * h * w)
  mean0 = jnp.sum(sum0, axis=(0, 1)) / cnt0
  var0 = jnp.maximum(jnp.sum(sumsq0, axis=(0, 1)) / cnt0 - mean0 * mean0, 0.0)
  scale0 = params['g0'].astype(f32) * lax.rsqrt(var0 + EPS)
  shift0 = params['b0'].astype(f32) - mean0 * scale0

  # -------- pass 2: BN0+ReLU, conv_0 (im2col), shortcut, BN1 partial stats ---
  w0_2d = params['w0'].astype(bf16).reshape(9 * cin, cout)
  kernel2 = functools.partial(_conv0_block_kernel, stride=stride,
                              has_shortcut=has_shortcut, out_h=ho, out_w=wo)

  in_specs2 = [
      pl.BlockSpec((1, h, w, cin), lambda i: (i, 0, 0, 0)),
      pl.BlockSpec((1, cin), lambda i: (0, 0)),
      pl.BlockSpec((1, cin), lambda i: (0, 0)),
      pl.BlockSpec((9 * cin, cout), lambda i: (0, 0)),
  ]
  inputs2 = [x, scale0.reshape(1, cin), shift0.reshape(1, cin), w0_2d]
  out_shape2 = [jax.ShapeDtypeStruct((n, ho * wo, cout), bf16)]   # conv0 (bf16)
  out_specs2 = [pl.BlockSpec((1, ho * wo, cout), lambda i: (i, 0, 0))]
  if has_shortcut:
    in_specs2.append(pl.BlockSpec((cin, cout), lambda i: (0, 0)))
    inputs2.append(params['ws'].astype(bf16))
    out_shape2.append(jax.ShapeDtypeStruct((n, ho * wo, cout), bf16))  # res
    out_specs2.append(pl.BlockSpec((1, ho * wo, cout), lambda i: (i, 0, 0)))
  out_shape2 += [jax.ShapeDtypeStruct((n, 1, cout), f32),
                 jax.ShapeDtypeStruct((n, 1, cout), f32)]
  out_specs2 += [pl.BlockSpec((1, 1, cout), lambda i: (i, 0, 0)),
                 pl.BlockSpec((1, 1, cout), lambda i: (i, 0, 0))]

  step2_bytes = (h * w * cin * 4
                 + (9 * cin + (cin if has_shortcut else 0)) * cout * 2
                 + (2 if has_shortcut else 1) * ho * wo * cout * 2
                 + (h + 2) * (w + 2) * cin * 2          # pad scratch (bf16)
                 + ho * wo * 9 * cin * 2                # patches scratch (bf16)
                 + ho * wo * 9 * cin * 4)               # matmul temps headroom
  outs2 = pl.pallas_call(
      kernel2,
      out_shape=tuple(out_shape2),
      grid=(n,),
      in_specs=in_specs2,
      out_specs=tuple(out_specs2),
      scratch_shapes=[pltpu.VMEM((h + 2, w + 2, cin), bf16),
                      pltpu.VMEM((ho, wo, 9 * cin), bf16)],
      compiler_params=pltpu.CompilerParams(
          dimension_semantics=("parallel",),
          vmem_limit_bytes=_vmem_limit(step2_bytes)),
      cost_estimate=pl.CostEstimate(
          flops=2 * n * ho * wo * cout * (9 * cin
                                          + (cin if has_shortcut else 0)),
          transcendentals=0,
          bytes_accessed=(n * h * w * cin * 4
                          + (2 if has_shortcut else 1) * n * ho * wo * cout * 2)),
  )(*inputs2)
  if has_shortcut:
    conv0_out, res_out, sum1, sumsq1 = outs2
  else:
    conv0_out, sum1, sumsq1 = outs2
    res_out = None

  cnt1 = float(n * ho * wo)
  mean1 = jnp.sum(sum1, axis=(0, 1)) / cnt1
  var1 = jnp.maximum(jnp.sum(sumsq1, axis=(0, 1)) / cnt1 - mean1 * mean1, 0.0)
  scale1 = params['g1'].astype(f32) * lax.rsqrt(var1 + EPS)
  shift1 = params['b1'].astype(f32) - mean1 * scale1

  # -------- pass 3: BN1+ReLU, conv_1 (im2col), residual add ------------------
  w1_2d = params['w1'].astype(bf16).reshape(9 * cout, cout)
  kernel3 = functools.partial(_conv1_block_kernel, out_h=ho, out_w=wo)
  if has_shortcut:
    res_in = res_out
    res_spec = pl.BlockSpec((1, ho * wo, cout), lambda i: (i, 0, 0))
  else:
    # Identity shortcut: read the original x directly -- no HBM copy of it.
    res_in = x
    res_spec = pl.BlockSpec((1, h, w, cin), lambda i: (i, 0, 0, 0))

  step3_bytes = (2 * ho * wo * cout * 2 + ho * wo * cout * 4
                 + (ho + 2) * (wo + 2) * cout * 2
                 + ho * wo * 9 * cout * 2 + ho * wo * 9 * cout * 4
                 + 9 * cout * cout * 2)
  out = pl.pallas_call(
      kernel3,
      out_shape=jax.ShapeDtypeStruct((n, ho * wo, cout), f32),
      grid=(n,),
      in_specs=[
          pl.BlockSpec((1, ho * wo, cout), lambda i: (i, 0, 0)),
          res_spec,
          pl.BlockSpec((1, cout), lambda i: (0, 0)),
          pl.BlockSpec((1, cout), lambda i: (0, 0)),
          pl.BlockSpec((9 * cout, cout), lambda i: (0, 0)),
      ],
      out_specs=pl.BlockSpec((1, ho * wo, cout), lambda i: (i, 0, 0)),
      scratch_shapes=[pltpu.VMEM((ho + 2, wo + 2, cout), bf16),
                      pltpu.VMEM((ho, wo, 9 * cout), bf16)],
      compiler_params=pltpu.CompilerParams(
          dimension_semantics=("parallel",),
          vmem_limit_bytes=_vmem_limit(step3_bytes)),
      cost_estimate=pl.CostEstimate(
          flops=2 * n * ho * wo * 9 * cout * cout, transcendentals=0,
          bytes_accessed=n * ho * wo * cout * (2 + 2 + 4)),
  )(conv0_out, res_in, scale1.reshape(1, cout), shift1.reshape(1, cout), w1_2d)

  out = out.reshape(n, ho, wo, cout)
  return jnp.transpose(out, (0, 3, 1, 2))                         # -> NCHW


# ----------------------- pure-JAX reference for verification -----------------
def reference_block(x_nchw, params, *, stride, has_shortcut):
  x = jnp.transpose(x_nchw, (0, 2, 3, 1)).astype(jnp.float32)
  dn = ('NHWC', 'HWIO', 'NHWC')

  def bn_relu(t, g, b):
    m = t.mean(axis=(0, 1, 2), keepdims=True)
    v = ((t - m) ** 2).mean(axis=(0, 1, 2), keepdims=True)
    return jnp.maximum(g * (t - m) / jnp.sqrt(v + EPS) + b, 0.0)

  a0 = bn_relu(x, params['g0'], params['b0'])
  pad = ((0, 0), (1, 1), (1, 1), (0, 0)) if stride == 1 else \
        ((0, 0), (0, 1), (0, 1), (0, 0))
  v0 = jnp.pad(a0, pad)
  out = lax.conv_general_dilated(v0, params['w0'], (stride, stride), 'VALID',
                                 dimension_numbers=dn,
                                 precision=lax.Precision.HIGHEST)
  out = bn_relu(out, params['g1'], params['b1'])
  out = lax.conv_general_dilated(out, params['w1'], (1, 1),
                                 ((1, 1), (1, 1)), dimension_numbers=dn,
                                 precision=lax.Precision.HIGHEST)
  if has_shortcut:
    cin, cout = params['ws'].shape
    sc = lax.conv_general_dilated(a0, params['ws'].reshape(1, 1, cin, cout),
                                  (stride, stride), 'VALID',
                                  dimension_numbers=dn,
                                  precision=lax.Precision.HIGHEST)
    out = sc + out
  else:
    out = x + out
  return jnp.transpose(out, (0, 3, 1, 2))


# ------------------------------------ main ------------------------------------
def _make_params(key, cin, cout, with_shortcut):
  ks = jax.random.split(key, 7)
  p = dict(
      g0=1.0 + 0.1 * jax.random.normal(ks[0], (cin,), jnp.float32),
      b0=0.1 * jax.random.normal(ks[1], (cin,), jnp.float32),
      w0=0.1 * jax.random.normal(ks[2], (3, 3, cin, cout), jnp.float32),
      g1=1.0 + 0.1 * jax.random.normal(ks[3], (cout,), jnp.float32),
      b1=0.1 * jax.random.normal(ks[4], (cout,), jnp.float32),
      w1=0.1 * jax.random.normal(ks[5], (3, 3, cout, cout), jnp.float32),
  )
  if with_shortcut:
    p['ws'] = 0.1 * jax.random.normal(ks[6], (cin, cout), jnp.float32)
  return p


def _check(name, x, params, stride, has_shortcut):
  out = jax.block_until_ready(
      wide_resnet_block(x, params, stride=stride, has_shortcut=has_shortcut))
  ref = reference_block(x, params, stride=stride, has_shortcut=has_shortcut)
  if out.shape != ref.shape:
    raise AssertionError(f'{name}: shape {out.shape} != {ref.shape}')
  err = float(jnp.max(jnp.abs(out - ref)))
  # bf16 matmul inputs + bf16 inter-pass activations -> engineering tolerance.
  if not jnp.allclose(out, ref, rtol=5e-2, atol=5e-2):
    raise AssertionError(f'{name}: Pallas output mismatches reference, '
                         f'max abs err = {err}')


if __name__ == "__main__":
  key = jax.random.PRNGKey(0)
  k1, k2, k3, k4 = jax.random.split(key, 4)

  # _Block(in_planes=4, out_planes=8, stride=1) -> 1x1-conv shortcut path
  x_a = jax.random.normal(k1, (2, 4, 16, 16), jnp.float32)
  params_a = _make_params(k2, 4, 8, with_shortcut=True)
  _check('shortcut', x_a, params_a, stride=1, has_shortcut=True)

  # _Block(in_planes=8, out_planes=8, stride=1) -> identity shortcut path
  x_b = jax.random.normal(k3, (2, 8, 8, 8), jnp.float32)
  params_b = _make_params(k4, 8, 8, with_shortcut=False)
  _check('identity', x_b, params_b, stride=1, has_shortcut=False)

  print("KERNEL_OK")
</pallas_src>

<mosaic_0001>
module attributes {stable_mosaic.version = 11 : i64} {
  func.func @_moments_kernel(%arg0: i32, %arg1: memref<1x16x16x4xf32, #tpu.memory_space<vmem>>, %arg2: memref<1x1x4xf32, #tpu.memory_space<vmem>>, %arg3: memref<1x1x4xf32, #tpu.memory_space<vmem>>) attributes {dimension_semantics = [#tpu.dimension_semantics<parallel>], iteration_bounds = array<i64: 2>, scalar_prefetch = 0 : i64, scratch_operands = 0 : i64, tpu.core_type = #tpu.core_type<tc>, window_params = [{transform_indices = @transform_0, window_bounds = array<i64: 1, 16, 16, 4>}, {transform_indices = @transform_1, window_bounds = array<i64: 1, 1, 4>}, {transform_indices = @transform_2, window_bounds = array<i64: 1, 1, 4>}]} {
    %c0 = arith.constant 0 : index
    %c0_0 = arith.constant 0 : index
    %c0_1 = arith.constant 0 : index
    %c0_2 = arith.constant 0 : index
    %0 = vector.load %arg1[%c0, %c0_0, %c0_1, %c0_2] : memref<1x16x16x4xf32, #tpu.memory_space<vmem>>, vector<1x16x16x4xf32>
    %1 = vector.shape_cast %0 : vector<1x16x16x4xf32> to vector<256x4xf32>
    %cst = arith.constant dense<0.000000e+00> : vector<4xf32>
    %2 = vector.multi_reduction <add>, %1, %cst [0] : vector<256x4xf32> to vector<4xf32>
    %3 = vector.shape_cast %2 : vector<4xf32> to vector<1x4xf32>
    %4 = vector.shape_cast %3 : vector<1x4xf32> to vector<1x1x4xf32>
    %c0_3 = arith.constant 0 : index
    %c0_4 = arith.constant 0 : index
    %c0_5 = arith.constant 0 : index
    %5 = vector.load %arg2[%c0_3, %c0_4, %c0_5] : memref<1x1x4xf32, #tpu.memory_space<vmem>>, vector<1x1x4xf32>
    tpu.vector_store %arg2[%c0_3, %c0_4, %c0_5], %4 {strides = array<i32>} : memref<1x1x4xf32, #tpu.memory_space<vmem>>, vector<1x1x4xf32>,
    %6 = arith.mulf %1, %1 : vector<256x4xf32>
    %cst_6 = arith.constant dense<0.000000e+00> : vector<4xf32>
    %7 = vector.multi_reduction <add>, %6, %cst_6 [0] : vector<256x4xf32> to vector<4xf32>
    %8 = vector.shape_cast %7 : vector<4xf32> to vector<1x4xf32>
    %9 = vector.shape_cast %8 : vector<1x4xf32> to vector<1x1x4xf32>
    %c0_7 = arith.constant 0 : index
    %c0_8 = arith.constant 0 : index
    %c0_9 = arith.constant 0 : index
    %10 = vector.load %arg3[%c0_7, %c0_8, %c0_9] : memref<1x1x4xf32, #tpu.memory_space<vmem>>, vector<1x1x4xf32>
    tpu.vector_store %arg3[%c0_7, %c0_8, %c0_9], %9 {strides = array<i32>} : memref<1x1x4xf32, #tpu.memory_space<vmem>>, vector<1x1x4xf32>,
    return
  }
  func.func @transform_0(%arg0: i32) -> (i32, i32, i32, i32) {
    %c0_i32 = arith.constant 0 : i32
    %c0_i32_0 = arith.constant 0 : i32
    %c0_i32_1 = arith.constant 0 : i32
    %c0_i32_2 = arith.constant 0 : i32
    return %arg0, %c0_i32, %c0_i32_0, %c0_i32_1 : i32, i32, i32, i32
  }
  func.func @transform_1(%arg0: i32) -> (i32, i32, i32) {
    %c0_i32 = arith.constant 0 : i32
    %c0_i32_0 = arith.constant 0 : i32
    %c0_i32_1 = arith.constant 0 : i32
    return %arg0, %c0_i32, %c0_i32_0 : i32, i32, i32
  }
  func.func @transform_2(%arg0: i32) -> (i32, i32, i32) {
    %c0_i32 = arith.constant 0 : i32
    %c0_i32_0 = arith.constant 0 : i32
    %c0_i32_1 = arith.constant 0 : i32
    return %arg0, %c0_i32, %c0_i32_0 : i32, i32, i32
  }
}

module attributes {stable_mosaic.version = 11 : i64} {
  func.func @_conv0_block_kernel(%arg0: i32, %arg1: memref<1x16x16x4xf32, #tpu.memory_space<vmem>>, %arg2: memref<1x4xf32, #tpu.memory_space<vmem>>, %arg3: memref<1x4xf32, #tpu.memory_space<vmem>>, %arg4: memref<36x8xbf16, #tpu.memory_space<vmem>>, %arg5: memref<4x8xbf16, #tpu.memory_space<vmem>>, %arg6: memref<1x256x8xbf16, #tpu.memory_space<vmem>>, %arg7: memref<1x256x8xbf16, #tpu.memory_space<vmem>>, %arg8: memref<1x1x8xf32, #tpu.memory_space<vmem>>, %arg9: memref<1x1x8xf32, #tpu.memory_space<vmem>>, %arg10: memref<18x18x4xbf16, #tpu.memory_space<vmem>>, %arg11: memref<16x16x36xbf16, #tpu.memory_space<vmem>>) attributes {dimension_semantics = [#tpu.dimension_semantics<parallel>], iteration_bounds = array<i64: 2>, scalar_prefetch = 0 : i64, scratch_operands = 2 : i64, tpu.core_type = #tpu.core_type<tc>, window_params = [{transform_indices = @transform_0, window_bounds = array<i64: 1, 16, 16, 4>}, {pipeline_mode = #tpu.pipeline_mode<synchronous>, transform_indices = @transform_1, window_bounds = array<i64: 1, 4>}, {pipeline_mode = #tpu.pipeline_mode<synchronous>, transform_indices = @transform_2, window_bounds = array<i64: 1, 4>}, {pipeline_mode = #tpu.pipeline_mode<synchronous>, transform_indices = @transform_3, window_bounds = array<i64: 36, 8>}, {pipeline_mode = #tpu.pipeline_mode<synchronous>, transform_indices = @transform_4, window_bounds = array<i64: 4, 8>}, {transform_indices = @transform_5, window_bounds = array<i64: 1, 256, 8>}, {transform_indices = @transform_6, window_bounds = array<i64: 1, 256, 8>}, {transform_indices = @transform_7, window_bounds = array<i64: 1, 1, 8>}, {transform_indices = @transform_8, window_bounds = array<i64: 1, 1, 8>}]} {
    %c0 = arith.constant 0 : index
    %c0_0 = arith.constant 0 : index
    %c0_1 = arith.constant 0 : index
    %c0_2 = arith.constant 0 : index
    %0 = vector.load %arg1[%c0, %c0_0, %c0_1, %c0_2] : memref<1x16x16x4xf32, #tpu.memory_space<vmem>>, vector<1x16x16x4xf32>
    %1 = vector.shape_cast %0 : vector<1x16x16x4xf32> to vector<256x4xf32>
    %c0_3 = arith.constant 0 : index
    %c0_4 = arith.constant 0 : index
    %2 = vector.load %arg2[%c0_3, %c0_4] : memref<1x4xf32, #tpu.memory_space<vmem>>, vector<1x4xf32>
    %3 = vector.broadcast %2 : vector<1x4xf32> to vector<256x4xf32>
    %4 = arith.mulf %1, %3 : vector<256x4xf32>
    %c0_5 = arith.constant 0 : index
    %c0_6 = arith.constant 0 : index
    %5 = vector.load %arg3[%c0_5, %c0_6] : memref<1x4xf32, #tpu.memory_space<vmem>>, vector<1x4xf32>
    %6 = vector.broadcast %5 : vector<1x4xf32> to vector<256x4xf32>
    %7 = arith.addf %4, %6 : vector<256x4xf32>
    %cst = arith.constant 0.000000e+00 : f32
    %8 = vector.broadcast %cst : f32 to vector<256x4xf32>
    %9 = arith.maximumf %7, %8 : vector<256x4xf32>
    %10 = arith.truncf %9 : vector<256x4xf32> to vector<256x4xbf16>
    %cst_7 = arith.constant 0.000000e+00 : bf16
    %11 = vector.broadcast %cst_7 : bf16 to vector<1x18x4xbf16>
    %c0_8 = arith.constant 0 : index
    %c0_9 = arith.constant 0 : index
    %c0_10 = arith.constant 0 : index
    %12 = vector.load %arg10[%c0_8, %c0_9, %c0_10] : memref<18x18x4xbf16, #tpu.memory_space<vmem>>, vector<1x18x4xbf16>
    tpu.vector_store %arg10[%c0_8, %c0_9, %c0_10], %11 {strides = array<i32>} : memref<18x18x4xbf16, #tpu.memory_space<vmem>>, vector<1x18x4xbf16>,
    %cst_11 = arith.constant 0.000000e+00 : bf16
    %13 = vector.broadcast %cst_11 : bf16 to vector<1x18x4xbf16>
    %c17 = arith.constant 17 : index
    %c0_12 = arith.constant 0 : index
    %c0_13 = arith.constant 0 : index
    %14 = vector.load %arg10[%c17, %c0_12, %c0_13] : memref<18x18x4xbf16, #tpu.memory_space<vmem>>, vector<1x18x4xbf16>
    tpu.vector_store %arg10[%c17, %c0_12, %c0_13], %13 {strides = array<i32>} : memref<18x18x4xbf16, #tpu.memory_space<vmem>>, vector<1x18x4xbf16>,
    %cst_14 = arith.constant 0.000000e+00 : bf16
    %15 = vector.broadcast %cst_14 : bf16 to vector<18x1x4xbf16>
    %c0_15 = arith.constant 0 : index
    %c0_16 = arith.constant 0 : index
    %c0_17 = arith.constant 0 : index
    %16 = vector.load %arg10[%c0_15, %c0_16, %c0_17] : memref<18x18x4xbf16, #tpu.memory_space<vmem>>, vector<18x1x4xbf16>
    tpu.vector_store %arg10[%c0_15, %c0_16, %c0_17], %15 {strides = array<i32>} : memref<18x18x4xbf16, #tpu.memory_space<vmem>>, vector<18x1x4xbf16>,
    %cst_18 = arith.constant 0.000000e+00 : bf16
    %17 = vector.broadcast %cst_18 : bf16 to vector<18x1x4xbf16>
    %c0_19 = arith.constant 0 : index
    %c17_20 = arith.constant 17 : index
    %c0_21 = arith.constant 0 : index
    %18 = vector.load %arg10[%c0_19, %c17_20, %c0_21] : memref<18x18x4xbf16, #tpu.memory_space<vmem>>, vector<18x1x4xbf16>
    tpu.vector_store %arg10[%c0_19, %c17_20, %c0_21], %17 {strides = array<i32>} : memref<18x18x4xbf16, #tpu.memory_space<vmem>>, vector<18x1x4xbf16>,
    %19 = vector.shape_cast %10 : vector<256x4xbf16> to vector<16x16x4xbf16>
    %c1 = arith.constant 1 : index
    %c1_22 = arith.constant 1 : index
    %c0_23 = arith.constant 0 : index
    %20 = vector.load %arg10[%c1, %c1_22, %c0_23] : memref<18x18x4xbf16, #tpu.memory_space<vmem>>, vector<16x16x4xbf16>
    tpu.vector_store %arg10[%c1, %c1_22, %c0_23], %19 {strides = array<i32>} : memref<18x18x4xbf16, #tpu.memory_space<vmem>>, vector<16x16x4xbf16>,
    %c0_24 = arith.constant 0 : index
    %c0_25 = arith.constant 0 : index
    %c0_26 = arith.constant 0 : index
    %21 = vector.load %arg10[%c0_24, %c0_25, %c0_26] : memref<18x18x4xbf16, #tpu.memory_space<vmem>>, vector<16x16x4xbf16>
    %c0_27 = arith.constant 0 : index
    %c0_28 = arith.constant 0 : index
    %c0_29 = arith.constant 0 : index
    %22 = vector.load %arg11[%c0_27, %c0_28, %c0_29] : memref<16x16x36xbf16, #tpu.memory_space<vmem>>, vector<16x16x4xbf16>
    tpu.vector_store %arg11[%c0_27, %c0_28, %c0_29], %21 {strides = array<i32>} : memref<16x16x36xbf16, #tpu.memory_space<vmem>>, vector<16x16x4xbf16>,
    %c0_30 = arith.constant 0 : index
    %c1_31 = arith.constant 1 : index
    %c0_32 = arith.constant 0 : index
    %23 = vector.load %arg10[%c0_30, %c1_31, %c0_32] : memref<18x18x4xbf16, #tpu.memory_space<vmem>>, vector<16x16x4xbf16>
    %c0_33 = arith.constant 0 : index
    %c0_34 = arith.constant 0 : index
    %c4 = arith.constant 4 : index
    %24 = vector.load %arg11[%c0_33, %c0_34, %c4] : memref<16x16x36xbf16, #tpu.memory_space<vmem>>, vector<16x16x4xbf16>
    tpu.vector_store %arg11[%c0_33, %c0_34, %c4], %23 {strides = array<i32>} : memref<16x16x36xbf16, #tpu.memory_space<vmem>>, vector<16x16x4xbf16>,
    %c0_35 = arith.constant 0 : index
    %c2 = arith.constant 2 : index
    %c0_36 = arith.constant 0 : index
    %25 = vector.load %arg10[%c0_35, %c2, %c0_36] : memref<18x18x4xbf16, #tpu.memory_space<vmem>>, vector<16x16x4xbf16>
    %c0_37 = arith.constant 0 : index
    %c0_38 = arith.constant 0 : index
    %c8 = arith.constant 8 : index
    %26 = vector.load %arg11[%c0_37, %c0_38, %c8] : memref<16x16x36xbf16, #tpu.memory_space<vmem>>, vector<16x16x4xbf16>
    tpu.vector_store %arg11[%c0_37, %c0_38, %c8], %25 {strides = array<i32>} : memref<16x16x36xbf16, #tpu.memory_space<vmem>>, vector<16x16x4xbf16>,
    %c1_39 = arith.constant 1 : index
    %c0_40 = arith.constant 0 : index
    %c0_41 = arith.constant 0 : index
    %27 = vector.load %arg10[%c1_39, %c0_40, %c0_41] : memref<18x18x4xbf16, #tpu.memory_space<vmem>>, vector<16x16x4xbf16>
    %c0_42 = arith.constant 0 : index
    %c0_43 = arith.constant 0 : index
    %c12 = arith.constant 12 : index
    %28 = vector.load %arg11[%c0_42, %c0_43, %c12] : memref<16x16x36xbf16, #tpu.memory_space<vmem>>, vector<16x16x4xbf16>
    tpu.vector_store %arg11[%c0_42, %c0_43, %c12], %27 {strides = array<i32>} : memref<16x16x36xbf16, #tpu.memory_space<vmem>>, vector<16x16x4xbf16>,
    %c1_44 = arith.constant 1 : index
    %c1_45 = arith.constant 1 : index
    %c0_46 = arith.constant 0 : index
    %29 = vector.load %arg10[%c1_44, %c1_45, %c0_46] : memref<18x18x4xbf16, #tpu.memory_space<vmem>>, vector<16x16x4xbf16>
    %c0_47 = arith.constant 0 : index
    %c0_48 = arith.constant 0 : index
    %c16 = arith.constant 16 : index
    %30 = vector.load %arg11[%c0_47, %c0_48, %c16] : memref<16x16x36xbf16, #tpu.memory_space<vmem>>, vector<16x16x4xbf16>
    tpu.vector_store %arg11[%c0_47, %c0_48, %c16], %29 {strides = array<i32>} : memref<16x16x36xbf16, #tpu.memory_space<vmem>>, vector<16x16x4xbf16>,
    %c1_49 = arith.constant 1 : index
    %c2_50 = arith.constant 2 : index
    %c0_51 = arith.constant 0 : index
    %31 = vector.load %arg10[%c1_49, %c2_50, %c0_51] : memref<18x18x4xbf16, #tpu.memory_space<vmem>>, vector<16x16x4xbf16>
    %c0_52 = arith.constant 0 : index
    %c0_53 = arith.constant 0 : index
    %c20 = arith.constant 20 : index
    %32 = vector.load %arg11[%c0_52, %c0_53, %c20] : memref<16x16x36xbf16, #tpu.memory_space<vmem>>, vector<16x16x4xbf16>
    tpu.vector_store %arg11[%c0_52, %c0_53, %c20], %31 {strides = array<i32>} : memref<16x16x36xbf16, #tpu.memory_space<vmem>>, vector<16x16x4xbf16>,
    %c2_54 = arith.constant 2 : index
    %c0_55 = arith.constant 0 : index
    %c0_56 = arith.constant 0 : index
    %33 = vector.load %arg10[%c2_54, %c0_55, %c0_56] : memref<18x18x4xbf16, #tpu.memory_space<vmem>>, vector<16x16x4xbf16>
    %c0_57 = arith.constant 0 : index
    %c0_58 = arith.constant 0 : index
    %c24 = arith.constant 24 : index
    %34 = vector.load %arg11[%c0_57, %c0_58, %c24] : memref<16x16x36xbf16, #tpu.memory_space<vmem>>, vector<16x16x4xbf16>
    tpu.vector_store %arg11[%c0_57, %c0_58, %c24], %33 {strides = array<i32>} : memref<16x16x36xbf16, #tpu.memory_space<vmem>>, vector<16x16x4xbf16>,
    %c2_59 = arith.constant 2 : index
    %c1_60 = arith.constant 1 : index
    %c0_61 = arith.constant 0 : index
    %35 = vector.load %arg10[%c2_59, %c1_60, %c0_61] : memref<18x18x4xbf16, #tpu.memory_space<vmem>>, vector<16x16x4xbf16>
    %c0_62 = arith.constant 0 : index
    %c0_63 = arith.constant 0 : index
    %c28 = arith.constant 28 : index
    %36 = vector.load %arg11[%c0_62, %c0_63, %c28] : memref<16x16x36xbf16, #tpu.memory_space<vmem>>, vector<16x16x4xbf16>
    tpu.vector_store %arg11[%c0_62, %c0_63, %c28], %35 {strides = array<i32>} : memref<16x16x36xbf16, #tpu.memory_space<vmem>>, vector<16x16x4xbf16>,
    %c2_64 = arith.constant 2 : index
    %c2_65 = arith.constant 2 : index
    %c0_66 = arith.constant 0 : index
    %37 = vector.load %arg10[%c2_64, %c2_65, %c0_66] : memref<18x18x4xbf16, #tpu.memory_space<vmem>>, vector<16x16x4xbf16>
    %c0_67 = arith.constant 0 : index
    %c0_68 = arith.constant 0 : index
    %c32 = arith.constant 32 : index
    %38 = vector.load %arg11[%c0_67, %c0_68, %c32] : memref<16x16x36xbf16, #tpu.memory_space<vmem>>, vector<16x16x4xbf16>
    tpu.vector_store %arg11[%c0_67, %c0_68, %c32], %37 {strides = array<i32>} : memref<16x16x36xbf16, #tpu.memory_space<vmem>>, vector<16x16x4xbf16>,
    %c0_69 = arith.constant 0 : index
    %c0_70 = arith.constant 0 : index
    %c0_71 = arith.constant 0 : index
    %39 = vector.load %arg11[%c0_69, %c0_70, %c0_71] : memref<16x16x36xbf16, #tpu.memory_space<vmem>>, vector<16x16x36xbf16>
    %40 = vector.shape_cast %39 : vector<16x16x36xbf16> to vector<256x36xbf16>
    %c0_72 = arith.constant 0 : index
    %c0_73 = arith.constant 0 : index
    %41 = vector.load %arg4[%c0_72, %c0_73] : memref<36x8xbf16, #tpu.memory_space<vmem>>, vector<36x8xbf16>
    %cst_74 = arith.constant dense<0.000000e+00> : vector<256x8xf32>
    %42 = tpu.matmul %40, %41, %cst_74 {dimension_numbers = #tpu.dot_dimension_numbers<[1], [0], [0], [1], [0, 0, 1, 1], [], []>} : vector<256x36xbf16>, vector<36x8xbf16>, vector<256x8xf32> -> vector<256x8xf32>
    %43 = arith.truncf %42 : vector<256x8xf32> to vector<256x8xbf16>
    %44 = vector.shape_cast %43 : vector<256x8xbf16> to vector<1x256x8xbf16>
    %c0_75 = arith.constant 0 : index
    %c0_76 = arith.constant 0 : index
    %c0_77 = arith.constant 0 : index
    %45 = vector.load %arg6[%c0_75, %c0_76, %c0_77] : memref<1x256x8xbf16, #tpu.memory_space<vmem>>, vector<1x256x8xbf16>
    tpu.vector_store %arg6[%c0_75, %c0_76, %c0_77], %44 {strides = array<i32>} : memref<1x256x8xbf16, #tpu.memory_space<vmem>>, vector<1x256x8xbf16>,
    %cst_78 = arith.constant dense<0.000000e+00> : vector<8xf32>
    %46 = vector.multi_reduction <add>, %42, %cst_78 [0] : vector<256x8xf32> to vector<8xf32>
    %47 = vector.shape_cast %46 : vector<8xf32> to vector<1x8xf32>
    %48 = vector.shape_cast %47 : vector<1x8xf32> to vector<1x1x8xf32>
    %c0_79 = arith.constant 0 : index
    %c0_80 = arith.constant 0 : index
    %c0_81 = arith.constant 0 : index
    %49 = vector.load %arg8[%c0_79, %c0_80, %c0_81] : memref<1x1x8xf32, #tpu.memory_space<vmem>>, vector<1x1x8xf32>
    tpu.vector_store %arg8[%c0_79, %c0_80, %c0_81], %48 {strides = array<i32>} : memref<1x1x8xf32, #tpu.memory_space<vmem>>, vector<1x1x8xf32>,
    %50 = arith.mulf %42, %42 : vector<256x8xf32>
    %cst_82 = arith.constant dense<0.000000e+00> : vector<8xf32>
    %51 = vector.multi_reduction <add>, %50, %cst_82 [0] : vector<256x8xf32> to vector<8xf32>
    %52 = vector.shape_cast %51 : vector<8xf32> to vector<1x8xf32>
    %53 = vector.shape_cast %52 : vector<1x8xf32> to vector<1x1x8xf32>
    %c0_83 = arith.constant 0 : index
    %c0_84 = arith.constant 0 : index
    %c0_85 = arith.constant 0 : index
    %54 = vector.load %arg9[%c0_83, %c0_84, %c0_85] : memref<1x1x8xf32, #tpu.memory_space<vmem>>, vector<1x1x8xf32>
    tpu.vector_store %arg9[%c0_83, %c0_84, %c0_85], %53 {strides = array<i32>} : memref<1x1x8xf32, #tpu.memory_space<vmem>>, vector<1x1x8xf32>,
    %c0_86 = arith.constant 0 : index
    %c0_87 = arith.constant 0 : index
    %55 = vector.load %arg5[%c0_86, %c0_87] : memref<4x8xbf16, #tpu.memory_space<vmem>>, vector<4x8xbf16>
    %cst_88 = arith.constant dense<0.000000e+00> : vector<256x8xf32>
    %56 = tpu.matmul %10, %55, %cst_88 {dimension_numbers = #tpu.dot_dimension_numbers<[1], [0], [0], [1], [0, 0, 1, 1], [], []>} : vector<256x4xbf16>, vector<4x8xbf16>, vector<256x8xf32> -> vector<256x8xf32>
    %57 = arith.truncf %56 : vector<256x8xf32> to vector<256x8xbf16>
    %58 = vector.shape_cast %57 : vector<256x8xbf16> to vector<1x256x8xbf16>
    %c0_89 = arith.constant 0 : index
    %c0_90 = arith.constant 0 : index
    %c0_91 = arith.constant 0 : index
    %59 = vector.load %arg7[%c0_89, %c0_90, %c0_91] : memref<1x256x8xbf16, #tpu.memory_space<vmem>>, vector<1x256x8xbf16>
    tpu.vector_store %arg7[%c0_89, %c0_90, %c0_91], %58 {strides = array<i32>} : memref<1x256x8xbf16, #tpu.memory_space<vmem>>, vector<1x256x8xbf16>,
    return
  }
  func.func @transform_0(%arg0: i32) -> (i32, i32, i32, i32) {
    %c0_i32 = arith.constant 0 : i32
    %c0_i32_0 = arith.constant 0 : i32
    %c0_i32_1 = arith.constant 0 : i32
    %c0_i32_2 = arith.constant 0 : i32
    return %arg0, %c0_i32, %c0_i32_0, %c0_i32_1 : i32, i32, i32, i32
  }
  func.func @transform_1(%arg0: i32) -> (i32, i32) {
    %c0_i32 = arith.constant 0 : i32
    %c0_i32_0 = arith.constant 0 : i32
    %c0_i32_1 = arith.constant 0 : i32
    return %c0_i32, %c0_i32_0 : i32, i32
  }
  func.func @transform_2(%arg0: i32) -> (i32, i32) {
    %c0_i32 = arith.constant 0 : i32
    %c0_i32_0 = arith.constant 0 : i32
    %c0_i32_1 = arith.constant 0 : i32
    return %c0_i32, %c0_i32_0 : i32, i32
  }
  func.func @transform_3(%arg0: i32) -> (i32, i32) {
    %c0_i32 = arith.constant 0 : i32
    %c0_i32_0 = arith.constant 0 : i32
    %c0_i32_1 = arith.constant 0 : i32
    return %c0_i32, %c0_i32_0 : i32, i32
  }
  func.func @transform_4(%arg0: i32) -> (i32, i32) {
    %c0_i32 = arith.constant 0 : i32
    %c0_i32_0 = arith.constant 0 : i32
    %c0_i32_1 = arith.constant 0 : i32
    return %c0_i32, %c0_i32_0 : i32, i32
  }
  func.func @transform_5(%arg0: i32) -> (i32, i32, i32) {
    %c0_i32 = arith.constant 0 : i32
    %c0_i32_0 = arith.constant 0 : i32
    %c0_i32_1 = arith.constant 0 : i32
    return %arg0, %c0_i32, %c0_i32_0 : i32, i32, i32
  }
  func.func @transform_6(%arg0: i32) -> (i32, i32, i32) {
    %c0_i32 = arith.constant 0 : i32
    %c0_i32_0 = arith.constant 0 : i32
    %c0_i32_1 = arith.constant 0 : i32
    return %arg0, %c0_i32, %c0_i32_0 : i32, i32, i32
  }
  func.func @transform_7(%arg0: i32) -> (i32, i32, i32) {
    %c0_i32 = arith.constant 0 : i32
    %c0_i32_0 = arith.constant 0 : i32
    %c0_i32_1 = arith.constant 0 : i32
    return %arg0, %c0_i32, %c0_i32_0 : i32, i32, i32
  }
  func.func @transform_8(%arg0: i32) -> (i32, i32, i32) {
    %c0_i32 = arith.constant 0 : i32
    %c0_i32_0 = arith.constant 0 : i32
    %c0_i32_1 = arith.constant 0 : i32
    return %arg0, %c0_i32, %c0_i32_0 : i32, i32, i32
  }
}

module attributes {stable_mosaic.version = 11 : i64} {
  func.func @_conv1_block_kernel(%arg0: i32, %arg1: memref<1x256x8xbf16, #tpu.memory_space<vmem>>, %arg2: memref<1x256x8xbf16, #tpu.memory_space<vmem>>, %arg3: memref<1x8xf32, #tpu.memory_space<vmem>>, %arg4: memref<1x8xf32, #tpu.memory_space<vmem>>, %arg5: memref<72x8xbf16, #tpu.memory_space<vmem>>, %arg6: memref<1x256x8xf32, #tpu.memory_space<vmem>>, %arg7: memref<18x18x8xbf16, #tpu.memory_space<vmem>>, %arg8: memref<16x16x72xbf16, #tpu.memory_space<vmem>>) attributes {dimension_semantics = [#tpu.dimension_semantics<parallel>], iteration_bounds = array<i64: 2>, scalar_prefetch = 0 : i64, scratch_operands = 2 : i64, tpu.core_type = #tpu.core_type<tc>, window_params = [{transform_indices = @transform_0, window_bounds = array<i64: 1, 256, 8>}, {transform_indices = @transform_1, window_bounds = array<i64: 1, 256, 8>}, {pipeline_mode = #tpu.pipeline_mode<synchronous>, transform_indices = @transform_2, window_bounds = array<i64: 1, 8>}, {pipeline_mode = #tpu.pipeline_mode<synchronous>, transform_indices = @transform_3, window_bounds = array<i64: 1, 8>}, {pipeline_mode = #tpu.pipeline_mode<synchronous>, transform_indices = @transform_4, window_bounds = array<i64: 72, 8>}, {transform_indices = @transform_5, window_bounds = array<i64: 1, 256, 8>}]} {
    %c0 = arith.constant 0 : index
    %c0_0 = arith.constant 0 : index
    %c0_1 = arith.constant 0 : index
    %0 = vector.load %arg1[%c0, %c0_0, %c0_1] : memref<1x256x8xbf16, #tpu.memory_space<vmem>>, vector<1x256x8xbf16>
    %1 = vector.shape_cast %0 : vector<1x256x8xbf16> to vector<256x8xbf16>
    %c0_2 = arith.constant 0 : index
    %c0_3 = arith.constant 0 : index
    %2 = vector.load %arg3[%c0_2, %c0_3] : memref<1x8xf32, #tpu.memory_space<vmem>>, vector<1x8xf32>
    %3 = arith.extf %1 : vector<256x8xbf16> to vector<256x8xf32>
    %4 = vector.broadcast %2 : vector<1x8xf32> to vector<256x8xf32>
    %5 = arith.mulf %3, %4 : vector<256x8xf32>
    %c0_4 = arith.constant 0 : index
    %c0_5 = arith.constant 0 : index
    %6 = vector.load %arg4[%c0_4, %c0_5] : memref<1x8xf32, #tpu.memory_space<vmem>>, vector<1x8xf32>
    %7 = vector.broadcast %6 : vector<1x8xf32> to vector<256x8xf32>
    %8 = arith.addf %5, %7 : vector<256x8xf32>
    %cst = arith.constant 0.000000e+00 : f32
    %9 = vector.broadcast %cst : f32 to vector<256x8xf32>
    %10 = arith.maximumf %8, %9 : vector<256x8xf32>
    %11 = arith.truncf %10 : vector<256x8xf32> to vector<256x8xbf16>
    %cst_6 = arith.constant 0.000000e+00 : bf16
    %12 = vector.broadcast %cst_6 : bf16 to vector<1x18x8xbf16>
    %c0_7 = arith.constant 0 : index
    %c0_8 = arith.constant 0 : index
    %c0_9 = arith.constant 0 : index
    %13 = vector.load %arg7[%c0_7, %c0_8, %c0_9] : memref<18x18x8xbf16, #tpu.memory_space<vmem>>, vector<1x18x8xbf16>
    tpu.vector_store %arg7[%c0_7, %c0_8, %c0_9], %12 {strides = array<i32>} : memref<18x18x8xbf16, #tpu.memory_space<vmem>>, vector<1x18x8xbf16>,
    %cst_10 = arith.constant 0.000000e+00 : bf16
    %14 = vector.broadcast %cst_10 : bf16 to vector<1x18x8xbf16>
    %c17 = arith.constant 17 : index
    %c0_11 = arith.constant 0 : index
    %c0_12 = arith.constant 0 : index
    %15 = vector.load %arg7[%c17, %c0_11, %c0_12] : memref<18x18x8xbf16, #tpu.memory_space<vmem>>, vector<1x18x8xbf16>
    tpu.vector_store %arg7[%c17, %c0_11, %c0_12], %14 {strides = array<i32>} : memref<18x18x8xbf16, #tpu.memory_space<vmem>>, vector<1x18x8xbf16>,
    %cst_13 = arith.constant 0.000000e+00 : bf16
    %16 = vector.broadcast %cst_13 : bf16 to vector<18x1x8xbf16>
    %c0_14 = arith.constant 0 : index
    %c0_15 = arith.constant 0 : index
    %c0_16 = arith.constant 0 : index
    %17 = vector.load %arg7[%c0_14, %c0_15, %c0_16] : memref<18x18x8xbf16, #tpu.memory_space<vmem>>, vector<18x1x8xbf16>
    tpu.vector_store %arg7[%c0_14, %c0_15, %c0_16], %16 {strides = array<i32>} : memref<18x18x8xbf16, #tpu.memory_space<vmem>>, vector<18x1x8xbf16>,
    %cst_17 = arith.constant 0.000000e+00 : bf16
    %18 = vector.broadcast %cst_17 : bf16 to vector<18x1x8xbf16>
    %c0_18 = arith.constant 0 : index
    %c17_19 = arith.constant 17 : index
    %c0_20 = arith.constant 0 : index
    %19 = vector.load %arg7[%c0_18, %c17_19, %c0_20] : memref<18x18x8xbf16, #tpu.memory_space<vmem>>, vector<18x1x8xbf16>
    tpu.vector_store %arg7[%c0_18, %c17_19, %c0_20], %18 {strides = array<i32>} : memref<18x18x8xbf16, #tpu.memory_space<vmem>>, vector<18x1x8xbf16>,
    %20 = vector.shape_cast %11 : vector<256x8xbf16> to vector<16x16x8xbf16>
    %c1 = arith.constant 1 : index
    %c1_21 = arith.constant 1 : index
    %c0_22 = arith.constant 0 : index
    %21 = vector.load %arg7[%c1, %c1_21, %c0_22] : memref<18x18x8xbf16, #tpu.memory_space<vmem>>, vector<16x16x8xbf16>
    tpu.vector_store %arg7[%c1, %c1_21, %c0_22], %20 {strides = array<i32>} : memref<18x18x8xbf16, #tpu.memory_space<vmem>>, vector<16x16x8xbf16>,
    %c0_23 = arith.constant 0 : index
    %c0_24 = arith.constant 0 : index
    %c0_25 = arith.constant 0 : index
    %22 = vector.load %arg7[%c0_23, %c0_24, %c0_25] : memref<18x18x8xbf16, #tpu.memory_space<vmem>>, vector<16x16x8xbf16>
    %c0_26 = arith.constant 0 : index
    %c0_27 = arith.constant 0 : index
    %c0_28 = arith.constant 0 : index
    %23 = vector.load %arg8[%c0_26, %c0_27, %c0_28] : memref<16x16x72xbf16, #tpu.memory_space<vmem>>, vector<16x16x8xbf16>
    tpu.vector_store %arg8[%c0_26, %c0_27, %c0_28], %22 {strides = array<i32>} : memref<16x16x72xbf16, #tpu.memory_space<vmem>>, vector<16x16x8xbf16>,
    %c0_29 = arith.constant 0 : index
    %c1_30 = arith.constant 1 : index
    %c0_31 = arith.constant 0 : index
    %24 = vector.load %arg7[%c0_29, %c1_30, %c0_31] : memref<18x18x8xbf16, #tpu.memory_space<vmem>>, vector<16x16x8xbf16>
    %c0_32 = arith.constant 0 : index
    %c0_33 = arith.constant 0 : index
    %c8 = arith.constant 8 : index
    %25 = vector.load %arg8[%c0_32, %c0_33, %c8] : memref<16x16x72xbf16, #tpu.memory_space<vmem>>, vector<16x16x8xbf16>
    tpu.vector_store %arg8[%c0_32, %c0_33, %c8], %24 {strides = array<i32>} : memref<16x16x72xbf16, #tpu.memory_space<vmem>>, vector<16x16x8xbf16>,
    %c0_34 = arith.constant 0 : index
    %c2 = arith.constant 2 : index
    %c0_35 = arith.constant 0 : index
    %26 = vector.load %arg7[%c0_34, %c2, %c0_35] : memref<18x18x8xbf16, #tpu.memory_space<vmem>>, vector<16x16x8xbf16>
    %c0_36 = arith.constant 0 : index
    %c0_37 = arith.constant 0 : index
    %c16 = arith.constant 16 : index
    %27 = vector.load %arg8[%c0_36, %c0_37, %c16] : memref<16x16x72xbf16, #tpu.memory_space<vmem>>, vector<16x16x8xbf16>
    tpu.vector_store %arg8[%c0_36, %c0_37, %c16], %26 {strides = array<i32>} : memref<16x16x72xbf16, #tpu.memory_space<vmem>>, vector<16x16x8xbf16>,
    %c1_38 = arith.constant 1 : index
    %c0_39 = arith.constant 0 : index
    %c0_40 = arith.constant 0 : index
    %28 = vector.load %arg7[%c1_38, %c0_39, %c0_40] : memref<18x18x8xbf16, #tpu.memory_space<vmem>>, vector<16x16x8xbf16>
    %c0_41 = arith.constant 0 : index
    %c0_42 = arith.constant 0 : index
    %c24 = arith.constant 24 : index
    %29 = vector.load %arg8[%c0_41, %c0_42, %c24] : memref<16x16x72xbf16, #tpu.memory_space<vmem>>, vector<16x16x8xbf16>
    tpu.vector_store %arg8[%c0_41, %c0_42, %c24], %28 {strides = array<i32>} : memref<16x16x72xbf16, #tpu.memory_space<vmem>>, vector<16x16x8xbf16>,
    %c1_43 = arith.constant 1 : index
    %c1_44 = arith.constant 1 : index
    %c0_45 = arith.constant 0 : index
    %30 = vector.load %arg7[%c1_43, %c1_44, %c0_45] : memref<18x18x8xbf16, #tpu.memory_space<vmem>>, vector<16x16x8xbf16>
    %c0_46 = arith.constant 0 : index
    %c0_47 = arith.constant 0 : index
    %c32 = arith.constant 32 : index
    %31 = vector.load %arg8[%c0_46, %c0_47, %c32] : memref<16x16x72xbf16, #tpu.memory_space<vmem>>, vector<16x16x8xbf16>
    tpu.vector_store %arg8[%c0_46, %c0_47, %c32], %30 {strides = array<i32>} : memref<16x16x72xbf16, #tpu.memory_space<vmem>>, vector<16x16x8xbf16>,
    %c1_48 = arith.constant 1 : index
    %c2_49 = arith.constant 2 : index
    %c0_50 = arith.constant 0 : index
    %32 = vector.load %arg7[%c1_48, %c2_49, %c0_50] : memref<18x18x8xbf16, #tpu.memory_space<vmem>>, vector<16x16x8xbf16>
    %c0_51 = arith.constant 0 : index
    %c0_52 = arith.constant 0 : index
    %c40 = arith.constant 40 : index
    %33 = vector.load %arg8[%c0_51, %c0_52, %c40] : memref<16x16x72xbf16, #tpu.memory_space<vmem>>, vector<16x16x8xbf16>
    tpu.vector_store %arg8[%c0_51, %c0_52, %c40], %32 {strides = array<i32>} : memref<16x16x72xbf16, #tpu.memory_space<vmem>>, vector<16x16x8xbf16>,
    %c2_53 = arith.constant 2 : index
    %c0_54 = arith.constant 0 : index
    %c0_55 = arith.constant 0 : index
    %34 = vector.load %arg7[%c2_53, %c0_54, %c0_55] : memref<18x18x8xbf16, #tpu.memory_space<vmem>>, vector<16x16x8xbf16>
    %c0_56 = arith.constant 0 : index
    %c0_57 = arith.constant 0 : index
    %c48 = arith.constant 48 : index
    %35 = vector.load %arg8[%c0_56, %c0_57, %c48] : memref<16x16x72xbf16, #tpu.memory_space<vmem>>, vector<16x16x8xbf16>
    tpu.vector_store %arg8[%c0_56, %c0_57, %c48], %34 {strides = array<i32>} : memref<16x16x72xbf16, #tpu.memory_space<vmem>>, vector<16x16x8xbf16>,
    %c2_58 = arith.constant 2 : index
    %c1_59 = arith.constant 1 : index
    %c0_60 = arith.constant 0 : index
    %36 = vector.load %arg7[%c2_58, %c1_59, %c0_60] : memref<18x18x8xbf16, #tpu.memory_space<vmem>>, vector<16x16x8xbf16>
    %c0_61 = arith.constant 0 : index
    %c0_62 = arith.constant 0 : index
    %c56 = arith.constant 56 : index
    %37 = vector.load %arg8[%c0_61, %c0_62, %c56] : memref<16x16x72xbf16, #tpu.memory_space<vmem>>, vector<16x16x8xbf16>
    tpu.vector_store %arg8[%c0_61, %c0_62, %c56], %36 {strides = array<i32>} : memref<16x16x72xbf16, #tpu.memory_space<vmem>>, vector<16x16x8xbf16>,
    %c2_63 = arith.constant 2 : index
    %c2_64 = arith.constant 2 : index
    %c0_65 = arith.constant 0 : index
    %38 = vector.load %arg7[%c2_63, %c2_64, %c0_65] : memref<18x18x8xbf16, #tpu.memory_space<vmem>>, vector<16x16x8xbf16>
    %c0_66 = arith.constant 0 : index
    %c0_67 = arith.constant 0 : index
    %c64 = arith.constant 64 : index
    %39 = vector.load %arg8[%c0_66, %c0_67, %c64] : memref<16x16x72xbf16, #tpu.memory_space<vmem>>, vector<16x16x8xbf16>
    tpu.vector_store %arg8[%c0_66, %c0_67, %c64], %38 {strides = array<i32>} : memref<16x16x72xbf16, #tpu.memory_space<vmem>>, vector<16x16x8xbf16>,
    %c0_68 = arith.constant 0 : index
    %c0_69 = arith.constant 0 : index
    %c0_70 = arith.constant 0 : index
    %40 = vector.load %arg8[%c0_68, %c0_69, %c0_70] : memref<16x16x72xbf16, #tpu.memory_space<vmem>>, vector<16x16x72xbf16>
    %41 = vector.shape_cast %40 : vector<16x16x72xbf16> to vector<256x72xbf16>
    %c0_71 = arith.constant 0 : index
    %c0_72 = arith.constant 0 : index
    %42 = vector.load %arg5[%c0_71, %c0_72] : memref<72x8xbf16, #tpu.memory_space<vmem>>, vector<72x8xbf16>
    %cst_73 = arith.constant dense<0.000000e+00> : vector<256x8xf32>
    %43 = tpu.matmul %41, %42, %cst_73 {dimension_numbers = #tpu.dot_dimension_numbers<[1], [0], [0], [1], [0, 0, 1, 1], [], []>} : vector<256x72xbf16>, vector<72x8xbf16>, vector<256x8xf32> -> vector<256x8xf32>
    %c0_74 = arith.constant 0 : index
    %c0_75 = arith.constant 0 : index
    %c0_76 = arith.constant 0 : index
    %44 = vector.load %arg2[%c0_74, %c0_75, %c0_76] : memref<1x256x8xbf16, #tpu.memory_space<vmem>>, vector<1x256x8xbf16>
    %45 = arith.extf %44 : vector<1x256x8xbf16> to vector<1x256x8xf32>
    %46 = vector.shape_cast %45 : vector<1x256x8xf32> to vector<256x8xf32>
    %47 = arith.addf %43, %46 : vector<256x8xf32>
    %48 = vector.shape_cast %47 : vector<256x8xf32> to vector<1x256x8xf32>
    %c0_77 = arith.constant 0 : index
    %c0_78 = arith.constant 0 : index
    %c0_79 = arith.constant 0 : index
    %49 = vector.load %arg6[%c0_77, %c0_78, %c0_79] : memref<1x256x8xf32, #tpu.memory_space<vmem>>, vector<1x256x8xf32>
    tpu.vector_store %arg6[%c0_77, %c0_78, %c0_79], %48 {strides = array<i32>} : memref<1x256x8xf32, #tpu.memory_space<vmem>>, vector<1x256x8xf32>,
    return
  }
  func.func @transform_0(%arg0: i32) -> (i32, i32, i32) {
    %c0_i32 = arith.constant 0 : i32
    %c0_i32_0 = arith.constant 0 : i32
    %c0_i32_1 = arith.constant 0 : i32
    return %arg0, %c0_i32, %c0_i32_0 : i32, i32, i32
  }
  func.func @transform_1(%arg0: i32) -> (i32, i32, i32) {
    %c0_i32 = arith.constant 0 : i32
    %c0_i32_0 = arith.constant 0 : i32
    %c0_i32_1 = arith.constant 0 : i32
    return %arg0, %c0_i32, %c0_i32_0 : i32, i32, i32
  }
  func.func @transform_2(%arg0: i32) -> (i32, i32) {
    %c0_i32 = arith.constant 0 : i32
    %c0_i32_0 = arith.constant 0 : i32
    %c0_i32_1 = arith.constant 0 : i32
    return %c0_i32, %c0_i32_0 : i32, i32
  }
  func.func @transform_3(%arg0: i32) -> (i32, i32) {
    %c0_i32 = arith.constant 0 : i32
    %c0_i32_0 = arith.constant 0 : i32
    %c0_i32_1 = arith.constant 0 : i32
    return %c0_i32, %c0_i32_0 : i32, i32
  }
  func.func @transform_4(%arg0: i32) -> (i32, i32) {
    %c0_i32 = arith.constant 0 : i32
    %c0_i32_0 = arith.constant 0 : i32
    %c0_i32_1 = arith.constant 0 : i32
    return %c0_i32, %c0_i32_0 : i32, i32
  }
  func.func @transform_5(%arg0: i32) -> (i32, i32, i32) {
    %c0_i32 = arith.constant 0 : i32
    %c0_i32_0 = arith.constant 0 : i32
    %c0_i32_1 = arith.constant 0 : i32
    return %arg0, %c0_i32, %c0_i32_0 : i32, i32, i32
  }
}

</mosaic_0001>

<bundles_post_ra>
// kernel: wide_resnet_block.3
= control target key start
LH: loop header
LB: loop body
LE: loop exit
PB: predicated region body
PF: predicated region fallthrough
CT: control target
= control target key end

     0   :  { %s468_s9 = smov 0   ;;  %s591_s0 = inlined_call_operand.vmem [shape: f32[2,16,16,4], index: 0, kind: input, shape index: {}]   ;;  %s592_s1 = inlined_call_operand.vmem [shape: f32[2,1,4], index: 1, kind: output, shape index: {0}]   ;;  %s593_s2 = inlined_call_operand.vmem [shape: f32[2,1,4], index: 2, kind: output, shape index: {1}]  }
   0x1 LB: > { %s427_s10 = sadd.s32 4294967295, %s451_s9   ;;  %p431_p0 = scmp.ge.s32.totalorder %s451_s9, 1  ;;  %s451_s9 = sphi %s468_s9, %s13_s9  }
   0x2   : > { %p115_p1 = scmp.lt.s32.totalorder %s451_s9, 3 }
   0x4   : > { %p116_p2 = pnand %p431_p0, %p115_p1 }
   0x5   : > { %p138_p3 = scmp.lt.s32.totalorder (!%p116_p2), %s427_s10, 1 }
   0x6   : > { %119 = sbr.rel (%p116_p2) target bundleno = 95 (0x5f), region = 24 }
   0xb   : > { %s595_s10 = smov (!%p138_p3, %s427_s10), 1  ;;  %vm181_vm0 = vcmask 31744   ;;  %vm251_vm1 = vcmask 24576  }
   0xc   : > { %s436_s11 = sshll.u32 %s595_s10, 8  ;;  %s145_s17 = scalar_lea.vmem %s592_s1, %s595_s10 }
   0xd   : > { %s482_s14 = scalar_lea.vmem %s591_s0, %s436_s11  ;;  %s148_s20 = scalar_lea.vmem %s593_s2, %s595_s10 }
   0xe   : > { %v149_v0 = vld [vmem:[%s482_s14] sm:$0xff]  ;;  %v150_v1 = vld [vmem:[%s482_s14 + $0x8] sm:$0xff]  ;;  %v151_v2 = vld [vmem:[%s482_s14 + $0x10] sm:$0xff] }
   0xf   : > { %v182_v3 = vsel %vm181_vm0, %v149_v0, 0.0  ;;  %v183_v4 = vsel %vm181_vm0, %v150_v1, 0.0  ;;  %v185_v5 = vsel %vm181_vm0, %v151_v2, 0.0  ;;  %v152_v6 = vld [vmem:[%s482_s14 + $0x18] sm:$0xff]  ;;  %v153_v9 = vld [vmem:[%s482_s14 + $0x20] sm:$0xff]  ;;  %v154_v12 = vld [vmem:[%s482_s14 + $0x28] sm:$0xff]  ;;  %v253_v20 = vmul.f32 %v149_v0, %v149_v0 }
  0x10   : > { %v184_v7 = vadd.f32 %v183_v4, %v182_v3  ;;  %v187_v8 = vsel %vm181_vm0, %v152_v6, 0.0  ;;  %v189_v11 = vsel %vm181_vm0, %v153_v9, 0.0  ;;  %v191_v14 = vsel %vm181_vm0, %v154_v12, 0.0  ;;  %v155_v15 = vld [vmem:[%s482_s14 + $0x30] sm:$0xff]  ;;  %v156_v18 = vld [vmem:[%s482_s14 + $0x38] sm:$0xff]  ;;  %v157_v24 = vld [vmem:[%s482_s14 + $0x40] sm:$0xff] }
  0x11   : > { %v193_v17 = vsel %vm181_vm0, %v155_v15, 0.0  ;;  %v195_v21 = vsel %vm181_vm0, %v156_v18, 0.0  ;;  %v254_v22 = vmul.f32 %v150_v1, %v150_v1  ;;  %v255_v23 = vmul.f32 %v151_v2, %v151_v2  ;;  %v158_v28 = vld [vmem:[%s482_s14 + $0x48] sm:$0xff]  ;;  %v159_v35 = vld [vmem:[%s482_s14 + $0x50] sm:$0xff]  ;;  %v160_v41 = vld [vmem:[%s482_s14 + $0x58] sm:$0xff] }
  0x12   : > { %v186_v10 = vadd.f32 %v185_v5, %v184_v7  ;;  %v197_v26 = vsel %vm181_vm0, %v157_v24, 0.0  ;;  %v256_v27 = vmul.f32 %v152_v6, %v152_v6  ;;  %v285_v30 = vsel %vm181_vm0, %v253_v20, 0.0  ;;  %v161_v47 = vld [vmem:[%s482_s14 + $0x60] sm:$0xff]  ;;  %v162_v53 = vld [vmem:[%s482_s14 + $0x68] sm:$0xff]  ;;  %v163_v59 = vld [vmem:[%s482_s14 + $0x70] sm:$0xff] }
  0x13   : > { %v199_v31 = vsel %vm181_vm0, %v158_v28, 0.0  ;;  %v257_v32 = vmul.f32 %v153_v9, %v153_v9  ;;  %v286_v33 = vsel %vm181_vm0, %v254_v22, 0.0  ;;  %v288_v34 = vsel %vm181_vm0, %v255_v23, 0.0  ;;  %v164_v1 = vld [vmem:[%s482_s14 + $0x78] sm:$0xff]  ;;  %v165_v7 = vld [vmem:[%s482_s14 + $0x80] sm:$0xff] }
  0x14   : > { %v188_v13 = vadd.f32 %v187_v8, %v186_v10  ;;  %v287_v37 = vadd.f32 %v286_v33, %v285_v30  ;;  %v201_v38 = vsel %vm181_vm0, %v159_v35, 0.0  ;;  %v258_v39 = vmul.f32 %v154_v12, %v154_v12 }
  0x15   : > { %v290_v40 = vsel %vm181_vm0, %v256_v27, 0.0  ;;  %v203_v44 = vsel %vm181_vm0, %v160_v41, 0.0  ;;  %v259_v45 = vmul.f32 %v155_v15, %v155_v15  ;;  %v292_v46 = vsel %vm181_vm0, %v257_v32, 0.0 }
  0x16   : > { %v190_v16 = vadd.f32 %v189_v11, %v188_v13  ;;  %v289_v43 = vadd.f32 %v288_v34, %v287_v37  ;;  %v205_v50 = vsel %vm181_vm0, %v161_v47, 0.0  ;;  %v260_v51 = vmul.f32 %v156_v18, %v156_v18  ;;  %v166_v13 = vld [vmem:[%s482_s14 + $0x88] sm:$0xff] }
  0x17   : > { %v294_v52 = vsel %vm181_vm0, %v258_v39, 0.0  ;;  %v207_v56 = vsel %vm181_vm0, %v162_v53, 0.0  ;;  %v261_v57 = vmul.f32 %v157_v24, %v157_v24  ;;  %v296_v58 = vsel %vm181_vm0, %v259_v45, 0.0  ;;  %v170_v37 = vld [vmem:[%s482_s14 + $0xa8] sm:$0xff] }
  0x18   : > { %v192_v19 = vadd.f32 %v191_v14, %v190_v16  ;;  %v291_v49 = vadd.f32 %v290_v40, %v289_v43  ;;  %v209_v62 = vsel %vm181_vm0, %v163_v59, 0.0  ;;  %v262_v63 = vmul.f32 %v158_v28, %v158_v28  ;;  %v171_v43 = vld [vmem:[%s482_s14 + $0xb0] sm:$0xff] }
  0x19   : > { %v298_v0 = vsel %vm181_vm0, %v260_v51, 0.0  ;;  %v211_v4 = vsel %vm181_vm0, %v164_v1, 0.0  ;;  %v263_v5 = vmul.f32 %v159_v35, %v159_v35  ;;  %v300_v6 = vsel %vm181_vm0, %v261_v57, 0.0 }
  0x1a   : > { %v194_v25 = vadd.f32 %v193_v17, %v192_v19  ;;  %v293_v55 = vadd.f32 %v292_v46, %v291_v49  ;;  %v213_v10 = vsel %vm181_vm0, %v165_v7, 0.0  ;;  %v264_v11 = vmul.f32 %v160_v41, %v160_v41  ;;  %v167_v19 = vld [vmem:[%s482_s14 + $0x90] sm:$0xff]  ;;  %v172_v49 = vld [vmem:[%s482_s14 + $0xb8] sm:$0xff] }
  0x1b   : > { %v302_v12 = vsel %vm181_vm0, %v262_v63, 0.0  ;;  %v215_v16 = vsel %vm181_vm0, %v166_v13, 0.0  ;;  %v265_v17 = vmul.f32 %v161_v47, %v161_v47  ;;  %v304_v18 = vsel %vm181_vm0, %v263_v5, 0.0 }
  0x1c   : > { %v196_v29 = vadd.f32 %v195_v21, %v194_v25  ;;  %v295_v61 = vadd.f32 %v294_v52, %v293_v55  ;;  %v217_v22 = vsel %vm181_vm0, %v167_v19, 0.0  ;;  %v266_v23 = vmul.f32 %v162_v53, %v162_v53  ;;  %v168_v25 = vld [vmem:[%s482_s14 + $0x98] sm:$0xff]  ;;  %v173_v55 = vld [vmem:[%s482_s14 + $0xc0] sm:$0xff] }
  0x1d   : > { %v306_v24 = vsel %vm181_vm0, %v264_v11, 0.0  ;;  %v219_v28 = vsel %vm181_vm0, %v168_v25, 0.0  ;;  %v308_v30 = vsel %vm181_vm0, %v265_v17, 0.0  ;;  %v268_v35 = vmul.f32 %v164_v1, %v164_v1 }
  0x1e   : > { %v198_v36 = vadd.f32 %v197_v26, %v196_v29  ;;  %v297_v3 = vadd.f32 %v296_v58, %v295_v61  ;;  %v267_v29 = vmul.f32 %v163_v59, %v163_v59  ;;  %v223_v40 = vsel %vm181_vm0, %v170_v37, 0.0  ;;  %v174_v61 = vld [vmem:[%s482_s14 + $0xc8] sm:$0xff] }
  0x1f   : > { %v269_v41 = vmul.f32 %v165_v7, %v165_v7  ;;  %v225_v46 = vsel %vm181_vm0, %v171_v43, 0.0  ;;  %v270_v47 = vmul.f32 %v166_v13, %v166_v13  ;;  %v227_v52 = vsel %vm181_vm0, %v172_v49, 0.0 }
  0x20   : > { %v200_v42 = vadd.f32 %v199_v31, %v198_v36  ;;  %v299_v9 = vadd.f32 %v298_v0, %v297_v3  ;;  %v169_v31 = vld [vmem:[%s482_s14 + $0xa0] sm:$0xff]  ;;  %v310_v36 = vsel %vm181_vm0, %v266_v23, 0.0  ;;  %v271_v53 = vmul.f32 %v167_v19, %v167_v19  ;;  %v175_v3 = vld [vmem:[%s482_s14 + $0xd0] sm:$0xff] }
  0x21   : > { %v221_v34 = vsel %vm181_vm0, %v169_v31, 0.0  ;;  %v229_v58 = vsel %vm181_vm0, %v173_v55, 0.0  ;;  %v272_v59 = vmul.f32 %v168_v25, %v168_v25  ;;  %v231_v0 = vsel %vm181_vm0, %v174_v61, 0.0 }
  0x22   : > { %v202_v48 = vadd.f32 %v201_v38, %v200_v42  ;;  %v301_v15 = vadd.f32 %v300_v6, %v299_v9  ;;  %v312_v42 = vsel %vm181_vm0, %v267_v29, 0.0  ;;  %v273_v1 = vmul.f32 %v169_v31, %v169_v31  ;;  %v176_v9 = vld [vmem:[%s482_s14 + $0xd8] sm:$0xff] }
  0x23   : > { %v233_v6 = vsel %vm181_vm0, %v175_v3, 0.0  ;;  %v274_v7 = vmul.f32 %v170_v37, %v170_v37  ;;  %v275_v13 = vmul.f32 %v171_v43, %v171_v43  ;;  %v276_v19 = vmul.f32 %v172_v49, %v172_v49 }
  0x24   : > { %v204_v54 = vadd.f32 %v203_v44, %v202_v48  ;;  %v303_v21 = vadd.f32 %v302_v12, %v301_v15  ;;  %v314_v48 = vsel %vm181_vm0, %v268_v35, 0.0  ;;  %v235_v12 = vsel %vm181_vm0, %v176_v9, 0.0  ;;  %v177_v15 = vld [vmem:[%s482_s14 + $0xe0] sm:$0xff] }
  0x25   : > { %v277_v25 = vmul.f32 %v173_v55, %v173_v55  ;;  %v278_v31 = vmul.f32 %v174_v61, %v174_v61  ;;  %v279_v37 = vmul.f32 %v175_v3, %v175_v3 }
  0x26   : > { %v206_v60 = vadd.f32 %v205_v50, %v204_v54  ;;  %v305_v27 = vadd.f32 %v304_v18, %v303_v21  ;;  %v316_v54 = vsel %vm181_vm0, %v269_v41, 0.0  ;;  %v237_v18 = vsel %vm181_vm0, %v177_v15, 0.0  ;;  %v178_v21 = vld [vmem:[%s482_s14 + $0xe8] sm:$0xff] }
  0x27   : > { %v280_v41 = vmul.f32 %v176_v9, %v176_v9  ;;  %v282_v49 = vmul.f32 %v178_v21, %v178_v21 }
  0x28   : > { %v208_v2 = vadd.f32 %v207_v56, %v206_v60  ;;  %v307_v33 = vadd.f32 %v306_v24, %v305_v27  ;;  %v318_v60 = vsel %vm181_vm0, %v270_v47, 0.0  ;;  %v239_v24 = vsel %vm181_vm0, %v178_v21, 0.0  ;;  %v179_v27 = vld [vmem:[%s482_s14 + $0xf0] sm:$0xff] }
  0x2a   : > { %v210_v8 = vadd.f32 %v209_v62, %v208_v2  ;;  %v309_v39 = vadd.f32 %v308_v30, %v307_v33  ;;  %v320_v2 = vsel %vm181_vm0, %v271_v53, 0.0  ;;  %v241_v30 = vsel %vm181_vm0, %v179_v27, 0.0  ;;  %v180_v33 = vld [vmem:[%s482_s14 + $0xf8] sm:$0xff] }
  0x2b   : > { %v283_v53 = vmul.f32 %v179_v27, %v179_v27 }
  0x2c   : > { %v212_v14 = vadd.f32 %v211_v4, %v210_v8  ;;  %v311_v45 = vadd.f32 %v310_v36, %v309_v39  ;;  %v322_v8 = vsel %vm181_vm0, %v272_v59, 0.0  ;;  %v243_v36 = vsel %vm181_vm0, %v180_v33, 0.0 }
  0x2d   : > { %v344_v61 = vsel %vm181_vm0, %v283_v53, 0.0 }
  0x2e   : > { %v214_v20 = vadd.f32 %v213_v10, %v212_v14  ;;  %v313_v51 = vadd.f32 %v312_v42, %v311_v45  ;;  %v324_v14 = vsel %vm181_vm0, %v273_v1, 0.0  ;;  %v334_v42 = vsel %vm181_vm0, %v278_v31, 0.0 }
  0x2f   : > { %v281_v45 = vmul.f32 %v177_v15, %v177_v15 }
  0x30   : > { %v216_v26 = vadd.f32 %v215_v16, %v214_v20  ;;  %v315_v57 = vadd.f32 %v314_v48, %v313_v51  ;;  %v326_v20 = vsel %vm181_vm0, %v274_v7, 0.0 }
  0x32   : > { %v218_v32 = vadd.f32 %v217_v22, %v216_v26  ;;  %v317_v63 = vadd.f32 %v316_v54, %v315_v57  ;;  %v328_v26 = vsel %vm181_vm0, %v275_v13, 0.0  ;;  %v340_v54 = vsel %vm181_vm0, %v281_v45, 0.0 }
  0x33   : > { %v284_v57 = vmul.f32 %v180_v33, %v180_v33 }
  0x34   : > { %v220_v38 = vadd.f32 %v219_v28, %v218_v32  ;;  %v319_v5 = vadd.f32 %v318_v60, %v317_v63  ;;  %v330_v32 = vsel %vm181_vm0, %v276_v19, 0.0 }
  0x36   : > { %v222_v44 = vadd.f32 %v221_v34, %v220_v38  ;;  %v321_v11 = vadd.f32 %v320_v2, %v319_v5  ;;  %v332_v38 = vsel %vm181_vm0, %v277_v25, 0.0 }
  0x38   : > { %v224_v50 = vadd.f32 %v223_v40, %v222_v44  ;;  %v323_v17 = vadd.f32 %v322_v8, %v321_v11 }
  0x3a   : > { %v226_v56 = vadd.f32 %v225_v46, %v224_v50  ;;  %v325_v23 = vadd.f32 %v324_v14, %v323_v17  ;;  %v336_v46 = vsel %vm181_vm0, %v279_v37, 0.0  ;;  %v338_v50 = vsel %vm181_vm0, %v280_v41, 0.0 }
  0x3c   : > { %v228_v62 = vadd.f32 %v227_v52, %v226_v56  ;;  %v327_v29 = vadd.f32 %v326_v20, %v325_v23 }
  0x3e   : > { %v230_v4 = vadd.f32 %v229_v58, %v228_v62  ;;  %v329_v35 = vadd.f32 %v328_v26, %v327_v29  ;;  %v342_v58 = vsel %vm181_vm0, %v282_v49, 0.0 }
  0x40   : > { %v232_v10 = vadd.f32 %v231_v0, %v230_v4  ;;  %v331_v40 = vadd.f32 %v330_v32, %v329_v35  ;;  %v346_v0 = vsel %vm181_vm0, %v284_v57, 0.0 }
  0x42   : > { %v234_v16 = vadd.f32 %v233_v6, %v232_v10  ;;  %v333_v44 = vadd.f32 %v332_v38, %v331_v40 }
  0x44   : > { %v236_v22 = vadd.f32 %v235_v12, %v234_v16  ;;  %v335_v48 = vadd.f32 %v334_v42, %v333_v44 }
  0x46   : > { %v238_v28 = vadd.f32 %v237_v18, %v236_v22  ;;  %v337_v52 = vadd.f32 %v336_v46, %v335_v48 }
  0x48   : > { %v240_v34 = vadd.f32 %v239_v24, %v238_v28  ;;  %v339_v56 = vadd.f32 %v338_v50, %v337_v52 }
  0x4a   : > { %v242_v39 = vadd.f32 %v241_v30, %v240_v34  ;;  %v341_v60 = vadd.f32 %v340_v54, %v339_v56 }
  0x4c   : > { %v244_v43 = vadd.f32 %v243_v36, %v242_v39  ;;  %v343_v63 = vadd.f32 %v342_v58, %v341_v60 }
  0x4e   : > { %v245_v47 = vrot.slane %v244_v43, 4  ;;  %v345_v2 = vadd.f32 %v344_v61, %v343_v63 }
  0x50   : > { %v246_v51 = vadd.f32 %v245_v47, %v244_v43  ;;  %v347_v3 = vadd.f32 %v346_v0, %v345_v2 }
  0x52   : > { %v247_v55 = vrot.slane %v246_v51, 2  ;;  %v348_v4 = vrot.slane %v347_v3, 4 }
  0x54   : > { %v248_v59 = vadd.f32 %v247_v55, %v246_v51  ;;  %v349_v5 = vadd.f32 %v348_v4, %v347_v3 }
  0x56   : > { %v249_v62 = vrot.slane %v248_v59, 1  ;;  %v350_v6 = vrot.slane %v349_v5, 2 }
  0x58   : > { %v250_v1 = vadd.f32 %v249_v62, %v248_v59  ;;  %v351_v7 = vadd.f32 %v350_v6, %v349_v5 }
  0x5a   : > { %252 = vst.msk [vmem:[%s145_s17] sm:$0x1] %vm251_vm1, %v250_v1  ;;  %v352_v8 = vrot.slane %v351_v7, 1 }
  0x5c   : > { %v353_v9 = vadd.f32 %v352_v8, %v351_v7 }
  0x5e   : > { %354 = vst.msk [vmem:[%s148_s20] sm:$0x1] %vm251_vm1, %v353_v9 }
  0x5f PF: > { %s13_s9 = sadd.s32 1, %s451_s9  }
  0x60   : > { %p10_p4 = scmp.ge.s32.totalorder %s13_s9, 4  }
  0x62   :  { %12 = sbr.rel (!%p10_p4) target bundleno = 1 (0x1), region = 66 }

// kernel: wide_resnet_block.4
= control target key start
LH: loop header
LB: loop body
LE: loop exit
PB: predicated region body
PF: predicated region fallthrough
CT: control target
= control target key end

     0   :  { %s5426_s27 = smov 0   ;;  %s7713_s0 = inlined_call_operand.vmem [shape: f32[2,16,16,4], index: 0, kind: input, shape index: {}]   ;;  %s7714_s1 = inlined_call_operand.vmem [shape: f32[1,4], index: 1, kind: input, shape index: {}]   ;;  %s7715_s2 = inlined_call_operand.vmem [shape: f32[1,4], index: 2, kind: input, shape index: {}]   ;;  %s7716_s3 = inlined_call_operand.vmem [shape: bf16[36,8], index: 3, kind: input, shape index: {}]   ;;  %s7717_s4 = inlined_call_operand.vmem [shape: bf16[4,8], index: 4, kind: input, shape index: {}]   ;;  %s7718_s5 = inlined_call_operand.vmem [shape: bf16[2,256,8], index: 5, kind: output, shape index: {0}]   ;;  %s7719_s6 = inlined_call_operand.vmem [shape: bf16[2,256,8], index: 6, kind: output, shape index: {1}]   ;;  %s7720_s7 = inlined_call_operand.vmem [shape: f32[2,1,8], index: 7, kind: output, shape index: {2}]   ;;  %s7721_s8 = inlined_call_operand.vmem [shape: f32[2,1,8], index: 8, kind: output, shape index: {3}]  }
   0x1 LB: > { %s5151_s28 = sadd.s32 4294967295, %s5370_s27   ;;  %p5155_p0 = scmp.ge.s32.totalorder %s5370_s27, 1  ;;  %s5370_s27 = sphi %s5426_s27, %s19_s27  }
   0x2   : > { %p269_p1 = scmp.lt.s32.totalorder %s5370_s27, 3 }
   0x4   : > { %p270_p2 = pnand %p5155_p0, %p269_p1 }
   0x6   : > { %273 = sbr.rel (%p270_p2) target bundleno = 1056 (0x420), region = 40 }
   0xb   : > { %vm504_vm0 = vcmask 27648   ;;  %vm507_vm1 = vcmask 24576   ;;  %vm514_vm2 = vsmask.f32 256  ;;  %v5372_v0 = vmov 0   ;;  %p314_p3 = scmp.lt.s32.totalorder %s5151_s28, 1 }
   0xc   : > { %506 = vst.msk [vmem:[#allocation2 + $0x4] sm:$0xf] %vm504_vm0, %v5372_v0  ;;  %vm5438_vm3 = vmand %vm507_vm1, %vm514_vm2  ;;  %vm570_vm4 = vsmask.f32 7938  ;;  %v5450_v2 = vld [vmem:[%s7714_s1] ss:$0 sm:$0xff] }
   0xd   : > { %508 = vst.msk [vmem:[#allocation2 + $0x8] sm:$0x1] %vm507_vm1, %v5372_v0  ;;  %s7753_s28 = smov (!%p314_p3, %s5151_s28), 1  ;;  %v519_v3 = vld [vmem:[#allocation2 + $0xc] sm:$0x1]  ;;  %vm5463_vm5 = vmand %vm507_vm1, %vm570_vm4  ;;  %s5373_s15 = smov 4  }
   0xe   : > { %505 = vst.msk [vmem:[#allocation2] sm:$0xf] %vm504_vm0, %v5372_v0  ;;  %s5316_s9 = sshll.u32 %s7753_s28, 8  ;;  %v5457_v4 = vld [vmem:[%s7715_s2] ss:$0 sm:$0xff]  ;;  %v520_v5 = vsel %vm5438_vm3, 0, %v519_v3  ;;  %vm5518_vm9 = vmand %vm504_vm0, %vm570_vm4  ;;  %s334_s11 = scalar_lea.vmem %s7721_s8, %s7753_s28 }
   0xf   : > { %510 = vst.msk [vmem:[#allocation2 + $0xcc] sm:$0xf] %vm504_vm0, %v5372_v0  ;;  %s5470_s14 = scalar_lea.vmem %s7713_s0, %s5316_s9  ;;  %v575_v7 = vld [vmem:[#allocation2 + $0x14] sm:$0x1]  ;;  %v525_v8 = vld [vmem:[#allocation2 + $0x24] sm:$0x1] }
  0x10   : > { %511 = vst.msk [vmem:[#allocation2 + $0xd0] sm:$0xf] %vm504_vm0, %v5372_v0  ;;  %vm1175_vm6 = vsmask.f32 3328  ;;  %vm1176_vm7 = vsmask.f32 7440 }
  0x11   : > { %512 = vst.msk [vmem:[#allocation2 + $0xd4] sm:$0x1] %vm507_vm1, %v5372_v0  ;;  %v336_v10 = vld [vmem:[%s5470_s14] sm:$0xff]  ;;  %v337_v11 = vld [vmem:[%s5470_s14 + $0x8] sm:$0xff]  ;;  %v576_v12 = vsel %vm5463_vm5, 0, %v575_v7  ;;  %v526_v13 = vsel %vm5438_vm3, 0, %v525_v8  ;;  %vm5528_vm10 = vmor %vm1175_vm6, %vm1176_vm7 }
  0x12   : > { %521 = vst [vmem:[#allocation2 + $0xc] sm:$0x1] %v520_v5  ;;  %v372_v17 = vmul.f32 %v5450_v2, %v336_v10  ;;  %v373_v18 = vmul.f32 %v5450_v2, %v337_v11  ;;  %vm626_vm8 = vsmask.f32 4368  ;;  %v340_v21 = vld [vmem:[%s5470_s14 + $0x20] sm:$0xff]  ;;  %v341_v22 = vld [vmem:[%s5470_s14 + $0x28] sm:$0xff] }
  0x13   : > { %v1128_v9 = vld [vmem:[#allocation2 + $0x4] sm:$0xf]  ;;  %577 = vst [vmem:[#allocation2 + $0x14] sm:$0x1] %v576_v12  ;;  %v581_v27 = vld [vmem:[#allocation2 + $0x2c] sm:$0x1]  ;;  %v376_v29 = vmul.f32 %v5450_v2, %v340_v21  ;;  %v377_v30 = vmul.f32 %v5450_v2, %v341_v22  ;;  %vm5535_vm11 = vmor %vm514_vm2, %vm626_vm8 }
  0x14   : > { %v572_v14 = vld [vmem:[#allocation2 + $0x8] sm:$0x1]  ;;  %v1188_v15 = vshll.u32 %v1128_v9, 16  ;;  %v1192_v16 = vshrl.u32 %v1128_v9, 16  ;;  %v408_v25 = vadd.f32 %v5457_v4, %v372_v17  ;;  %v409_v26 = vadd.f32 %v5457_v4, %v373_v18  ;;  %527 = vst [vmem:[#allocation2 + $0x24] sm:$0x1] %v526_v13 }
  0x15   : > { %v573_v19 = vsel %vm5463_vm5, 0, %v572_v14  ;;  %v516_v20 = vld [vmem:[#allocation2] sm:$0x1]  ;;  %v582_v31 = vsel %vm5463_vm5, 0, %v581_v27  ;;  %v342_v32 = vld [vmem:[%s5470_s14 + $0x30] sm:$0xff]  ;;  %v343_v33 = vld [vmem:[%s5470_s14 + $0x38] sm:$0xff]  ;;  %v412_v39 = vadd.f32 %v5457_v4, %v376_v29  ;;  %v413_v40 = vadd.f32 %v5457_v4, %v377_v30 }
  0x16   : > { %574 = vst [vmem:[#allocation2 + $0x8] sm:$0x1] %v573_v19  ;;  %v5484_v23 = vrot.slane %v1188_v15, 5  ;;  %v1194_v24 = vrot.slane %v1192_v16, 4  ;;  %v517_v28 = vsel %vm5438_vm3, 0, %v516_v20  ;;  %v440_v35 = vmax.f32 %v408_v25, 0.0 }
  0x17   : > { %v441_v36 = vmax.f32 %v409_v26, 0.0  ;;  %518 = vst [vmem:[#allocation2] sm:$0x1] %v517_v28  ;;  %v378_v37 = vmul.f32 %v5450_v2, %v342_v32  ;;  %v584_v38 = vld [vmem:[#allocation2 + $0x38] sm:$0x1]  ;;  %v379_v41 = vmul.f32 %v5450_v2, %v343_v33  ;;  %v338_v43 = vld [vmem:[%s5470_s14 + $0x10] sm:$0xff] }
  0x18   : > { %v1195_v34 = vor.u32 %v1194_v24, %v5484_v23  ;;  %583 = vst [vmem:[#allocation2 + $0x2c] sm:$0x1] %v582_v31  ;;  %v585_v42 = vsel %vm5463_vm5, 0, %v584_v38  ;;  %v5504_v45 = vpack.c.bf16 %v440_v35, %v440_v35  ;;  %v444_v48 = vmax.f32 %v412_v39, 0.0  ;;  %v339_v51 = vld [vmem:[%s5470_s14 + $0x18] sm:$0xff]  ;;  %s5374_s20 = smov 8  }
  0x19   : > { %v5506_v46 = vpack.c.bf16 %v441_v36, %v441_v36  ;;  %v414_v47 = vadd.f32 %v5457_v4, %v378_v37  ;;  %586 = vst [vmem:[#allocation2 + $0x38] sm:$0x1] %v585_v42  ;;  %v445_v49 = vmax.f32 %v413_v40, 0.0  ;;  %v415_v50 = vadd.f32 %v5457_v4, %v379_v41  ;;  %v951_v7 = vld [vmem:[#allocation2 + $0xc] sm:$0xf]  ;;  %s5375_s21 = smov 12  }
  0x1a   : > { %v1196_v44 = vrot.slane %v1195_v34, 4  ;;  %v374_v52 = vmul.f32 %v5450_v2, %v338_v43  ;;  %v629_v53 = vshrl.u32 %v5504_v45, 16  ;;  %v632_v54 = vshll.u32 %v5504_v45, 16  ;;  %v955_v19 = vld [vmem:[#allocation2 + $0x14] sm:$0x1]  ;;  %s5376_s26 = smov 16  }
  0x1b   : > { %v637_v55 = vshrl.u32 %v5506_v46, 16  ;;  %v640_v56 = vshll.u32 %v5506_v46, 16  ;;  %v5522_v59 = vpack.c.bf16 %v444_v48, %v444_v48  ;;  %v5524_v60 = vpack.c.bf16 %v445_v49, %v445_v49  ;;  %v965_v29 = vld [vmem:[#allocation2 + $0x24] sm:$0xf]  ;;  %v522_v43 = vld [vmem:[#allocation2 + $0x18] sm:$0x1] }
  0x1c   : > { %v446_v61 = vmax.f32 %v414_v47, 0.0  ;;  %v447_v62 = vmax.f32 %v415_v50, 0.0  ;;  %v631_v3 = vrot.slane %v629_v53, 7  ;;  %v375_v8 = vmul.f32 %v5450_v2, %v339_v51  ;;  %v345_v51 = vld [vmem:[%s5470_s14 + $0x48] sm:$0xff]  ;;  %v5568_v53 = vld [vmem:[#allocation2 + $0x3c] sm:$0x1] }
  0x1d   : > { %v1129_v58 = vld [vmem:[#allocation2 + $0x8] sm:$0x1]  ;;  %v639_v5 = vrot.slane %v637_v55, 7  ;;  %v663_v11 = vshrl.u32 %v5522_v59, 16  ;;  %v666_v12 = vshll.u32 %v5522_v59, 16  ;;  %v671_v13 = vshrl.u32 %v5524_v60, 16 }
  0x1e   : > { %v1198_v0 = vshll.u32 %v1129_v58, 16  ;;  %v1127_v10 = vld [vmem:[#allocation2] sm:$0xf]  ;;  %v674_v14 = vshll.u32 %v5524_v60, 16  ;;  %v634_v16 = vor.u32 %v632_v54, %v631_v3  ;;  %v635_v17 = vrot.slane %v631_v3, 4  ;;  %s5377_s29 = smov 20  }
  0x1f   : > { %v642_v18 = vor.u32 %v640_v56, %v639_v5  ;;  %v1179_v20 = vshrl.u32 %v1127_v10, 16  ;;  %v1182_v21 = vshll.u32 %v1127_v10, 16  ;;  %v644_v22 = vrot.slane %v639_v5, 4  ;;  %v969_v34 = vld [vmem:[#allocation2 + $0x2c] sm:$0x1]  ;;  %s5378_s30 = smov 24  }
  0x20   : > { %v1200_v15 = vrot.slane %v1198_v0, 5  ;;  %v665_v24 = vrot.slane %v663_v11, 7  ;;  %v952_v27 = vsel %vm5518_vm9, %v634_v16, %v951_v7  ;;  %v673_v28 = vrot.slane %v671_v13, 7  ;;  %s5379_s9 = smov 28   ;;  %s5380_s10 = smov 32  }
  0x21   : > { %v643_v26 = vsel %vm5535_vm11, %v635_v17, %v642_v18  ;;  %953 = vst [vmem:[#allocation2 + $0xc] sm:$0xf] %v952_v27  ;;  %v1181_v30 = vrot.slane %v1179_v20, 4  ;;  %v1184_v31 = vrot.slane %v1182_v21, 5  ;;  %v956_v32 = vsel %vm5438_vm3, %v644_v22, %v955_v19  ;;  %v976_v22 = vld [vmem:[#allocation2 + $0x38] sm:$0x1] }
  0x22   : > { %v1201_v25 = vsel %vm5528_vm10, %v1196_v44, %v1200_v15  ;;  %v668_v33 = vor.u32 %v666_v12, %v665_v24  ;;  %954 = vst.msk [vmem:[#allocation2 + $0x10] sm:$0xf] %vm504_vm0, %v643_v26  ;;  %v669_v35 = vrot.slane %v665_v24, 4  ;;  %v676_v36 = vor.u32 %v674_v14, %v673_v28  ;;  %v344_v44 = vld [vmem:[%s5470_s14 + $0x40] sm:$0xff]  ;;  %s5317_s17 = sshll.u32 %s7753_s28, 7 }
  0x23   : > { %1564 = vrot.lane.b32.xlu0 %v1201_v25, %s5373_s15  ;;  %v678_v37 = vrot.slane %v673_v28, 4  ;;  %v5553_v38 = vpack.c.bf16 %v446_v61, %v446_v61  ;;  %v1185_v39 = vor.u32 %v1184_v31, %v1181_v30  ;;  %957 = vst [vmem:[#allocation2 + $0x14] sm:$0x1] %v956_v32  ;;  %v5557_v41 = vpack.c.bf16 %v447_v62, %v447_v62  ;;  %s7487_s25 = scalar_lea.vmem %s7719_s6, %s5317_s17 }
  0x24   : > { %v966_v40 = vsel %vm5518_vm9, %v668_v33, %v965_v29  ;;  %v410_v42 = vadd.f32 %v5457_v4, %v374_v52  ;;  %v677_v47 = vsel %vm5535_vm11, %v669_v35, %v676_v36  ;;  %v411_v50 = vadd.f32 %v5457_v4, %v375_v8 }
  0x25   : > { %967 = vst [vmem:[#allocation2 + $0x24] sm:$0xf] %v966_v40  ;;  %v970_v48 = vsel %vm5438_vm3, %v678_v37, %v969_v34  ;;  %v680_v49 = vshrl.u32 %v5553_v38, 16  ;;  %v1186_v54 = vrot.slane %v1185_v39, 4  ;;  %v688_v52 = vshrl.u32 %v5557_v41, 16 }
  0x26   : > { %968 = vst.msk [vmem:[#allocation2 + $0x28] sm:$0xf] %vm504_vm0, %v677_v47  ;;  %v691_v55 = vshll.u32 %v5557_v41, 16  ;;  %v442_v56 = vmax.f32 %v410_v42, 0.0  ;;  %v443_v61 = vmax.f32 %v411_v50, 0.0  ;;  %v523_v62 = vsel %vm5438_vm3, 0, %v522_v43 }
  0x27   : > { %971 = vst [vmem:[#allocation2 + $0x2c] sm:$0x1] %v970_v48  ;;  %v5573_v58 = vrot.slane %v680_v49, 7  ;;  %v380_v0 = vmul.f32 %v5450_v2, %v344_v44  ;;  %v1191_v3 = vsel %vm5528_vm10, %v1186_v54, %v5484_v23  ;;  %v690_v5 = vrot.slane %v688_v52, 7  ;;  %v346_v54 = vld [vmem:[%s5470_s14 + $0x50] sm:$0xff] }
  0x28   : > { %v5581_v7 = vpack.c.bf16 %v442_v56, %v442_v56  ;;  %524 = vst [vmem:[#allocation2 + $0x18] sm:$0x1] %v523_v62  ;;  %v381_v8 = vmul.f32 %v5450_v2, %v345_v51  ;;  %v1130_v10 = vld [vmem:[#allocation2 + $0xc] sm:$0xf]  ;;  %v5585_v12 = vpack.c.bf16 %v443_v61, %v443_v61  ;;  %v532_v14 = vsel %vm5438_vm3, 0, %v5568_v53  ;;  %v347_v62 = vld [vmem:[%s5470_s14 + $0x58] sm:$0xff] }
  0x29   : > { %v686_v11 = vrot.slane %v5573_v58, 4  ;;  %v5588_v13 = vadd.f32 %v5457_v4, %v380_v0  ;;  %v1131_v15 = vld [vmem:[#allocation2 + $0x10] sm:$0xf]  ;;  %v1203_v23 = vshrl.u32 %v1130_v10, 16  ;;  %v1206_v16 = vshll.u32 %v1130_v10, 16 }
  0x2a   : > { %v693_v17 = vor.u32 %v691_v55, %v690_v5  ;;  %v695_v18 = vrot.slane %v690_v5, 4  ;;  %v1212_v19 = vshll.u32 %v1131_v15, 16  ;;  %v1216_v20 = vshrl.u32 %v1131_v15, 16  ;;  %v1132_v21 = vld [vmem:[#allocation2 + $0x14] sm:$0x1] }
  0x2b   : > { %1562 = vrot.lane.b32.xlu0 %v1191_v3, %s5373_s15  ;;  %v646_v24 = vshrl.u32 %v5581_v7, 16  ;;  %v649_v25 = vshll.u32 %v5581_v7, 16  ;;  %v1205_v26 = vrot.slane %v1203_v23, 4  ;;  %v1208_v27 = vrot.slane %v1206_v16, 5  ;;  %533 = vst [vmem:[#allocation2 + $0x3c] sm:$0x1] %v532_v14 }
  0x2c   : > { %v1222_v28 = vshll.u32 %v1132_v21, 16  ;;  %v1136_v29 = vld [vmem:[#allocation2 + $0x24] sm:$0xf]  ;;  %v694_v30 = vsel %vm5535_vm11, %v686_v11, %v693_v17  ;;  %v1214_v31 = vrot.slane %v1212_v19, 5  ;;  %v1218_v32 = vrot.slane %v1216_v20, 4 }
  0x2d   : > { %v1137_v33 = vld [vmem:[#allocation2 + $0x28] sm:$0xf]  ;;  %v1251_v34 = vshrl.u32 %v1136_v29, 16  ;;  %v1254_v35 = vshll.u32 %v1136_v29, 16  ;;  %v1209_v36 = vor.u32 %v1208_v27, %v1205_v26  ;;  %975 = vst.msk [vmem:[#allocation2 + $0x34] sm:$0xf] %vm504_vm0, %v694_v30  ;;  %v977_v53 = vsel %vm5438_vm3, %v695_v18, %v976_v22 }
  0x2e   : > { %v5598_v37 = vrot.slane %v1222_v28, 5  ;;  %v1260_v39 = vshll.u32 %v1137_v33, 16  ;;  %v1264_v40 = vshrl.u32 %v1137_v33, 16  ;;  %v1138_v42 = vld [vmem:[#allocation2 + $0x2c] sm:$0x1]  ;;  %v1219_v43 = vor.u32 %v1218_v32, %v1214_v31 }
  0x2f   : > { %v1253_v44 = vrot.slane %v1251_v34, 4  ;;  %v1256_v47 = vrot.slane %v1254_v35, 5  ;;  %v1270_v48 = vshll.u32 %v1138_v42, 16  ;;  %v1210_v49 = vrot.slane %v1209_v36, 4  ;;  %978 = vst [vmem:[#allocation2 + $0x38] sm:$0x1] %v977_v53 }
  0x30   : > { %v1262_v50 = vrot.slane %v1260_v39, 5  ;;  %v1266_v51 = vrot.slane %v1264_v40, 4  ;;  %v1220_v52 = vrot.slane %v1219_v43, 4  ;;  %v648_v61 = vrot.slane %v646_v24, 7  ;;  %v958_v11 = vld [vmem:[#allocation2 + $0x18] sm:$0xf] }
  0x31   : > { %v1257_v55 = vor.u32 %v1256_v47, %v1253_v44  ;;  %v5604_v56 = vrot.slane %v1270_v48, 5  ;;  %v1215_v0 = vsel %vm5528_vm10, %v1210_v49, %v1214_v31  ;;  %v654_v5 = vshrl.u32 %v5585_v12, 16  ;;  %v534_v39 = vld [vmem:[#allocation2 + $0x48] sm:$0x1] }
  0x32   : > { %v1267_v3 = vor.u32 %v1266_v51, %v1262_v50  ;;  %v657_v10 = vshll.u32 %v5585_v12, 16  ;;  %1566 = vrot.lane.b32.xlu1 %v1215_v0, %s5373_s15  ;;  %v1225_v15 = vsel %vm5528_vm10, %v1220_v52, %v5598_v37  ;;  %v651_v16 = vor.u32 %v649_v25, %v648_v61  ;;  %v578_v51 = vld [vmem:[#allocation2 + $0x20] sm:$0x1]  ;;  %v979_v52 = vld [vmem:[#allocation2 + $0x3c] sm:$0xf] }
  0x33   : > { %v1258_v23 = vrot.slane %v1257_v55, 4  ;;  %v652_v17 = vrot.slane %v648_v61, 4  ;;  %v5617_v19 = vrot.slane %v654_v5, 7  ;;  %v417_v20 = vadd.f32 %v5457_v4, %v381_v8 }
  0x34   : > { %v5615_v18 = vrot.slane %v1267_v3, 4  ;;  %v448_v21 = vmax.f32 %v5588_v13, 0.0  ;;  %v959_v22 = vsel %vm5518_vm9, %v651_v16, %v958_v11  ;;  %v382_v24 = vmul.f32 %v5450_v2, %v346_v54  ;;  %v1140_v8 = vld [vmem:[#allocation2 + $0x34] sm:$0xf] }
  0x35   : > { %v1263_v14 = vsel %vm5528_vm10, %v1258_v23, %v1262_v50  ;;  %v383_v26 = vmul.f32 %v5450_v2, %v347_v62  ;;  %v659_v13 = vor.u32 %v657_v10, %v5617_v19  ;;  %960 = vst [vmem:[#allocation2 + $0x18] sm:$0xf] %v959_v22  ;;  %v449_v27 = vmax.f32 %v417_v20, 0.0 }
  0x36   : > { %1574 = vrot.lane.b32.xlu0 %v1263_v14, %s5373_s15  ;;  %v1273_v25 = vsel %vm5528_vm10, %v5615_v18, %v5604_v56  ;;  %v5633_v28 = vpack.c.bf16 %v448_v21, %v448_v21  ;;  %v1284_v29 = vshll.u32 %v1140_v8, 16  ;;  %v1288_v30 = vshrl.u32 %v1140_v8, 16  ;;  %v1141_v33 = vld [vmem:[#allocation2 + $0x38] sm:$0x1] }
  0x37   : > { %v418_v31 = vadd.f32 %v5457_v4, %v382_v24  ;;  %v419_v32 = vadd.f32 %v5457_v4, %v383_v26  ;;  %v660_v34 = vsel %vm5535_vm11, %v652_v17, %v659_v13  ;;  %v5639_v35 = vpack.c.bf16 %v449_v27, %v449_v27  ;;  %v348_v17 = vld [vmem:[%s5470_s14 + $0x60] sm:$0xff]  ;;  %v590_v24 = vld [vmem:[#allocation2 + $0x50] sm:$0x1] }
  0x38   : > { %v697_v36 = vshrl.u32 %v5633_v28, 16  ;;  %v700_v37 = vshll.u32 %v5633_v28, 16  ;;  %v5643_v40 = vrot.slane %v1284_v29, 5  ;;  %v1290_v42 = vrot.slane %v1288_v30, 4  ;;  %961 = vst.msk [vmem:[#allocation2 + $0x1c] sm:$0xf] %vm504_vm0, %v660_v34 }
  0x39   : > { %v1294_v43 = vshll.u32 %v1141_v33, 16  ;;  %v450_v44 = vmax.f32 %v418_v31, 0.0  ;;  %v705_v48 = vshrl.u32 %v5639_v35, 16  ;;  %v708_v49 = vshll.u32 %v5639_v35, 16  ;;  %v349_v29 = vld [vmem:[%s5470_s14 + $0x68] sm:$0xff] }
  0x3a   : > { %v699_v47 = vrot.slane %v697_v36, 7  ;;  %v451_v50 = vmax.f32 %v419_v32, 0.0  ;;  %1568 = vrot.lane.b32.xlu1 %v1225_v15, %s5373_s15  ;;  %v1291_v53 = vor.u32 %v1290_v42, %v5643_v40  ;;  %v535_v61 = vsel %vm5438_vm3, 0, %v534_v39  ;;  %v350_v36 = vld [vmem:[%s5470_s14 + $0x70] sm:$0xff] }
  0x3b   : > { %v1296_v54 = vrot.slane %v1294_v43, 5  ;;  %v5650_v55 = vpack.c.bf16 %v450_v44, %v450_v44  ;;  %v5654_v3 = vrot.slane %v705_v48, 7  ;;  %536 = vst [vmem:[#allocation2 + $0x48] sm:$0x1] %v535_v61  ;;  %v579_v16 = vsel %vm5463_vm5, 0, %v578_v51 }
  0x3c   : > { %v702_v62 = vor.u32 %v700_v37, %v699_v47  ;;  %v703_v0 = vrot.slane %v699_v47, 4  ;;  %v5656_v5 = vpack.c.bf16 %v451_v50, %v451_v50  ;;  %v1292_v10 = vrot.slane %v1291_v53, 4  ;;  %v1133_v11 = vld [vmem:[#allocation2 + $0x18] sm:$0xf]  ;;  %580 = vst [vmem:[#allocation2 + $0x20] sm:$0x1] %v579_v16 }
  0x3d   : > { %v714_v15 = vshrl.u32 %v5650_v55, 16  ;;  %v717_v23 = vshll.u32 %v5650_v55, 16  ;;  %v1227_v20 = vshrl.u32 %v1133_v11, 16  ;;  %v1230_v21 = vshll.u32 %v1133_v11, 16  ;;  %v593_v50 = vld [vmem:[#allocation2 + $0x5c] sm:$0x1] }
  0x3e   : > { %v710_v14 = vor.u32 %v708_v49, %v5654_v3  ;;  %v980_v22 = vsel %vm5518_vm9, %v702_v62, %v979_v52  ;;  %v1297_v26 = vsel %vm5528_vm10, %v1292_v10, %v1296_v54  ;;  %v722_v13 = vshrl.u32 %v5656_v5, 16  ;;  %v528_v51 = vld [vmem:[#allocation2 + $0x30] sm:$0x1]  ;;  %v351_v16 = vld [vmem:[%s5470_s14 + $0x78] sm:$0xff] }
  0x3f   : > { %981 = vst [vmem:[#allocation2 + $0x3c] sm:$0xf] %v980_v22  ;;  %v716_v8 = vrot.slane %v714_v15, 7  ;;  %v725_v27 = vshll.u32 %v5656_v5, 16  ;;  %1580 = vrot.lane.b32.xlu0 %v1297_v26, %s5373_s15  ;;  %v1134_v30 = vld [vmem:[#allocation2 + $0x1c] sm:$0xf]  ;;  %v384_v49 = vmul.f32 %v5450_v2, %v348_v17  ;;  %v385_v52 = vmul.f32 %v5450_v2, %v349_v29 }
  0x40   : > { %v1229_v31 = vrot.slane %v1227_v20, 4  ;;  %v1232_v32 = vrot.slane %v1230_v21, 5  ;;  %v711_v33 = vsel %vm5535_vm11, %v703_v0, %v710_v14  ;;  %v661_v34 = vrot.slane %v5617_v19, 4  ;;  %v353_v29 = vld [vmem:[%s5470_s14 + $0x88] sm:$0xff] }
  0x41   : > { %v1236_v37 = vshll.u32 %v1134_v30, 16  ;;  %v1240_v39 = vshrl.u32 %v1134_v30, 16  ;;  %982 = vst.msk [vmem:[#allocation2 + $0x40] sm:$0xf] %vm504_vm0, %v711_v33  ;;  %v719_v42 = vor.u32 %v717_v23, %v716_v8  ;;  %v720_v43 = vrot.slane %v716_v8, 4 }
  0x42   : > { %v1233_v44 = vor.u32 %v1232_v32, %v1229_v31  ;;  %v724_v47 = vrot.slane %v722_v13, 7  ;;  %v591_v48 = vsel %vm5463_vm5, 0, %v590_v24  ;;  %1576 = vrot.lane.b32.xlu1 %v1273_v25, %s5373_s15  ;;  %v986_v54 = vld [vmem:[#allocation2 + $0x48] sm:$0xf]  ;;  %v386_v61 = vmul.f32 %v5450_v2, %v350_v36 }
  0x43   : > { %v1238_v19 = vrot.slane %v1236_v37, 5  ;;  %v1242_v53 = vrot.slane %v1240_v39, 4  ;;  %592 = vst [vmem:[#allocation2 + $0x50] sm:$0x1] %v591_v48  ;;  %v987_v10 = vsel %vm5518_vm9, %v719_v42, %v986_v54  ;;  %v962_v15 = vld [vmem:[#allocation2 + $0x20] sm:$0x1]  ;;  %v420_v56 = vadd.f32 %v5457_v4, %v384_v49 }
  0x44   : > { %v1234_v62 = vrot.slane %v1233_v44, 4  ;;  %v727_v0 = vor.u32 %v725_v27, %v724_v47  ;;  %v729_v11 = vrot.slane %v724_v47, 4  ;;  %988 = vst [vmem:[#allocation2 + $0x48] sm:$0xf] %v987_v10  ;;  %v421_v18 = vadd.f32 %v5457_v4, %v385_v52  ;;  %v352_v27 = vld [vmem:[%s5470_s14 + $0x80] sm:$0xff] }
  0x45   : > { %v1243_v23 = vor.u32 %v1242_v53, %v1238_v19  ;;  %v594_v25 = vsel %vm5463_vm5, 0, %v593_v50  ;;  %v963_v14 = vsel %vm5438_vm3, %v661_v34, %v962_v15  ;;  %v529_v22 = vsel %vm5438_vm3, 0, %v528_v51 }
  0x46   : > { %v1239_v17 = vsel %vm5528_vm10, %v1234_v62, %v1238_v19  ;;  %v1142_v20 = vld [vmem:[#allocation2 + $0x3c] sm:$0xf]  ;;  %v728_v21 = vsel %vm5535_vm11, %v720_v43, %v727_v0  ;;  %595 = vst [vmem:[#allocation2 + $0x5c] sm:$0x1] %v594_v25  ;;  %v452_v13 = vmax.f32 %v420_v56, 0.0  ;;  %v453_v31 = vmax.f32 %v421_v18, 0.0 }
  0x47   : > { %1570 = vrot.lane.b32.xlu2 %v1239_v17, %s5373_s15  ;;  %v1299_v24 = vshrl.u32 %v1142_v20, 16  ;;  %v1302_v26 = vshll.u32 %v1142_v20, 16  ;;  %989 = vst.msk [vmem:[#allocation2 + $0x4c] sm:$0xf] %vm504_vm0, %v728_v21  ;;  %v5705_v8 = vrot.slane %v1243_v23, 4  ;;  %v683_v32 = vshll.u32 %v5553_v38, 16 }
  0x48   : > { %v5709_v30 = vld [vmem:[#allocation2 + $0x40] sm:$0xf]  ;;  %964 = vst [vmem:[#allocation2 + $0x20] sm:$0x1] %v963_v14  ;;  %v387_v33 = vmul.f32 %v5450_v2, %v351_v16  ;;  %v422_v34 = vadd.f32 %v5457_v4, %v386_v61  ;;  %v5716_v44 = vpack.c.bf16 %v452_v13, %v452_v13  ;;  %v5718_v47 = vpack.c.bf16 %v453_v31, %v453_v31 }
  0x49   : > { %v1301_v36 = vrot.slane %v1299_v24, 4  ;;  %v1304_v37 = vrot.slane %v1302_v26, 5  ;;  %v1308_v39 = vshll.u32 %v5709_v30, 16  ;;  %v1312_v42 = vshrl.u32 %v5709_v30, 16  ;;  %530 = vst [vmem:[#allocation2 + $0x30] sm:$0x1] %v529_v22 }
  0x4a   : > { %v990_v43 = vld [vmem:[#allocation2 + $0x50] sm:$0x1]  ;;  %v685_v48 = vor.u32 %v683_v32, %v5573_v58  ;;  %v423_v49 = vadd.f32 %v5457_v4, %v387_v33  ;;  %v454_v53 = vmax.f32 %v422_v34, 0.0  ;;  %v731_v52 = vshrl.u32 %v5716_v44, 16  ;;  %v540_v20 = vld [vmem:[#allocation2 + $0x60] sm:$0x1] }
  0x4b   : > { %v1305_v50 = vor.u32 %v1304_v37, %v1301_v36  ;;  %v5722_v51 = vrot.slane %v1308_v39, 5  ;;  %v991_v19 = vsel %vm5438_vm3, %v729_v11, %v990_v43  ;;  %v1145_v54 = vld [vmem:[#allocation2 + $0x48] sm:$0xf]  ;;  %v739_v61 = vshrl.u32 %v5718_v47, 16 }
  0x4c   : > { %992 = vst [vmem:[#allocation2 + $0x50] sm:$0x1] %v991_v19  ;;  %v388_v62 = vmul.f32 %v5450_v2, %v352_v27  ;;  %v389_v0 = vmul.f32 %v5450_v2, %v353_v29  ;;  %v1323_v10 = vshrl.u32 %v1145_v54, 16  ;;  %v1326_v15 = vshll.u32 %v1145_v54, 16  ;;  %v543_v19 = vld [vmem:[#allocation2 + $0x6c] sm:$0x1] }
  0x4d   : > { %v1306_v58 = vrot.slane %v1305_v50, 4  ;;  %v742_v23 = vshll.u32 %v5718_v47, 16  ;;  %v5731_v18 = vrot.slane %v731_v52, 7  ;;  %v741_v11 = vrot.slane %v739_v61, 7  ;;  %v997_v25 = vld [vmem:[#allocation2 + $0x5c] sm:$0x1] }
  0x4e   : > { %v1146_v56 = vld [vmem:[#allocation2 + $0x4c] sm:$0xf]  ;;  %v455_v16 = vmax.f32 %v423_v49, 0.0  ;;  %v5733_v17 = vpack.c.bf16 %v454_v53, %v454_v53  ;;  %v1325_v14 = vrot.slane %v1323_v10, 4  ;;  %v1328_v22 = vrot.slane %v1326_v15, 5 }
  0x4f   : > { %v1311_v21 = vsel %vm5528_vm10, %v1306_v58, %v5722_v51  ;;  %v1332_v24 = vshll.u32 %v1146_v56, 16  ;;  %v1135_v26 = vld [vmem:[#allocation2 + $0x20] sm:$0x1]  ;;  %v1336_v13 = vshrl.u32 %v1146_v56, 16  ;;  %v737_v29 = vrot.slane %v5731_v18, 4 }
  0x50   : > { %7738 = vst [vmem:[#allocation4_spill] sm:$0xff] %v5733_v17  ;;  %1582 = vrot.lane.b32.xlu1 %v1311_v21, %s5373_s15  ;;  %v1246_v27 = vshll.u32 %v1135_v26, 16  ;;  %v744_v31 = vor.u32 %v742_v23, %v741_v11  ;;  %v972_v32 = vld [vmem:[#allocation2 + $0x30] sm:$0xf]  ;;  %v1329_v33 = vor.u32 %v1328_v22, %v1325_v14  ;;  %v746_v36 = vrot.slane %v741_v11, 4 }
  0x51   : > { %v1334_v34 = vrot.slane %v1332_v24, 5  ;;  %v973_v37 = vsel %vm5518_vm9, %v685_v48, %v972_v32  ;;  %v1338_v43 = vrot.slane %v1336_v13, 4  ;;  %v5744_v50 = vpack.c.bf16 %v455_v16, %v455_v16  ;;  %v587_v56 = vld [vmem:[#allocation2 + $0x44] sm:$0x1] }
  0x52   : > { %v1248_v39 = vrot.slane %v1246_v27, 5  ;;  %v745_v49 = vsel %vm5535_vm11, %v737_v29, %v744_v31  ;;  %974 = vst [vmem:[#allocation2 + $0x30] sm:$0xf] %v973_v37  ;;  %v1330_v53 = vrot.slane %v1329_v33, 4  ;;  %v998_v52 = vsel %vm5438_vm3, %v746_v36, %v997_v25  ;;  %v599_v27 = vld [vmem:[#allocation2 + $0x74] sm:$0x1] }
  0x53   : > { %7739 = vst [vmem:[#allocation5_spill] sm:$0xff] %v5744_v50  ;;  %v1147_v54 = vld [vmem:[#allocation2 + $0x50] sm:$0x1]  ;;  %v541_v61 = vsel %vm5438_vm3, 0, %v540_v20  ;;  %v424_v48 = vadd.f32 %v5457_v4, %v388_v62  ;;  %v1339_v10 = vor.u32 %v1338_v43, %v1334_v34  ;;  %v748_v23 = vshrl.u32 %v5733_v17, 16 }
  0x54   : > { %996 = vst.msk [vmem:[#allocation2 + $0x58] sm:$0xf] %vm504_vm0, %v745_v49  ;;  %v1249_v58 = vsel %vm5528_vm10, %v5705_v8, %v1248_v39  ;;  %v1342_v15 = vshll.u32 %v1147_v54, 16  ;;  %v1335_v11 = vsel %vm5528_vm10, %v1330_v53, %v1334_v34  ;;  %v751_v25 = vshll.u32 %v5733_v17, 16 }
  0x55   : > { %999 = vst [vmem:[#allocation2 + $0x5c] sm:$0x1] %v998_v52  ;;  %1572 = vrot.lane.b32.xlu2 %v1249_v58, %s5373_s15  ;;  %v756_v62 = vshrl.u32 %v5744_v50, 16  ;;  %v759_v16 = vshll.u32 %v5744_v50, 16  ;;  %1586 = vrot.lane.b32.xlu0 %v1335_v11, %s5373_s15  ;;  %v1340_v8 = vrot.slane %v1339_v10, 4  ;;  %v750_v21 = vrot.slane %v748_v23, 7 }
  0x56   : > { %542 = vst [vmem:[#allocation2 + $0x60] sm:$0x1] %v541_v61  ;;  %v1344_v20 = vrot.slane %v1342_v15, 5  ;;  %v425_v14 = vadd.f32 %v5457_v4, %v389_v0  ;;  %v456_v24 = vmax.f32 %v424_v48, 0.0  ;;  %v544_v26 = vsel %vm5438_vm3, 0, %v543_v19  ;;  %v354_v10 = vld [vmem:[%s5470_s14 + $0x90] sm:$0xff] }
  0x57   : > { %v5764_v22 = vrot.slane %v756_v62, 7  ;;  %v588_v13 = vsel %vm5463_vm5, 0, %v587_v56  ;;  %v753_v31 = vor.u32 %v751_v25, %v750_v21  ;;  %v754_v32 = vrot.slane %v750_v21, 4  ;;  %545 = vst [vmem:[#allocation2 + $0x6c] sm:$0x1] %v544_v26 }
  0x58   : > { %v1345_v29 = vsel %vm5528_vm10, %v1340_v8, %v1344_v20  ;;  %v457_v33 = vmax.f32 %v425_v14, 0.0  ;;  %v5774_v36 = vpack.c.bf16 %v456_v24, %v456_v24  ;;  %589 = vst [vmem:[#allocation2 + $0x44] sm:$0x1] %v588_v13  ;;  %v712_v37 = vrot.slane %v5654_v3, 4  ;;  %v355_v8 = vld [vmem:[%s5470_s14 + $0x98] sm:$0xff] }
  0x59   : > { %1588 = vrot.lane.b32.xlu1 %v1345_v29, %s5373_s15  ;;  %v1139_v0 = vld [vmem:[#allocation2 + $0x30] sm:$0xf]  ;;  %v761_v34 = vor.u32 %v759_v16, %v5764_v22  ;;  %v1314_v39 = vrot.slane %v1312_v42, 4  ;;  %v600_v54 = vsel %vm5463_vm5, 0, %v599_v27  ;;  %v602_v26 = vld [vmem:[#allocation2 + $0x80] sm:$0x1] }
  0x5a   : > { %7740 = vst [vmem:[#allocation6_spill] sm:$0xff] %v5774_v36  ;;  %v1275_v49 = vshrl.u32 %v1139_v0, 16  ;;  %v1278_v19 = vshll.u32 %v1139_v0, 16  ;;  %v5779_v53 = vpack.c.bf16 %v457_v33, %v457_v33  ;;  %v765_v3 = vshrl.u32 %v5774_v36, 16  ;;  %v555_v50 = vld [vmem:[#allocation2 + $0x9c] sm:$0x1] }
  0x5b   : > { %v1149_v43 = vld [vmem:[#allocation2 + $0x58] sm:$0xf]  ;;  %v762_v58 = vsel %vm5535_vm11, %v754_v32, %v761_v34  ;;  %v768_v56 = vshll.u32 %v5774_v36, 16  ;;  %601 = vst [vmem:[#allocation2 + $0x74] sm:$0x1] %v600_v54  ;;  %vm1787_vm12 = vcmask 1042432  }
  0x5c   : > { %7741 = vst [vmem:[#allocation7_spill] sm:$0xff] %v5779_v53  ;;  %v1150_v52 = vld [vmem:[#allocation2 + $0x5c] sm:$0x1]  ;;  %v1356_v61 = vshll.u32 %v1149_v43, 16  ;;  %v1360_v48 = vshrl.u32 %v1149_v43, 16  ;;  %v1277_v42 = vrot.slane %v1275_v49, 4  ;;  %v390_v43 = vmul.f32 %v5450_v2, %v354_v10 }
  0x5d   : > { %v1366_v30 = vshll.u32 %v1150_v52, 16  ;;  %v1280_v15 = vrot.slane %v1278_v19, 5  ;;  %v1000_v23 = vld [vmem:[#allocation2 + $0x60] sm:$0xf]  ;;  %1003 = vst.msk [vmem:[#allocation2 + $0x64] sm:$0xf] %vm504_vm0, %v762_v58  ;;  %v391_v49 = vmul.f32 %v5450_v2, %v355_v8 }
  0x5e   : > { %v5788_v11 = vrot.slane %v1356_v61, 5  ;;  %v1362_v25 = vrot.slane %v1360_v48, 4  ;;  %v1001_v62 = vsel %vm5518_vm9, %v753_v31, %v1000_v23  ;;  %v767_v16 = vrot.slane %v765_v3, 7  ;;  %v1007_v32 = vld [vmem:[#allocation2 + $0x6c] sm:$0xf] }
  0x5f   : > { %v1368_v20 = vrot.slane %v1366_v30, 5  ;;  %v1281_v21 = vor.u32 %v1280_v15, %v1277_v42  ;;  %1002 = vst [vmem:[#allocation2 + $0x60] sm:$0xf] %v1001_v62  ;;  %v773_v14 = vshrl.u32 %v5779_v53, 16  ;;  %v776_v24 = vshll.u32 %v5779_v53, 16  ;;  %v357_v30 = vld [vmem:[%s5470_s14 + $0xa8] sm:$0xff] }
  0x60   : > { %v1363_v13 = vor.u32 %v1362_v25, %v5788_v11  ;;  %v770_v27 = vor.u32 %v768_v56, %v767_v16  ;;  %v771_v29 = vrot.slane %v767_v16, 4  ;;  %v1315_v31 = vor.u32 %v1314_v39, %v5722_v51  ;;  %v983_v34 = vld [vmem:[#allocation2 + $0x44] sm:$0x1]  ;;  %v537_v19 = vld [vmem:[#allocation2 + $0x54] sm:$0x1] }
  0x61   : > { %v1282_v33 = vrot.slane %v1281_v21, 4  ;;  %v775_v0 = vrot.slane %v773_v14, 7  ;;  %v984_v48 = vsel %vm5438_vm3, %v712_v37, %v983_v34  ;;  %v356_v51 = vld [vmem:[%s5470_s14 + $0xa0] sm:$0xff]  ;;  %v426_v10 = vadd.f32 %v5457_v4, %v390_v43  ;;  %v358_v42 = vld [vmem:[%s5470_s14 + $0xb0] sm:$0xff] }
  0x62   : > { %v1364_v52 = vrot.slane %v1363_v13, 4  ;;  %v1008_v61 = vsel %vm5518_vm9, %v770_v27, %v1007_v32  ;;  %v5804_v58 = vrot.slane %v1315_v31, 4  ;;  %985 = vst [vmem:[#allocation2 + $0x44] sm:$0x1] %v984_v48  ;;  %v427_v37 = vadd.f32 %v5457_v4, %v391_v49  ;;  %v1011_v32 = vld [vmem:[#allocation2 + $0x74] sm:$0x1] }
  0x63   : > { %v1287_v39 = vsel %vm5528_vm10, %v1282_v33, %v5643_v40  ;;  %v778_v54 = vor.u32 %v776_v24, %v775_v0  ;;  %1009 = vst [vmem:[#allocation2 + $0x6c] sm:$0xf] %v1008_v61  ;;  %v780_v3 = vrot.slane %v775_v0, 4  ;;  %v603_v23 = vsel %vm5463_vm5, 0, %v602_v26  ;;  %v359_v0 = vld [vmem:[%s5470_s14 + $0xb8] sm:$0xff] }
  0x64   : > { %v1369_v15 = vsel %vm5528_vm10, %v1364_v52, %v1368_v20  ;;  %1578 = vrot.lane.b32.xlu2 %v1287_v39, %s5373_s15  ;;  %v538_v40 = vsel %vm5438_vm3, 0, %v537_v19  ;;  %v5822_v56 = vld [vmem:[#allocation2 + $0x64] sm:$0xf]  ;;  %v458_v62 = vmax.f32 %v426_v10, 0.0  ;;  %604 = vst [vmem:[#allocation2 + $0x80] sm:$0x1] %v603_v23  ;;  %v392_v8 = vmul.f32 %v5450_v2, %v356_v51 }
  0x65   : > { %1592 = vrot.lane.b32.xlu0 %v1369_v15, %s5373_s15  ;;  %v779_v25 = vsel %vm5535_vm11, %v771_v29, %v778_v54  ;;  %v734_v16 = vshll.u32 %v5716_v44, 16  ;;  %v549_v20 = vld [vmem:[#allocation2 + $0x84] sm:$0x1]  ;;  %v1380_v14 = vshll.u32 %v5822_v56, 16  ;;  %v1384_v24 = vshrl.u32 %v5822_v56, 16 }
  0x66   : > { %v1151_v21 = vld [vmem:[#allocation2 + $0x60] sm:$0xf]  ;;  %1010 = vst.msk [vmem:[#allocation2 + $0x70] sm:$0xf] %vm504_vm0, %v779_v25  ;;  %v393_v26 = vmul.f32 %v5450_v2, %v357_v30  ;;  %v5833_v13 = vmul.f32 %v5450_v2, %v358_v42  ;;  %v459_v31 = vmax.f32 %v427_v37, 0.0  ;;  %v5835_v33 = vpack.c.bf16 %v458_v62, %v458_v62 }
  0x67   : > { %v1371_v27 = vshrl.u32 %v1151_v21, 16  ;;  %v1374_v29 = vshll.u32 %v1151_v21, 16  ;;  %v5838_v34 = vrot.slane %v1380_v14, 5  ;;  %v1012_v43 = vsel %vm5438_vm3, %v780_v3, %v1011_v32  ;;  %539 = vst [vmem:[#allocation2 + $0x54] sm:$0x1] %v538_v40 }
  0x68   : > { %v736_v49 = vor.u32 %v734_v16, %v5731_v18  ;;  %v428_v19 = vadd.f32 %v5457_v4, %v392_v8  ;;  %1013 = vst [vmem:[#allocation2 + $0x74] sm:$0x1] %v1012_v43  ;;  %v5844_v48 = vpack.c.bf16 %v459_v31, %v459_v31  ;;  %v782_v51 = vshrl.u32 %v5835_v33, 16 }
  0x69   : > { %v1373_v52 = vrot.slane %v1371_v27, 4  ;;  %v1376_v61 = vrot.slane %v1374_v29, 5  ;;  %v429_v54 = vadd.f32 %v5457_v4, %v393_v26  ;;  %v550_v30 = vsel %vm5438_vm3, 0, %v549_v20  ;;  %v1144_v37 = vld [vmem:[#allocation2 + $0x44] sm:$0x1] }
  0x6a   : > { %v1154_v39 = vld [vmem:[#allocation2 + $0x6c] sm:$0xf]  ;;  %v460_v10 = vmax.f32 %v428_v19, 0.0  ;;  %v395_v3 = vmul.f32 %v5450_v2, %v359_v0  ;;  %v5851_v23 = vrot.slane %v782_v51, 7  ;;  %v1318_v40 = vshll.u32 %v1144_v37, 16 }
  0x6b   : > { %v1377_v42 = vor.u32 %v1376_v61, %v1373_v52  ;;  %v1395_v18 = vshrl.u32 %v1154_v39, 16  ;;  %v1398_v15 = vshll.u32 %v1154_v39, 16  ;;  %v790_v25 = vshrl.u32 %v5844_v48, 16  ;;  %551 = vst [vmem:[#allocation2 + $0x84] sm:$0x1] %v550_v30 }
  0x6c   : > { %v793_v62 = vshll.u32 %v5844_v48, 16  ;;  %v461_v16 = vmax.f32 %v429_v54, 0.0  ;;  %v788_v20 = vrot.slane %v5851_v23, 4  ;;  %v1320_v27 = vrot.slane %v1318_v40, 5  ;;  %v1018_v30 = vld [vmem:[#allocation2 + $0x80] sm:$0x1] }
  0x6d   : > { %v1378_v8 = vrot.slane %v1377_v42, 4  ;;  %v1155_v4 = vld [vmem:[#allocation2 + $0x70] sm:$0xf]  ;;  %v1397_v21 = vrot.slane %v1395_v18, 4  ;;  %v1400_v14 = vrot.slane %v1398_v15, 5  ;;  %v792_v29 = vrot.slane %v790_v25, 7 }
  0x6e   : > { %v1404_v26 = vshll.u32 %v1155_v4, 16  ;;  %v1408_v2 = vshrl.u32 %v1155_v4, 16  ;;  %v993_v0 = vld [vmem:[#allocation2 + $0x54] sm:$0xf]  ;;  %v5859_v43 = vpack.c.bf16 %v460_v10, %v460_v10  ;;  %v5861_v19 = vpack.c.bf16 %v461_v16, %v461_v16  ;;  %v552_v37 = vld [vmem:[#allocation2 + $0x90] sm:$0x1] }
  0x6f   : > { %v1383_v32 = vsel %vm5528_vm10, %v1378_v8, %v5838_v34  ;;  %v1401_v31 = vor.u32 %v1400_v14, %v1397_v21  ;;  %v1321_v61 = vsel %vm5528_vm10, %v5804_v58, %v1320_v27  ;;  %v1156_v51 = vld [vmem:[#allocation2 + $0x74] sm:$0x1]  ;;  %v795_v54 = vor.u32 %v793_v62, %v792_v29  ;;  %v596_v62 = vld [vmem:[#allocation2 + $0x68] sm:$0x1] }
  0x70   : > { %1594 = vrot.lane.b32.xlu1 %v1383_v32, %s5373_s15  ;;  %v1406_v52 = vrot.slane %v1404_v26, 5  ;;  %v1410_v39 = vrot.slane %v1408_v2, 4  ;;  %1584 = vrot.lane.b32.xlu2 %v1321_v61, %s5373_s15  ;;  %v1414_v18 = vshll.u32 %v1156_v51, 16  ;;  %v797_v15 = vrot.slane %v792_v29, 4  ;;  %v5885_v2 = vld [vmem:[%s7715_s2] ss:$0 sm:$0xff] }
  0x71   : > { %v1402_v42 = vrot.slane %v1401_v31, 4  ;;  %v994_v10 = vsel %vm5518_vm9, %v736_v49, %v993_v0  ;;  %v796_v25 = vsel %vm5535_vm11, %v788_v20, %v795_v54  ;;  %v799_v58 = vshrl.u32 %v5859_v43, 16  ;;  %v360_v61 = vld [vmem:[%s5470_s14 + $0xc0] sm:$0xff] }
  0x72   : > { %v1411_v40 = vor.u32 %v1410_v39, %v1406_v52  ;;  %995 = vst [vmem:[#allocation2 + $0x54] sm:$0xf] %v994_v10  ;;  %v802_v16 = vshll.u32 %v5859_v43, 16  ;;  %v1416_v4 = vrot.slane %v1414_v18, 5  ;;  %v1019_v49 = vsel %vm5438_vm3, %v797_v15, %v1018_v30  ;;  %v1021_v32 = vld [vmem:[#allocation2 + $0x84] sm:$0xf] }
  0x73   : > { %v1407_v8 = vsel %vm5528_vm10, %v1402_v42, %v1406_v52  ;;  %1017 = vst.msk [vmem:[#allocation2 + $0x7c] sm:$0xf] %vm504_vm0, %v796_v25  ;;  %v807_v21 = vshrl.u32 %v5861_v19, 16  ;;  %v801_v20 = vrot.slane %v799_v58, 7  ;;  %v810_v26 = vshll.u32 %v5861_v19, 16  ;;  %v361_v15 = vld [vmem:[%s5470_s14 + $0xc8] sm:$0xff] }
  0x74   : > { %1598 = vrot.lane.b32.xlu0 %v1407_v8, %s5373_s15  ;;  %v1412_v14 = vrot.slane %v1411_v40, 4  ;;  %1020 = vst [vmem:[#allocation2 + $0x80] sm:$0x1] %v1019_v49  ;;  %v430_v27 = vadd.f32 %v5885_v2, %v5833_v13  ;;  %v431_v31 = vadd.f32 %v5885_v2, %v395_v3  ;;  %v553_v0 = vsel %vm5438_vm3, 0, %v552_v37  ;;  %v608_v13 = vld [vmem:[#allocation2 + $0x98] sm:$0x1] }
  0x75   : > { %v5889_v29 = vrot.slane %v807_v21, 7  ;;  %v597_v52 = vsel %vm5463_vm5, 0, %v596_v62  ;;  %v804_v39 = vor.u32 %v802_v16, %v801_v20  ;;  %v805_v54 = vrot.slane %v801_v20, 4  ;;  %554 = vst [vmem:[#allocation2 + $0x90] sm:$0x1] %v553_v0 }
  0x76   : > { %v1417_v51 = vsel %vm5528_vm10, %v1412_v14, %v1416_v4  ;;  %v462_v30 = vmax.f32 %v430_v27, 0.0  ;;  %v463_v18 = vmax.f32 %v431_v31, 0.0  ;;  %598 = vst [vmem:[#allocation2 + $0x68] sm:$0x1] %v597_v52  ;;  %v1386_v3 = vrot.slane %v1384_v24, 4 }
  0x77   : > { %v812_v42 = vor.u32 %v810_v26, %v5889_v29  ;;  %v1022_v10 = vsel %vm5518_vm9, %v804_v39, %v1021_v32  ;;  %v763_v40 = vrot.slane %v5764_v22, 4  ;;  %v5912_v25 = vld [vmem:[%s7714_s1] ss:$0 sm:$0xff]  ;;  %v609_v8 = vsel %vm5463_vm5, 0, %v608_v13  ;;  %v362_v22 = vld [vmem:[%s5470_s14 + $0xd0] sm:$0xff] }
  0x78   : > { %1600 = vrot.lane.b32.xlu1 %v1417_v51, %s5373_s15  ;;  %v5906_v37 = vpack.c.bf16 %v462_v30, %v462_v30  ;;  %v396_v58 = vmul.f32 %v5912_v25, %v360_v61  ;;  %1023 = vst [vmem:[#allocation2 + $0x84] sm:$0xf] %v1022_v10  ;;  %v5917_v24 = vpack.c.bf16 %v463_v18, %v463_v18  ;;  %vm1788_vm13 = vcmask 1046532  }
  0x79   : > { %v1148_v16 = vld [vmem:[#allocation2 + $0x54] sm:$0xf]  ;;  %v813_v56 = vsel %vm5535_vm11, %v805_v54, %v812_v42  ;;  %v1387_v62 = vor.u32 %v1386_v3, %v5838_v34  ;;  %v397_v14 = vmul.f32 %v5912_v25, %v361_v15  ;;  %610 = vst [vmem:[#allocation2 + $0x98] sm:$0x1] %v609_v8  ;;  %vm1658_vm14 = vcmask 60448   ;;  %vm6097_vm15 = vmor %vm1787_vm12, %vm1788_vm13 }
  0x7a   : > { %v1158_v4 = vld [vmem:[#allocation2 + $0x7c] sm:$0xf]  ;;  %v1347_v49 = vshrl.u32 %v1148_v16, 16  ;;  %v1350_v21 = vshll.u32 %v1148_v16, 16  ;;  %1024 = vst.msk [vmem:[#allocation2 + $0x88] sm:$0xf] %vm504_vm0, %v813_v56  ;;  %v5926_v20 = vadd.f32 %v5885_v2, %v396_v58  ;;  %v398_v58 = vmul.f32 %v5912_v25, %v362_v22 }
  0x7b   : > { %v1159_v26 = vld [vmem:[#allocation2 + $0x80] sm:$0x1]  ;;  %v1428_v27 = vshll.u32 %v1158_v4, 16  ;;  %v1432_v32 = vshrl.u32 %v1158_v4, 16  ;;  %v816_v31 = vshrl.u32 %v5906_v37, 16  ;;  %v819_v34 = vshll.u32 %v5906_v37, 16 }
  0x7c   : > { %v1438_v0 = vshll.u32 %v1159_v26, 16  ;;  %v1349_v52 = vrot.slane %v1347_v49, 4  ;;  %v1352_v61 = vrot.slane %v1350_v21, 5  ;;  %v824_v51 = vshrl.u32 %v5917_v24, 16  ;;  %v1028_v15 = vld [vmem:[#allocation2 + $0x90] sm:$0xf] }
  0x7d   : > { %v5931_v39 = vrot.slane %v1428_v27, 5  ;;  %v1434_v54 = vrot.slane %v1432_v32, 4  ;;  %v818_v30 = vrot.slane %v816_v31, 7  ;;  %v827_v13 = vshll.u32 %v5917_v24, 16  ;;  %v1004_v10 = vld [vmem:[#allocation2 + $0x68] sm:$0x1] }
  0x7e   : > { %v1440_v42 = vrot.slane %v1438_v0, 5  ;;  %v1353_v18 = vor.u32 %v1352_v61, %v1349_v52  ;;  %v826_v3 = vrot.slane %v824_v51, 7  ;;  %v1005_v8 = vsel %vm5438_vm3, %v763_v40, %v1004_v10  ;;  %v363_v49 = vld [vmem:[%s5470_s14 + $0xd8] sm:$0xff]  ;;  %v611_v0 = vld [vmem:[#allocation2 + $0xa4] sm:$0x1] }
  0x7f   : > { %v1435_v16 = vor.u32 %v1434_v54, %v5931_v39  ;;  %v821_v56 = vor.u32 %v819_v34, %v818_v30  ;;  %v822_v4 = vrot.slane %v818_v30, 4  ;;  %v1160_v26 = vld [vmem:[#allocation2 + $0x84] sm:$0xf]  ;;  %1006 = vst [vmem:[#allocation2 + $0x68] sm:$0x1] %v1005_v8  ;;  %v433_v31 = vadd.f32 %v5885_v2, %v397_v14 }
  0x80   : > { %v1354_v21 = vrot.slane %v1353_v18, 4  ;;  %v829_v27 = vor.u32 %v827_v13, %v826_v3  ;;  %v831_v32 = vrot.slane %v826_v3, 4  ;;  %v1443_v22 = vshrl.u32 %v1160_v26, 16  ;;  %v546_v13 = vld [vmem:[#allocation2 + $0x78] sm:$0x1]  ;;  %v364_v8 = vld [vmem:[%s5470_s14 + $0xe0] sm:$0xff] }
  0x81   : > { %v1436_v52 = vrot.slane %v1435_v16, 4  ;;  %v5940_v61 = vld [vmem:[#allocation2 + $0x88] sm:$0xf]  ;;  %v1446_v51 = vshll.u32 %v1160_v26, 16  ;;  %v1029_v34 = vsel %vm5518_vm9, %v821_v56, %v1028_v15  ;;  %v1388_v14 = vrot.slane %v1387_v62, 4 }
  0x82   : > { %v1359_v40 = vsel %vm5528_vm10, %v1354_v21, %v5788_v11  ;;  %v1452_v54 = vshll.u32 %v5940_v61, 16  ;;  %v830_v30 = vsel %vm5535_vm11, %v822_v4, %v829_v27  ;;  %1030 = vst [vmem:[#allocation2 + $0x90] sm:$0xf] %v1029_v34  ;;  %v1445_v3 = vrot.slane %v1443_v22, 4  ;;  %v1032_v10 = vld [vmem:[#allocation2 + $0x98] sm:$0x1] }
  0x83   : > { %v1441_v18 = vsel %vm5528_vm10, %v1436_v52, %v1440_v42  ;;  %1590 = vrot.lane.b32.xlu2 %v1359_v40, %s5373_s15  ;;  %v1448_v15 = vrot.slane %v1446_v51, 5  ;;  %1031 = vst.msk [vmem:[#allocation2 + $0x94] sm:$0xf] %vm504_vm0, %v830_v30  ;;  %v399_v11 = vmul.f32 %v5912_v25, %v363_v49  ;;  %v1033_v62 = vsel %vm5438_vm3, %v831_v32, %v1032_v10  ;;  %v558_v4 = vld [vmem:[#allocation2 + $0xa8] sm:$0x1] }
  0x84   : > { %1604 = vrot.lane.b32.xlu0 %v1441_v18, %s5373_s15  ;;  %v5956_v16 = vrot.slane %v1452_v54, 5  ;;  %v464_v56 = vmax.f32 %v5926_v20, 0.0  ;;  %v465_v42 = vmax.f32 %v433_v31, 0.0  ;;  %1034 = vst [vmem:[#allocation2 + $0x98] sm:$0x1] %v1033_v62  ;;  %v612_v26 = vsel %vm5463_vm5, 0, %v611_v0 }
  0x85   : > { %v1449_v21 = vor.u32 %v1448_v15, %v1445_v3  ;;  %v547_v49 = vsel %vm5438_vm3, 0, %v546_v13  ;;  %v785_v27 = vshll.u32 %v5835_v33, 16  ;;  %613 = vst [vmem:[#allocation2 + $0xa4] sm:$0x1] %v612_v26  ;;  %v434_v20 = vadd.f32 %v5885_v2, %v398_v58  ;;  %v365_v31 = vld [vmem:[%s5470_s14 + $0xe8] sm:$0xff] }
  0x86   : > { %v5967_v52 = vpack.c.bf16 %v464_v56, %v464_v56  ;;  %v5969_v22 = vpack.c.bf16 %v465_v42, %v465_v42  ;;  %v435_v32 = vadd.f32 %v5885_v2, %v399_v11  ;;  %v1153_v34 = vld [vmem:[#allocation2 + $0x68] sm:$0x1]  ;;  %548 = vst [vmem:[#allocation2 + $0x78] sm:$0x1] %v547_v49  ;;  %v559_v40 = vsel %vm5438_vm3, 0, %v558_v4 }
  0x87   : > { %v1450_v51 = vrot.slane %v1449_v21, 4  ;;  %v787_v0 = vor.u32 %v785_v27, %v5851_v23  ;;  %v400_v54 = vmul.f32 %v5912_v25, %v364_v8  ;;  %v1390_v30 = vshll.u32 %v1153_v34, 16  ;;  %560 = vst [vmem:[#allocation2 + $0xa8] sm:$0x1] %v559_v40  ;;  %v2052_v57 = vld [vmem:[#allocation2 + $0x88] sm:$0xf] }
  0x88   : > { %v833_v13 = vshrl.u32 %v5967_v52, 16  ;;  %v841_v18 = vshrl.u32 %v5969_v22, 16  ;;  %v844_v58 = vshll.u32 %v5969_v22, 16  ;;  %v466_v10 = vmax.f32 %v434_v20, 0.0  ;;  %v2050_v9 = vld [vmem:[#allocation2 + $0x7c] sm:$0xf] }
  0x89   : > { %v1455_v3 = vsel %vm5528_vm10, %v1450_v51, %v5956_v16  ;;  %v1163_v15 = vld [vmem:[#allocation2 + $0x90] sm:$0xf]  ;;  %v467_v23 = vmax.f32 %v435_v32, 0.0  ;;  %v401_v11 = vmul.f32 %v5912_v25, %v365_v31  ;;  %v1392_v4 = vrot.slane %v1390_v30, 5 }
  0x8a   : > { %1606 = vrot.lane.b32.xlu1 %v1455_v3, %s5373_s15  ;;  %v1164_v62 = vld [vmem:[#allocation2 + $0x94] sm:$0xf]  ;;  %v1467_v56 = vshrl.u32 %v1163_v15, 16  ;;  %v1470_v42 = vshll.u32 %v1163_v15, 16  ;;  %v5986_v8 = vrot.slane %v833_v13, 7  ;;  %v843_v49 = vrot.slane %v841_v18, 7 }
  0x8b   : > { %v1476_v21 = vshll.u32 %v1164_v62, 16  ;;  %v1480_v26 = vshrl.u32 %v1164_v62, 16  ;;  %v5988_v27 = vpack.c.bf16 %v466_v10, %v466_v10  ;;  %v1393_v20 = vsel %vm5528_vm10, %v1388_v14, %v1392_v4  ;;  %v1165_v32 = vld [vmem:[#allocation2 + $0x98] sm:$0x1] }
  0x8c   : > { %v1469_v34 = vrot.slane %v1467_v56, 4  ;;  %v1472_v51 = vrot.slane %v1470_v42, 5  ;;  %v839_v25 = vrot.slane %v5986_v8, 4  ;;  %1596 = vrot.lane.b32.xlu2 %v1393_v20, %s5373_s15  ;;  %v1486_v30 = vshll.u32 %v1165_v32, 16  ;;  %v1039_v3 = vld [vmem:[#allocation2 + $0xa4] sm:$0x1] }
  0x8d   : > { %v1478_v31 = vrot.slane %v1476_v21, 5  ;;  %v1482_v40 = vrot.slane %v1480_v26, 4  ;;  %v846_v13 = vor.u32 %v844_v58, %v843_v49  ;;  %v848_v62 = vrot.slane %v843_v49, 4  ;;  %v1014_v18 = vld [vmem:[#allocation2 + $0x78] sm:$0xf] }
  0x8e   : > { %v1473_v15 = vor.u32 %v1472_v51, %v1469_v34  ;;  %v5994_v10 = vpack.c.bf16 %v467_v23, %v467_v23  ;;  %v850_v56 = vshrl.u32 %v5988_v27, 16  ;;  %v561_v42 = vld [vmem:[#allocation2 + $0xb4] sm:$0x1]  ;;  %v1488_v14 = vrot.slane %v1486_v30, 5  ;;  %v1042_v26 = vld [vmem:[#allocation2 + $0xa8] sm:$0xf] }
  0x8f   : > { %v1483_v53 = vor.u32 %v1482_v40, %v1478_v31  ;;  %v847_v4 = vsel %vm5535_vm11, %v839_v25, %v846_v13  ;;  %v1015_v21 = vsel %vm5518_vm9, %v787_v0, %v1014_v18  ;;  %v605_v20 = vld [vmem:[#allocation2 + $0x8c] sm:$0x1]  ;;  %v1040_v23 = vsel %vm5438_vm3, %v848_v62, %v1039_v3  ;;  %v617_v3 = vld [vmem:[#allocation2 + $0xbc] sm:$0x1] }
  0x90   : > { %v1474_v58 = vrot.slane %v1473_v15, 4  ;;  %1038 = vst.msk [vmem:[#allocation2 + $0xa0] sm:$0xf] %vm504_vm0, %v847_v4  ;;  %v852_v49 = vrot.slane %v850_v56, 7  ;;  %v853_v34 = vshll.u32 %v5988_v27, 16  ;;  %v858_v32 = vshrl.u32 %v5994_v10, 16 }
  0x91   : > { %v1484_v51 = vrot.slane %v1483_v53, 4  ;;  %1041 = vst [vmem:[#allocation2 + $0xa4] sm:$0x1] %v1040_v23  ;;  %v861_v25 = vshll.u32 %v5994_v10, 16  ;;  %v436_v40 = vadd.f32 %v5885_v2, %v400_v54  ;;  %v437_v15 = vadd.f32 %v5885_v2, %v401_v11 }
  0x92   : > { %v1479_v0 = vsel %vm5528_vm10, %v1474_v58, %v1478_v31  ;;  %1016 = vst [vmem:[#allocation2 + $0x78] sm:$0xf] %v1015_v21  ;;  %v855_v30 = vor.u32 %v853_v34, %v852_v49  ;;  %v856_v13 = vrot.slane %v852_v49, 4  ;;  %v6014_v62 = vrot.slane %v858_v32, 7 }
  0x93   : > { %1610 = vrot.lane.b32.xlu0 %v1479_v0, %s5373_s15  ;;  %v1489_v53 = vsel %vm5528_vm10, %v1484_v51, %v1488_v14  ;;  %v468_v18 = vmax.f32 %v436_v40, 0.0  ;;  %v562_v54 = vsel %vm5438_vm3, 0, %v561_v42  ;;  %v469_v56 = vmax.f32 %v437_v15, 0.0 }
  0x94   : > { %1612 = vrot.lane.b32.xlu1 %v1489_v53, %s5373_s15  ;;  %v1043_v31 = vsel %vm5518_vm9, %v855_v30, %v1042_v26  ;;  %563 = vst [vmem:[#allocation2 + $0xb4] sm:$0x1] %v562_v54  ;;  %v606_v2 = vsel %vm5463_vm5, 0, %v605_v20  ;;  %v863_v11 = vor.u32 %v861_v25, %v6014_v62  ;;  %v618_v4 = vsel %vm5463_vm5, 0, %v617_v3 }
  0x95   : > { %1044 = vst [vmem:[#allocation2 + $0xa8] sm:$0xf] %v1043_v31  ;;  %v6024_v14 = vpack.c.bf16 %v468_v18, %v468_v18  ;;  %v1456_v42 = vshrl.u32 %v5940_v61, 16  ;;  %v6029_v21 = vpack.c.bf16 %v469_v56, %v469_v56  ;;  %v814_v26 = vrot.slane %v5889_v29, 4 }
  0x96   : > { %607 = vst [vmem:[#allocation2 + $0x8c] sm:$0x1] %v606_v2  ;;  %v864_v23 = vsel %vm5535_vm11, %v856_v13, %v863_v11  ;;  %vm1998_vm1 = vcmask 93248   ;;  %vm2752_vm2 = vcmask 158848   ;;  %vm3089_vm4 = vcmask 191648  }
  0x97   : > { %v1167_v58 = vld [vmem:[#allocation2 + $0xa0] sm:$0xf]  ;;  %v867_v20 = vshrl.u32 %v6024_v14, 16  ;;  %v870_v49 = vshll.u32 %v6024_v14, 16  ;;  %619 = vst [vmem:[#allocation2 + $0xbc] sm:$0x1] %v618_v4 }
  0x98   : > { %v1168_v34 = vld [vmem:[#allocation2 + $0xa4] sm:$0x1]  ;;  %v1500_v51 = vshll.u32 %v1167_v58, 16  ;;  %v1504_v32 = vshrl.u32 %v1167_v58, 16  ;;  %1045 = vst.msk [vmem:[#allocation2 + $0xac] sm:$0xf] %vm504_vm0, %v864_v23 }
  0x99   : > { %v1510_v61 = vshll.u32 %v1168_v34, 16  ;;  %v1157_v25 = vld [vmem:[#allocation2 + $0x78] sm:$0xf]  ;;  %v869_v40 = vrot.slane %v867_v20, 7  ;;  %v875_v0 = vshrl.u32 %v6029_v21, 16  ;;  %v878_v29 = vshll.u32 %v6029_v21, 16 }
  0x9a   : > { %v6039_v30 = vrot.slane %v1500_v51, 5  ;;  %v1506_v13 = vrot.slane %v1504_v32, 4  ;;  %v1419_v15 = vshrl.u32 %v1157_v25, 16  ;;  %v1422_v3 = vshll.u32 %v1157_v25, 16 }
  0x9b   : > { %v872_v53 = vor.u32 %v870_v49, %v869_v40  ;;  %v873_v18 = vrot.slane %v869_v40, 4  ;;  %v877_v54 = vrot.slane %v875_v0, 7  ;;  %v1049_v31 = vld [vmem:[#allocation2 + $0xb4] sm:$0xf]  ;;  %v1458_v56 = vrot.slane %v1456_v42, 4 }
  0x9c   : > { %v1507_v2 = vor.u32 %v1506_v13, %v6039_v30  ;;  %v1512_v11 = vrot.slane %v1510_v61, 5  ;;  %v1421_v4 = vrot.slane %v1419_v15, 4  ;;  %v1424_v58 = vrot.slane %v1422_v3, 5  ;;  %v1169_v23 = vld [vmem:[#allocation2 + $0xa8] sm:$0xf] }
  0x9d   : > { %v1515_v20 = vshrl.u32 %v1169_v23, 16  ;;  %v1518_v34 = vshll.u32 %v1169_v23, 16  ;;  %v880_v36 = vor.u32 %v878_v29, %v877_v54  ;;  %v1050_v51 = vsel %vm5518_vm9, %v872_v53, %v1049_v31  ;;  %v1025_v32 = vld [vmem:[#allocation2 + $0x8c] sm:$0x1] }
  0x9e   : > { %v1508_v25 = vrot.slane %v1507_v2, 4  ;;  %v1425_v49 = vor.u32 %v1424_v58, %v1421_v4  ;;  %1051 = vst [vmem:[#allocation2 + $0xb4] sm:$0xf] %v1050_v51  ;;  %v1026_v42 = vsel %vm5438_vm3, %v814_v26, %v1025_v32  ;;  %v882_v40 = vrot.slane %v877_v54, 4  ;;  %v1053_v0 = vld [vmem:[#allocation2 + $0xbc] sm:$0x1] }
  0x9f   : > { %v6046_v61 = vld [vmem:[#allocation2 + $0xac] sm:$0xf]  ;;  %v1517_v13 = vrot.slane %v1515_v20, 4  ;;  %v1520_v15 = vrot.slane %v1518_v34, 5  ;;  %v881_v29 = vsel %vm5535_vm11, %v873_v18, %v880_v36  ;;  %1027 = vst [vmem:[#allocation2 + $0x8c] sm:$0x1] %v1026_v42  ;;  %v1459_v58 = vor.u32 %v1458_v56, %v5956_v16 }
  0xa0   : > { %v1513_v3 = vsel %vm5528_vm10, %v1508_v25, %v1512_v11  ;;  %v1426_v53 = vrot.slane %v1425_v49, 4  ;;  %v1524_v31 = vshll.u32 %v6046_v61, 16  ;;  %1052 = vst.msk [vmem:[#allocation2 + $0xb8] sm:$0xf] %vm504_vm0, %v881_v29  ;;  %v1054_v54 = vsel %vm5438_vm3, %v882_v40, %v1053_v0  ;;  %v614_v2 = vld [vmem:[#allocation2 + $0xb0] sm:$0x1] }
  0xa1   : > { %1616 = vrot.lane.b32.xlu0 %v1513_v3, %s5373_s15  ;;  %v1521_v26 = vor.u32 %v1520_v15, %v1517_v13  ;;  %1055 = vst [vmem:[#allocation2 + $0xbc] sm:$0x1] %v1054_v54  ;;  %v556_v11 = vsel %vm5438_vm3, 0, %v555_v50  ;;  %v836_v23 = vshll.u32 %v5967_v52, 16  ;;  %v615_v20 = vsel %vm5463_vm5, 0, %v614_v2 }
  0xa2   : > { %v1431_v36 = vsel %vm5528_vm10, %v1426_v53, %v5931_v39  ;;  %v6060_v18 = vrot.slane %v1524_v31, 5  ;;  %557 = vst [vmem:[#allocation2 + $0x9c] sm:$0x1] %v556_v11  ;;  %v1460_v49 = vrot.slane %v1459_v58, 4  ;;  %v6074_v15 = vld [vmem:[#allocation2 + $0x4] sm:$0xf] }
  0xa3   : > { %1602 = vrot.lane.b32.xlu2 %v1431_v36, %s5373_s15  ;;  %v1522_v4 = vrot.slane %v1521_v26, 4  ;;  %616 = vst [vmem:[#allocation2 + $0xb0] sm:$0x1] %v615_v20  ;;  %v838_v56 = vor.u32 %v836_v23, %v5986_v8  ;;  %v865_v53 = vrot.slane %v6014_v62, 4  ;;  %v1792_v8 = vrot.slane %v6074_v15, 5 }
  0xa4   : > { %v1711_v15 = vld [vmem:[#allocation2 + $0x50] sm:$0x1]  ;;  %vm4395_vm6 = vcmask 1041408   ;;  %vm3283_vm7 = vcmask 224448   ;;  %vm3844_vm8 = vcmask 257248   ;;  %vm4808_vm12 = vcmask 31744  }
  0xa5   : > { %v1527_v39 = vsel %vm5528_vm10, %v1522_v4, %v6060_v18  ;;  %v1172_v34 = vld [vmem:[#allocation2 + $0xb4] sm:$0xf] }
  0xa6   : > { %1618 = vrot.lane.b32.xlu1 %v1527_v39, %s5373_s15  ;;  %v1539_v50 = vshrl.u32 %v1172_v34, 16  ;;  %v1542_v51 = vshll.u32 %v1172_v34, 16  ;;  %v1162_v32 = vld [vmem:[#allocation2 + $0x8c] sm:$0x1]  ;;  %v1693_v39 = vld [vmem:[#allocation2 + $0x8] sm:$0x1] }
  0xa7   : > { %v1173_v25 = vld [vmem:[#allocation2 + $0xb8] sm:$0xf]  ;;  %v1462_v16 = vshll.u32 %v1162_v32, 16  ;;  %v1694_v32 = vld [vmem:[#allocation2 + $0xc] sm:$0xe] }
  0xa8   : > { %v1541_v42 = vrot.slane %v1539_v50, 4  ;;  %v1544_v40 = vrot.slane %v1542_v51, 5  ;;  %v1548_v0 = vshll.u32 %v1173_v25, 16  ;;  %v1552_v13 = vshrl.u32 %v1173_v25, 16  ;;  %v1174_v3 = vld [vmem:[#allocation2 + $0xbc] sm:$0x1] }
  0xa9   : > { %v1464_v29 = vrot.slane %v1462_v16, 5  ;;  %v1558_v2 = vshll.u32 %v1174_v3, 16  ;;  %v1035_v36 = vld [vmem:[#allocation2 + $0x9c] sm:$0xf]  ;;  %v6088_v25 = vld [vmem:[#allocation2 + $0x10] sm:$0xf] }
  0xaa   : > { %v1545_v31 = vor.u32 %v1544_v40, %v1541_v42  ;;  %v1550_v26 = vrot.slane %v1548_v0, 5  ;;  %v1554_v54 = vrot.slane %v1552_v13, 4  ;;  %v1036_v4 = vsel %vm5518_vm9, %v838_v56, %v1035_v36  ;;  %v1046_v62 = vld [vmem:[#allocation2 + $0xb0] sm:$0x1]  ;;  %v1064_v16 = vld [vmem:[#allocation2 + $0x4] sm:$0xf] }
  0xab   : > { %v1465_v11 = vsel %vm5528_vm10, %v1460_v49, %v1464_v29  ;;  %v1560_v20 = vrot.slane %v1558_v2, 5  ;;  %1037 = vst [vmem:[#allocation2 + $0x9c] sm:$0xf] %v1036_v4  ;;  %v1047_v34 = vsel %vm5438_vm3, %v865_v53, %v1046_v62  ;;  %v1565_v49 = vpop.permute.xlu0 %1564  ;;  %v1794_v42 = vrot.slane %v1792_v8, 4  ;;  %v1698_v53 = vld [vmem:[#allocation2 + $0x1c] sm:$0xf] }
  0xac   : > { %v1546_v58 = vrot.slane %v1545_v31, 4  ;;  %1608 = vrot.lane.b32.xlu2 %v1465_v11, %s5373_s15  ;;  %v1555_v23 = vor.u32 %v1554_v54, %v1550_v26  ;;  %1048 = vst [vmem:[#allocation2 + $0xb0] sm:$0x1] %v1047_v34  ;;  %v1795_v40 = vrot.slane %v1693_v39, 5  ;;  %v1528_v13 = vshrl.u32 %v6046_v61, 16  ;;  %v1571_v39 = vpop.permute.xlu2 %1570 }
  0xad   : > { %1096 = vst.msk [vmem:[#allocation3 + $0x4] sm:$0xf] %vm504_vm0, %v1064_v16  ;;  %v5163_v29 = vrot.slane %v1694_v32, 9  ;;  %v1799_v3 = vrot.slane %v6088_v25, 5  ;;  %v1697_v36 = vld [vmem:[#allocation2 + $0x18] sm:$0xe] }
  0xae   : > { %v1551_v50 = vsel %vm5528_vm10, %v1546_v58, %v1550_v26  ;;  %v1556_v51 = vrot.slane %v1555_v23, 4  ;;  %1660 = vst.msk [vmem:[#allocation3 + $0x4] sm:$0xf] %vm1658_vm14, %v1565_v49  ;;  %v1796_v26 = vsel %vm6097_vm15, %v1794_v42, %v1795_v40  ;;  %v1806_v11 = vrot.slane %v1698_v53, 5  ;;  %v1067_v34 = vld [vmem:[#allocation2 + $0x18] sm:$0xf] }
  0xaf   : > { %1622 = vrot.lane.b32.xlu0 %v1551_v50, %s5373_s15  ;;  %v1800_v23 = vsel %vm6097_vm15, %v5163_v29, %v1799_v3  ;;  %v1530_v61 = vrot.slane %v1528_v13, 4  ;;  %v1567_v50 = vpop.permute.xlu1 %1566  ;;  %v5164_v49 = vrot.slane %v1697_v36, 9  ;;  %1099 = vst.msk [vmem:[#allocation3 + $0x10] sm:$0xf] %vm504_vm0, %v1067_v34  ;;  %v6113_v42 = vld [vmem:[#allocation2 + $0x28] sm:$0xf] }
  0xb0   : > { %v1561_v56 = vsel %vm5528_vm10, %v1556_v51, %v1560_v20  ;;  %v1699_v20 = vld [vmem:[#allocation2 + $0x20] sm:$0x1]  ;;  %v1065_v51 = vld [vmem:[#allocation2 + $0xc] sm:$0xf]  ;;  %v1808_v16 = vrot.slane %v1806_v11, 4 }
  0xb1   : > { %1624 = vrot.lane.b32.xlu1 %v1561_v56, %s5373_s15  ;;  %1663 = vst.msk [vmem:[#allocation3 + $0x10] sm:$0xf] %vm1658_vm14, %v1571_v39  ;;  %v1063_v40 = vld [vmem:[#allocation2] sm:$0xf]  ;;  %v1531_v29 = vor.u32 %v1530_v61, %v6060_v18  ;;  %v1702_v18 = vld [vmem:[#allocation2 + $0x2c] sm:$0x1] }
  0xb2   : > { %v1166_v31 = vld [vmem:[#allocation2 + $0x9c] sm:$0xf]  ;;  %1097 = vst.msk [vmem:[#allocation3 + $0x8] sm:$0xf] %vm504_vm0, %v1065_v51  ;;  %v1816_v34 = vrot.slane %v1702_v18, 5 }
  0xb3   : > { %v1491_v54 = vshrl.u32 %v1166_v31, 16  ;;  %v1494_v2 = vshll.u32 %v1166_v31, 16  ;;  %v1171_v62 = vld [vmem:[#allocation2 + $0xb0] sm:$0x1]  ;;  %v1563_v56 = vpop.permute.xlu0 %1562  ;;  %v1809_v31 = vrot.slane %v1699_v20, 5  ;;  %v1532_v36 = vrot.slane %v1531_v29, 4 }
  0xb4   : > { %v1534_v53 = vshll.u32 %v1171_v62, 16  ;;  %1661 = vst.msk [vmem:[#allocation3 + $0x8] sm:$0xf] %vm1658_vm14, %v1567_v50  ;;  %v1573_v61 = vpop.permute.xlu2 %1572  ;;  %v1066_v20 = vld [vmem:[#allocation2 + $0x10] sm:$0xf] }
  0xb5   : > { %v1493_v4 = vrot.slane %v1491_v54, 4  ;;  %v1496_v58 = vrot.slane %v1494_v2, 5  ;;  %v1807_v54 = vsel %vm6097_vm15, %v5164_v49, %v1806_v11  ;;  %v1813_v2 = vrot.slane %v6113_v42, 5  ;;  %1095 = vst.msk [vmem:[#allocation3] sm:$0xf] %vm504_vm0, %v1063_v40 }
  0xb6   : > { %1659 = vst.msk [vmem:[#allocation3] sm:$0xf] %vm1658_vm14, %v1563_v56  ;;  %v1068_v11 = vld [vmem:[#allocation2 + $0x1c] sm:$0xf]  ;;  %v1069_v51 = vld [vmem:[#allocation2 + $0x24] sm:$0xf] }
  0xb7   : > { %1904 = vrot.lane.b32.xlu0 %v1796_v26, %s5374_s20  ;;  %v1497_v32 = vor.u32 %v1496_v58, %v1493_v4  ;;  %v1536_v4 = vrot.slane %v1534_v53, 5  ;;  %v1810_v58 = vsel %vm6097_vm15, %v1808_v16, %v1809_v31  ;;  %v1569_v62 = vpop.permute.xlu1 %1568  ;;  %v1815_v39 = vrot.slane %v1813_v2, 4  ;;  %1100 = vst.msk [vmem:[#allocation3 + $0x14] sm:$0xf] %vm504_vm0, %v1068_v11  ;;  %v1691_v56 = vld [vmem:[#allocation2] sm:$0xe] }
  0xb8   : > { %1664 = vst.msk [vmem:[#allocation3 + $0x14] sm:$0xf] %vm1658_vm14, %v1573_v61  ;;  %v1707_v29 = vld [vmem:[#allocation2 + $0x40] sm:$0xf]  ;;  %v5162_v53 = vrot.slane %v1691_v56, 9 }
  0xb9   : > { %1906 = vrot.lane.b32.xlu1 %v1800_v23, %s5374_s20  ;;  %v1498_v13 = vrot.slane %v1497_v32, 4  ;;  %v1703_v23 = vld [vmem:[#allocation2 + $0x30] sm:$0xe]  ;;  %v1537_v32 = vsel %vm5528_vm10, %v1532_v36, %v1536_v4  ;;  %1098 = vst.msk [vmem:[#allocation3 + $0xc] sm:$0xf] %vm504_vm0, %v1066_v20  ;;  %v1817_v40 = vsel %vm6097_vm15, %v1815_v39, %v1816_v34 }
  0xba   : > { %v5166_v49 = vrot.slane %v1703_v23, 9  ;;  %1662 = vst.msk [vmem:[#allocation3 + $0xc] sm:$0xf] %vm1658_vm14, %v1569_v62  ;;  %v1070_v36 = vld [vmem:[#allocation2 + $0x28] sm:$0xf]  ;;  %v1827_v23 = vrot.slane %v1707_v29, 5  ;;  %v1793_v62 = vsel %vm6097_vm15, %v5162_v53, %v1792_v8 }
  0xbb   : > { %v1503_v26 = vsel %vm5528_vm10, %v1498_v13, %v6039_v30  ;;  %v6131_v30 = vld [vmem:[#allocation2 + $0x34] sm:$0xf]  ;;  %v1575_v50 = vpop.permute.xlu0 %1574  ;;  %1101 = vst.msk [vmem:[#allocation3 + $0x18] sm:$0xf] %vm504_vm0, %v1069_v51  ;;  %v1706_v13 = vld [vmem:[#allocation2 + $0x3c] sm:$0xe] }
  0xbc   : > { %1614 = vrot.lane.b32.xlu2 %v1503_v26, %s5373_s15  ;;  %v1820_v16 = vrot.slane %v6131_v30, 5  ;;  %1665 = vst.msk [vmem:[#allocation3 + $0x18] sm:$0xf] %vm1658_vm14, %v1575_v50  ;;  %v1708_v26 = vld [vmem:[#allocation2 + $0x44] sm:$0x1]  ;;  %v1829_v39 = vrot.slane %v1827_v23, 4 }
  0xbd   : > { %v6155_v61 = vld [vmem:[#allocation2 + $0x4c] sm:$0xf]  ;;  %v1072_v20 = vld [vmem:[#allocation2 + $0x34] sm:$0xf]  ;;  %v1830_v34 = vrot.slane %v1708_v26, 5  ;;  %v1801_v8 = vrot.slane %v1799_v3, 4 }
  0xbe   : > { %v1821_v31 = vsel %vm6097_vm15, %v5166_v49, %v1820_v16  ;;  %v1579_v18 = vpop.permute.xlu2 %1578  ;;  %1102 = vst.msk [vmem:[#allocation3 + $0x1c] sm:$0xf] %vm504_vm0, %v1070_v36  ;;  %v1696_v50 = vld [vmem:[#allocation2 + $0x14] sm:$0x1]  ;;  %v1074_v29 = vld [vmem:[#allocation2 + $0x40] sm:$0xf] }
  0xbf   : > { %1910 = vrot.lane.b32.xlu0 %v1807_v54, %s5374_s20  ;;  %v1071_v54 = vld [vmem:[#allocation2 + $0x30] sm:$0xf]  ;;  %v1577_v4 = vpop.permute.xlu1 %1576  ;;  %1104 = vst.msk [vmem:[#allocation3 + $0x24] sm:$0xf] %vm504_vm0, %v1072_v20  ;;  %v1802_v49 = vrot.slane %v1696_v50, 5  ;;  %v1831_v56 = vsel %vm6097_vm15, %v1829_v39, %v1830_v34  ;;  %v1822_v42 = vrot.slane %v1820_v16, 4 }
  0xc0   : > { %1103 = vst.msk [vmem:[#allocation3 + $0x20] sm:$0xf] %vm504_vm0, %v1071_v54  ;;  %v1075_v3 = vld [vmem:[#allocation2 + $0x48] sm:$0xf]  ;;  %v1715_v20 = vld [vmem:[#allocation2 + $0x60] sm:$0xe] }
  0xc1   : > { %1912 = vrot.lane.b32.xlu1 %v1810_v58, %s5374_s20  ;;  %v5167_v58 = vrot.slane %v1706_v13, 9  ;;  %1667 = vst.msk [vmem:[#allocation3 + $0x20] sm:$0xf] %vm1658_vm14, %v1579_v18  ;;  %v6175_v13 = vld [vmem:[#allocation2 + $0x58] sm:$0xf]  ;;  %v1837_v18 = vrot.slane %v1711_v15, 5  ;;  %v1803_v36 = vsel %vm6097_vm15, %v1801_v8, %v1802_v49 }
  0xc2   : > { %1666 = vst.msk [vmem:[#allocation3 + $0x1c] sm:$0xf] %vm1658_vm14, %v1577_v4  ;;  %v1717_v50 = vld [vmem:[#allocation2 + $0x68] sm:$0x1]  ;;  %v1076_v15 = vld [vmem:[#allocation2 + $0x4c] sm:$0xf] }
  0xc3   : > { %v1581_v11 = vpop.permute.xlu0 %1580  ;;  %v1828_v51 = vsel %vm6097_vm15, %v5167_v58, %v1827_v23  ;;  %1106 = vst.msk [vmem:[#allocation3 + $0x2c] sm:$0xf] %vm504_vm0, %v1074_v29  ;;  %v1841_v58 = vrot.slane %v6175_v13, 5  ;;  %v1700_v23 = vld [vmem:[#allocation2 + $0x24] sm:$0xe]  ;;  %v5170_v49 = vrot.slane %v1715_v20, 9 }
  0xc4   : > { %1620 = vrot.lane.b32.xlu2 %v1537_v32, %s5373_s15  ;;  %v1834_v32 = vrot.slane %v6155_v61, 5  ;;  %1668 = vst.msk [vmem:[#allocation3 + $0x24] sm:$0xf] %vm1658_vm14, %v1581_v11  ;;  %v5165_v39 = vrot.slane %v1700_v23, 9  ;;  %v6199_v29 = vld [vmem:[#allocation2 + $0x70] sm:$0xf] }
  0xc5   : > { %1107 = vst.msk [vmem:[#allocation3 + $0x30] sm:$0xf] %vm504_vm0, %v1075_v3  ;;  %v1855_v3 = vrot.slane %v6199_v29, 5  ;;  %v6217_v20 = vld [vmem:[#allocation2 + $0x7c] sm:$0xf] }
  0xc6   : > { %v1836_v54 = vrot.slane %v1834_v32, 4  ;;  %1108 = vst.msk [vmem:[#allocation3 + $0x34] sm:$0xf] %vm504_vm0, %v1076_v15  ;;  %v1862_v15 = vrot.slane %v6217_v20, 5  ;;  %v1729_v61 = vld [vmem:[#allocation2 + $0x98] sm:$0x1] }
  0xc7   : > { %1916 = vrot.lane.b32.xlu0 %v1817_v40, %s5374_s20  ;;  %v1712_v40 = vld [vmem:[#allocation2 + $0x54] sm:$0xe]  ;;  %v1583_v26 = vpop.permute.xlu1 %1582  ;;  %v1857_v30 = vrot.slane %v1855_v3, 4 }
  0xc8   : > { %v5169_v4 = vrot.slane %v1712_v40, 9  ;;  %v1838_v11 = vsel %vm6097_vm15, %v1836_v54, %v1837_v18  ;;  %v1078_v40 = vld [vmem:[#allocation2 + $0x58] sm:$0xf]  ;;  %v1851_v18 = vrot.slane %v1717_v50, 5  ;;  %v1864_v29 = vrot.slane %v1862_v15, 4 }
  0xc9   : > { %1918 = vrot.lane.b32.xlu1 %v1821_v31, %s5374_s20  ;;  %v1073_v31 = vld [vmem:[#allocation2 + $0x3c] sm:$0xf]  ;;  %1110 = vst.msk [vmem:[#allocation3 + $0x3c] sm:$0xf] %vm504_vm0, %v1078_v40  ;;  %v1724_v40 = vld [vmem:[#allocation2 + $0x84] sm:$0xe] }
  0xca   : > { %v1585_v53 = vpop.permute.xlu2 %1584  ;;  %1105 = vst.msk [vmem:[#allocation3 + $0x28] sm:$0xf] %vm504_vm0, %v1073_v31  ;;  %v1842_v34 = vsel %vm6097_vm15, %v5169_v4, %v1841_v58  ;;  %v1814_v31 = vsel %vm6097_vm15, %v5165_v39, %v1813_v2  ;;  %v1079_v39 = vld [vmem:[#allocation2 + $0x60] sm:$0xf]  ;;  %v3916_v1 = vld [vmem:[#allocation2 + $0xb4] sm:$0xe] }
  0xcb   : > { %v1587_v25 = vpop.permute.xlu0 %1586  ;;  %1670 = vst.msk [vmem:[#allocation3 + $0x2c] sm:$0xf] %vm1658_vm14, %v1585_v53 }
  0xcc   : > { %1902 = vrot.lane.b32.xlu2 %v1793_v62, %s5374_s20  ;;  %1669 = vst.msk [vmem:[#allocation3 + $0x28] sm:$0xf] %vm1658_vm14, %v1583_v26  ;;  %v1716_v62 = vld [vmem:[#allocation2 + $0x64] sm:$0xf]  ;;  %v1705_v26 = vld [vmem:[#allocation2 + $0x38] sm:$0x1] }
  0xcd   : > { %1671 = vst.msk [vmem:[#allocation3 + $0x30] sm:$0xf] %vm1658_vm14, %v1587_v25  ;;  %v1823_v2 = vrot.slane %v1705_v26, 5 }
  0xce   : > { %1111 = vst.msk [vmem:[#allocation3 + $0x40] sm:$0xf] %vm504_vm0, %v1079_v39 }
  0xcf   : > { %1922 = vrot.lane.b32.xlu0 %v1828_v51, %s5374_s20  ;;  %v1077_v51 = vld [vmem:[#allocation2 + $0x54] sm:$0xf]  ;;  %v1589_v8 = vpop.permute.xlu1 %1588  ;;  %v1824_v50 = vsel %vm6097_vm15, %v1822_v42, %v1823_v2  ;;  %v1083_v42 = vld [vmem:[#allocation2 + $0x78] sm:$0xf]  ;;  %v1082_v2 = vld [vmem:[#allocation2 + $0x70] sm:$0xf] }
  0xd0   : > { %1109 = vst.msk [vmem:[#allocation3 + $0x38] sm:$0xf] %vm504_vm0, %v1077_v51 }
  0xd1   : > { %1924 = vrot.lane.b32.xlu1 %v1831_v56, %s5374_s20  ;;  %v1848_v56 = vrot.slane %v1716_v62, 5  ;;  %1672 = vst.msk [vmem:[#allocation3 + $0x34] sm:$0xf] %vm1658_vm14, %v1589_v8  ;;  %v1080_v62 = vld [vmem:[#allocation2 + $0x64] sm:$0xf] }
  0xd2   : > { %1112 = vst.msk [vmem:[#allocation3 + $0x44] sm:$0xf] %vm504_vm0, %v1080_v62 }
  0xd3   : > { %v1850_v54 = vrot.slane %v1848_v56, 4  ;;  %v1849_v25 = vsel %vm6097_vm15, %v5170_v49, %v1848_v56  ;;  %v1709_v49 = vld [vmem:[#allocation2 + $0x48] sm:$0xe]  ;;  %1115 = vst.msk [vmem:[#allocation3 + $0x50] sm:$0xf] %vm504_vm0, %v1083_v42 }
  0xd4   : > { %1908 = vrot.lane.b32.xlu2 %v1803_v36, %s5374_s20  ;;  %v1720_v36 = vld [vmem:[#allocation2 + $0x74] sm:$0x1]  ;;  %1114 = vst.msk [vmem:[#allocation3 + $0x4c] sm:$0xf] %vm504_vm0, %v1082_v2  ;;  %v1718_v42 = vld [vmem:[#allocation2 + $0x6c] sm:$0xe] }
  0xd5   : > { %v1852_v23 = vsel %vm6097_vm15, %v1850_v54, %v1851_v18  ;;  %v1858_v16 = vrot.slane %v1720_v36, 5  ;;  %v1726_v54 = vld [vmem:[#allocation2 + $0x8c] sm:$0x1]  ;;  %v5173_v36 = vrot.slane %v1724_v40, 9  ;;  %v6260_v40 = vld [vmem:[#allocation2 + $0xa0] sm:$0xf] }
  0xd7   : > { %1928 = vrot.lane.b32.xlu0 %v1838_v11, %s5374_s20  ;;  %v1593_v53 = vpop.permute.xlu0 %1592  ;;  %v1721_v11 = vld [vmem:[#allocation2 + $0x78] sm:$0xe]  ;;  %v1859_v56 = vsel %vm6097_vm15, %v1857_v30, %v1858_v16  ;;  %v1714_v16 = vld [vmem:[#allocation2 + $0x5c] sm:$0x1] }
  0xd8   : > { %1674 = vst.msk [vmem:[#allocation3 + $0x3c] sm:$0xf] %vm1658_vm14, %v1593_v53  ;;  %v5172_v51 = vrot.slane %v1721_v11, 9  ;;  %v1725_v53 = vld [vmem:[#allocation2 + $0x88] sm:$0xf] }
  0xd9   : > { %1930 = vrot.lane.b32.xlu1 %v1842_v34, %s5374_s20  ;;  %v1081_v34 = vld [vmem:[#allocation2 + $0x6c] sm:$0xf]  ;;  %v1084_v11 = vld [vmem:[#allocation2 + $0x7c] sm:$0xf] }
  0xda   : > { %1113 = vst.msk [vmem:[#allocation3 + $0x48] sm:$0xf] %vm504_vm0, %v1081_v34  ;;  %v1863_v26 = vsel %vm6097_vm15, %v5172_v51, %v1862_v15  ;;  %v1872_v34 = vrot.slane %v1726_v54, 5  ;;  %v1727_v15 = vld [vmem:[#allocation2 + $0x90] sm:$0xe] }
  0xdb   : > { %1116 = vst.msk [vmem:[#allocation3 + $0x54] sm:$0xf] %vm504_vm0, %v1084_v11  ;;  %v5171_v11 = vrot.slane %v1718_v42, 9 }
  0xdc   : > { %1914 = vrot.lane.b32.xlu2 %v1814_v31, %s5374_s20  ;;  %v5168_v31 = vrot.slane %v1709_v49, 9 }
  0xdd   : > { %v1591_v4 = vpop.permute.xlu2 %1590 }
  0xde   : > { %1673 = vst.msk [vmem:[#allocation3 + $0x38] sm:$0xf] %vm1658_vm14, %v1591_v4  ;;  %v1869_v4 = vrot.slane %v1725_v53, 5  ;;  %v1835_v62 = vsel %vm6097_vm15, %v5168_v31, %v1834_v32  ;;  %v1843_v32 = vrot.slane %v1841_v58, 4  ;;  %v1086_v53 = vld [vmem:[#allocation2 + $0x88] sm:$0xf] }
  0xdf   : > { %1934 = vrot.lane.b32.xlu0 %v1849_v25, %s5374_s20  ;;  %v1085_v31 = vld [vmem:[#allocation2 + $0x84] sm:$0xf]  ;;  %1118 = vst.msk [vmem:[#allocation3 + $0x5c] sm:$0xf] %vm504_vm0, %v1086_v53 }
  0xe0   : > { %v1871_v39 = vrot.slane %v1869_v4, 4  ;;  %1117 = vst.msk [vmem:[#allocation3 + $0x58] sm:$0xf] %vm504_vm0, %v1085_v31  ;;  %v1723_v31 = vld [vmem:[#allocation2 + $0x80] sm:$0x1] }
  0xe1   : > { %1936 = vrot.lane.b32.xlu1 %v1852_v23, %s5374_s20  ;;  %v6242_v23 = vld [vmem:[#allocation2 + $0x94] sm:$0xf] }
  0xe2   : > { %v1595_v8 = vpop.permute.xlu1 %1594  ;;  %v1876_v51 = vrot.slane %v6242_v23, 5  ;;  %v1873_v49 = vsel %vm6097_vm15, %v1871_v39, %v1872_v34  ;;  %v1735_v39 = vld [vmem:[#allocation2 + $0xb0] sm:$0x1] }
  0xe3   : > { %1675 = vst.msk [vmem:[#allocation3 + $0x40] sm:$0xf] %vm1658_vm14, %v1595_v8  ;;  %v1844_v8 = vrot.slane %v1714_v16, 5  ;;  %v1088_v16 = vld [vmem:[#allocation2 + $0x94] sm:$0xf]  ;;  %v1893_v53 = vrot.slane %v1735_v39, 5 }
  0xe4   : > { %1920 = vrot.lane.b32.xlu2 %v1824_v50, %s5374_s20  ;;  %v1870_v50 = vsel %vm6097_vm15, %v5173_v36, %v1869_v4  ;;  %v1878_v54 = vrot.slane %v1876_v51, 4  ;;  %v1733_v36 = vld [vmem:[#allocation2 + $0xa8] sm:$0xe]  ;;  %v1734_v4 = vld [vmem:[#allocation2 + $0xac] sm:$0xf] }
  0xe5   : > { %v1845_v13 = vsel %vm6097_vm15, %v1843_v32, %v1844_v8  ;;  %v1090_v32 = vld [vmem:[#allocation2 + $0xa0] sm:$0xf]  ;;  %v6283_v8 = vld [vmem:[#allocation2 + $0xb8] sm:$0xf]  ;;  %1120 = vst.msk [vmem:[#allocation3 + $0x64] sm:$0xf] %vm504_vm0, %v1088_v16 }
  0xe6   : > { %v1599_v18 = vpop.permute.xlu0 %1598  ;;  %v1597_v25 = vpop.permute.xlu2 %1596  ;;  %1122 = vst.msk [vmem:[#allocation3 + $0x6c] sm:$0xf] %vm504_vm0, %v1090_v32  ;;  %v2031_v16 = vld [vmem:[#allocation2 + $0xc] sm:$0xf]  ;;  %v1094_v32 = vld [vmem:[#allocation2 + $0xb8] sm:$0xf] }
  0xe7   : > { %1940 = vrot.lane.b32.xlu0 %v1859_v56, %s5374_s20  ;;  %1677 = vst.msk [vmem:[#allocation3 + $0x48] sm:$0xf] %vm1658_vm14, %v1599_v18  ;;  %v1730_v56 = vld [vmem:[#allocation2 + $0x9c] sm:$0xe]  ;;  %v1879_v18 = vrot.slane %v1729_v61, 5  ;;  %v1890_v61 = vrot.slane %v1734_v4, 5 }
  0xe8   : > { %1676 = vst.msk [vmem:[#allocation3 + $0x44] sm:$0xf] %vm1658_vm14, %v1597_v25  ;;  %v5175_v58 = vrot.slane %v1730_v56, 9  ;;  %v1883_v25 = vrot.slane %v6260_v40, 5 }
  0xe9   : > { %1942 = vrot.lane.b32.xlu1 %v1863_v26, %s5374_s20  ;;  %v1087_v26 = vld [vmem:[#allocation2 + $0x90] sm:$0xf]  ;;  %v1880_v2 = vsel %vm6097_vm15, %v1878_v54, %v1879_v18  ;;  %v1892_v56 = vrot.slane %v1890_v61, 4  ;;  %v1897_v54 = vrot.slane %v6283_v8, 5  ;;  %1126 = vst.msk [vmem:[#allocation3 + $0x7c] sm:$0xf] %vm504_vm0, %v1094_v32 }
  0xea   : > { %v1601_v30 = vpop.permute.xlu1 %1600  ;;  %1119 = vst.msk [vmem:[#allocation3 + $0x60] sm:$0xf] %vm504_vm0, %v1087_v26  ;;  %v2035_v32 = vld [vmem:[#allocation2 + $0x24] sm:$0xf] }
  0xeb   : > { %1678 = vst.msk [vmem:[#allocation3 + $0x4c] sm:$0xf] %vm1658_vm14, %v1601_v30  ;;  %v1089_v30 = vld [vmem:[#allocation2 + $0x9c] sm:$0xf]  ;;  %v1894_v42 = vsel %vm6097_vm15, %v1892_v56, %v1893_v53  ;;  %v1899_v4 = vrot.slane %v1897_v54, 4  ;;  %v1885_v53 = vrot.slane %v1883_v25, 4 }
  0xec   : > { %1926 = vrot.lane.b32.xlu2 %v1835_v62, %s5374_s20  ;;  %v1884_v62 = vsel %vm6097_vm15, %v5175_v58, %v1883_v25  ;;  %1121 = vst.msk [vmem:[#allocation3 + $0x68] sm:$0xf] %vm504_vm0, %v1089_v30  ;;  %v5174_v30 = vrot.slane %v1727_v15, 9  ;;  %v2033_v56 = vld [vmem:[#allocation2 + $0x18] sm:$0xf]  ;;  %v366_v15 = vld [vmem:[%s5470_s14 + $0xf0] sm:$0xff] }
  0xee   : > { %v1877_v8 = vsel %vm6097_vm15, %v5174_v30, %v1876_v51 }
  0xef   : > { %1946 = vrot.lane.b32.xlu0 %v1870_v50, %s5374_s20  ;;  %v5176_v50 = vrot.slane %v1733_v36, 9  ;;  %v1091_v36 = vld [vmem:[#allocation2 + $0xa8] sm:$0xf] }
  0xf0   : > { %1123 = vst.msk [vmem:[#allocation3 + $0x70] sm:$0xf] %vm504_vm0, %v1091_v36 }
  0xf1   : > { %1948 = vrot.lane.b32.xlu1 %v1873_v49, %s5374_s20  ;;  %v1856_v49 = vsel %vm6097_vm15, %v5171_v11, %v1855_v3  ;;  %v1891_v26 = vsel %vm6097_vm15, %v5176_v50, %v1890_v61  ;;  %v1865_v3 = vrot.slane %v1723_v31, 5 }
  0xf3   : > { %v1866_v20 = vsel %vm6097_vm15, %v1864_v29, %v1865_v3  ;;  %v2037_v29 = vld [vmem:[#allocation2 + $0x30] sm:$0xf] }
  0xf4   : > { %1932 = vrot.lane.b32.xlu2 %v1845_v13, %s5374_s20  ;;  %v1738_v13 = vld [vmem:[#allocation2 + $0xbc] sm:$0x1] }
  0xf5   : > { %v1900_v11 = vrot.slane %v1738_v13, 5  ;;  %v1736_v13 = vld [vmem:[#allocation2 + $0xb4] sm:$0xe] }
  0xf6   : > { %v1605_v34 = vpop.permute.xlu0 %1604  ;;  %v5177_v51 = vrot.slane %v1736_v13, 9 }
  0xf7   : > { %1952 = vrot.lane.b32.xlu0 %v1880_v2, %s5374_s20  ;;  %1680 = vst.msk [vmem:[#allocation3 + $0x54] sm:$0xf] %vm1658_vm14, %v1605_v34  ;;  %v1092_v2 = vld [vmem:[#allocation2 + $0xac] sm:$0xf]  ;;  %v1901_v39 = vsel %vm6097_vm15, %v1899_v4, %v1900_v11  ;;  %v2032_v11 = vld [vmem:[#allocation2 + $0x10] sm:$0xf] }
  0xf8   : > { %1124 = vst.msk [vmem:[#allocation3 + $0x74] sm:$0xf] %vm504_vm0, %v1092_v2  ;;  %v1898_v3 = vsel %vm6097_vm15, %v5177_v51, %v1897_v54  ;;  %v2040_v2 = vld [vmem:[#allocation2 + $0x40] sm:$0xf]  ;;  %v2043_v54 = vld [vmem:[#allocation2 + $0x54] sm:$0xf] }
  0xf9   : > { %1954 = vrot.lane.b32.xlu1 %v1884_v62, %s5374_s20  ;;  %v1093_v62 = vld [vmem:[#allocation2 + $0xb4] sm:$0xf] }
  0xfa   : > { %1125 = vst.msk [vmem:[#allocation3 + $0x78] sm:$0xf] %vm504_vm0, %v1093_v62 }
  0xfc   : > { %v1607_v18 = vpop.permute.xlu1 %1606  ;;  %1938 = vrot.lane.b32.xlu2 %v1856_v49, %s5374_s20  ;;  %v1732_v49 = vld [vmem:[#allocation2 + $0xa4] sm:$0x1] }
  0xfd   : > { %v1603_v58 = vpop.permute.xlu2 %1602  ;;  %1681 = vst.msk [vmem:[#allocation3 + $0x58] sm:$0xf] %vm1658_vm14, %v1607_v18  ;;  %v1886_v31 = vrot.slane %v1732_v49, 5 }
  0xfe   : > { %1679 = vst.msk [vmem:[#allocation3 + $0x50] sm:$0xf] %vm1658_vm14, %v1603_v58  ;;  %v2036_v58 = vld [vmem:[#allocation2 + $0x28] sm:$0xf] }
  0xff   : > { %1958 = vrot.lane.b32.xlu0 %v1891_v26, %s5374_s20  ;;  %v2034_v26 = vld [vmem:[#allocation2 + $0x1c] sm:$0xf]  ;;  %v1887_v18 = vsel %vm6097_vm15, %v1885_v53, %v1886_v31  ;;  %v2045_v53 = vld [vmem:[#allocation2 + $0x60] sm:$0xf] }
 0x101   : > { %1960 = vrot.lane.b32.xlu1 %v1894_v42, %s5374_s20  ;;  %v2039_v42 = vld [vmem:[#allocation2 + $0x3c] sm:$0xf] }
 0x104   : > { %1944 = vrot.lane.b32.xlu2 %v1866_v20, %s5374_s20  ;;  %v2042_v20 = vld [vmem:[#allocation2 + $0x4c] sm:$0xf] }
 0x105   : > { %v1611_v34 = vpop.permute.xlu0 %1610 }
 0x106   : > { %v1609_v50 = vpop.permute.xlu2 %1608  ;;  %1683 = vst.msk [vmem:[#allocation3 + $0x60] sm:$0xf] %vm1658_vm14, %v1611_v34  ;;  %v1613_v61 = vpop.permute.xlu1 %1612  ;;  %v5362_v34 = vld [vmem:[%s7714_s1] ss:$0 sm:$0xff] }
 0x107   : > { %1964 = vrot.lane.b32.xlu0 %v1901_v39, %s5374_s20  ;;  %1682 = vst.msk [vmem:[#allocation3 + $0x5c] sm:$0xf] %vm1658_vm14, %v1609_v50  ;;  %v402_v30 = vmul.f32 %v5362_v34, %v366_v15  ;;  %v5363_v50 = vld [vmem:[%s7715_s2] ss:$0 sm:$0xff]  ;;  %v2051_v15 = vld [vmem:[#allocation2 + $0x84] sm:$0xf] }
 0x108   : > { %1684 = vst.msk [vmem:[#allocation3 + $0x64] sm:$0xf] %vm1658_vm14, %v1613_v61 }
 0x109   : > { %2095 = vrot.lane.b32.xlu1 %v2031_v16, %s5375_s21  ;;  %v438_v61 = vadd.f32 %v5363_v50, %v402_v30 }
 0x10b   : > { %v470_v49 = vmax.f32 %v438_v61, 0.0 }
 0x10c   : > { %1950 = vrot.lane.b32.xlu2 %v1877_v8, %s5374_s20 }
 0x10f   : > { %2099 = vrot.lane.b32.xlu0 %v2033_v56, %s5375_s21  ;;  %v564_v56 = vld [vmem:[#allocation2 + $0xc0] sm:$0x1] }
 0x110   : > { %v565_v31 = vsel %vm5438_vm3, 0, %v564_v56 }
 0x111   : > { %2101 = vrot.lane.b32.xlu1 %v2034_v26, %s5375_s21  ;;  %v6358_v26 = vpack.c.bf16 %v470_v49, %v470_v49  ;;  %566 = vst [vmem:[#allocation2 + $0xc0] sm:$0x1] %v565_v31 }
 0x113   : > { %v1617_v23 = vpop.permute.xlu0 %1616  ;;  %7744 = vst [vmem:[#allocation8_spill] sm:$0xff] %v6358_v26  ;;  %v884_v13 = vshrl.u32 %v6358_v26, 16 }
 0x114   : > { %1686 = vst.msk [vmem:[#allocation3 + $0x6c] sm:$0xf] %vm1658_vm14, %v1617_v23  ;;  %1956 = vrot.lane.b32.xlu2 %v1887_v18, %s5374_s20  ;;  %v2046_v18 = vld [vmem:[#allocation2 + $0x64] sm:$0xf] }
 0x115   : > { %v6364_v51 = vrot.slane %v884_v13, 7 }
 0x116   : > { %v1615_v40 = vpop.permute.xlu2 %1614 }
 0x117   : > { %2105 = vrot.lane.b32.xlu0 %v2036_v58, %s5375_s21  ;;  %1685 = vst.msk [vmem:[#allocation3 + $0x68] sm:$0xf] %vm1658_vm14, %v1615_v40  ;;  %v2038_v40 = vld [vmem:[#allocation2 + $0x34] sm:$0xf] }
 0x118   : > { %v1619_v25 = vpop.permute.xlu1 %1618 }
 0x119   : > { %2107 = vrot.lane.b32.xlu1 %v2037_v29, %s5375_s21  ;;  %1687 = vst.msk [vmem:[#allocation3 + $0x70] sm:$0xf] %vm1658_vm14, %v1619_v25  ;;  %v887_v29 = vshll.u32 %v6358_v26, 16 }
 0x11c   : > { %1962 = vrot.lane.b32.xlu2 %v1898_v3, %s5374_s20  ;;  %v889_v3 = vor.u32 %v887_v29, %v6364_v51  ;;  %s7217_s20 = scalar_lea.vmem %s7718_s5, %s5317_s17 }
 0x11e   : > { %v1621_v36 = vpop.permute.xlu2 %1620 }
 0x11f   : > { %2111 = vrot.lane.b32.xlu0 %v2039_v42, %s5375_s21  ;;  %1688 = vst.msk [vmem:[#allocation3 + $0x74] sm:$0xf] %vm1658_vm14, %v1621_v36  ;;  %v2048_v42 = vld [vmem:[#allocation2 + $0x70] sm:$0xf] }
 0x121   : > { %v1623_v4 = vpop.permute.xlu0 %1622  ;;  %2113 = vrot.lane.b32.xlu1 %v2040_v2, %s5375_s21  ;;  %v1056_v2 = vld [vmem:[#allocation2 + $0xc0] sm:$0xf] }
 0x122   : > { %1689 = vst.msk [vmem:[#allocation3 + $0x78] sm:$0xf] %vm1658_vm14, %v1623_v4  ;;  %v1057_v36 = vsel %vm5518_vm9, %v889_v3, %v1056_v2  ;;  %v2049_v4 = vld [vmem:[#allocation2 + $0x78] sm:$0xf]  ;;  %v890_v2 = vrot.slane %v6364_v51, 4  ;;  %vm4181_vm9 = vcmask 290048  }
 0x123   : > { %v1625_v62 = vpop.permute.xlu1 %1624  ;;  %1058 = vst [vmem:[#allocation2 + $0xc0] sm:$0xf] %v1057_v36 }
 0x124   : > { %1690 = vst.msk [vmem:[#allocation3 + $0x7c] sm:$0xf] %vm1658_vm14, %v1625_v62  ;;  %2097 = vrot.lane.b32.xlu2 %v2032_v11, %s5375_s21 }
 0x126   : > { %v1903_v39 = vpop.permute.xlu2 %1902 }
 0x127   : > { %2117 = vrot.lane.b32.xlu0 %v2042_v20, %s5375_s21  ;;  %1999 = vst.msk [vmem:[#allocation3] sm:$0xf] %vm1998_vm1, %v1903_v39  ;;  %v2041_v20 = vld [vmem:[#allocation2 + $0x48] sm:$0xf]  ;;  %v367_v39 = vld [vmem:[%s5470_s14 + $0xf8] sm:$0xff] }
 0x129   : > { %v1905_v16 = vpop.permute.xlu0 %1904  ;;  %2119 = vrot.lane.b32.xlu1 %v2043_v54, %s5375_s21 }
 0x12a   : > { %2000 = vst.msk [vmem:[#allocation3 + $0x4] sm:$0xf] %vm1998_vm1, %v1905_v16  ;;  %v403_v16 = vmul.f32 %v5362_v34, %v367_v39 }
 0x12b   : > { %v1907_v8 = vpop.permute.xlu1 %1906 }
 0x12c   : > { %2001 = vst.msk [vmem:[#allocation3 + $0x8] sm:$0xf] %vm1998_vm1, %v1907_v8  ;;  %2103 = vrot.lane.b32.xlu2 %v2035_v32, %s5375_s21  ;;  %v439_v32 = vadd.f32 %v5363_v50, %v403_v16  ;;  %v2044_v8 = vld [vmem:[#allocation2 + $0x58] sm:$0xf]  ;;  %v2224_v50 = vld [vmem:[#allocation2 + $0xc] sm:$0xf] }
 0x12d   : > { %v2273_v3 = vshrl.u32 %v2224_v50, 16 }
 0x12e   : > { %v1909_v23 = vpop.permute.xlu2 %1908  ;;  %v471_v56 = vmax.f32 %v439_v32, 0.0 }
 0x12f   : > { %2123 = vrot.lane.b32.xlu0 %v2045_v53, %s5375_s21  ;;  %2002 = vst.msk [vmem:[#allocation3 + $0xc] sm:$0xf] %vm1998_vm1, %v1909_v23  ;;  %v2054_v53 = vld [vmem:[#allocation2 + $0x94] sm:$0xf] }
 0x130   : > { %v6386_v31 = vpack.c.bf16 %v471_v56, %v471_v56 }
 0x131   : > { %v1911_v58 = vpop.permute.xlu0 %1910  ;;  %2125 = vrot.lane.b32.xlu1 %v2046_v18, %s5375_s21  ;;  %v2055_v18 = vld [vmem:[#allocation2 + $0x9c] sm:$0xf] }
 0x132   : > { %2003 = vst.msk [vmem:[#allocation3 + $0x10] sm:$0xf] %vm1998_vm1, %v1911_v58  ;;  %v892_v23 = vshrl.u32 %v6386_v31, 16  ;;  %v895_v29 = vshll.u32 %v6386_v31, 16 }
 0x133   : > { %v1913_v25 = vpop.permute.xlu1 %1912  ;;  %7745 = vst [vmem:[#allocation9_spill] sm:$0xff] %v6386_v31 }
 0x134   : > { %2004 = vst.msk [vmem:[#allocation3 + $0x14] sm:$0xf] %vm1998_vm1, %v1913_v25  ;;  %2109 = vrot.lane.b32.xlu2 %v2038_v40, %s5375_s21  ;;  %v6392_v58 = vrot.slane %v892_v23, 7  ;;  %v2047_v40 = vld [vmem:[#allocation2 + $0x6c] sm:$0xf] }
 0x136   : > { %v1915_v11 = vpop.permute.xlu2 %1914  ;;  %v897_v36 = vor.u32 %v895_v29, %v6392_v58 }
 0x137   : > { %2129 = vrot.lane.b32.xlu0 %v2048_v42, %s5375_s21  ;;  %2005 = vst.msk [vmem:[#allocation3 + $0x18] sm:$0xf] %vm1998_vm1, %v1915_v11  ;;  %v2276_v42 = vshll.u32 %v2224_v50, 16  ;;  %v2225_v11 = vld [vmem:[#allocation2 + $0x10] sm:$0xf] }
 0x138   : > { %v2282_v39 = vshll.u32 %v2225_v11, 16  ;;  %v2061_v50 = vld [vmem:[#allocation2 + $0xc0] sm:$0xf] }
 0x139   : > { %v1917_v62 = vpop.permute.xlu0 %1916  ;;  %2131 = vrot.lane.b32.xlu1 %v2049_v4, %s5375_s21  ;;  %v2057_v4 = vld [vmem:[#allocation2 + $0xa8] sm:$0xf]  ;;  %v2278_v51 = vrot.slane %v2276_v42, 5 }
 0x13a   : > { %2006 = vst.msk [vmem:[#allocation3 + $0x1c] sm:$0xf] %vm1998_vm1, %v1917_v62  ;;  %v898_v62 = vsel %vm5535_vm11, %v890_v2, %v897_v36  ;;  %v2284_v23 = vrot.slane %v2282_v39, 5  ;;  %vm4346_vm11 = vcmask 293888  }
 0x13b   : > { %v1919_v54 = vpop.permute.xlu1 %1918  ;;  %1059 = vst.msk [vmem:[#allocation2 + $0xc4] sm:$0xf] %vm504_vm0, %v898_v62  ;;  %vm2191_vm0 = vcmask 126048  }
 0x13c   : > { %2007 = vst.msk [vmem:[#allocation3 + $0x20] sm:$0xf] %vm1998_vm1, %v1919_v54  ;;  %2115 = vrot.lane.b32.xlu2 %v2041_v20, %s5375_s21  ;;  %v2058_v20 = vld [vmem:[#allocation2 + $0xac] sm:$0xf]  ;;  %v2286_v54 = vshrl.u32 %v2225_v11, 16 }
 0x13d   : > { %v2233_v11 = vld [vmem:[#allocation2 + $0x30] sm:$0xf] }
 0x13e   : > { %v1921_v30 = vpop.permute.xlu2 %1920 }
 0x13f   : > { %2135 = vrot.lane.b32.xlu0 %v2051_v15, %s5375_s21  ;;  %2008 = vst.msk [vmem:[#allocation3 + $0x24] sm:$0xf] %vm1998_vm1, %v1921_v30  ;;  %v2228_v30 = vld [vmem:[#allocation2 + $0x1c] sm:$0xf] }
 0x140   : > { %v2306_v56 = vshll.u32 %v2228_v30, 16 }
 0x141   : > { %v1923_v61 = vpop.permute.xlu0 %1922  ;;  %2137 = vrot.lane.b32.xlu1 %v2052_v57, %s5375_s21  ;;  %v2275_v57 = vrot.slane %v2273_v3, 4 }
 0x142   : > { %2009 = vst.msk [vmem:[#allocation3 + $0x28] sm:$0xf] %vm1998_vm1, %v1923_v61  ;;  %v2288_v61 = vrot.slane %v2286_v54, 4  ;;  %v6410_v2 = vrot.slane %v2306_v56, 5 }
 0x143   : > { %v1925_v49 = vpop.permute.xlu1 %1924 }
 0x144   : > { %2010 = vst.msk [vmem:[#allocation3 + $0x2c] sm:$0xf] %vm1998_vm1, %v1925_v49  ;;  %2121 = vrot.lane.b32.xlu2 %v2044_v8, %s5375_s21  ;;  %v2279_v8 = vor.u32 %v2278_v51, %v2275_v57  ;;  %v2226_v49 = vld [vmem:[#allocation2 + $0x14] sm:$0x1] }
 0x145   : > { %v2292_v29 = vshll.u32 %v2226_v49, 16  ;;  %v2348_v49 = vshll.u32 %v2233_v11, 16 }
 0x146   : > { %v1927_v34 = vpop.permute.xlu2 %1926  ;;  %v2280_v42 = vrot.slane %v2279_v8, 4 }
 0x147   : > { %2141 = vrot.lane.b32.xlu0 %v2054_v53, %s5375_s21  ;;  %2011 = vst.msk [vmem:[#allocation3 + $0x30] sm:$0xf] %vm1998_vm1, %v1927_v34  ;;  %v2310_v53 = vshrl.u32 %v2228_v30, 16  ;;  %v2060_v34 = vld [vmem:[#allocation2 + $0xb8] sm:$0xf] }
 0x148   : > { %v2285_v8 = vsel %vm5528_vm10, %v2280_v42, %v2284_v23  ;;  %v2237_v42 = vld [vmem:[#allocation2 + $0x40] sm:$0xf] }
 0x149   : > { %v1929_v13 = vpop.permute.xlu0 %1928  ;;  %2143 = vrot.lane.b32.xlu1 %v2055_v18, %s5375_s21  ;;  %v2230_v18 = vld [vmem:[#allocation2 + $0x24] sm:$0xf]  ;;  %v2312_v36 = vrot.slane %v2310_v53, 4 }
 0x14a   : > { %2012 = vst.msk [vmem:[#allocation3 + $0x34] sm:$0xf] %vm1998_vm1, %v1929_v13  ;;  %v2289_v13 = vor.u32 %v2288_v61, %v2284_v23  ;;  %v2234_v61 = vld [vmem:[#allocation2 + $0x34] sm:$0xf] }
 0x14b   : > { %v1931_v25 = vpop.permute.xlu1 %1930  ;;  %v2313_v30 = vor.u32 %v2312_v36, %v6410_v2  ;;  %v2358_v56 = vshrl.u32 %v2234_v61, 16 }
 0x14c   : > { %2013 = vst.msk [vmem:[#allocation3 + $0x38] sm:$0xf] %vm1998_vm1, %v1931_v25  ;;  %2127 = vrot.lane.b32.xlu2 %v2047_v40, %s5375_s21  ;;  %v2321_v40 = vshrl.u32 %v2230_v18, 16  ;;  %v2324_v25 = vshll.u32 %v2230_v18, 16  ;;  %v2290_v54 = vrot.slane %v2289_v13, 4 }
 0x14e   : > { %v1933_v15 = vpop.permute.xlu2 %1932  ;;  %v2323_v57 = vrot.slane %v2321_v40, 4  ;;  %v2326_v51 = vrot.slane %v2324_v25, 5  ;;  %v2350_v25 = vrot.slane %v2348_v49, 5  ;;  %v2227_v49 = vld [vmem:[#allocation2 + $0x18] sm:$0xf] }
 0x14f   : > { %2147 = vrot.lane.b32.xlu0 %v2057_v4, %s5375_s21  ;;  %2014 = vst.msk [vmem:[#allocation3 + $0x3c] sm:$0xf] %vm1998_vm1, %v1933_v15  ;;  %v2229_v4 = vld [vmem:[#allocation2 + $0x20] sm:$0x1]  ;;  %v2294_v15 = vrot.slane %v2292_v29, 5  ;;  %v2314_v29 = vrot.slane %v2313_v30, 4 }
 0x150   : > { %v2327_v18 = vor.u32 %v2326_v51, %v2323_v57  ;;  %v2378_v57 = vshll.u32 %v2237_v42, 16  ;;  %v2382_v51 = vshrl.u32 %v2237_v42, 16  ;;  %v2238_v42 = vld [vmem:[#allocation2 + $0x44] sm:$0x1] }
 0x151   : > { %v1935_v16 = vpop.permute.xlu0 %1934  ;;  %2149 = vrot.lane.b32.xlu1 %v2058_v20, %s5375_s21  ;;  %v2053_v20 = vld [vmem:[#allocation2 + $0x90] sm:$0xf]  ;;  %v2295_v53 = vsel %vm5528_vm10, %v2290_v54, %v2294_v15 }
 0x152   : > { %2015 = vst.msk [vmem:[#allocation3 + $0x40] sm:$0xf] %vm1998_vm1, %v1935_v16  ;;  %v2316_v16 = vshll.u32 %v2229_v4, 16  ;;  %v2056_v4 = vld [vmem:[#allocation2 + $0xa0] sm:$0xf] }
 0x153   : > { %v1937_v32 = vpop.permute.xlu1 %1936 }
 0x154   : > { %2016 = vst.msk [vmem:[#allocation3 + $0x44] sm:$0xf] %vm1998_vm1, %v1937_v32  ;;  %2133 = vrot.lane.b32.xlu2 %v2050_v9, %s5375_s21  ;;  %v6416_v9 = vld [vmem:[#allocation2 + $0x28] sm:$0xf]  ;;  %v2345_v32 = vshrl.u32 %v2233_v11, 16  ;;  %v2318_v40 = vrot.slane %v2316_v16, 5 }
 0x155   : > { %v2235_v11 = vld [vmem:[#allocation2 + $0x38] sm:$0x1]  ;;  %v2334_v26 = vshrl.u32 %v6416_v9, 16 }
 0x156   : > { %v1939_v3 = vpop.permute.xlu2 %1938  ;;  %v2347_v23 = vrot.slane %v2345_v32, 4  ;;  %v2319_v30 = vsel %vm5528_vm10, %v2314_v29, %v2318_v40  ;;  %v2364_v32 = vshll.u32 %v2235_v11, 16  ;;  %v2059_v29 = vld [vmem:[#allocation2 + $0xb4] sm:$0xf] }
 0x157   : > { %2153 = vrot.lane.b32.xlu0 %v2060_v34, %s5375_s21  ;;  %2017 = vst.msk [vmem:[#allocation3 + $0x48] sm:$0xf] %vm1998_vm1, %v1939_v3  ;;  %v2330_v34 = vshll.u32 %v6416_v9, 16  ;;  %v2360_v3 = vrot.slane %v2358_v56, 4 }
 0x158   : > { %v2351_v16 = vor.u32 %v2350_v25, %v2347_v23  ;;  %v2366_v25 = vrot.slane %v2364_v32, 5  ;;  %v2388_v32 = vshll.u32 %v2238_v42, 16 }
 0x159   : > { %v1941_v62 = vpop.permute.xlu0 %1940  ;;  %2155 = vrot.lane.b32.xlu1 %v2061_v50, %s5375_s21  ;;  %v2354_v50 = vshll.u32 %v2234_v61, 16 }
 0x15a   : > { %2018 = vst.msk [vmem:[#allocation3 + $0x4c] sm:$0xf] %vm1998_vm1, %v1941_v62  ;;  %v2328_v62 = vrot.slane %v2327_v18, 4  ;;  %v2242_v18 = vld [vmem:[#allocation2 + $0x54] sm:$0xf]  ;;  %v2352_v40 = vrot.slane %v2351_v16, 4 }
 0x15b   : > { %v1943_v39 = vpop.permute.xlu1 %1942  ;;  %v2356_v54 = vrot.slane %v2354_v50, 5  ;;  %v6439_v50 = vrot.slane %v2378_v57, 5  ;;  %v2417_v11 = vshrl.u32 %v2242_v18, 16  ;;  %v2243_v16 = vld [vmem:[#allocation2 + $0x58] sm:$0xf] }
 0x15c   : > { %2019 = vst.msk [vmem:[#allocation3 + $0x50] sm:$0xf] %vm1998_vm1, %v1943_v39  ;;  %2139 = vrot.lane.b32.xlu2 %v2053_v20, %s5375_s21  ;;  %v6429_v20 = vrot.slane %v2330_v34, 5  ;;  %v2239_v39 = vld [vmem:[#allocation2 + $0x48] sm:$0xf]  ;;  %v2426_v31 = vshll.u32 %v2243_v16, 16 }
 0x15d   : > { %v2361_v61 = vor.u32 %v2360_v3, %v2356_v54  ;;  %v2393_v56 = vshrl.u32 %v2239_v39, 16 }
 0x15e   : > { %v1945_v13 = vpop.permute.xlu2 %1944 }
 0x15f   : > { %2656 = vrot.lane.b32.xlu0 %v2285_v8, %s5376_s26  ;;  %2020 = vst.msk [vmem:[#allocation3 + $0x54] sm:$0xf] %vm1998_vm1, %v1945_v13  ;;  %v2333_v8 = vsel %vm5528_vm10, %v2328_v62, %v6429_v20  ;;  %v2384_v13 = vrot.slane %v2382_v51, 4  ;;  %v2362_v23 = vrot.slane %v2361_v61, 4  ;;  %v2420_v62 = vshll.u32 %v2242_v18, 16 }
 0x160   : > { %v2395_v57 = vrot.slane %v2393_v56, 4  ;;  %v2357_v61 = vsel %vm5528_vm10, %v2352_v40, %v2356_v54 }
 0x161   : > { %v1947_v36 = vpop.permute.xlu0 %1946  ;;  %2658 = vrot.lane.b32.xlu1 %v2295_v53, %s5376_s26  ;;  %v2396_v53 = vshll.u32 %v2239_v39, 16 }
 0x162   : > { %2021 = vst.msk [vmem:[#allocation3 + $0x58] sm:$0xf] %vm1998_vm1, %v1947_v36  ;;  %v2297_v36 = vshrl.u32 %v2227_v49, 16 }
 0x163   : > { %v1949_v15 = vpop.permute.xlu1 %1948  ;;  %v2398_v51 = vrot.slane %v2396_v53, 5 }
 0x164   : > { %2022 = vst.msk [vmem:[#allocation3 + $0x5c] sm:$0xf] %vm1998_vm1, %v1949_v15  ;;  %2145 = vrot.lane.b32.xlu2 %v2056_v4, %s5375_s21  ;;  %v2300_v4 = vshll.u32 %v2227_v49, 16  ;;  %v6444_v15 = vld [vmem:[#allocation2 + $0x4c] sm:$0xf]  ;;  %v2367_v49 = vsel %vm5528_vm10, %v2362_v23, %v2366_v25  ;;  %v2299_v18 = vrot.slane %v2297_v36, 4 }
 0x165   : > { %v2402_v56 = vshll.u32 %v6444_v15, 16  ;;  %v2399_v53 = vor.u32 %v2398_v51, %v2395_v57  ;;  %v2062_v25 = vld [vmem:[#allocation2 + $0xc4] sm:$0xf]  ;;  %v2428_v57 = vrot.slane %v2426_v31, 5  ;;  %v2248_v51 = vld [vmem:[#allocation2 + $0x6c] sm:$0xf] }
 0x166   : > { %v1951_v34 = vpop.permute.xlu2 %1950 }
 0x167   : > { %2662 = vrot.lane.b32.xlu0 %v2319_v30, %s5376_s26  ;;  %2023 = vst.msk [vmem:[#allocation3 + $0x60] sm:$0xf] %vm1998_vm1, %v1951_v34  ;;  %v2385_v30 = vor.u32 %v2384_v13, %v6439_v50  ;;  %v2302_v34 = vrot.slane %v2300_v4, 5  ;;  %v2422_v13 = vrot.slane %v2420_v62, 5  ;;  %v6458_v36 = vrot.slane %v2402_v56, 5 }
 0x168   : > { %v2244_v4 = vld [vmem:[#allocation2 + $0x5c] sm:$0x1]  ;;  %v2400_v9 = vrot.slane %v2399_v53, 4 }
 0x169   : > { %v1953_v3 = vpop.permute.xlu0 %1952  ;;  %2664 = vrot.lane.b32.xlu1 %v2333_v8, %s5376_s26  ;;  %v2430_v8 = vshrl.u32 %v2243_v16, 16  ;;  %v2386_v40 = vrot.slane %v2385_v30, 4  ;;  %v2336_v16 = vrot.slane %v2334_v26, 4  ;;  %v2436_v56 = vshll.u32 %v2244_v4, 16  ;;  %v2236_v53 = vld [vmem:[#allocation2 + $0x3c] sm:$0xf] }
 0x16a   : > { %2024 = vst.msk [vmem:[#allocation3 + $0x64] sm:$0xf] %vm1998_vm1, %v1953_v3  ;;  %v2419_v3 = vrot.slane %v2417_v11, 4  ;;  %v2303_v11 = vor.u32 %v2302_v34, %v2299_v18  ;;  %v2468_v18 = vshll.u32 %v2248_v51, 16  ;;  %v2405_v31 = vsel %vm5528_vm10, %v2400_v9, %v6458_v36 }
 0x16b   : > { %v1955_v39 = vpop.permute.xlu1 %1954  ;;  %v2432_v42 = vrot.slane %v2430_v8, 4  ;;  %v2232_v8 = vld [vmem:[#allocation2 + $0x2c] sm:$0x1]  ;;  %v2369_v9 = vshrl.u32 %v2236_v53, 16 }
 0x16c   : > { %2025 = vst.msk [vmem:[#allocation3 + $0x68] sm:$0xf] %vm1998_vm1, %v1955_v39  ;;  %2151 = vrot.lane.b32.xlu2 %v2059_v29, %s5375_s21  ;;  %v2390_v29 = vrot.slane %v2388_v32, 5  ;;  %v2246_v39 = vld [vmem:[#allocation2 + $0x64] sm:$0xf]  ;;  %v2423_v62 = vor.u32 %v2422_v13, %v2419_v3  ;;  %v2304_v34 = vrot.slane %v2303_v11, 4  ;;  %v2337_v13 = vor.u32 %v2336_v16, %v6429_v20 }
 0x16d   : > { %v6478_v16 = vld [vmem:[#allocation2 + $0x70] sm:$0xf] }
 0x16e   : > { %v1957_v54 = vpop.permute.xlu2 %1956  ;;  %v2391_v32 = vsel %vm5528_vm10, %v2386_v40, %v2390_v29  ;;  %v2424_v26 = vrot.slane %v2423_v62, 4  ;;  %v2340_v40 = vshll.u32 %v2232_v8, 16  ;;  %v2247_v29 = vld [vmem:[#allocation2 + $0x68] sm:$0x1]  ;;  %v2372_v62 = vshll.u32 %v2236_v53, 16 }
 0x16f   : > { %2668 = vrot.lane.b32.xlu0 %v2357_v61, %s5376_s26  ;;  %2026 = vst.msk [vmem:[#allocation3 + $0x6c] sm:$0xf] %vm1998_vm1, %v1957_v54  ;;  %v2450_v61 = vshll.u32 %v2246_v39, 16  ;;  %v2454_v54 = vshrl.u32 %v2246_v39, 16  ;;  %v2309_v20 = vsel %vm5528_vm10, %v2304_v34, %v6410_v2  ;;  %v2252_v53 = vld [vmem:[#allocation2 + $0x7c] sm:$0xf] }
 0x171   : > { %v1959_v23 = vpop.permute.xlu0 %1958  ;;  %2670 = vrot.lane.b32.xlu1 %v2367_v49, %s5376_s26  ;;  %v2433_v49 = vor.u32 %v2432_v42, %v2428_v57  ;;  %v2251_v42 = vld [vmem:[#allocation2 + $0x78] sm:$0xf]  ;;  %v6471_v4 = vrot.slane %v2450_v61, 5  ;;  %v2456_v11 = vrot.slane %v2454_v54, 4  ;;  %v2429_v54 = vsel %vm5528_vm10, %v2424_v26, %v2428_v57  ;;  %v620_v26 = vld [vmem:[#allocation2 + $0xc8] sm:$0x1] }
 0x172   : > { %2027 = vst.msk [vmem:[#allocation3 + $0x70] sm:$0xf] %vm1998_vm1, %v1959_v23  ;;  %v2465_v23 = vshrl.u32 %v2248_v51, 16  ;;  %v2489_v8 = vshrl.u32 %v2251_v42, 16 }
 0x173   : > { %v1961_v30 = vpop.permute.xlu1 %1960  ;;  %v2434_v39 = vrot.slane %v2433_v49, 4  ;;  %v2492_v49 = vshll.u32 %v2251_v42, 16  ;;  %v2502_v42 = vshrl.u32 %v2252_v53, 16 }
 0x174   : > { %2028 = vst.msk [vmem:[#allocation3 + $0x74] sm:$0xf] %vm1998_vm1, %v1961_v30  ;;  %2157 = vrot.lane.b32.xlu2 %v2062_v25, %s5375_s21  ;;  %v2438_v25 = vrot.slane %v2436_v56, 5  ;;  %v2467_v30 = vrot.slane %v2465_v23, 4  ;;  %v2460_v56 = vshll.u32 %v2247_v29, 16  ;;  %v2342_v23 = vrot.slane %v2340_v40, 5 }
 0x175   : > { %v2371_v29 = vrot.slane %v2369_v9, 4  ;;  %v2491_v17 = vrot.slane %v2489_v8, 4  ;;  %v2494_v57 = vrot.slane %v2492_v49, 5  ;;  %v2498_v40 = vshll.u32 %v2252_v53, 16 }
 0x176   : > { %v1963_v3 = vpop.permute.xlu2 %1962  ;;  %v2439_v2 = vsel %vm5528_vm10, %v2434_v39, %v2438_v25  ;;  %v2462_v39 = vrot.slane %v2460_v56, 5  ;;  %v2255_v25 = vld [vmem:[#allocation2 + $0x88] sm:$0xf]  ;;  %v2504_v8 = vrot.slane %v2502_v42, 4  ;;  %v2257_v56 = vld [vmem:[#allocation2 + $0x90] sm:$0xf] }
 0x177   : > { %2674 = vrot.lane.b32.xlu0 %v2391_v32, %s5376_s26  ;;  %2029 = vst.msk [vmem:[#allocation3 + $0x78] sm:$0xf] %vm1998_vm1, %v1963_v3  ;;  %v2470_v32 = vrot.slane %v2468_v18, 5  ;;  %v2457_v18 = vor.u32 %v2456_v11, %v6471_v4  ;;  %v2474_v3 = vshll.u32 %v6478_v16, 16  ;;  %v621_v11 = vsel %vm5463_vm5, 0, %v620_v26 }
 0x178   : > { %622 = vst [vmem:[#allocation2 + $0xc8] sm:$0x1] %v621_v11  ;;  %v899_v53 = vrot.slane %v6392_v58, 4  ;;  %v2500_v26 = vrot.slane %v2498_v40, 5  ;;  %v2256_v42 = vld [vmem:[#allocation2 + $0x8c] sm:$0x1] }
 0x179   : > { %v1965_v51 = vpop.permute.xlu0 %1964  ;;  %2676 = vrot.lane.b32.xlu1 %v2405_v31, %s5376_s26  ;;  %v2338_v31 = vrot.slane %v2337_v13, 4  ;;  %v2471_v34 = vor.u32 %v2470_v32, %v2467_v30  ;;  %v2406_v30 = vshrl.u32 %v6444_v15, 16 }
 0x17a   : > { %2030 = vst.msk [vmem:[#allocation3 + $0x7c] sm:$0xf] %vm1998_vm1, %v1965_v51  ;;  %v2374_v51 = vrot.slane %v2372_v62, 5  ;;  %v6494_v62 = vrot.slane %v2474_v3, 5  ;;  %v2241_v3 = vld [vmem:[#allocation2 + $0x50] sm:$0x1] }
 0x17b   : > { %v2096_v61 = vpop.permute.xlu1 %2095  ;;  %v2472_v9 = vrot.slane %v2471_v34, 4  ;;  %v2343_v49 = vsel %vm5528_vm10, %v2338_v31, %v2342_v23  ;;  %v2505_v31 = vor.u32 %v2504_v8, %v2500_v26  ;;  %v2408_v11 = vrot.slane %v2406_v30, 4 }
 0x17c   : > { %2192 = vst.msk [vmem:[#allocation3] sm:$0xf] %vm2191_vm0, %v2096_v61  ;;  %2660 = vrot.lane.b32.xlu2 %v2309_v20, %s5376_s26  ;;  %v2458_v20 = vrot.slane %v2457_v18, 4  ;;  %v2375_v61 = vor.u32 %v2374_v51, %v2371_v29  ;;  %v2253_v18 = vld [vmem:[#allocation2 + $0x80] sm:$0x1]  ;;  %v2537_v29 = vshrl.u32 %v2257_v56, 16 }
 0x17d   : > { %v2508_v23 = vshll.u32 %v2253_v18, 16  ;;  %v2540_v51 = vshll.u32 %v2257_v56, 16  ;;  %v2477_v58 = vsel %vm5528_vm10, %v2472_v9, %v6494_v62  ;;  %v2260_v56 = vld [vmem:[#allocation2 + $0x9c] sm:$0xf] }
 0x17e   : > { %v2098_v13 = vpop.permute.xlu2 %2097  ;;  %v2463_v34 = vsel %vm5528_vm10, %v2458_v20, %v2462_v39  ;;  %v2412_v39 = vshll.u32 %v2241_v3, 16 }
 0x17f   : > { %2680 = vrot.lane.b32.xlu0 %v2429_v54, %s5376_s26  ;;  %2193 = vst.msk [vmem:[#allocation3 + $0x4] sm:$0xf] %vm2191_vm0, %v2098_v13  ;;  %v2495_v54 = vor.u32 %v2494_v57, %v2491_v17  ;;  %v2522_v13 = vshll.u32 %v2255_v25, 16  ;;  %v2245_v17 = vld [vmem:[#allocation2 + $0x60] sm:$0xf]  ;;  %v2376_v57 = vrot.slane %v2375_v61, 4 }
 0x180   : > { %v2441_v8 = vshrl.u32 %v2245_v17, 16  ;;  %v2444_v18 = vshll.u32 %v2245_v17, 16  ;;  %v2510_v9 = vrot.slane %v2508_v23, 5  ;;  %v2542_v30 = vrot.slane %v2540_v51, 5  ;;  %v1060_v3 = vld [vmem:[#allocation2 + $0xc8] sm:$0x1] }
 0x181   : > { %v2100_v32 = vpop.permute.xlu0 %2099  ;;  %2682 = vrot.lane.b32.xlu1 %v2439_v2, %s5376_s26  ;;  %v2526_v2 = vshrl.u32 %v2255_v25, 16  ;;  %v2496_v40 = vrot.slane %v2495_v54, 4  ;;  %v6508_v25 = vrot.slane %v2522_v13, 5  ;;  %v2539_v54 = vrot.slane %v2537_v29, 4 }
 0x182   : > { %2194 = vst.msk [vmem:[#allocation3 + $0x8] sm:$0xf] %vm2191_vm0, %v2100_v32  ;;  %v2381_v13 = vsel %vm5528_vm10, %v2376_v57, %v6439_v50  ;;  %v2443_v29 = vrot.slane %v2441_v8, 4  ;;  %v2446_v50 = vrot.slane %v2444_v18, 5  ;;  %v2261_v57 = vld [vmem:[#allocation2 + $0xa0] sm:$0xf] }
 0x183   : > { %v2102_v15 = vpop.permute.xlu1 %2101  ;;  %v2528_v32 = vrot.slane %v2526_v2, 4  ;;  %v2409_v2 = vor.u32 %v2408_v11, %v6458_v36  ;;  %v2501_v23 = vsel %vm5528_vm10, %v2496_v40, %v2500_v26  ;;  %v2543_v36 = vor.u32 %v2542_v30, %v2539_v54 }
 0x184   : > { %2195 = vst.msk [vmem:[#allocation3 + $0xc] sm:$0xf] %vm2191_vm0, %v2102_v15  ;;  %2666 = vrot.lane.b32.xlu2 %v2343_v49, %s5376_s26  ;;  %v2532_v49 = vshll.u32 %v2256_v42, 16  ;;  %v2506_v15 = vrot.slane %v2505_v31, 4  ;;  %v1061_v31 = vsel %vm5438_vm3, %v899_v53, %v1060_v3  ;;  %v2574_v53 = vshrl.u32 %v2261_v57, 16 }
 0x185   : > { %v2529_v17 = vor.u32 %v2528_v32, %v6508_v25  ;;  %1062 = vst [vmem:[#allocation2 + $0xc8] sm:$0x1] %v1061_v31  ;;  %v2410_v11 = vrot.slane %v2409_v2, 4  ;;  %v2414_v32 = vrot.slane %v2412_v39, 5  ;;  %v2447_v54 = vor.u32 %v2446_v50, %v2443_v29 }
 0x186   : > { %v2104_v20 = vpop.permute.xlu2 %2103  ;;  %v2570_v30 = vshll.u32 %v2261_v57, 16  ;;  %v2544_v39 = vrot.slane %v2543_v36, 4 }
 0x187   : > { %2686 = vrot.lane.b32.xlu0 %v2463_v34, %s5376_s26  ;;  %2196 = vst.msk [vmem:[#allocation3 + $0x10] sm:$0xf] %vm2191_vm0, %v2104_v20  ;;  %v6517_v34 = vld [vmem:[#allocation2 + $0x94] sm:$0xf]  ;;  %v2561_v20 = vshrl.u32 %v2260_v56, 16  ;;  %v2530_v40 = vrot.slane %v2529_v17, 4 }
 0x188   : > { %v2546_v51 = vshll.u32 %v6517_v34, 16  ;;  %v2448_v31 = vrot.slane %v2447_v54, 4 }
 0x189   : > { %v2106_v61 = vpop.permute.xlu0 %2105  ;;  %2688 = vrot.lane.b32.xlu1 %v2477_v58, %s5376_s26  ;;  %v2564_v58 = vshll.u32 %v2260_v56, 16  ;;  %v2511_v56 = vsel %vm5528_vm10, %v2506_v15, %v2510_v9  ;;  %v2563_v8 = vrot.slane %v2561_v20, 4  ;;  %v2264_v15 = vld [vmem:[#allocation2 + $0xac] sm:$0xf]  ;;  %v2576_v9 = vrot.slane %v2574_v53, 4 }
 0x18a   : > { %2197 = vst.msk [vmem:[#allocation3 + $0x14] sm:$0xf] %vm2191_vm0, %v2106_v61  ;;  %v2534_v61 = vrot.slane %v2532_v49, 5  ;;  %v6533_v2 = vrot.slane %v2546_v51, 5  ;;  %v2415_v49 = vsel %vm5528_vm10, %v2410_v11, %v2414_v32  ;;  %v2594_v29 = vshll.u32 %v2264_v15, 16 }
 0x18b   : > { %v2108_v42 = vpop.permute.xlu1 %2107  ;;  %v2566_v18 = vrot.slane %v2564_v58, 5  ;;  %v2262_v58 = vld [vmem:[#allocation2 + $0xa4] sm:$0x1]  ;;  %v2598_v50 = vshrl.u32 %v2264_v15, 16  ;;  %v2250_v51 = vld [vmem:[#allocation2 + $0x74] sm:$0x1] }
 0x18c   : > { %2198 = vst.msk [vmem:[#allocation3 + $0x18] sm:$0xf] %vm2191_vm0, %v2108_v42  ;;  %2672 = vrot.lane.b32.xlu2 %v2381_v13, %s5376_s26  ;;  %v2478_v13 = vshrl.u32 %v6478_v16, 16  ;;  %v2535_v42 = vsel %vm5528_vm10, %v2530_v40, %v2534_v61  ;;  %v2266_v16 = vld [vmem:[#allocation2 + $0xb4] sm:$0xf]  ;;  %v2549_v36 = vsel %vm5528_vm10, %v2544_v39, %v6533_v2  ;;  %v2580_v32 = vshll.u32 %v2262_v58, 16 }
 0x18d   : > { %v2567_v20 = vor.u32 %v2566_v18, %v2563_v8  ;;  %v2609_v53 = vshrl.u32 %v2266_v16, 16  ;;  %v2453_v8 = vsel %vm5528_vm10, %v2448_v31, %v6471_v4  ;;  %v2265_v18 = vld [vmem:[#allocation2 + $0xb0] sm:$0x1]  ;;  %v6550_v54 = vrot.slane %v2594_v29, 5  ;;  %v6555_v31 = vld [vmem:[#allocation2 + $0xb8] sm:$0xf] }
 0x18e   : > { %v2110_v26 = vpop.permute.xlu2 %2109  ;;  %v2480_v57 = vrot.slane %v2478_v13, 4  ;;  %v2484_v39 = vshll.u32 %v2250_v51, 16 }
 0x18f   : > { %2692 = vrot.lane.b32.xlu0 %v2501_v23, %s5376_s26  ;;  %2199 = vst.msk [vmem:[#allocation3 + $0x1c] sm:$0xf] %vm2191_vm0, %v2110_v26  ;;  %v2572_v23 = vrot.slane %v2570_v30, 5  ;;  %v2612_v26 = vshll.u32 %v2266_v16, 16  ;;  %v2568_v61 = vrot.slane %v2567_v20, 4  ;;  %v2600_v30 = vrot.slane %v2598_v50, 4 }
 0x190   : > { %v2611_v20 = vrot.slane %v2609_v53, 4  ;;  %v2604_v16 = vshll.u32 %v2265_v18, 16 }
 0x191   : > { %v2112_v3 = vpop.permute.xlu0 %2111  ;;  %2694 = vrot.lane.b32.xlu1 %v2511_v56, %s5376_s26  ;;  %v2577_v11 = vor.u32 %v2576_v9, %v2572_v23  ;;  %v2254_v56 = vld [vmem:[#allocation2 + $0x84] sm:$0xf]  ;;  %v2269_v9 = vld [vmem:[#allocation2 + $0xc0] sm:$0xf]  ;;  %v2614_v58 = vrot.slane %v2612_v26, 5  ;;  %v2573_v29 = vsel %vm5528_vm10, %v2568_v61, %v2572_v23 }
 0x192   : > { %2200 = vst.msk [vmem:[#allocation3 + $0x20] sm:$0xf] %vm2191_vm0, %v2112_v3  ;;  %v2481_v3 = vor.u32 %v2480_v57, %v6494_v62  ;;  %v2513_v15 = vshrl.u32 %v2254_v56, 16  ;;  %v2601_v62 = vor.u32 %v2600_v30, %v6550_v54  ;;  %v2633_v50 = vshrl.u32 %v2269_v9, 16 }
 0x193   : > { %v2114_v17 = vpop.permute.xlu1 %2113  ;;  %v2486_v57 = vrot.slane %v2484_v39, 5  ;;  %v2615_v26 = vor.u32 %v2614_v58, %v2611_v20  ;;  %v2606_v18 = vrot.slane %v2604_v16, 5  ;;  %v2550_v39 = vshrl.u32 %v6517_v34, 16 }
 0x194   : > { %2201 = vst.msk [vmem:[#allocation3 + $0x24] sm:$0xf] %vm2191_vm0, %v2114_v17  ;;  %2678 = vrot.lane.b32.xlu2 %v2415_v49, %s5376_s26  ;;  %v2516_v49 = vshll.u32 %v2254_v56, 16  ;;  %v2582_v17 = vrot.slane %v2580_v32, 5  ;;  %v2482_v51 = vrot.slane %v2481_v3, 4  ;;  %v2602_v30 = vrot.slane %v2601_v62, 4 }
 0x195   : > { %v2270_v56 = vld [vmem:[#allocation2 + $0xc4] sm:$0xf] }
 0x196   : > { %v2116_v40 = vpop.permute.xlu2 %2115  ;;  %v2518_v32 = vrot.slane %v2516_v49, 5  ;;  %v2646_v23 = vshrl.u32 %v2270_v56, 16  ;;  %v2642_v3 = vshll.u32 %v2270_v56, 16  ;;  %v2607_v16 = vsel %vm5528_vm10, %v2602_v30, %v2606_v18  ;;  %v2259_v56 = vld [vmem:[#allocation2 + $0x98] sm:$0x1] }
 0x197   : > { %2698 = vrot.lane.b32.xlu0 %v2535_v42, %s5376_s26  ;;  %2202 = vst.msk [vmem:[#allocation3 + $0x28] sm:$0xf] %vm2191_vm0, %v2116_v40  ;;  %v2578_v42 = vrot.slane %v2577_v11, 4  ;;  %v2515_v11 = vrot.slane %v2513_v15, 4  ;;  %v2618_v40 = vshll.u32 %v6555_v31, 16 }
 0x198   : > { %v2648_v20 = vrot.slane %v2646_v23, 4  ;;  %v6587_v23 = vld [vmem:[#allocation2 + $0x10] sm:$0xf] }
 0x199   : > { %v2118_v13 = vpop.permute.xlu0 %2117  ;;  %2700 = vrot.lane.b32.xlu1 %v2549_v36, %s5376_s26  ;;  %v2636_v36 = vshll.u32 %v2269_v9, 16  ;;  %v2583_v53 = vsel %vm5528_vm10, %v2578_v42, %v2582_v17  ;;  %v2519_v49 = vor.u32 %v2518_v32, %v2515_v11  ;;  %v2487_v9 = vsel %vm5528_vm10, %v2482_v51, %v2486_v57  ;;  %v2263_v11 = vld [vmem:[#allocation2 + $0xa8] sm:$0xf] }
 0x19a   : > { %2203 = vst.msk [vmem:[#allocation3 + $0x2c] sm:$0xf] %vm2191_vm0, %v2118_v13  ;;  %v2616_v42 = vrot.slane %v2615_v26, 4  ;;  %v6572_v17 = vrot.slane %v2618_v40, 5  ;;  %v2588_v18 = vshll.u32 %v2263_v11, 16 }
 0x19b   : > { %v2120_v4 = vpop.permute.xlu1 %2119  ;;  %v2638_v13 = vrot.slane %v2636_v36, 5  ;;  %v2520_v62 = vrot.slane %v2519_v49, 4  ;;  %v2552_v36 = vrot.slane %v2550_v39, 4  ;;  %v2787_v49 = vld [vmem:[#allocation2 + $0x14] sm:$0x1] }
 0x19c   : > { %2204 = vst.msk [vmem:[#allocation3 + $0x30] sm:$0xf] %vm2191_vm0, %v2120_v4  ;;  %2684 = vrot.lane.b32.xlu2 %v2453_v8, %s5376_s26  ;;  %v2635_v8 = vrot.slane %v2633_v50, 4  ;;  %v2271_v4 = vld [vmem:[#allocation2 + $0xc8] sm:$0x1]  ;;  %v2621_v50 = vsel %vm5528_vm10, %v2616_v42, %v6572_v17  ;;  %v2590_v42 = vrot.slane %v2588_v18, 5 }
 0x19d   : > { %v2652_v57 = vshll.u32 %v2271_v4, 16  ;;  %v2525_v40 = vsel %vm5528_vm10, %v2520_v62, %v6508_v25  ;;  %v2553_v30 = vor.u32 %v2552_v36, %v6533_v2  ;;  %v2883_v25 = vrot.slane %v6587_v23, 5 }
 0x19e   : > { %v2122_v61 = vpop.permute.xlu2 %2121  ;;  %v2639_v34 = vor.u32 %v2638_v13, %v2635_v8  ;;  %v2556_v8 = vshll.u32 %v2259_v56, 16  ;;  %v2886_v62 = vrot.slane %v2787_v49, 5 }
 0x19f   : > { %2704 = vrot.lane.b32.xlu0 %v2573_v29, %s5376_s26  ;;  %2205 = vst.msk [vmem:[#allocation3 + $0x34] sm:$0xf] %vm2191_vm0, %v2122_v61  ;;  %v2644_v29 = vrot.slane %v2642_v3, 5  ;;  %v2585_v61 = vshrl.u32 %v2263_v11, 16  ;;  %v2654_v3 = vrot.slane %v2652_v57, 5 }
 0x1a1   : > { %v2124_v15 = vpop.permute.xlu0 %2123  ;;  %2706 = vrot.lane.b32.xlu1 %v2583_v53, %s5376_s26  ;;  %v2649_v51 = vor.u32 %v2648_v20, %v2644_v29  ;;  %v2640_v53 = vrot.slane %v2639_v34, 4  ;;  %v2554_v20 = vrot.slane %v2553_v30, 4  ;;  %v6599_v34 = vld [vmem:[#allocation2 + $0x1c] sm:$0xf] }
 0x1a2   : > { %2206 = vst.msk [vmem:[#allocation3 + $0x38] sm:$0xf] %vm2191_vm0, %v2124_v15 }
 0x1a3   : > { %v2126_v58 = vpop.permute.xlu1 %2125  ;;  %v2650_v13 = vrot.slane %v2649_v51, 4  ;;  %v2645_v15 = vsel %vm5528_vm10, %v2640_v53, %v2644_v29  ;;  %v2885_v29 = vrot.slane %v2883_v25, 4  ;;  %v2622_v51 = vshrl.u32 %v6555_v31, 16 }
 0x1a4   : > { %2207 = vst.msk [vmem:[#allocation3 + $0x3c] sm:$0xf] %vm2191_vm0, %v2126_v58  ;;  %2690 = vrot.lane.b32.xlu2 %v2487_v9, %s5376_s26  ;;  %v2587_v9 = vrot.slane %v2585_v61, 4  ;;  %v2558_v58 = vrot.slane %v2556_v8, 5  ;;  %v2792_v61 = vld [vmem:[#allocation2 + $0x28] sm:$0xf] }
 0x1a5   : > { %v2655_v2 = vsel %vm5528_vm10, %v2650_v13, %v2654_v3  ;;  %v2887_v53 = vsel %vm6097_vm15, %v2885_v29, %v2886_v62  ;;  %v2624_v18 = vrot.slane %v2622_v51, 4  ;;  %v2268_v8 = vld [vmem:[#allocation2 + $0xbc] sm:$0x1]  ;;  %v2793_v13 = vld [vmem:[#allocation2 + $0x2c] sm:$0x1] }
 0x1a6   : > { %v2128_v32 = vpop.permute.xlu2 %2127  ;;  %v2591_v36 = vor.u32 %v2590_v42, %v2587_v9  ;;  %v2559_v57 = vsel %vm5528_vm10, %v2554_v20, %v2558_v58  ;;  %v6624_v9 = vld [vmem:[#allocation2 + $0x34] sm:$0xf]  ;;  %v2628_v20 = vshll.u32 %v2268_v8, 16  ;;  %v2797_v51 = vld [vmem:[#allocation2 + $0x3c] sm:$0xe] }
 0x1a7   : > { %2710 = vrot.lane.b32.xlu0 %v2607_v16, %s5376_s26  ;;  %2208 = vst.msk [vmem:[#allocation3 + $0x40] sm:$0xf] %vm2191_vm0, %v2128_v32  ;;  %v2788_v16 = vld [vmem:[#allocation2 + $0x18] sm:$0xe]  ;;  %v2890_v32 = vrot.slane %v6599_v34, 5  ;;  %v2625_v42 = vor.u32 %v2624_v18, %v6572_v17  ;;  %v2904_v29 = vrot.slane %v6624_v9, 5 }
 0x1a8   : > { %v5179_v11 = vrot.slane %v2788_v16, 9  ;;  %v2785_v18 = vld [vmem:[#allocation2 + $0xc] sm:$0xe]  ;;  %v2800_v8 = vld [vmem:[#allocation2 + $0x48] sm:$0xe] }
 0x1a9   : > { %v2130_v26 = vpop.permute.xlu0 %2129  ;;  %2712 = vrot.lane.b32.xlu1 %v2621_v50, %s5376_s26  ;;  %v2626_v62 = vrot.slane %v2625_v42, 4  ;;  %v5183_v42 = vrot.slane %v2800_v8, 9 }
 0x1aa   : > { %2209 = vst.msk [vmem:[#allocation3 + $0x44] sm:$0xf] %vm2191_vm0, %v2130_v26  ;;  %v2592_v26 = vrot.slane %v2591_v36, 4  ;;  %v2891_v31 = vsel %vm6097_vm15, %v5179_v11, %v2890_v32  ;;  %v2906_v11 = vrot.slane %v2904_v29, 4 }
 0x1ab   : > { %v2132_v39 = vpop.permute.xlu1 %2131 }
 0x1ac   : > { %2210 = vst.msk [vmem:[#allocation3 + $0x48] sm:$0xf] %vm2191_vm0, %v2132_v39  ;;  %2696 = vrot.lane.b32.xlu2 %v2525_v40, %s5376_s26  ;;  %v2791_v40 = vld [vmem:[#allocation2 + $0x24] sm:$0xe]  ;;  %v2897_v39 = vrot.slane %v2792_v61, 5  ;;  %v2597_v49 = vsel %vm5528_vm10, %v2592_v26, %v6550_v54 }
 0x1ad   : > { %v5180_v3 = vrot.slane %v2791_v40, 9  ;;  %v2796_v54 = vld [vmem:[#allocation2 + $0x38] sm:$0x1]  ;;  %v5182_v40 = vrot.slane %v2797_v51, 9 }
 0x1ae   : > { %v2134_v4 = vpop.permute.xlu2 %2133  ;;  %v2899_v58 = vrot.slane %v2897_v39, 4 }
 0x1af   : > { %2716 = vrot.lane.b32.xlu0 %v2645_v15, %s5376_s26  ;;  %2211 = vst.msk [vmem:[#allocation3 + $0x4c] sm:$0xf] %vm2191_vm0, %v2134_v4  ;;  %v2898_v16 = vsel %vm6097_vm15, %v5180_v3, %v2897_v39  ;;  %v5178_v3 = vrot.slane %v2785_v18, 9  ;;  %v2794_v18 = vld [vmem:[#allocation2 + $0x30] sm:$0xe] }
 0x1b1   : > { %v2136_v50 = vpop.permute.xlu0 %2135  ;;  %2718 = vrot.lane.b32.xlu1 %v2655_v2, %s5376_s26  ;;  %v2900_v2 = vrot.slane %v2793_v13, 5  ;;  %v2801_v13 = vld [vmem:[#allocation2 + $0x4c] sm:$0xf] }
 0x1b2   : > { %2212 = vst.msk [vmem:[#allocation3 + $0x50] sm:$0xf] %vm2191_vm0, %v2136_v50  ;;  %v2630_v50 = vrot.slane %v2628_v20, 5  ;;  %v2918_v20 = vrot.slane %v2801_v13, 5 }
 0x1b3   : > { %v2138_v56 = vpop.permute.xlu1 %2137  ;;  %v2901_v36 = vsel %vm6097_vm15, %v2899_v58, %v2900_v2  ;;  %v3317_v2 = vld [vmem:[#allocation2 + $0x1c] sm:$0xf] }
 0x1b4   : > { %2213 = vst.msk [vmem:[#allocation3 + $0x54] sm:$0xf] %vm2191_vm0, %v2138_v56  ;;  %2702 = vrot.lane.b32.xlu2 %v2559_v57, %s5376_s26  ;;  %v6636_v57 = vld [vmem:[#allocation2 + $0x40] sm:$0xf]  ;;  %v2907_v56 = vrot.slane %v2796_v54, 5  ;;  %v2631_v26 = vsel %vm5528_vm10, %v2626_v62, %v2630_v50  ;;  %v3378_v51 = vshrl.u32 %v3317_v2, 16 }
 0x1b5   : > { %v2911_v61 = vrot.slane %v6636_v57, 5  ;;  %v2790_v50 = vld [vmem:[#allocation2 + $0x20] sm:$0x1]  ;;  %v3321_v57 = vld [vmem:[#allocation2 + $0x2c] sm:$0x1] }
 0x1b6   : > { %v2140_v30 = vpop.permute.xlu2 %2139  ;;  %v2893_v23 = vrot.slane %v2790_v50, 5 }
 0x1b7   : > { %2995 = vrot.lane.b32.xlu0 %v2887_v53, %s5377_s29  ;;  %2214 = vst.msk [vmem:[#allocation3 + $0x58] sm:$0xf] %vm2191_vm0, %v2140_v30  ;;  %v2908_v30 = vsel %vm6097_vm15, %v2906_v11, %v2907_v56  ;;  %v2912_v39 = vsel %vm6097_vm15, %v5182_v40, %v2911_v61  ;;  %v2892_v11 = vrot.slane %v2890_v32, 4  ;;  %v2913_v9 = vrot.slane %v2911_v61, 4 }
 0x1b9   : > { %v2142_v15 = vpop.permute.xlu0 %2141  ;;  %2997 = vrot.lane.b32.xlu1 %v2891_v31, %s5377_s29  ;;  %v2894_v34 = vsel %vm6097_vm15, %v2892_v11, %v2893_v23 }
 0x1ba   : > { %2215 = vst.msk [vmem:[#allocation3 + $0x5c] sm:$0xf] %vm2191_vm0, %v2142_v15 }
 0x1bb   : > { %v2144_v4 = vpop.permute.xlu1 %2143 }
 0x1bc   : > { %2216 = vst.msk [vmem:[#allocation3 + $0x60] sm:$0xf] %vm2191_vm0, %v2144_v4  ;;  %2708 = vrot.lane.b32.xlu2 %v2597_v49, %s5376_s26  ;;  %v2802_v49 = vld [vmem:[#allocation2 + $0x50] sm:$0x1]  ;;  %v2884_v4 = vsel %vm6097_vm15, %v5178_v3, %v2883_v25  ;;  %v5181_v3 = vrot.slane %v2794_v18, 9 }
 0x1bd   : > { %v2921_v54 = vrot.slane %v2802_v49, 5  ;;  %v3877_v49 = vld [vmem:[#allocation2 + $0x18] sm:$0xe] }
 0x1be   : > { %v2146_v17 = vpop.permute.xlu2 %2145 }
 0x1bf   : > { %3001 = vrot.lane.b32.xlu0 %v2898_v16, %s5377_s29  ;;  %2217 = vst.msk [vmem:[#allocation3 + $0x64] sm:$0xf] %vm2191_vm0, %v2146_v17  ;;  %v2920_v16 = vrot.slane %v2918_v20, 4  ;;  %v3374_v17 = vshll.u32 %v3317_v2, 16 }
 0x1c1   : > { %v2148_v53 = vpop.permute.xlu0 %2147  ;;  %3003 = vrot.lane.b32.xlu1 %v2901_v36, %s5377_s29  ;;  %v2919_v36 = vsel %vm6097_vm15, %v5183_v42, %v2918_v20  ;;  %v2922_v25 = vsel %vm6097_vm15, %v2920_v16, %v2921_v54  ;;  %v6682_v42 = vld [vmem:[#allocation2 + $0x1c] sm:$0xf]  ;;  %v2905_v16 = vsel %vm6097_vm15, %v5181_v3, %v2904_v29  ;;  %v5194_v54 = vrot.slane %v3877_v49, 9 }
 0x1c2   : > { %2218 = vst.msk [vmem:[#allocation3 + $0x68] sm:$0xf] %vm2191_vm0, %v2148_v53  ;;  %v6672_v53 = vrot.slane %v3374_v17, 5 }
 0x1c3   : > { %v2150_v31 = vpop.permute.xlu1 %2149 }
 0x1c4   : > { %2219 = vst.msk [vmem:[#allocation3 + $0x6c] sm:$0xf] %vm2191_vm0, %v2150_v31  ;;  %2714 = vrot.lane.b32.xlu2 %v2631_v26, %s5376_s26  ;;  %v3380_v26 = vrot.slane %v3378_v51, 4  ;;  %v3318_v31 = vld [vmem:[#allocation2 + $0x20] sm:$0x1] }
 0x1c5   : > { %v3384_v13 = vshll.u32 %v3318_v31, 16 }
 0x1c6   : > { %v2152_v15 = vpop.permute.xlu2 %2151  ;;  %v3381_v8 = vor.u32 %v3380_v26, %v6672_v53 }
 0x1c7   : > { %3007 = vrot.lane.b32.xlu0 %v2908_v30, %s5377_s29  ;;  %2220 = vst.msk [vmem:[#allocation3 + $0x70] sm:$0xf] %vm2191_vm0, %v2152_v15  ;;  %v3123_v30 = vld [vmem:[#allocation2 + $0x18] sm:$0xf] }
 0x1c8   : > { %v3382_v20 = vrot.slane %v3381_v8, 4  ;;  %v6710_v8 = vld [vmem:[#allocation2 + $0x58] sm:$0xf] }
 0x1c9   : > { %v2154_v58 = vpop.permute.xlu0 %2153  ;;  %3009 = vrot.lane.b32.xlu1 %v2912_v39, %s5377_s29  ;;  %v3124_v39 = vld [vmem:[#allocation2 + $0x1c] sm:$0xf] }
 0x1ca   : > { %2221 = vst.msk [vmem:[#allocation3 + $0x74] sm:$0xf] %vm2191_vm0, %v2154_v58  ;;  %v3386_v58 = vrot.slane %v3384_v13, 5  ;;  %v3125_v13 = vld [vmem:[#allocation2 + $0x24] sm:$0xf] }
 0x1cb   : > { %v2156_v62 = vpop.permute.xlu1 %2155 }
 0x1cc   : > { %2222 = vst.msk [vmem:[#allocation3 + $0x78] sm:$0xf] %vm2191_vm0, %v2156_v62  ;;  %2993 = vrot.lane.b32.xlu2 %v2884_v4, %s5377_s29  ;;  %v3320_v4 = vld [vmem:[#allocation2 + $0x28] sm:$0xf]  ;;  %v3975_v62 = vrot.slane %v6682_v42, 5  ;;  %v3387_v17 = vsel %vm5528_vm10, %v3382_v20, %v3386_v58  ;;  %v2925_v58 = vrot.slane %v6710_v8, 5 }
 0x1cd   : > { %v3398_v51 = vshll.u32 %v3320_v4, 16  ;;  %v3402_v11 = vshrl.u32 %v3320_v4, 16 }
 0x1ce   : > { %v2158_v56 = vpop.permute.xlu2 %2157  ;;  %v3976_v29 = vsel %vm6097_vm15, %v5194_v54, %v3975_v62  ;;  %v6717_v54 = vld [vmem:[#allocation2 + $0x28] sm:$0xf] }
 0x1cf   : > { %3013 = vrot.lane.b32.xlu0 %v2919_v36, %s5377_s29  ;;  %2223 = vst.msk [vmem:[#allocation3 + $0x7c] sm:$0xf] %vm2191_vm0, %v2158_v56  ;;  %v2799_v36 = vld [vmem:[#allocation2 + $0x44] sm:$0x1]  ;;  %v6704_v26 = vrot.slane %v3398_v51, 5 }
 0x1d0   : > { %v2914_v23 = vrot.slane %v2799_v36, 5 }
 0x1d1   : > { %v2657_v40 = vpop.permute.xlu0 %2656  ;;  %3015 = vrot.lane.b32.xlu1 %v2922_v25, %s5377_s29  ;;  %v3316_v25 = vld [vmem:[#allocation2 + $0x18] sm:$0xf] }
 0x1d2   : > { %2753 = vst.msk [vmem:[#allocation3] sm:$0xf] %vm2752_vm2, %v2657_v40  ;;  %v3404_v40 = vrot.slane %v3402_v11, 4  ;;  %v3365_v61 = vshrl.u32 %v3316_v25, 16 }
 0x1d3   : > { %v2659_v32 = vpop.permute.xlu1 %2658 }
 0x1d4   : > { %2754 = vst.msk [vmem:[#allocation3 + $0x4] sm:$0xf] %vm2752_vm2, %v2659_v32  ;;  %2999 = vrot.lane.b32.xlu2 %v2894_v34, %s5377_s29  ;;  %v3368_v34 = vshll.u32 %v3316_v25, 16  ;;  %v2915_v32 = vsel %vm6097_vm15, %v2913_v9, %v2914_v23  ;;  %v3405_v3 = vor.u32 %v3404_v40, %v6704_v26  ;;  %v3982_v23 = vrot.slane %v6717_v54, 5  ;;  %v3340_v25 = vld [vmem:[#allocation2 + $0x78] sm:$0xf] }
 0x1d6   : > { %v2661_v15 = vpop.permute.xlu2 %2660  ;;  %v3370_v49 = vrot.slane %v3368_v34, 5  ;;  %v3319_v34 = vld [vmem:[#allocation2 + $0x24] sm:$0xf] }
 0x1d7   : > { %3187 = vrot.lane.b32.xlu0 %v3123_v30, %s5378_s30  ;;  %2755 = vst.msk [vmem:[#allocation3 + $0x8] sm:$0xf] %vm2752_vm2, %v2661_v15  ;;  %v2803_v30 = vld [vmem:[#allocation2 + $0x54] sm:$0xe]  ;;  %v3367_v15 = vrot.slane %v3365_v61, 4 }
 0x1d8   : > { %v5184_v20 = vrot.slane %v2803_v30, 9 }
 0x1d9   : > { %v2663_v2 = vpop.permute.xlu0 %2662  ;;  %3189 = vrot.lane.b32.xlu1 %v3124_v39, %s5378_s30  ;;  %v3408_v39 = vshll.u32 %v3321_v57, 16  ;;  %v3371_v51 = vor.u32 %v3370_v49, %v3367_v15  ;;  %v2810_v57 = vld [vmem:[#allocation2 + $0x70] sm:$0xf] }
 0x1da   : > { %2756 = vst.msk [vmem:[#allocation3 + $0xc] sm:$0xf] %vm2752_vm2, %v2663_v2  ;;  %v3126_v2 = vld [vmem:[#allocation2 + $0x28] sm:$0xf]  ;;  %v2926_v11 = vsel %vm6097_vm15, %v5184_v20, %v2925_v58  ;;  %v3389_v20 = vshrl.u32 %v3319_v34, 16 }
 0x1db   : > { %v2665_v50 = vpop.permute.xlu1 %2664  ;;  %v3410_v36 = vrot.slane %v3408_v39, 5  ;;  %v3372_v40 = vrot.slane %v3371_v51, 4  ;;  %v2939_v39 = vrot.slane %v2810_v57, 5  ;;  %v3879_v51 = vld [vmem:[#allocation2 + $0x20] sm:$0x1] }
 0x1dc   : > { %2757 = vst.msk [vmem:[#allocation3 + $0x10] sm:$0xf] %vm2752_vm2, %v2665_v50  ;;  %3005 = vrot.lane.b32.xlu2 %v2905_v16, %s5377_s29  ;;  %v3880_v16 = vld [vmem:[#allocation2 + $0x24] sm:$0xe]  ;;  %v3406_v50 = vrot.slane %v3405_v3, 4 }
 0x1dd   : > { %v5195_v9 = vrot.slane %v3880_v16, 9  ;;  %v3377_v49 = vsel %vm5528_vm10, %v3372_v40, %v6672_v53  ;;  %v3977_v53 = vrot.slane %v3975_v62, 4 }
 0x1de   : > { %v2667_v56 = vpop.permute.xlu2 %2666 }
 0x1df   : > { %3750 = vrot.lane.b32.xlu0 %v3387_v17, %s5379_s9  ;;  %2758 = vst.msk [vmem:[#allocation3 + $0x14] sm:$0xf] %vm2752_vm2, %v2667_v56  ;;  %v3411_v56 = vsel %vm5528_vm10, %v3406_v50, %v3410_v36  ;;  %v3983_v61 = vsel %vm6097_vm15, %v5195_v9, %v3982_v23 }
 0x1e1   : > { %v2669_v31 = vpop.permute.xlu0 %2668  ;;  %4085 = vrot.lane.b32.xlu1 %v3976_v29, %s5380_s10 }
 0x1e2   : > { %2759 = vst.msk [vmem:[#allocation3 + $0x18] sm:$0xf] %vm2752_vm2, %v2669_v31  ;;  %v2809_v31 = vld [vmem:[#allocation2 + $0x6c] sm:$0xe] }
 0x1e3   : > { %v2671_v18 = vpop.permute.xlu1 %2670  ;;  %v5186_v3 = vrot.slane %v2809_v31, 9 }
 0x1e4   : > { %2760 = vst.msk [vmem:[#allocation3 + $0x1c] sm:$0xf] %vm2752_vm2, %v2671_v18  ;;  %3011 = vrot.lane.b32.xlu2 %v2915_v32, %s5377_s29  ;;  %v3557_v32 = vshrl.u32 %v3340_v25, 16  ;;  %v3560_v18 = vshll.u32 %v3340_v25, 16 }
 0x1e5   : > { %v2940_v9 = vsel %vm6097_vm15, %v5186_v3, %v2939_v39  ;;  %v3140_v3 = vld [vmem:[#allocation2 + $0x7c] sm:$0xf] }
 0x1e6   : > { %v2673_v4 = vpop.permute.xlu2 %2672  ;;  %v3559_v50 = vrot.slane %v3557_v32, 4  ;;  %v3562_v36 = vrot.slane %v3560_v18, 5 }
 0x1e7   : > { %3191 = vrot.lane.b32.xlu0 %v3125_v13, %s5378_s30  ;;  %2761 = vst.msk [vmem:[#allocation3 + $0x20] sm:$0xf] %vm2752_vm2, %v2673_v4  ;;  %v2811_v13 = vld [vmem:[#allocation2 + $0x74] sm:$0x1]  ;;  %v2941_v4 = vrot.slane %v2939_v39, 4 }
 0x1e8   : > { %v2942_v16 = vrot.slane %v2811_v13, 5  ;;  %v3563_v31 = vor.u32 %v3562_v36, %v3559_v50  ;;  %v3322_v13 = vld [vmem:[#allocation2 + $0x30] sm:$0xf]  ;;  %v3903_v50 = vld [vmem:[#allocation2 + $0x80] sm:$0x1] }
 0x1e9   : > { %v2675_v17 = vpop.permute.xlu0 %2674  ;;  %3193 = vrot.lane.b32.xlu1 %v3126_v2, %s5378_s30  ;;  %v3392_v2 = vshll.u32 %v3319_v34, 16 }
 0x1ea   : > { %2762 = vst.msk [vmem:[#allocation3 + $0x24] sm:$0xf] %vm2752_vm2, %v2675_v17  ;;  %v2943_v40 = vsel %vm6097_vm15, %v2941_v4, %v2942_v16  ;;  %v3564_v62 = vrot.slane %v3563_v31, 4  ;;  %v3416_v4 = vshll.u32 %v3322_v13, 16  ;;  %v3882_v31 = vld [vmem:[#allocation2 + $0x2c] sm:$0x1] }
 0x1eb   : > { %v2677_v29 = vpop.permute.xlu1 %2676  ;;  %v3394_v25 = vrot.slane %v3392_v2, 5  ;;  %v3413_v2 = vshrl.u32 %v3322_v13, 16 }
 0x1ec   : > { %2763 = vst.msk [vmem:[#allocation3 + $0x28] sm:$0xf] %vm2752_vm2, %v2677_v29  ;;  %3017 = vrot.lane.b32.xlu2 %v2926_v11, %s5377_s29  ;;  %v6742_v11 = vld [vmem:[#allocation2 + $0x7c] sm:$0xf]  ;;  %v3391_v29 = vrot.slane %v3389_v20, 4 }
 0x1ed   : > { %v3566_v57 = vshll.u32 %v6742_v11, 16 }
 0x1ee   : > { %v2679_v30 = vpop.permute.xlu2 %2678  ;;  %v3395_v32 = vor.u32 %v3394_v25, %v3391_v29  ;;  %v4034_v29 = vrot.slane %v3903_v50, 5  ;;  %v3415_v25 = vrot.slane %v3413_v2, 4  ;;  %v3884_v2 = vld [vmem:[#allocation2 + $0x34] sm:$0xf]  ;;  %v3342_v50 = vld [vmem:[#allocation2 + $0x80] sm:$0x1] }
 0x1ef   : > { %3754 = vrot.lane.b32.xlu0 %v3411_v56, %s5379_s9  ;;  %2764 = vst.msk [vmem:[#allocation3 + $0x2c] sm:$0xf] %vm2752_vm2, %v2679_v30  ;;  %v3978_v56 = vrot.slane %v3879_v51, 5  ;;  %v6759_v18 = vrot.slane %v3566_v57, 5  ;;  %v6773_v57 = vld [vmem:[#allocation2 + $0x34] sm:$0xf] }
 0x1f0   : > { %v3396_v39 = vrot.slane %v3395_v32, 4 }
 0x1f1   : > { %v2681_v15 = vpop.permute.xlu0 %2680  ;;  %4089 = vrot.lane.b32.xlu1 %v3983_v61, %s5380_s10  ;;  %v3979_v42 = vsel %vm6097_vm15, %v3977_v53, %v3978_v56  ;;  %v3569_v20 = vsel %vm5528_vm10, %v3564_v62, %v6759_v18  ;;  %v3418_v56 = vrot.slane %v3416_v4, 5  ;;  %v3422_v62 = vshll.u32 %v6773_v57, 16 }
 0x1f2   : > { %2765 = vst.msk [vmem:[#allocation3 + $0x30] sm:$0xf] %vm2752_vm2, %v2681_v15  ;;  %v3901_v15 = vld [vmem:[#allocation2 + $0x78] sm:$0xe] }
 0x1f3   : > { %v2683_v17 = vpop.permute.xlu1 %2682  ;;  %v5202_v36 = vrot.slane %v3901_v15, 9 }
 0x1f4   : > { %2766 = vst.msk [vmem:[#allocation3 + $0x34] sm:$0xf] %vm2752_vm2, %v2683_v17  ;;  %3748 = vrot.lane.b32.xlu2 %v3377_v49, %s5379_s9  ;;  %v3902_v49 = vld [vmem:[#allocation2 + $0x7c] sm:$0xf] }
 0x1f5   : > { %v4031_v17 = vrot.slane %v3902_v49, 5  ;;  %v3128_v49 = vld [vmem:[#allocation2 + $0x34] sm:$0xf] }
 0x1f6   : > { %v2685_v61 = vpop.permute.xlu2 %2684 }
 0x1f7   : > { %3025 = vrot.lane.b32.xlu0 %v2940_v9, %s5377_s29  ;;  %2767 = vst.msk [vmem:[#allocation3 + $0x38] sm:$0xf] %vm2752_vm2, %v2685_v61  ;;  %v3401_v9 = vsel %vm5528_vm10, %v3396_v39, %v6704_v26  ;;  %v4033_v53 = vrot.slane %v4031_v17, 4  ;;  %v4032_v61 = vsel %vm6097_vm15, %v5202_v36, %v4031_v17  ;;  %v3984_v26 = vrot.slane %v3982_v23, 4  ;;  %v3885_v36 = vld [vmem:[#allocation2 + $0x38] sm:$0x1] }
 0x1f8   : > { %v6791_v39 = vrot.slane %v3422_v62, 5 }
 0x1f9   : > { %v2687_v34 = vpop.permute.xlu0 %2686  ;;  %3027 = vrot.lane.b32.xlu1 %v2943_v40, %s5377_s29  ;;  %v4035_v32 = vsel %vm6097_vm15, %v4033_v53, %v4034_v29  ;;  %v3139_v29 = vld [vmem:[#allocation2 + $0x78] sm:$0xf] }
 0x1fa   : > { %2768 = vst.msk [vmem:[#allocation3 + $0x3c] sm:$0xf] %vm2752_vm2, %v2687_v34  ;;  %v3985_v34 = vrot.slane %v3882_v31, 5 }
 0x1fb   : > { %v2689_v30 = vpop.permute.xlu1 %2688 }
 0x1fc   : > { %2769 = vst.msk [vmem:[#allocation3 + $0x40] sm:$0xf] %vm2752_vm2, %v2689_v30  ;;  %4087 = vrot.lane.b32.xlu2 %v3979_v42, %s5380_s10  ;;  %v3419_v42 = vor.u32 %v3418_v56, %v3415_v25  ;;  %v3986_v54 = vsel %vm6097_vm15, %v3984_v26, %v3985_v34  ;;  %v3343_v25 = vld [vmem:[#allocation2 + $0x84] sm:$0xf] }
 0x1fd   : > { %v3584_v62 = vshll.u32 %v3343_v25, 16 }
 0x1fe   : > { %v2691_v16 = vpop.permute.xlu2 %2690  ;;  %v3420_v23 = vrot.slane %v3419_v42, 4  ;;  %v3581_v42 = vshrl.u32 %v3343_v25, 16 }
 0x1ff   : > { %3221 = vrot.lane.b32.xlu0 %v3140_v3, %s5378_s30  ;;  %2770 = vst.msk [vmem:[#allocation3 + $0x44] sm:$0xf] %vm2752_vm2, %v2691_v16  ;;  %v3570_v3 = vshrl.u32 %v6742_v11, 16 }
 0x200   : > { %v3425_v11 = vsel %vm5528_vm10, %v3420_v23, %v6791_v39 }
 0x201   : > { %v2693_v51 = vpop.permute.xlu0 %2692  ;;  %3780 = vrot.lane.b32.xlu1 %v3569_v20, %s5379_s9  ;;  %v3883_v20 = vld [vmem:[#allocation2 + $0x30] sm:$0xe]  ;;  %v3572_v4 = vrot.slane %v3570_v3, 4 }
 0x202   : > { %2771 = vst.msk [vmem:[#allocation3 + $0x48] sm:$0xf] %vm2752_vm2, %v2693_v51  ;;  %v5196_v17 = vrot.slane %v3883_v20, 9  ;;  %v3989_v51 = vrot.slane %v3884_v2, 5  ;;  %v3583_v2 = vrot.slane %v3581_v42, 4 }
 0x203   : > { %v2695_v40 = vpop.permute.xlu1 %2694  ;;  %v3573_v56 = vor.u32 %v3572_v4, %v6759_v18 }
 0x204   : > { %2772 = vst.msk [vmem:[#allocation3 + $0x4c] sm:$0xf] %vm2752_vm2, %v2695_v40  ;;  %3752 = vrot.lane.b32.xlu2 %v3401_v9, %s5379_s9  ;;  %v6800_v9 = vld [vmem:[#allocation2 + $0x7c] sm:$0xf]  ;;  %v3576_v40 = vshll.u32 %v3342_v50, 16  ;;  %v3991_v31 = vrot.slane %v3989_v51, 4 }
 0x205   : > { %v2946_v34 = vrot.slane %v6800_v9, 5  ;;  %v3574_v3 = vrot.slane %v3573_v56, 4  ;;  %v3426_v50 = vshrl.u32 %v6773_v57, 16 }
 0x206   : > { %v2697_v30 = vpop.permute.xlu2 %2696 }
 0x207   : > { %4117 = vrot.lane.b32.xlu0 %v4032_v61, %s5380_s10  ;;  %2773 = vst.msk [vmem:[#allocation3 + $0x50] sm:$0xf] %vm2752_vm2, %v2697_v30  ;;  %v3992_v61 = vrot.slane %v3885_v36, 5  ;;  %v2814_v30 = vld [vmem:[#allocation2 + $0x80] sm:$0x1] }
 0x208   : > { %v2949_v20 = vrot.slane %v2814_v30, 5 }
 0x209   : > { %v2699_v13 = vpop.permute.xlu0 %2698  ;;  %4119 = vrot.lane.b32.xlu1 %v4035_v32, %s5380_s10  ;;  %v3990_v32 = vsel %vm6097_vm15, %v5196_v17, %v3989_v51  ;;  %v3993_v18 = vsel %vm6097_vm15, %v3991_v31, %v3992_v61  ;;  %v3428_v31 = vrot.slane %v3426_v50, 4  ;;  %v3326_v50 = vld [vmem:[#allocation2 + $0x40] sm:$0xf] }
 0x20a   : > { %2774 = vst.msk [vmem:[#allocation3 + $0x54] sm:$0xf] %vm2752_vm2, %v2699_v13  ;;  %v3344_v13 = vld [vmem:[#allocation2 + $0x88] sm:$0xf] }
 0x20b   : > { %v2701_v15 = vpop.permute.xlu1 %2700  ;;  %v3594_v23 = vshrl.u32 %v3344_v13, 16  ;;  %v3590_v4 = vshll.u32 %v3344_v13, 16  ;;  %v3127_v13 = vld [vmem:[#allocation2 + $0x30] sm:$0xf] }
 0x20c   : > { %2775 = vst.msk [vmem:[#allocation3 + $0x58] sm:$0xf] %vm2752_vm2, %v2701_v15  ;;  %4091 = vrot.lane.b32.xlu2 %v3986_v54, %s5380_s10  ;;  %v3578_v54 = vrot.slane %v3576_v40, 5  ;;  %v3141_v40 = vld [vmem:[#allocation2 + $0x84] sm:$0xf] }
 0x20d   : > { %v3596_v17 = vrot.slane %v3594_v23, 4  ;;  %v3592_v56 = vrot.slane %v3590_v4, 5 }
 0x20e   : > { %v2703_v16 = vpop.permute.xlu2 %2702  ;;  %v3579_v36 = vsel %vm5528_vm10, %v3574_v3, %v3578_v54  ;;  %v3325_v3 = vld [vmem:[#allocation2 + $0x3c] sm:$0xf]  ;;  %v3429_v54 = vor.u32 %v3428_v31, %v6791_v39  ;;  %v3446_v31 = vshll.u32 %v3326_v50, 16 }
 0x20f   : > { %3197 = vrot.lane.b32.xlu0 %v3128_v49, %s5378_s30  ;;  %2776 = vst.msk [vmem:[#allocation3 + $0x5c] sm:$0xf] %vm2752_vm2, %v2703_v16  ;;  %v2948_v49 = vrot.slane %v2946_v34, 4  ;;  %v3597_v57 = vor.u32 %v3596_v17, %v3592_v56  ;;  %v3440_v4 = vshll.u32 %v3325_v3, 16 }
 0x211   : > { %v2705_v53 = vpop.permute.xlu0 %2704  ;;  %3756 = vrot.lane.b32.xlu1 %v3425_v11, %s5379_s9  ;;  %v3586_v11 = vrot.slane %v3584_v62, 5  ;;  %v6827_v62 = vld [vmem:[#allocation2 + $0x88] sm:$0xf]  ;;  %v3598_v23 = vrot.slane %v3597_v57, 4 }
 0x212   : > { %2777 = vst.msk [vmem:[#allocation3 + $0x60] sm:$0xf] %vm2752_vm2, %v2705_v53  ;;  %v3345_v53 = vld [vmem:[#allocation2 + $0x8c] sm:$0x1] }
 0x213   : > { %v2707_v26 = vpop.permute.xlu1 %2706  ;;  %v3587_v25 = vor.u32 %v3586_v11, %v3583_v2  ;;  %v3600_v61 = vshll.u32 %v3345_v53, 16  ;;  %v3437_v11 = vshrl.u32 %v3325_v3, 16 }
 0x214   : > { %2778 = vst.msk [vmem:[#allocation3 + $0x64] sm:$0xf] %vm2752_vm2, %v2707_v26  ;;  %3219 = vrot.lane.b32.xlu2 %v3139_v29, %s5378_s30  ;;  %v2950_v29 = vsel %vm6097_vm15, %v2948_v49, %v2949_v20  ;;  %v4038_v20 = vrot.slane %v6827_v62, 5 }
 0x215   : > { %v3588_v42 = vrot.slane %v3587_v25, 4 }
 0x216   : > { %v2709_v15 = vpop.permute.xlu2 %2708 }
 0x217   : > { %4093 = vrot.lane.b32.xlu0 %v3990_v32, %s5380_s10  ;;  %2779 = vst.msk [vmem:[#allocation3 + $0x68] sm:$0xf] %vm2752_vm2, %v2709_v15  ;;  %v3324_v32 = vld [vmem:[#allocation2 + $0x38] sm:$0x1]  ;;  %v3602_v15 = vrot.slane %v3600_v61, 5  ;;  %v3593_v2 = vsel %vm5528_vm10, %v3588_v42, %v3592_v56  ;;  %v3439_v56 = vrot.slane %v3437_v11, 4 }
 0x218   : > { %v2812_v42 = vld [vmem:[#allocation2 + $0x78] sm:$0xe] }
 0x219   : > { %v2711_v16 = vpop.permute.xlu0 %2710  ;;  %4095 = vrot.lane.b32.xlu1 %v3993_v18, %s5380_s10  ;;  %v3432_v18 = vshll.u32 %v3324_v32, 16  ;;  %v3603_v17 = vsel %vm5528_vm10, %v3598_v23, %v3602_v15  ;;  %v3129_v23 = vld [vmem:[#allocation2 + $0x3c] sm:$0xf] }
 0x21a   : > { %2780 = vst.msk [vmem:[#allocation3 + $0x6c] sm:$0xf] %vm2752_vm2, %v2711_v16  ;;  %v3906_v16 = vld [vmem:[#allocation2 + $0x8c] sm:$0x1] }
 0x21b   : > { %v2713_v51 = vpop.permute.xlu1 %2712  ;;  %v3434_v39 = vrot.slane %v3432_v18, 5  ;;  %v4041_v25 = vrot.slane %v3906_v16, 5  ;;  %v5187_v18 = vrot.slane %v2812_v42, 9  ;;  %v6854_v16 = vld [vmem:[#allocation2 + $0x40] sm:$0xf] }
 0x21c   : > { %2781 = vst.msk [vmem:[#allocation3 + $0x70] sm:$0xf] %vm2752_vm2, %v2713_v51  ;;  %3782 = vrot.lane.b32.xlu2 %v3579_v36, %s5379_s9  ;;  %v3430_v36 = vrot.slane %v3429_v54, 4  ;;  %v3450_v51 = vshrl.u32 %v3326_v50, 16  ;;  %v3448_v54 = vrot.slane %v3446_v31, 5 }
 0x21d   : > { %v4250_v50 = vld [vmem:[%s7716_s3 + $0x10] sm:$0x3] }
 0x21e   : > { %v2715_v26 = vpop.permute.xlu2 %2714  ;;  %v3435_v61 = vsel %vm5528_vm10, %v3430_v36, %v3434_v39  ;;  %v2947_v36 = vsel %vm6097_vm15, %v5187_v18, %v2946_v34 }
 0x21f   : > { %3031 = vrot.lane.b32.xlu0 %v2950_v29, %s5377_s29  ;;  %2782 = vst.msk [vmem:[#allocation3 + $0x74] sm:$0xf] %vm2752_vm2, %v2715_v26  ;;  %v4040_v29 = vrot.slane %v4038_v20, 4  ;;  %v3452_v26 = vrot.slane %v3450_v51, 4  ;;  %v4340_v51 = vunpack.c.l.b16 %v4250_v50 }
 0x221   : > { %v2717_v30 = vpop.permute.xlu0 %2716  ;;  %3223 = vrot.lane.b32.xlu1 %v3141_v40, %s5378_s30  ;;  %v3442_v40 = vrot.slane %v3440_v4, 5  ;;  %v3453_v15 = vor.u32 %v3452_v26, %v3448_v54 }
 0x222   : > { %2783 = vst.msk [vmem:[#allocation3 + $0x78] sm:$0xf] %vm2752_vm2, %v2717_v30  ;;  %v3327_v30 = vld [vmem:[#allocation2 + $0x44] sm:$0x1] }
 0x223   : > { %v2719_v49 = vpop.permute.xlu1 %2718  ;;  %v3443_v3 = vor.u32 %v3442_v40, %v3439_v56  ;;  %v3454_v39 = vrot.slane %v3453_v15, 4  ;;  %v4343_v56 = vpack.c.b16 %v4340_v51, %v4340_v51  ;;  %v3888_v40 = vld [vmem:[#allocation2 + $0x44] sm:$0x1]  ;;  %v3904_v15 = vld [vmem:[#allocation2 + $0x84] sm:$0xe] }
 0x224   : > { %2784 = vst.msk [vmem:[#allocation3 + $0x7c] sm:$0xf] %vm2752_vm2, %v2719_v49  ;;  %3195 = vrot.lane.b32.xlu2 %v3127_v13, %s5378_s30  ;;  %v4042_v13 = vsel %vm6097_vm15, %v4040_v29, %v4041_v25  ;;  %v3456_v49 = vshll.u32 %v3327_v30, 16  ;;  %v3996_v25 = vrot.slane %v6854_v16, 5  ;;  %v3347_v30 = vld [vmem:[#allocation2 + $0x94] sm:$0xf] }
 0x225   : > { %v3444_v11 = vrot.slane %v3443_v3, 4  ;;  %v4397_v34 = vsel %vm4395_vm6, %v4343_v56, 0  ;;  %v3142_v3 = vld [vmem:[#allocation2 + $0x88] sm:$0xf]  ;;  %v5203_v50 = vrot.slane %v3904_v15, 9 }
 0x226   : > { %v2994_v53 = vpop.permute.xlu2 %2993  ;;  %4404 = vmatpush.bf16.msra.mxu0 %v4397_v34  ;;  %v3998_v26 = vrot.slane %v3996_v25, 4  ;;  %5337 = vmatpush.bf16.msra.mxu2 %v4397_v34  ;;  %v3132_v16 = vld [vmem:[#allocation2 + $0x4c] sm:$0xf] }
 0x227   : > { %3784 = vrot.lane.b32.xlu0 %v3593_v2, %s5379_s9  ;;  %3090 = vst.msk [vmem:[#allocation3] sm:$0xf] %vm3089_vm4, %v2994_v53  ;;  %v3449_v29 = vsel %vm5528_vm10, %v3444_v11, %v3448_v54  ;;  %v3618_v11 = vshrl.u32 %v3347_v30, 16  ;;  %v4039_v56 = vsel %vm6097_vm15, %v5203_v50, %v4038_v20 }
 0x229   : > { %v2996_v57 = vpop.permute.xlu0 %2995  ;;  %3786 = vrot.lane.b32.xlu1 %v3603_v17, %s5379_s9  ;;  %v3458_v17 = vrot.slane %v3456_v49, 5  ;;  %v3620_v51 = vrot.slane %v3618_v11, 4 }
 0x22a   : > { %3091 = vst.msk [vmem:[#allocation3 + $0x4] sm:$0xf] %vm3089_vm4, %v2996_v57  ;;  %v2815_v57 = vld [vmem:[#allocation2 + $0x84] sm:$0xe] }
 0x22b   : > { %v2998_v32 = vpop.permute.xlu1 %2997  ;;  %v3459_v9 = vsel %vm5528_vm10, %v3454_v39, %v3458_v17  ;;  %v5188_v54 = vrot.slane %v2815_v57, 9  ;;  %v3144_v57 = vld [vmem:[#allocation2 + $0x94] sm:$0xf] }
 0x22c   : > { %3092 = vst.msk [vmem:[#allocation3 + $0x8] sm:$0xf] %vm3089_vm4, %v2998_v32  ;;  %3758 = vrot.lane.b32.xlu2 %v3435_v61, %s5379_s9  ;;  %v6873_v61 = vld [vmem:[#allocation2 + $0x88] sm:$0xf]  ;;  %v3999_v32 = vrot.slane %v3888_v40, 5 }
 0x22d   : > { %v2953_v18 = vrot.slane %v6873_v61, 5 }
 0x22e   : > { %v3000_v2 = vpop.permute.xlu2 %2999  ;;  %v4000_v49 = vsel %vm6097_vm15, %v3998_v26, %v3999_v32  ;;  %v3907_v32 = vld [vmem:[#allocation2 + $0x90] sm:$0xe] }
 0x22f   : > { %4123 = vrot.lane.b32.xlu0 %v4042_v13, %s5380_s10  ;;  %3093 = vst.msk [vmem:[#allocation3 + $0xc] sm:$0xf] %vm3089_vm4, %v3000_v2  ;;  %v5336_v13 = vld [vmem:[%s7716_s3 + $0x8] sm:$0xff]  ;;  %v3614_v2 = vshll.u32 %v3347_v30, 16 }
 0x230   : > { %4405 = vmatpush.bf16.msra.mxu0 %v5336_v13  ;;  %5338 = vmatpush.bf16.msra.mxu2 %v5336_v13  ;;  %v3329_v13 = vld [vmem:[#allocation2 + $0x4c] sm:$0xf] }
 0x231   : > { %v3002_v4 = vpop.permute.xlu0 %3001  ;;  %3199 = vrot.lane.b32.xlu1 %v3129_v23, %s5378_s30  ;;  %v6897_v17 = vrot.slane %v3614_v2, 5  ;;  %v3470_v11 = vshll.u32 %v3329_v13, 16 }
 0x232   : > { %3094 = vst.msk [vmem:[#allocation3 + $0x10] sm:$0xf] %vm3089_vm4, %v3002_v4  ;;  %v5335_v4 = vld [vmem:[%s7716_s3] sm:$0xff] }
 0x233   : > { %v3004_v53 = vpop.permute.xlu1 %3003  ;;  %v3621_v34 = vor.u32 %v3620_v51, %v6897_v17 }
 0x234   : > { %3095 = vst.msk [vmem:[#allocation3 + $0x14] sm:$0xf] %vm3089_vm4, %v3004_v53  ;;  %3029 = vrot.lane.b32.xlu2 %v2947_v36, %s5377_s29  ;;  %v2954_v36 = vsel %vm6097_vm15, %v5188_v54, %v2953_v18  ;;  %4406 = vmatpush.bf16.msra.mxu0 %v5335_v4  ;;  %v5204_v54 = vrot.slane %v3907_v32, 9  ;;  %v3131_v32 = vld [vmem:[#allocation2 + $0x48] sm:$0xf] }
 0x235   : > { %5339 = vmatpush.bf16.msra.mxu2 %v5335_v4  ;;  %v3622_v62 = vrot.slane %v3621_v34, 4  ;;  %v3474_v4 = vshrl.u32 %v3329_v13, 16 }
 0x236   : > { %v3006_v31 = vpop.permute.xlu2 %3005 }
 0x237   : > { %3760 = vrot.lane.b32.xlu0 %v3449_v29, %s5379_s9  ;;  %3096 = vst.msk [vmem:[#allocation3 + $0x18] sm:$0xf] %vm3089_vm4, %v3006_v31  ;;  %v3348_v29 = vld [vmem:[#allocation2 + $0x98] sm:$0x1] }
 0x238   : > { %v3624_v31 = vshll.u32 %v3348_v29, 16  ;;  %v3476_v29 = vrot.slane %v3474_v4, 4 }
 0x239   : > { %v3008_v42 = vpop.permute.xlu0 %3007  ;;  %3762 = vrot.lane.b32.xlu1 %v3459_v9, %s5379_s9  ;;  %v3143_v9 = vld [vmem:[#allocation2 + $0x90] sm:$0xf] }
 0x23a   : > { %3097 = vst.msk [vmem:[#allocation3 + $0x1c] sm:$0xf] %vm3089_vm4, %v3008_v42  ;;  %v6909_v42 = vld [vmem:[#allocation2 + $0x94] sm:$0xf]  ;;  %v3626_v20 = vrot.slane %v3624_v31, 5 }
 0x23b   : > { %v3010_v23 = vpop.permute.xlu1 %3009 }
 0x23c   : > { %3098 = vst.msk [vmem:[#allocation3 + $0x20] sm:$0xf] %vm3089_vm4, %v3010_v23  ;;  %3225 = vrot.lane.b32.xlu2 %v3142_v3, %s5378_s30  ;;  %v3130_v3 = vld [vmem:[#allocation2 + $0x40] sm:$0xf]  ;;  %v4045_v23 = vrot.slane %v6909_v42, 5  ;;  %v3627_v2 = vsel %vm5528_vm10, %v3622_v62, %v3626_v20 }
 0x23e   : > { %v3012_v39 = vpop.permute.xlu2 %3011 }
 0x23f   : > { %4099 = vrot.lane.b32.xlu0 %v4000_v49, %s5380_s10  ;;  %3099 = vst.msk [vmem:[#allocation3 + $0x24] sm:$0xf] %vm3089_vm4, %v3012_v39  ;;  %v3886_v49 = vld [vmem:[#allocation2 + $0x3c] sm:$0xe]  ;;  %v3346_v39 = vld [vmem:[#allocation2 + $0x90] sm:$0xf] }
 0x240   : > { %v5197_v50 = vrot.slane %v3886_v49, 9  ;;  %v3608_v34 = vshll.u32 %v3346_v39, 16  ;;  %v6939_v49 = vld [vmem:[#allocation2 + $0x4c] sm:$0xf] }
 0x241   : > { %v3014_v53 = vpop.permute.xlu0 %3013  ;;  %3033 = vrot.lane.b32.xlu1 %v2954_v36, %s5377_s29  ;;  %v4046_v36 = vsel %vm6097_vm15, %v5204_v54, %v4045_v23 }
 0x242   : > { %3100 = vst.msk [vmem:[#allocation3 + $0x28] sm:$0xf] %vm3089_vm4, %v3014_v53  ;;  %v6925_v53 = vrot.slane %v3470_v11, 5  ;;  %v3997_v31 = vsel %vm6097_vm15, %v5197_v50, %v3996_v25  ;;  %v3610_v13 = vrot.slane %v3608_v34, 5 }
 0x243   : > { %v3016_v40 = vpop.permute.xlu1 %3015 }
 0x244   : > { %3101 = vst.msk [vmem:[#allocation3 + $0x2c] sm:$0xf] %vm3089_vm4, %v3016_v40  ;;  %4121 = vrot.lane.b32.xlu2 %v4039_v56, %s5380_s10  ;;  %v3330_v40 = vld [vmem:[#allocation2 + $0x50] sm:$0x1]  ;;  %v3477_v62 = vor.u32 %v3476_v29, %v6925_v53 }
 0x245   : > { %v3480_v20 = vshll.u32 %v3330_v40, 16  ;;  %v2818_v40 = vld [vmem:[#allocation2 + $0x90] sm:$0xe] }
 0x246   : > { %v3018_v26 = vpop.permute.xlu2 %3017 }
 0x247   : > { %3227 = vrot.lane.b32.xlu0 %v3143_v9, %s5378_s30  ;;  %3102 = vst.msk [vmem:[#allocation3 + $0x30] sm:$0xf] %vm3089_vm4, %v3018_v26  ;;  %v3605_v9 = vshrl.u32 %v3346_v39, 16  ;;  %v2817_v26 = vld [vmem:[#allocation2 + $0x8c] sm:$0x1]  ;;  %v3482_v11 = vrot.slane %v3480_v20, 5 }
 0x248   : > { %v2956_v54 = vrot.slane %v2817_v26, 5  ;;  %v2820_v20 = vld [vmem:[#allocation2 + $0x98] sm:$0x1] }
 0x249   : > { %v3188_v30 = vpop.permute.xlu0 %3187  ;;  %3229 = vrot.lane.b32.xlu1 %v3144_v57, %s5378_s30 }
 0x24a   : > { %3284 = vst.msk [vmem:[#allocation3] sm:$0xf] %vm3283_vm7, %v3188_v30  ;;  %v3607_v30 = vrot.slane %v3605_v9, 4  ;;  %v2819_v9 = vld [vmem:[#allocation2 + $0x94] sm:$0xf] }
 0x24b   : > { %v3190_v15 = vpop.permute.xlu1 %3189 }
 0x24c   : > { %3285 = vst.msk [vmem:[#allocation3 + $0x4] sm:$0xf] %vm3283_vm7, %v3190_v15  ;;  %3201 = vrot.lane.b32.xlu2 %v3130_v3, %s5378_s30  ;;  %v2955_v3 = vrot.slane %v2953_v18, 4  ;;  %v3889_v15 = vld [vmem:[#allocation2 + $0x48] sm:$0xe]  ;;  %v3611_v50 = vor.u32 %v3610_v13, %v3607_v30  ;;  %v5189_v30 = vrot.slane %v2818_v40, 9 }
 0x24d   : > { %v5198_v18 = vrot.slane %v3889_v15, 9  ;;  %v2960_v13 = vrot.slane %v2819_v9, 5 }
 0x24e   : > { %v3749_v51 = vpop.permute.xlu2 %3748  ;;  %v2957_v61 = vsel %vm6097_vm15, %v2955_v3, %v2956_v54 }
 0x24f   : > { %3790 = vrot.lane.b32.xlu0 %v3627_v2, %s5379_s9  ;;  %3845 = vst.msk [vmem:[#allocation3] sm:$0xf] %vm3844_vm8, %v3749_v51  ;;  %v3478_v2 = vrot.slane %v3477_v62, 4  ;;  %v3349_v51 = vld [vmem:[#allocation2 + $0x9c] sm:$0xf]  ;;  %v2962_v15 = vrot.slane %v2960_v13, 4 }
 0x250   : > { %v3632_v26 = vshll.u32 %v3349_v51, 16 }
 0x251   : > { %v3751_v56 = vpop.permute.xlu0 %3750  ;;  %4125 = vrot.lane.b32.xlu1 %v4046_v36, %s5380_s10  ;;  %v4003_v36 = vrot.slane %v6939_v49, 5  ;;  %v3483_v29 = vsel %vm5528_vm10, %v3478_v2, %v3482_v11  ;;  %v2963_v2 = vrot.slane %v2820_v20, 5  ;;  %v3331_v20 = vld [vmem:[#allocation2 + $0x54] sm:$0xf] }
 0x252   : > { %3846 = vst.msk [vmem:[#allocation3 + $0x4] sm:$0xf] %vm3844_vm8, %v3751_v56  ;;  %v3612_v56 = vrot.slane %v3611_v50, 4 }
 0x253   : > { %v4086_v57 = vpop.permute.xlu1 %4085  ;;  %v4004_v34 = vsel %vm6097_vm15, %v5198_v18, %v4003_v36  ;;  %v6963_v18 = vld [vmem:[#allocation2 + $0xa0] sm:$0xf]  ;;  %v2964_v40 = vsel %vm6097_vm15, %v2962_v15, %v2963_v2  ;;  %v3488_v15 = vshll.u32 %v3331_v20, 16 }
 0x254   : > { %4182 = vst.msk [vmem:[#allocation3] sm:$0xf] %vm4181_vm9, %v4086_v57  ;;  %4097 = vrot.lane.b32.xlu2 %v3997_v31, %s5380_s10  ;;  %v3328_v31 = vld [vmem:[#allocation2 + $0x48] sm:$0xf]  ;;  %v3629_v57 = vshrl.u32 %v3349_v51, 16  ;;  %v3617_v54 = vsel %vm5528_vm10, %v3612_v56, %v6897_v17  ;;  %v4047_v17 = vrot.slane %v4045_v23, 4 }
 0x256   : > { %v4088_v25 = vpop.permute.xlu2 %4087  ;;  %v3631_v11 = vrot.slane %v3629_v57, 4 }
 0x257   : > { %3203 = vrot.lane.b32.xlu0 %v3131_v32, %s5378_s30  ;;  %4183 = vst.msk [vmem:[#allocation3 + $0x4] sm:$0xf] %vm4181_vm9, %v4088_v25  ;;  %v3464_v25 = vshll.u32 %v3328_v31, 16 }
 0x259   : > { %v3192_v4 = vpop.permute.xlu0 %3191  ;;  %3205 = vrot.lane.b32.xlu1 %v3132_v16, %s5378_s30  ;;  %v3461_v16 = vshrl.u32 %v3328_v31, 16 }
 0x25a   : > { %3286 = vst.msk [vmem:[#allocation3 + $0x8] sm:$0xf] %vm3283_vm7, %v3192_v4  ;;  %v3634_v4 = vrot.slane %v3632_v26, 5 }
 0x25b   : > { %v3194_v39 = vpop.permute.xlu1 %3193  ;;  %v3463_v51 = vrot.slane %v3461_v16, 4 }
 0x25c   : > { %3287 = vst.msk [vmem:[#allocation3 + $0xc] sm:$0xf] %vm3283_vm7, %v3194_v39  ;;  %3035 = vrot.lane.b32.xlu2 %v2957_v61, %s5377_s29  ;;  %v3909_v61 = vld [vmem:[#allocation2 + $0x98] sm:$0x1]  ;;  %v2961_v39 = vsel %vm6097_vm15, %v5189_v30, %v2960_v13  ;;  %v3635_v9 = vor.u32 %v3634_v4, %v3631_v11  ;;  %v3146_v30 = vld [vmem:[#allocation2 + $0xa0] sm:$0xf] }
 0x25d   : > { %v4048_v56 = vrot.slane %v3909_v61, 5  ;;  %v3912_v4 = vld [vmem:[#allocation2 + $0xa4] sm:$0x1] }
 0x25e   : > { %v3753_v32 = vpop.permute.xlu2 %3752  ;;  %v5319_v62 = vld [vmem:[#allocation3] sm:$0xff]  ;;  %v3636_v23 = vrot.slane %v3635_v9, 4 }
 0x25f   : > { %3766 = vrot.lane.b32.xlu0 %v3483_v29, %s5379_s9  ;;  %3847 = vst.msk [vmem:[#allocation3 + $0x8] sm:$0xf] %vm3844_vm8, %v3753_v32  ;;  %5282 = vmatmul.msk.bf16.vlgmr.msra.gmra.mxu0 %vm4346_vm11, %v5319_v62  ;;  %v3466_v29 = vrot.slane %v3464_v25, 5  ;;  %v4049_v42 = vsel %vm6097_vm15, %v4047_v17, %v4048_v56  ;;  %v3485_v25 = vshrl.u32 %v3331_v20, 16 }
 0x261   : > { %v3755_v3 = vpop.permute.xlu0 %3754  ;;  %4101 = vrot.lane.b32.xlu1 %v4004_v34, %s5380_s10  ;;  %v3638_v34 = vshll.u32 %v6963_v18, 16  ;;  %v3467_v26 = vor.u32 %v3466_v29, %v3463_v51  ;;  %v4055_v29 = vrot.slane %v3912_v4, 5  ;;  %v3487_v56 = vrot.slane %v3485_v25, 4  ;;  %v3892_v25 = vld [vmem:[#allocation2 + $0x54] sm:$0xe] }
 0x262   : > { %3848 = vst.msk [vmem:[#allocation3 + $0xc] sm:$0xf] %vm3844_vm8, %v3755_v3  ;;  %v3910_v3 = vld [vmem:[#allocation2 + $0x9c] sm:$0xe]  ;;  %v3351_v4 = vld [vmem:[#allocation2 + $0xa4] sm:$0x1] }
 0x263   : > { %v4090_v50 = vpop.permute.xlu1 %4089  ;;  %v6980_v32 = vrot.slane %v3638_v34, 5  ;;  %v3468_v13 = vrot.slane %v3467_v26, 4  ;;  %v3891_v34 = vld [vmem:[#allocation2 + $0x50] sm:$0x1] }
 0x264   : > { %4184 = vst.msk [vmem:[#allocation3 + $0x8] sm:$0xf] %vm4181_vm9, %v4090_v50  ;;  %3788 = vrot.lane.b32.xlu2 %v3617_v54, %s5379_s9  ;;  %v3911_v54 = vld [vmem:[#allocation2 + $0xa0] sm:$0xf]  ;;  %v5205_v50 = vrot.slane %v3910_v3, 9  ;;  %v4006_v26 = vrot.slane %v3891_v34, 5 }
 0x265   : > { %v3641_v16 = vsel %vm5528_vm10, %v3636_v23, %v6980_v32  ;;  %v4052_v61 = vrot.slane %v3911_v54, 5  ;;  %v3473_v17 = vsel %vm5528_vm10, %v3468_v13, %v6925_v53  ;;  %v4005_v53 = vrot.slane %v4003_v36, 4 }
 0x266   : > { %v4092_v31 = vpop.permute.xlu2 %4091  ;;  %v3642_v13 = vshrl.u32 %v6963_v18, 16 }
 0x267   : > { %3037 = vrot.lane.b32.xlu0 %v2961_v39, %s5377_s29  ;;  %4185 = vst.msk [vmem:[#allocation3 + $0xc] sm:$0xf] %vm4181_vm9, %v4092_v31  ;;  %v4054_v51 = vrot.slane %v4052_v61, 4  ;;  %v6995_v31 = vld [vmem:[#allocation2 + $0x58] sm:$0xf]  ;;  %v4007_v49 = vsel %vm6097_vm15, %v4005_v53, %v4006_v26 }
 0x269   : > { %v3026_v57 = vpop.permute.xlu0 %3025  ;;  %3039 = vrot.lane.b32.xlu1 %v2964_v40, %s5377_s29  ;;  %v3490_v40 = vrot.slane %v3488_v15, 5  ;;  %v3893_v15 = vld [vmem:[#allocation2 + $0x58] sm:$0xf] }
 0x26a   : > { %3106 = vst.msk [vmem:[#allocation3 + $0x40] sm:$0xf] %vm3089_vm4, %v3026_v57  ;;  %v4053_v57 = vsel %vm6097_vm15, %v5205_v50, %v4052_v61  ;;  %v3894_v50 = vld [vmem:[#allocation2 + $0x5c] sm:$0x1]  ;;  %v5199_v61 = vrot.slane %v3892_v25, 9 }
 0x26b   : > { %v3028_v62 = vpop.permute.xlu1 %3027  ;;  %v3491_v23 = vor.u32 %v3490_v40, %v3487_v56  ;;  %v3352_v56 = vld [vmem:[#allocation2 + $0xa8] sm:$0xf] }
 0x26c   : > { %3107 = vst.msk [vmem:[#allocation3 + $0x44] sm:$0xf] %vm3089_vm4, %v3028_v62  ;;  %4127 = vrot.lane.b32.xlu2 %v4049_v42, %s5380_s10  ;;  %v4056_v42 = vsel %vm6097_vm15, %v4054_v51, %v4055_v29  ;;  %v3494_v62 = vshll.u32 %v6995_v31, 16  ;;  %v3145_v29 = vld [vmem:[#allocation2 + $0x9c] sm:$0xf] }
 0x26d   : > { %v3492_v36 = vrot.slane %v3491_v23, 4 }
 0x26e   : > { %v3220_v2 = vpop.permute.xlu2 %3219  ;;  %v5320_v11 = vld [vmem:[#allocation3 + $0x8] sm:$0xff]  ;;  %v7013_v3 = vrot.slane %v3494_v62, 5  ;;  %v3653_v62 = vshrl.u32 %v3352_v56, 16 }
 0x26f   : > { %3233 = vrot.lane.b32.xlu0 %v3146_v30, %s5378_s30  ;;  %3300 = vst.msk [vmem:[#allocation3 + $0x40] sm:$0xf] %vm3283_vm7, %v3220_v2  ;;  %5283 = vmatmul.msk.bf16.gmra.mxu0 %vm4346_vm11, %v5320_v11  ;;  %v3644_v2 = vrot.slane %v3642_v13, 4 }
 0x270   : > { %v3497_v18 = vsel %vm5528_vm10, %v3492_v36, %v7013_v3 }
 0x271   : > { %v3222_v39 = vpop.permute.xlu0 %3221  ;;  %3792 = vrot.lane.b32.xlu1 %v3641_v16, %s5379_s9  ;;  %v3134_v16 = vld [vmem:[#allocation2 + $0x58] sm:$0xf]  ;;  %v3645_v40 = vor.u32 %v3644_v2, %v6980_v32  ;;  %v3353_v32 = vld [vmem:[#allocation2 + $0xac] sm:$0xf] }
 0x272   : > { %3301 = vst.msk [vmem:[#allocation3 + $0x44] sm:$0xf] %vm3283_vm7, %v3222_v39  ;;  %v4010_v39 = vrot.slane %v3893_v15, 5 }
 0x273   : > { %v3781_v9 = vpop.permute.xlu1 %3780  ;;  %v3646_v13 = vrot.slane %v3645_v40, 4 }
 0x274   : > { %3861 = vst.msk [vmem:[#allocation3 + $0x40] sm:$0xf] %vm3844_vm8, %v3781_v9  ;;  %3764 = vrot.lane.b32.xlu2 %v3473_v17, %s5379_s9  ;;  %v7022_v17 = vld [vmem:[#allocation2 + $0xa0] sm:$0xf]  ;;  %v3648_v9 = vshll.u32 %v3351_v4, 16  ;;  %v4012_v34 = vrot.slane %v4010_v39, 4  ;;  %v4011_v23 = vsel %vm6097_vm15, %v5199_v61, %v4010_v39 }
 0x275   : > { %v3498_v4 = vshrl.u32 %v6995_v31, 16 }
 0x276   : > { %v3783_v20 = vpop.permute.xlu2 %3782 }
 0x277   : > { %4129 = vrot.lane.b32.xlu0 %v4053_v57, %s5380_s10  ;;  %3862 = vst.msk [vmem:[#allocation3 + $0x44] sm:$0xf] %vm3844_vm8, %v3783_v20  ;;  %v4013_v57 = vrot.slane %v3894_v50, 5  ;;  %v3656_v20 = vshll.u32 %v3352_v56, 16  ;;  %v3500_v31 = vrot.slane %v3498_v4, 4 }
 0x278   : > { %v3915_v4 = vld [vmem:[#allocation2 + $0xb0] sm:$0x1] }
 0x279   : > { %v4118_v30 = vpop.permute.xlu0 %4117  ;;  %4131 = vrot.lane.b32.xlu1 %v4056_v42, %s5380_s10  ;;  %v2967_v42 = vrot.slane %v7022_v17, 5  ;;  %v4014_v36 = vsel %vm6097_vm15, %v4012_v34, %v4013_v57  ;;  %v3658_v2 = vrot.slane %v3656_v20, 5  ;;  %v3147_v34 = vld [vmem:[#allocation2 + $0xa8] sm:$0xf]  ;;  %v3333_v57 = vld [vmem:[#allocation2 + $0x5c] sm:$0x1] }
 0x27a   : > { %4198 = vst.msk [vmem:[#allocation3 + $0x40] sm:$0xf] %vm4181_vm9, %v4118_v30  ;;  %v2823_v30 = vld [vmem:[#allocation2 + $0xa4] sm:$0x1] }
 0x27b   : > { %v4120_v54 = vpop.permute.xlu1 %4119  ;;  %v2969_v25 = vrot.slane %v2967_v42, 4  ;;  %v2970_v15 = vrot.slane %v2823_v30, 5  ;;  %v3501_v30 = vor.u32 %v3500_v31, %v7013_v3 }
 0x27c   : > { %4199 = vst.msk [vmem:[#allocation3 + $0x44] sm:$0xf] %vm4181_vm9, %v4120_v54  ;;  %4103 = vrot.lane.b32.xlu2 %v4007_v49, %s5380_s10  ;;  %v3650_v49 = vrot.slane %v3648_v9, 5  ;;  %v3666_v54 = vshrl.u32 %v3353_v32, 16 }
 0x27d   : > { %v2971_v56 = vsel %vm6097_vm15, %v2969_v25, %v2970_v15  ;;  %v3334_v15 = vld [vmem:[#allocation2 + $0x60] sm:$0xf]  ;;  %v3502_v3 = vrot.slane %v3501_v30, 4 }
 0x27e   : > { %v3196_v11 = vpop.permute.xlu2 %3195  ;;  %v3651_v61 = vsel %vm5528_vm10, %v3646_v13, %v3650_v49  ;;  %v3668_v39 = vrot.slane %v3666_v54, 4  ;;  %v7052_v13 = vld [vmem:[#allocation2 + $0xac] sm:$0xf]  ;;  %v3133_v49 = vld [vmem:[#allocation2 + $0x54] sm:$0xf] }
 0x27f   : > { %3209 = vrot.lane.b32.xlu0 %v3134_v16, %s5378_s30  ;;  %3288 = vst.msk [vmem:[#allocation3 + $0x10] sm:$0xf] %vm3283_vm7, %v3196_v11  ;;  %v3662_v11 = vshll.u32 %v3353_v32, 16  ;;  %v3504_v32 = vshll.u32 %v3333_v57, 16 }
 0x281   : > { %v3198_v51 = vpop.permute.xlu0 %3197  ;;  %3768 = vrot.lane.b32.xlu1 %v3497_v18, %s5379_s9  ;;  %v3655_v18 = vrot.slane %v3653_v62, 4  ;;  %v3664_v9 = vrot.slane %v3662_v11, 5  ;;  %v3506_v11 = vrot.slane %v3504_v32, 5 }
 0x282   : > { %3289 = vst.msk [vmem:[#allocation3 + $0x14] sm:$0xf] %vm3283_vm7, %v3198_v51 }
 0x283   : > { %v3757_v53 = vpop.permute.xlu1 %3756  ;;  %v5327_v26 = vld [vmem:[#allocation3 + $0x40] sm:$0xff]  ;;  %v3659_v40 = vor.u32 %v3658_v2, %v3655_v18  ;;  %v4059_v2 = vrot.slane %v7052_v13, 5  ;;  %v3507_v31 = vsel %vm5528_vm10, %v3502_v3, %v3506_v11  ;;  %v3136_v3 = vld [vmem:[#allocation2 + $0x64] sm:$0xf]  ;;  %v3895_v11 = vld [vmem:[#allocation2 + $0x60] sm:$0xe] }
 0x284   : > { %3849 = vst.msk [vmem:[#allocation3 + $0x10] sm:$0xf] %vm3844_vm8, %v3757_v53  ;;  %3231 = vrot.lane.b32.xlu2 %v3145_v29, %s5378_s30  ;;  %5290 = vmatmul.msk.bf16.vlgmr.msra.gmra.mxu2 %vm4346_vm11, %v5327_v26  ;;  %v3354_v29 = vld [vmem:[#allocation2 + $0xb0] sm:$0x1]  ;;  %v3669_v53 = vor.u32 %v3668_v39, %v3664_v9  ;;  %v3512_v39 = vshll.u32 %v3334_v15, 16 }
 0x285   : > { %v3672_v26 = vshll.u32 %v3354_v29, 16  ;;  %v3660_v62 = vrot.slane %v3659_v40, 4  ;;  %v2805_v29 = vld [vmem:[#allocation2 + $0x5c] sm:$0x1]  ;;  %v4062_v40 = vrot.slane %v3915_v4, 5 }
 0x286   : > { %v3759_v16 = vpop.permute.xlu2 %3758  ;;  %v2928_v57 = vrot.slane %v2805_v29, 5  ;;  %v3896_v4 = vld [vmem:[#allocation2 + $0x64] sm:$0xf] }
 0x287   : > { %4105 = vrot.lane.b32.xlu0 %v4011_v23, %s5380_s10  ;;  %3850 = vst.msk [vmem:[#allocation3 + $0x14] sm:$0xf] %vm3844_vm8, %v3759_v16  ;;  %v3674_v54 = vrot.slane %v3672_v26, 5  ;;  %v3665_v18 = vsel %vm5528_vm10, %v3660_v62, %v3664_v9  ;;  %v3514_v26 = vrot.slane %v3512_v39, 5  ;;  %v2821_v62 = vld [vmem:[#allocation2 + $0x9c] sm:$0xe] }
 0x288   : > { %v5190_v32 = vrot.slane %v2821_v62, 9  ;;  %v4017_v39 = vrot.slane %v3896_v4, 5 }
 0x289   : > { %v4094_v50 = vpop.permute.xlu0 %4093  ;;  %4107 = vrot.lane.b32.xlu1 %v4014_v36, %s5380_s10  ;;  %v3670_v36 = vrot.slane %v3669_v53, 4 }
 0x28a   : > { %4186 = vst.msk [vmem:[#allocation3 + $0x10] sm:$0xf] %vm4181_vm9, %v4094_v50 }
 0x28b   : > { %v4096_v51 = vpop.permute.xlu1 %4095  ;;  %v3675_v50 = vsel %vm5528_vm10, %v3670_v36, %v3674_v54 }
 0x28c   : > { %4187 = vst.msk [vmem:[#allocation3 + $0x14] sm:$0xf] %vm4181_vm9, %v4096_v51  ;;  %3794 = vrot.lane.b32.xlu2 %v3651_v61, %s5379_s9  ;;  %v3509_v61 = vshrl.u32 %v3334_v15, 16 }
 0x28e   : > { %v3030_v23 = vpop.permute.xlu2 %3029  ;;  %v3511_v53 = vrot.slane %v3509_v61, 4  ;;  %v3897_v61 = vld [vmem:[#allocation2 + $0x68] sm:$0x1] }
 0x28f   : > { %3043 = vrot.lane.b32.xlu0 %v2971_v56, %s5377_s29  ;;  %3108 = vst.msk [vmem:[#allocation3 + $0x48] sm:$0xf] %vm3089_vm4, %v3030_v23  ;;  %v4061_v56 = vrot.slane %v4059_v2, 4 }
 0x290   : > { %v3515_v8 = vor.u32 %v3514_v26, %v3511_v53  ;;  %v3913_v53 = vld [vmem:[#allocation2 + $0xa8] sm:$0xe]  ;;  %v2826_v26 = vld [vmem:[#allocation2 + $0xb0] sm:$0x1] }
 0x291   : > { %v3032_v20 = vpop.permute.xlu0 %3031  ;;  %3235 = vrot.lane.b32.xlu1 %v3147_v34, %s5378_s30  ;;  %v2927_v34 = vrot.slane %v2925_v58, 4  ;;  %v4063_v30 = vsel %vm6097_vm15, %v4061_v56, %v4062_v40  ;;  %v7100_v56 = vld [vmem:[#allocation2 + $0xac] sm:$0xf]  ;;  %v3355_v40 = vld [vmem:[#allocation2 + $0xb4] sm:$0xf] }
 0x292   : > { %3109 = vst.msk [vmem:[#allocation3 + $0x4c] sm:$0xf] %vm3089_vm4, %v3032_v20  ;;  %v7073_v20 = vld [vmem:[#allocation2 + $0x64] sm:$0xf]  ;;  %v2974_v62 = vrot.slane %v7100_v56, 5 }
 0x293   : > { %v3224_v16 = vpop.permute.xlu1 %3223  ;;  %v5321_v25 = vld [vmem:[#allocation3 + $0x10] sm:$0xff]  ;;  %v3518_v58 = vshll.u32 %v7073_v20, 16 }
 0x294   : > { %3302 = vst.msk [vmem:[#allocation3 + $0x48] sm:$0xf] %vm3283_vm7, %v3224_v16  ;;  %3207 = vrot.lane.b32.xlu2 %v3133_v49, %s5378_s30  ;;  %5284 = vmatmul.msk.bf16.gmra.mxu0 %vm4346_vm11, %v5321_v25  ;;  %v2929_v49 = vsel %vm6097_vm15, %v2927_v34, %v2928_v57  ;;  %v2968_v16 = vsel %vm6097_vm15, %v5190_v32, %v2967_v42  ;;  %v3516_v25 = vrot.slane %v3515_v8, 4  ;;  %v5200_v42 = vrot.slane %v3895_v11, 9 }
 0x295   : > { %v7090_v15 = vrot.slane %v3518_v58, 5  ;;  %v4020_v34 = vrot.slane %v3897_v61, 5  ;;  %v3680_v32 = vshll.u32 %v3355_v40, 16  ;;  %v5206_v8 = vrot.slane %v3913_v53, 9 }
 0x296   : > { %v3226_v51 = vpop.permute.xlu2 %3225 }
 0x297   : > { %3796 = vrot.lane.b32.xlu0 %v3665_v18, %s5379_s9  ;;  %3303 = vst.msk [vmem:[#allocation3 + $0x4c] sm:$0xf] %vm3283_vm7, %v3226_v51 }
 0x299   : > { %v3785_v9 = vpop.permute.xlu0 %3784  ;;  %3798 = vrot.lane.b32.xlu1 %v3675_v50, %s5379_s9  ;;  %v3521_v50 = vsel %vm5528_vm10, %v3516_v25, %v7090_v15  ;;  %v2976_v25 = vrot.slane %v2974_v62, 4 }
 0x29a   : > { %3863 = vst.msk [vmem:[#allocation3 + $0x48] sm:$0xf] %vm3844_vm8, %v3785_v9  ;;  %v3148_v9 = vld [vmem:[#allocation2 + $0xac] sm:$0xf] }
 0x29b   : > { %v3787_v23 = vpop.permute.xlu1 %3786 }
 0x29c   : > { %3864 = vst.msk [vmem:[#allocation3 + $0x4c] sm:$0xf] %vm3844_vm8, %v3787_v23  ;;  %3770 = vrot.lane.b32.xlu2 %v3507_v31, %s5379_s9  ;;  %v4019_v31 = vrot.slane %v4017_v39, 4  ;;  %v4018_v23 = vsel %vm6097_vm15, %v5200_v42, %v4017_v39  ;;  %v3357_v39 = vld [vmem:[#allocation2 + $0xbc] sm:$0x1] }
 0x29e   : > { %v4122_v36 = vpop.permute.xlu2 %4121  ;;  %v4021_v58 = vsel %vm6097_vm15, %v4019_v31, %v4020_v34  ;;  %v3696_v34 = vshll.u32 %v3357_v39, 16  ;;  %v3338_v39 = vld [vmem:[#allocation2 + $0x70] sm:$0xf] }
 0x29f   : > { %4135 = vrot.lane.b32.xlu0 %v4063_v30, %s5380_s10  ;;  %4200 = vst.msk [vmem:[#allocation3 + $0x48] sm:$0xf] %vm4181_vm9, %v4122_v36  ;;  %v3677_v30 = vshrl.u32 %v3355_v40, 16 }
 0x2a1   : > { %v4124_v54 = vpop.permute.xlu0 %4123  ;;  %3019 = vrot.lane.b32.xlu1 %v2929_v49, %s5377_s29  ;;  %v3356_v49 = vld [vmem:[#allocation2 + $0xb8] sm:$0xf] }
 0x2a2   : > { %4201 = vst.msk [vmem:[#allocation3 + $0x4c] sm:$0xf] %vm4181_vm9, %v4124_v54  ;;  %v3690_v36 = vshrl.u32 %v3356_v49, 16  ;;  %v3686_v11 = vshll.u32 %v3356_v49, 16 }
 0x2a3   : > { %v3200_v18 = vpop.permute.xlu1 %3199 }
 0x2a4   : > { %3290 = vst.msk [vmem:[#allocation3 + $0x18] sm:$0xf] %vm3283_vm7, %v3200_v18  ;;  %3041 = vrot.lane.b32.xlu2 %v2968_v16, %s5377_s29  ;;  %v2977_v16 = vrot.slane %v2826_v26, 5  ;;  %v3679_v18 = vrot.slane %v3677_v30, 4  ;;  %v3692_v61 = vrot.slane %v3690_v36, 4  ;;  %v3688_v40 = vrot.slane %v3686_v11, 5 }
 0x2a5   : > { %v7129_v30 = vld [vmem:[#allocation2 + $0xb8] sm:$0xf] }
 0x2a6   : > { %v3202_v17 = vpop.permute.xlu2 %3201  ;;  %v3693_v31 = vor.u32 %v3692_v61, %v3688_v40 }
 0x2a7   : > { %3213 = vrot.lane.b32.xlu0 %v3136_v3, %s5378_s30  ;;  %3291 = vst.msk [vmem:[#allocation3 + $0x1c] sm:$0xf] %vm3283_vm7, %v3202_v17  ;;  %v3682_v3 = vrot.slane %v3680_v32, 5  ;;  %v4060_v17 = vsel %vm6097_vm15, %v5206_v8, %v4059_v2  ;;  %v3336_v2 = vld [vmem:[#allocation2 + $0x68] sm:$0x1] }
 0x2a8   : > { %v3528_v49 = vshll.u32 %v3336_v2, 16  ;;  %v3694_v8 = vrot.slane %v3693_v31, 4 }
 0x2a9   : > { %v3761_v51 = vpop.permute.xlu0 %3760  ;;  %v5328_v29 = vld [vmem:[#allocation3 + $0x48] sm:$0xff]  ;;  %3772 = vrot.lane.b32.xlu1 %v3521_v50, %s5379_s9  ;;  %v3522_v50 = vshrl.u32 %v7073_v20, 16  ;;  %v3149_v20 = vld [vmem:[#allocation2 + $0xb4] sm:$0xf] }
 0x2aa   : > { %3851 = vst.msk [vmem:[#allocation3 + $0x18] sm:$0xf] %vm3844_vm8, %v3761_v51  ;;  %5291 = vmatmul.msk.bf16.gmra.mxu2 %vm4346_vm11, %v5328_v29  ;;  %v2978_v51 = vsel %vm6097_vm15, %v2976_v25, %v2977_v16  ;;  %v3683_v29 = vor.u32 %v3682_v3, %v3679_v18  ;;  %v4066_v16 = vrot.slane %v7129_v30, 5  ;;  %v3918_v25 = vld [vmem:[#allocation2 + $0xbc] sm:$0x1]  ;;  %v3530_v3 = vrot.slane %v3528_v49, 5 }
 0x2ab   : > { %v3763_v57 = vpop.permute.xlu1 %3762  ;;  %v4069_v61 = vrot.slane %v3918_v25, 5  ;;  %v3339_v49 = vld [vmem:[#allocation2 + $0x74] sm:$0x1] }
 0x2ac   : > { %3852 = vst.msk [vmem:[#allocation3 + $0x1c] sm:$0xf] %vm3844_vm8, %v3763_v57  ;;  %3237 = vrot.lane.b32.xlu2 %v3148_v9, %s5378_s30  ;;  %v3524_v9 = vrot.slane %v3522_v50, 4  ;;  %v3684_v57 = vrot.slane %v3683_v29, 4  ;;  %v7142_v50 = vld [vmem:[#allocation2 + $0x64] sm:$0xf] }
 0x2ad   : > { %v3552_v25 = vshll.u32 %v3339_v49, 16 }
 0x2ae   : > { %v4098_v54 = vpop.permute.xlu2 %4097  ;;  %v3525_v32 = vor.u32 %v3524_v9, %v7090_v15  ;;  %v2824_v9 = vld [vmem:[#allocation2 + $0xa8] sm:$0xe] }
 0x2af   : > { %4109 = vrot.lane.b32.xlu0 %v4018_v23, %s5380_s10  ;;  %4188 = vst.msk [vmem:[#allocation3 + $0x18] sm:$0xf] %vm4181_vm9, %v4098_v54  ;;  %v3135_v23 = vld [vmem:[#allocation2 + $0x60] sm:$0xf]  ;;  %v3689_v54 = vsel %vm5528_vm10, %v3684_v57, %v3688_v40  ;;  %v2932_v40 = vrot.slane %v7142_v50, 5  ;;  %v5191_v2 = vrot.slane %v2824_v9, 9 }
 0x2b0   : > { %v3526_v18 = vrot.slane %v3525_v32, 4  ;;  %v3358_v9 = vld [vmem:[#allocation2 + $0xc0] sm:$0xf] }
 0x2b1   : > { %v4100_v4 = vpop.permute.xlu0 %4099  ;;  %4111 = vrot.lane.b32.xlu1 %v4021_v58, %s5380_s10  ;;  %v3698_v58 = vrot.slane %v3696_v34, 5  ;;  %v3542_v34 = vshll.u32 %v3338_v39, 16 }
 0x2b2   : > { %4189 = vst.msk [vmem:[#allocation3 + $0x1c] sm:$0xf] %vm4181_vm9, %v4100_v4  ;;  %v2806_v4 = vld [vmem:[#allocation2 + $0x60] sm:$0xe] }
 0x2b3   : > { %v3034_v42 = vpop.permute.xlu1 %3033  ;;  %v3699_v15 = vsel %vm5528_vm10, %v3694_v8, %v3698_v58  ;;  %v5185_v29 = vrot.slane %v2806_v4, 9  ;;  %v2975_v8 = vsel %vm6097_vm15, %v5191_v2, %v2974_v62  ;;  %v7176_v62 = vld [vmem:[#allocation2 + $0x70] sm:$0xf]  ;;  %v2827_v2 = vld [vmem:[#allocation2 + $0xb4] sm:$0xe] }
 0x2b4   : > { %3110 = vst.msk [vmem:[#allocation3 + $0x50] sm:$0xf] %vm3089_vm4, %v3034_v42  ;;  %4133 = vrot.lane.b32.xlu2 %v4060_v17, %s5380_s10  ;;  %v4068_v17 = vrot.slane %v4066_v16, 4 }
 0x2b5   : > { %v2933_v57 = vsel %vm6097_vm15, %v5185_v29, %v2932_v40  ;;  %v4024_v29 = vrot.slane %v7176_v62, 5 }
 0x2b6   : > { %v3036_v13 = vpop.permute.xlu2 %3035  ;;  %v4070_v31 = vsel %vm6097_vm15, %v4068_v17, %v4069_v61  ;;  %v3554_v61 = vrot.slane %v3552_v25, 5 }
 0x2b7   : > { %3047 = vrot.lane.b32.xlu0 %v2978_v51, %s5377_s29  ;;  %3111 = vst.msk [vmem:[#allocation3 + $0x54] sm:$0xf] %vm3089_vm4, %v3036_v13  ;;  %v3531_v51 = vsel %vm5528_vm10, %v3526_v18, %v3530_v3  ;;  %v3546_v13 = vshrl.u32 %v3338_v39, 16  ;;  %v567_v18 = vld [vmem:[#allocation2 + $0xcc] sm:$0x1] }
 0x2b8   : > { %v3138_v3 = vld [vmem:[#allocation2 + $0x70] sm:$0xf]  ;;  %v3150_v39 = vld [vmem:[#allocation2 + $0xb8] sm:$0xf] }
 0x2b9   : > { %v3228_v53 = vpop.permute.xlu0 %3227  ;;  %v5322_v26 = vld [vmem:[#allocation3 + $0x18] sm:$0xff]  ;;  %3239 = vrot.lane.b32.xlu1 %v3149_v20, %s5378_s30 }
 0x2ba   : > { %3304 = vst.msk [vmem:[#allocation3 + $0x50] sm:$0xf] %vm3283_vm7, %v3228_v53  ;;  %5285 = vmatmul.msk.bf16.gmra.mxu0 %vm4346_vm11, %v5322_v26  ;;  %v7162_v26 = vrot.slane %v3542_v34, 5  ;;  %v2828_v34 = vld [vmem:[#allocation2 + $0xb8] sm:$0xf] }
 0x2bb   : > { %v3230_v36 = vpop.permute.xlu1 %3229 }
 0x2bc   : > { %3305 = vst.msk [vmem:[#allocation3 + $0x54] sm:$0xf] %vm3283_vm7, %v3230_v36  ;;  %3211 = vrot.lane.b32.xlu2 %v3135_v23, %s5378_s30  ;;  %v3548_v23 = vrot.slane %v3546_v13, 4  ;;  %v3137_v36 = vld [vmem:[#allocation2 + $0x6c] sm:$0xf]  ;;  %v5207_v13 = vrot.slane %v3916_v1, 9 }
 0x2be   : > { %v3789_v11 = vpop.permute.xlu2 %3788 }
 0x2bf   : > { %3800 = vrot.lane.b32.xlu0 %v3689_v54, %s5379_s9  ;;  %3865 = vst.msk [vmem:[#allocation3 + $0x50] sm:$0xf] %vm3844_vm8, %v3789_v11  ;;  %v3549_v54 = vor.u32 %v3548_v23, %v7162_v26  ;;  %v568_v11 = vsel %vm5438_vm3, 0, %v567_v18  ;;  %v3701_v23 = vshrl.u32 %v3358_v9, 16  ;;  %vm4520_vm3 = vcmask 60416  }
 0x2c0   : > { %569 = vst [vmem:[#allocation2 + $0xcc] sm:$0x1] %v568_v11 }
 0x2c1   : > { %v3791_v42 = vpop.permute.xlu0 %3790  ;;  %3802 = vrot.lane.b32.xlu1 %v3699_v15, %s5379_s9  ;;  %v3898_v15 = vld [vmem:[#allocation2 + $0x6c] sm:$0xe]  ;;  %v3550_v17 = vrot.slane %v3549_v54, 4  ;;  %v5192_v54 = vrot.slane %v2827_v2, 9 }
 0x2c2   : > { %3866 = vst.msk [vmem:[#allocation3 + $0x54] sm:$0xf] %vm3844_vm8, %v3791_v42 }
 0x2c3   : > { %v4126_v20 = vpop.permute.xlu1 %4125 }
 0x2c4   : > { %4202 = vst.msk [vmem:[#allocation3 + $0x50] sm:$0xf] %vm4181_vm9, %v4126_v20  ;;  %3774 = vrot.lane.b32.xlu2 %v3531_v51, %s5379_s9  ;;  %v5201_v51 = vrot.slane %v3898_v15, 9  ;;  %v2808_v15 = vld [vmem:[#allocation2 + $0x68] sm:$0x1] }
 0x2c5   : > { %v2935_v1 = vrot.slane %v2808_v15, 5 }
 0x2c6   : > { %v4128_v53 = vpop.permute.xlu2 %4127 }
 0x2c7   : > { %4139 = vrot.lane.b32.xlu0 %v4070_v31, %s5380_s10  ;;  %4203 = vst.msk [vmem:[#allocation3 + $0x54] sm:$0xf] %vm4181_vm9, %v4128_v53  ;;  %v3555_v31 = vsel %vm5528_vm10, %v3550_v17, %v3554_v61  ;;  %v2829_v53 = vld [vmem:[#allocation2 + $0xbc] sm:$0x1]  ;;  %v3703_v61 = vrot.slane %v3701_v23, 4 }
 0x2c9   : > { %v3204_v32 = vpop.permute.xlu0 %3203  ;;  %3021 = vrot.lane.b32.xlu1 %v2933_v57, %s5377_s29  ;;  %v4025_v57 = vsel %vm6097_vm15, %v5201_v51, %v4024_v29 }
 0x2ca   : > { %3292 = vst.msk [vmem:[#allocation3 + $0x20] sm:$0xf] %vm3283_vm7, %v3204_v32  ;;  %v3704_v32 = vshll.u32 %v3358_v9, 16 }
 0x2cb   : > { %v3206_v58 = vpop.permute.xlu1 %3205 }
 0x2cc   : > { %3293 = vst.msk [vmem:[#allocation3 + $0x24] sm:$0xf] %vm3283_vm7, %v3206_v58  ;;  %3045 = vrot.lane.b32.xlu2 %v2975_v8, %s5377_s29  ;;  %v2981_v8 = vrot.slane %v2828_v34, 5  ;;  %v3337_v58 = vld [vmem:[#allocation2 + $0x6c] sm:$0xf]  ;;  %v3706_v6 = vrot.slane %v3704_v32, 5 }
 0x2cd   : > { %v3536_v17 = vshll.u32 %v3337_v58, 16 }
 0x2ce   : > { %v3765_v56 = vpop.permute.xlu2 %3764  ;;  %v5329_v4 = vld [vmem:[#allocation3 + $0x50] sm:$0xff]  ;;  %v2983_v11 = vrot.slane %v2981_v8, 4  ;;  %v2982_v30 = vsel %vm6097_vm15, %v5192_v54, %v2981_v8  ;;  %v3707_v34 = vor.u32 %v3706_v6, %v3703_v61  ;;  %v3152_v54 = vld [vmem:[#allocation2 + $0xc4] sm:$0xf] }
 0x2cf   : > { %3215 = vrot.lane.b32.xlu0 %v3137_v36, %s5378_s30  ;;  %3853 = vst.msk [vmem:[#allocation3 + $0x20] sm:$0xf] %vm3844_vm8, %v3765_v56  ;;  %5292 = vmatmul.msk.bf16.gmra.mxu2 %vm4346_vm11, %v5329_v4  ;;  %v623_v36 = vld [vmem:[#allocation2 + $0xd4] sm:$0x1]  ;;  %v2984_v56 = vrot.slane %v2829_v53, 5  ;;  %v3533_v4 = vshrl.u32 %v3337_v58, 16 }
 0x2d0   : > { %v624_v25 = vsel %vm5463_vm5, 0, %v623_v36  ;;  %v3708_v32 = vrot.slane %v3707_v34, 4  ;;  %v3919_v58 = vld [vmem:[#allocation2 + $0xc0] sm:$0xe]  ;;  %v3920_v36 = vld [vmem:[#allocation2 + $0xc4] sm:$0xf] }
 0x2d1   : > { %v3767_v42 = vpop.permute.xlu0 %3766  ;;  %3217 = vrot.lane.b32.xlu1 %v3138_v3, %s5378_s30  ;;  %v4067_v3 = vsel %vm6097_vm15, %v5207_v13, %v4066_v16  ;;  %625 = vst [vmem:[#allocation2 + $0xd4] sm:$0x1] %v624_v25  ;;  %v2934_v16 = vrot.slane %v2932_v40, 4  ;;  %v2985_v51 = vsel %vm6097_vm15, %v2983_v11, %v2984_v56  ;;  %v3535_v9 = vrot.slane %v3533_v4, 4  ;;  %v7236_v4 = vld [vmem:[#allocation2 + $0xc4] sm:$0xf] }
 0x2d2   : > { %3854 = vst.msk [vmem:[#allocation3 + $0x24] sm:$0xf] %vm3844_vm8, %v3767_v42  ;;  %vm4553_vm5 = vcmask 64512   ;;  %v5208_v11 = vrot.slane %v3919_v58, 9  ;;  %v4073_v56 = vrot.slane %v3920_v36, 5 }
 0x2d3   : > { %v4102_v20 = vpop.permute.xlu1 %4101  ;;  %v2936_v53 = vsel %vm6097_vm15, %v2934_v16, %v2935_v1  ;;  %v3921_v16 = vld [vmem:[#allocation2 + $0xc8] sm:$0x1]  ;;  %v4727_v58 = vld [vmem:[%s7717_s4] sm:$0x3] }
 0x2d4   : > { %4190 = vst.msk [vmem:[#allocation3 + $0x20] sm:$0xf] %vm4181_vm9, %v4102_v20  ;;  %3241 = vrot.lane.b32.xlu2 %v3150_v39, %s5378_s30  ;;  %v7202_v39 = vld [vmem:[#allocation2 + $0xc4] sm:$0xf] }
 0x2d5   : > { %v3710_v13 = vshll.u32 %v7202_v39, 16 }
 0x2d6   : > { %v4104_v49 = vpop.permute.xlu2 %4103 }
 0x2d7   : > { %3778 = vrot.lane.b32.xlu0 %v3555_v31, %s5379_s9  ;;  %4191 = vst.msk [vmem:[#allocation3 + $0x24] sm:$0xf] %vm4181_vm9, %v4104_v49  ;;  %v3538_v31 = vrot.slane %v3536_v17, 5  ;;  %v7229_v49 = vrot.slane %v3710_v13, 5 }
 0x2d9   : > { %v3038_v18 = vpop.permute.xlu0 %3037  ;;  %4113 = vrot.lane.b32.xlu1 %v4025_v57, %s5380_s10  ;;  %v3539_v23 = vor.u32 %v3538_v31, %v3535_v9  ;;  %v3713_v15 = vsel %vm5528_vm10, %v3708_v32, %v7229_v49  ;;  %v2832_v32 = vld [vmem:[#allocation2 + $0xc8] sm:$0x1] }
 0x2da   : > { %3112 = vst.msk [vmem:[#allocation3 + $0x58] sm:$0xf] %vm3089_vm4, %v3038_v18 }
 0x2db   : > { %v3040_v42 = vpop.permute.xlu1 %3039 }
 0x2dc   : > { %3113 = vst.msk [vmem:[#allocation3 + $0x5c] sm:$0xf] %vm3089_vm4, %v3040_v42  ;;  %4137 = vrot.lane.b32.xlu2 %v4067_v3, %s5380_s10  ;;  %v4408_v20 = vpop.f32.mrf.mxu0  ;;  %v3540_v3 = vrot.slane %v3539_v23, 4 }
 0x2dd   : > { %v4488_v40 = vpack.c.bf16 %v4408_v20, %v4408_v20  ;;  %v4625_v25 = vmul.f32 %v4408_v20, %v4408_v20  ;;  %v4554_v17 = vsel %vm4553_vm5, %v4408_v20, 0.0  ;;  %v2988_v20 = vrot.slane %v7236_v4, 5 }
 0x2de   : > { %v3232_v50 = vpop.permute.xlu2 %3231  ;;  %v5323_v2 = vld [vmem:[#allocation3 + $0x20] sm:$0xff] }
 0x2df   : > { %3049 = vrot.lane.b32.xlu0 %v2982_v30, %s5377_s29  ;;  %3306 = vst.msk [vmem:[#allocation3 + $0x58] sm:$0xf] %vm3283_vm7, %v3232_v50  ;;  %5286 = vmatmul.msk.bf16.gmra.mxu0 %vm4346_vm11, %v5323_v2  ;;  %v4657_v9 = vsel %vm4553_vm5, %v4625_v25, 0.0  ;;  %v3545_v50 = vsel %vm5528_vm10, %v3540_v3, %v7162_v26  ;;  %v4075_v2 = vrot.slane %v4073_v56, 4  ;;  %v4760_v26 = vunpack.c.l.b16 %v5504_v45 }
 0x2e0   : > { %4521 = vst.msk [vmem:[%s7217_s20] sm:$0xf] %vm4520_vm3, %v4488_v40  ;;  %v3900_v40 = vld [vmem:[#allocation2 + $0x74] sm:$0x1]  ;;  %v4761_v25 = vunpack.c.l.b16 %v5506_v46 }
 0x2e1   : > { %v3234_v57 = vpop.permute.xlu0 %3233  ;;  %3051 = vrot.lane.b32.xlu1 %v2985_v51, %s5377_s29  ;;  %v3361_v51 = vld [vmem:[#allocation2 + $0xcc] sm:$0xf]  ;;  %v4027_v3 = vrot.slane %v3900_v40, 5 }
 0x2e2   : > { %3307 = vst.msk [vmem:[#allocation3 + $0x5c] sm:$0xf] %vm3283_vm7, %v3234_v57  ;;  %v4076_v57 = vrot.slane %v3921_v16, 5  ;;  %v3728_v36 = vshll.u32 %v3361_v51, 16  ;;  %v4792_v45 = vpack.c.b16 %v4761_v25, %v4760_v26 }
 0x2e3   : > { %v3793_v8 = vpop.permute.xlu1 %3792 }
 0x2e4   : > { %3867 = vst.msk [vmem:[#allocation3 + $0x58] sm:$0xf] %vm3844_vm8, %v3793_v8  ;;  %3023 = vrot.lane.b32.xlu2 %v2936_v53, %s5377_s29  ;;  %v4410_v18 = vpop.f32.mrf.mxu0  ;;  %v4074_v53 = vsel %vm6097_vm15, %v5208_v11, %v4073_v56  ;;  %v3725_v8 = vshrl.u32 %v3361_v51, 16  ;;  %v3362_v11 = vld [vmem:[#allocation2 + $0xd0] sm:$0xf]  ;;  %v3730_v51 = vrot.slane %v3728_v36, 5 }
 0x2e5   : > { %v4489_v6 = vpack.c.bf16 %v4410_v18, %v4410_v18  ;;  %v4555_v42 = vsel %vm4553_vm5, %v4410_v18, 0.0  ;;  %v4626_v30 = vmul.f32 %v4410_v18, %v4410_v18  ;;  %v4026_v18 = vrot.slane %v4024_v29, 4  ;;  %v3153_v36 = vld [vmem:[#allocation2 + $0xcc] sm:$0xf] }
 0x2e6   : > { %v3795_v61 = vpop.permute.xlu2 %3794  ;;  %v4556_v1 = vadd.f32 %v4555_v42, %v4554_v17  ;;  %v4077_v17 = vsel %vm6097_vm15, %v4075_v2, %v4076_v57  ;;  %v3727_v16 = vrot.slane %v3725_v8, 4 }
 0x2e7   : > { %3245 = vrot.lane.b32.xlu0 %v3152_v54, %s5378_s30  ;;  %3868 = vst.msk [vmem:[#allocation3 + $0x5c] sm:$0xf] %vm3844_vm8, %v3795_v61  ;;  %v4658_v31 = vsel %vm4553_vm5, %v4626_v30, 0.0  ;;  %v4858_v54 = vsel %vm4395_vm6, %v4727_v58, 0  ;;  %v2991_v61 = vrot.slane %v2832_v32, 5 }
 0x2e8   : > { %4522 = vst.msk [vmem:[%s7217_s20 + $0x4] sm:$0xf] %vm4520_vm3, %v4489_v6  ;;  %v4659_v13 = vadd.f32 %v4658_v31, %v4657_v9  ;;  %4867 = vmatpush.bf16.msra.mxu1 %v4858_v54  ;;  %v3738_v6 = vshrl.u32 %v3362_v11, 16  ;;  %5340 = vmatpush.bf16.msra.mxu3 %v4858_v54  ;;  %v3734_v9 = vshll.u32 %v3362_v11, 16  ;;  %v3714_v31 = vshrl.u32 %v7202_v39, 16 }
 0x2e9   : > { %v4130_v34 = vpop.permute.xlu0 %4129  ;;  %3804 = vrot.lane.b32.xlu1 %v3713_v15, %s5379_s9  ;;  %v2990_v15 = vrot.slane %v2988_v20, 4  ;;  %v3731_v32 = vor.u32 %v3730_v51, %v3727_v16  ;;  %v3360_v11 = vld [vmem:[#allocation2 + $0xc8] sm:$0x1] }
 0x2ea   : > { %4204 = vst.msk [vmem:[#allocation3 + $0x58] sm:$0xf] %vm4181_vm9, %v4130_v34  ;;  %v3740_v2 = vrot.slane %v3738_v6, 4  ;;  %v3736_v8 = vrot.slane %v3734_v9, 5  ;;  %v3720_v16 = vshll.u32 %v3360_v11, 16  ;;  %v4764_v11 = vunpack.c.l.b16 %v5522_v59 }
 0x2eb   : > { %v4132_v23 = vpop.permute.xlu1 %4131  ;;  %5298 = vmatmul.msk.bf16.vlgmr.msra.gmra.mxu1 %vm4808_vm12, %v4792_v45  ;;  %v2992_v39 = vsel %vm6097_vm15, %v2990_v15, %v2991_v61  ;;  %v3732_v61 = vrot.slane %v3731_v32, 4  ;;  %v3154_v59 = vld [vmem:[#allocation2 + $0xd0] sm:$0xf] }
 0x2ec   : > { %4205 = vst.msk [vmem:[#allocation3 + $0x5c] sm:$0xf] %vm4181_vm9, %v4132_v23  ;;  %3776 = vrot.lane.b32.xlu2 %v3545_v50, %s5379_s9  ;;  %v4413_v56 = vpop.f32.mrf.mxu0  ;;  %v3363_v23 = vld [vmem:[#allocation2 + $0xd4] sm:$0x1]  ;;  %v3741_v54 = vor.u32 %v3740_v2, %v3736_v8  ;;  %v3722_v2 = vrot.slane %v3720_v16, 5 }
 0x2ed   : > { %v4490_v62 = vpack.c.bf16 %v4413_v56, %v4413_v56  ;;  %v4557_v29 = vsel %vm4553_vm5, %v4413_v56, 0.0  ;;  %v4627_v42 = vmul.f32 %v4413_v56, %v4413_v56  ;;  %v3744_v26 = vshll.u32 %v3363_v23, 16 }
 0x2ee   : > { %v3208_v46 = vpop.permute.xlu2 %3207  ;;  %v4558_v30 = vadd.f32 %v4557_v29, %v4556_v1  ;;  %v4028_v1 = vsel %vm6097_vm15, %v4026_v18, %v4027_v3  ;;  %v3737_v9 = vsel %vm5528_vm10, %v3732_v61, %v3736_v8 }
 0x2ef   : > { %4141 = vrot.lane.b32.xlu0 %v4074_v53, %s5380_s10  ;;  %3294 = vst.msk [vmem:[#allocation3 + $0x28] sm:$0xf] %vm3283_vm7, %v3208_v46  ;;  %v4660_v34 = vsel %vm4553_vm5, %v4627_v42, 0.0  ;;  %v3742_v42 = vrot.slane %v3741_v54, 4  ;;  %v4778_v54 = vunpack.c.l.b16 %v5835_v33 }
 0x2f0   : > { %4523 = vst.msk [vmem:[%s7217_s20 + $0x8] sm:$0xf] %vm4520_vm3, %v4490_v62  ;;  %v4661_v40 = vadd.f32 %v4660_v34, %v4659_v13  ;;  %v3716_v13 = vrot.slane %v3714_v31, 4  ;;  %v7295_v62 = vld [vmem:[#allocation2 + $0xd0] sm:$0xf]  ;;  %v4762_v34 = vunpack.c.l.b16 %v5581_v7 }
 0x2f1   : > { %v3210_v50 = vpop.permute.xlu0 %3209  ;;  %4143 = vrot.lane.b32.xlu1 %v4077_v17, %s5380_s10  ;;  %v3151_v17 = vld [vmem:[#allocation2 + $0xc0] sm:$0xf]  ;;  %v4080_v31 = vrot.slane %v7295_v62, 5  ;;  %v4767_v62 = vunpack.c.l.b16 %v5557_v41  ;;  %v4783_v41 = vunpack.c.l.b16 %v5917_v24 }
 0x2f2   : > { %3295 = vst.msk [vmem:[#allocation3 + $0x2c] sm:$0xf] %vm3283_vm7, %v3210_v50  ;;  %v3717_v46 = vor.u32 %v3716_v13, %v7229_v49  ;;  %v4763_v49 = vunpack.c.l.b16 %v5585_v12  ;;  %v3924_v50 = vld [vmem:[#allocation2 + $0xd4] sm:$0x1]  ;;  %v2830_v13 = vld [vmem:[#allocation2 + $0xc0] sm:$0xe] }
 0x2f3   : > { %v3769_v57 = vpop.permute.xlu1 %3768  ;;  %v5330_v53 = vld [vmem:[#allocation3 + $0x58] sm:$0xff]  ;;  %v4082_v23 = vrot.slane %v4080_v31, 4  ;;  %v4083_v7 = vrot.slane %v3924_v50, 5 }
 0x2f4   : > { %3855 = vst.msk [vmem:[#allocation3 + $0x28] sm:$0xf] %vm3844_vm8, %v3769_v57  ;;  %4115 = vrot.lane.b32.xlu2 %v4028_v1, %s5380_s10  ;;  %5293 = vmatmul.msk.bf16.gmra.mxu2 %vm4346_vm11, %v5330_v53  ;;  %v4415_v58 = vpop.f32.mrf.mxu0  ;;  %v3718_v1 = vrot.slane %v3717_v46, 4  ;;  %v4793_v57 = vpack.c.b16 %v4763_v49, %v4762_v34 }
 0x2f5   : > { %v4491_v18 = vpack.c.bf16 %v4415_v58, %v4415_v58  ;;  %v4559_v3 = vsel %vm4553_vm5, %v4415_v58, 0.0  ;;  %v4628_v15 = vmul.f32 %v4415_v58, %v4415_v58  ;;  %v4084_v58 = vsel %vm6097_vm15, %v4082_v23, %v4083_v7 }
 0x2f6   : > { %v3771_v25 = vpop.permute.xlu2 %3770  ;;  %v7288_v56 = vadd.f32 %v4559_v3, %v4558_v30  ;;  %v3746_v30 = vrot.slane %v3744_v26, 5  ;;  %v4779_v26 = vunpack.c.l.b16 %v5844_v48 }
 0x2f7   : > { %3055 = vrot.lane.b32.xlu0 %v2992_v39, %s5377_s29  ;;  %3856 = vst.msk [vmem:[#allocation3 + $0x2c] sm:$0xf] %vm3844_vm8, %v3771_v25  ;;  %v4662_v6 = vsel %vm4553_vm5, %v4628_v15, 0.0  ;;  %v3723_v39 = vsel %vm5528_vm10, %v3718_v1, %v3722_v2  ;;  %v4781_v1 = vunpack.c.l.b16 %v5861_v19 }
 0x2f8   : > { %4524 = vst.msk [vmem:[%s7217_s20 + $0xc] sm:$0xf] %vm4520_vm3, %v4491_v18  ;;  %v7297_v29 = vadd.f32 %v4662_v6, %v4661_v40  ;;  %v3747_v40 = vsel %vm5528_vm10, %v3742_v42, %v3746_v30  ;;  %v4801_v18 = vpack.c.b16 %v4779_v26, %v4778_v54  ;;  %vm4623_vm10 = vcmask 57344  }
 0x2f9   : > { %v4106_v45 = vpop.permute.xlu0 %4105  ;;  %3247 = vrot.lane.b32.xlu1 %v3153_v36, %s5378_s30  ;;  %v5193_v36 = vrot.slane %v2830_v13, 9 }
 0x2fa   : > { %4192 = vst.msk [vmem:[#allocation3 + $0x28] sm:$0xf] %vm4181_vm9, %v4106_v45  ;;  %5307 = vmatmul.msk.bf16.vlgmr.msra.gmra.mxu3 %vm4808_vm12, %v4801_v18 }
 0x2fb   : > { %v4108_v51 = vpop.permute.xlu1 %4107  ;;  %5299 = vmatmul.msk.bf16.gmra.mxu1 %vm4808_vm12, %v4793_v57  ;;  %v2989_v33 = vsel %vm6097_vm15, %v5193_v36, %v2988_v20 }
 0x2fc   : > { %4193 = vst.msk [vmem:[#allocation3 + $0x2c] sm:$0xf] %vm4181_vm9, %v4108_v51  ;;  %3243 = vrot.lane.b32.xlu2 %v3151_v17, %s5378_s30  ;;  %v4765_v17 = vunpack.c.l.b16 %v5524_v60  ;;  %v3922_v51 = vld [vmem:[#allocation2 + $0xcc] sm:$0xe] }
 0x2fd   : > { %v5209_v50 = vrot.slane %v3922_v51, 9 }
 0x2fe   : > { %v3042_v53 = vpop.permute.xlu2 %3041  ;;  %v4794_v61 = vpack.c.b16 %v4765_v17, %v4764_v11 }
 0x2ff   : > { %3808 = vrot.lane.b32.xlu0 %v3737_v9, %s5379_s9  ;;  %3114 = vst.msk [vmem:[#allocation3 + $0x60] sm:$0xf] %vm3089_vm4, %v3042_v53  ;;  %v4081_v23 = vsel %vm6097_vm15, %v5209_v50, %v4080_v31 }
 0x301   : > { %v3044_v12 = vpop.permute.xlu0 %3043  ;;  %3810 = vrot.lane.b32.xlu1 %v3747_v40, %s5379_s9  ;;  %v4780_v40 = vunpack.c.l.b16 %v5859_v43 }
 0x302   : > { %3115 = vst.msk [vmem:[#allocation3 + $0x64] sm:$0xf] %vm3089_vm4, %v3044_v12 }
 0x303   : > { %v3236_v32 = vpop.permute.xlu1 %3235  ;;  %v5324_v8 = vld [vmem:[#allocation3 + $0x28] sm:$0xff]  ;;  %v4802_v57 = vpack.c.b16 %v4781_v1, %v4780_v40 }
 0x304   : > { %3308 = vst.msk [vmem:[#allocation3 + $0x60] sm:$0xf] %vm3283_vm7, %v3236_v32  ;;  %3806 = vrot.lane.b32.xlu2 %v3723_v39, %s5379_s9  ;;  %5287 = vmatmul.msk.bf16.gmra.mxu0 %vm4346_vm11, %v5324_v8  ;;  %v4766_v32 = vunpack.c.l.b16 %v5553_v38  ;;  %v4782_v38 = vunpack.c.l.b16 %v5906_v37  ;;  %v4769_v37 = vunpack.c.l.b16 %v5639_v35 }
 0x306   : > { %v3238_v63 = vpop.permute.xlu2 %3237  ;;  %v4795_v8 = vpack.c.b16 %v4767_v62, %v4766_v32  ;;  %v4803_v26 = vpack.c.b16 %v4783_v41, %v4782_v38 }
 0x307   : > { %4147 = vrot.lane.b32.xlu0 %v4084_v58, %s5380_s10  ;;  %3309 = vst.msk [vmem:[#allocation3 + $0x64] sm:$0xf] %vm3283_vm7, %v3238_v63  ;;  %v7327_v25 = vpop.f32.mrf.mxu2 }
 0x308   : > { %v4504_v15 = vpack.c.bf16 %v7327_v25, %v7327_v25 }
 0x309   : > { %v3797_v3 = vpop.permute.xlu0 %3796 }
 0x30a   : > { %3869 = vst.msk [vmem:[#allocation3 + $0x60] sm:$0xf] %vm3844_vm8, %v3797_v3  ;;  %5308 = vmatmul.msk.bf16.gmra.mxu3 %vm4808_vm12, %v4802_v57 }
 0x30b   : > { %4537 = vst.msk [vmem:[%s7217_s20 + $0x40] sm:$0xf] %vm4520_vm3, %v4504_v15  ;;  %v3799_v48 = vpop.permute.xlu1 %3798  ;;  %5300 = vmatmul.msk.bf16.gmra.mxu1 %vm4808_vm12, %v4794_v61  ;;  %v4768_v15 = vunpack.c.l.b16 %v5633_v28  ;;  %v4784_v61 = vunpack.c.l.b16 %v5967_v52 }
 0x30c   : > { %3870 = vst.msk [vmem:[#allocation3 + $0x64] sm:$0xf] %vm3844_vm8, %v3799_v48  ;;  %3053 = vrot.lane.b32.xlu2 %v2989_v33, %s5377_s29 }
 0x30d   : > { %v4796_v33 = vpack.c.b16 %v4769_v37, %v4768_v15 }
 0x30e   : > { %v4134_v6 = vpop.permute.xlu2 %4133 }
 0x30f   : > { %4206 = vst.msk [vmem:[#allocation3 + $0x60] sm:$0xf] %vm4181_vm9, %v4134_v6  ;;  %v7344_v4 = vpop.f32.mrf.mxu2  ;;  %v4785_v6 = vunpack.c.l.b16 %v5969_v22 }
 0x310   : > { %v4505_v45 = vpack.c.bf16 %v7344_v4, %v7344_v4 }
 0x311   : > { %v4136_v20 = vpop.permute.xlu0 %4135  ;;  %v4418_v46 = vpop.f32.mrf.mxu0 }
 0x312   : > { %4207 = vst.msk [vmem:[#allocation3 + $0x64] sm:$0xf] %vm4181_vm9, %v4136_v20  ;;  %v4492_v42 = vpack.c.bf16 %v4418_v46, %v4418_v46  ;;  %v4561_v30 = vsel %vm4553_vm5, %v4418_v46, 0.0  ;;  %v4629_v16 = vmul.f32 %v4418_v46, %v4418_v46  ;;  %v4804_v46 = vpack.c.b16 %v4785_v6, %v4784_v61 }
 0x313   : > { %4538 = vst.msk [vmem:[%s7217_s20 + $0x44] sm:$0xf] %vm4520_vm3, %v4505_v45  ;;  %v3020_v60 = vpop.permute.xlu1 %3019  ;;  %v4562_v9 = vadd.f32 %v4561_v30, %v7288_v56 }
 0x314   : > { %3103 = vst.msk [vmem:[#allocation3 + $0x34] sm:$0xf] %vm3089_vm4, %v3020_v60  ;;  %3249 = vrot.lane.b32.xlu2 %v3154_v59, %s5378_s30  ;;  %v4664_v34 = vsel %vm4553_vm5, %v4629_v16, 0.0  ;;  %s331_s30 = scalar_lea.vmem %s7720_s7, %s7753_s28 }
 0x315   : > { %4525 = vst.msk [vmem:[%s7217_s20 + $0x10] sm:$0xf] %vm4520_vm3, %v4492_v42  ;;  %v4665_v49 = vadd.f32 %v4664_v34, %v7297_v29  ;;  %v4770_v34 = vunpack.c.l.b16 %v5650_v55 }
 0x316   : > { %v3212_v2 = vpop.permute.xlu2 %3211 }
 0x317   : > { %3296 = vst.msk [vmem:[#allocation3 + $0x30] sm:$0xf] %vm3283_vm7, %v3212_v2 }
 0x319   : > { %v3214_v53 = vpop.permute.xlu0 %3213  ;;  %v5331_v56 = vld [vmem:[#allocation3 + $0x60] sm:$0xff]  ;;  %v4420_v29 = vpop.f32.mrf.mxu0 }
 0x31a   : > { %3297 = vst.msk [vmem:[#allocation3 + $0x34] sm:$0xf] %vm3283_vm7, %v3214_v53  ;;  %5294 = vmatmul.msk.bf16.gmra.mxu2 %vm4346_vm11, %v5331_v56  ;;  %v4493_v19 = vpack.c.bf16 %v4420_v29, %v4420_v29  ;;  %v4563_v7 = vsel %vm4553_vm5, %v4420_v29, 0.0  ;;  %v4630_v12 = vmul.f32 %v4420_v29, %v4420_v29  ;;  %5309 = vmatmul.msk.bf16.gmra.mxu3 %vm4808_vm12, %v4803_v26 }
 0x31b   : > { %v3773_v43 = vpop.permute.xlu1 %3772  ;;  %v4564_v39 = vadd.f32 %v4563_v7, %v4562_v9  ;;  %5301 = vmatmul.msk.bf16.gmra.mxu1 %vm4808_vm12, %v4795_v8  ;;  %v4787_v7 = vunpack.c.l.b16 %v5994_v10 }
 0x31c   : > { %3857 = vst.msk [vmem:[#allocation3 + $0x30] sm:$0xf] %vm3844_vm8, %v3773_v43  ;;  %4145 = vrot.lane.b32.xlu2 %v4081_v23, %s5380_s10  ;;  %v4666_v0 = vsel %vm4553_vm5, %v4630_v12, 0.0 }
 0x31d   : > { %4526 = vst.msk [vmem:[%s7217_s20 + $0x14] sm:$0xf] %vm4520_vm3, %v4493_v19  ;;  %v4667_v31 = vadd.f32 %v4666_v0, %v4665_v49  ;;  %v4771_v49 = vunpack.c.l.b16 %v5656_v5  ;;  %v4786_v19 = vunpack.c.l.b16 %v5988_v27  ;;  %v4772_v0 = vunpack.c.l.b16 %v5716_v44 }
 0x31e   : > { %v3775_v13 = vpop.permute.xlu2 %3774  ;;  %v4788_v44 = vunpack.c.l.b16 %v6024_v14 }
 0x31f   : > { %3858 = vst.msk [vmem:[#allocation3 + $0x34] sm:$0xf] %vm3844_vm8, %v3775_v13  ;;  %v4797_v50 = vpack.c.b16 %v4771_v49, %v4770_v34 }
 0x321   : > { %v4110_v58 = vpop.permute.xlu0 %4109 }
 0x322   : > { %4194 = vst.msk [vmem:[#allocation3 + $0x30] sm:$0xf] %vm4181_vm9, %v4110_v58 }
 0x323   : > { %v4112_v36 = vpop.permute.xlu1 %4111 }
 0x324   : > { %4195 = vst.msk [vmem:[#allocation3 + $0x34] sm:$0xf] %vm4181_vm9, %v4112_v36 }
 0x326   : > { %v3046_v54 = vpop.permute.xlu2 %3045 }
 0x327   : > { %3116 = vst.msk [vmem:[#allocation3 + $0x68] sm:$0xf] %vm3089_vm4, %v3046_v54 }
 0x329   : > { %v3048_v63 = vpop.permute.xlu0 %3047 }
 0x32a   : > { %3117 = vst.msk [vmem:[#allocation3 + $0x6c] sm:$0xf] %vm3089_vm4, %v3048_v63  ;;  %5310 = vmatmul.msk.bf16.gmra.mxu3 %vm4808_vm12, %v4804_v46 }
 0x32b   : > { %v3240_v18 = vpop.permute.xlu1 %3239  ;;  %v5325_v3 = vld [vmem:[#allocation3 + $0x30] sm:$0xff]  ;;  %5302 = vmatmul.msk.bf16.gmra.mxu1 %vm4808_vm12, %v4796_v33 }
 0x32c   : > { %3310 = vst.msk [vmem:[#allocation3 + $0x68] sm:$0xf] %vm3283_vm7, %v3240_v18  ;;  %5288 = vmatmul.msk.bf16.gmra.mxu0 %vm4346_vm11, %v5325_v3  ;;  %v7746_v18 = vld [vmem:[#allocation4_spill] sm:$0xff] }
 0x32d   : > { %v7391_v24 = vpop.f32.mrf.mxu2  ;;  %v4774_v14 = vunpack.c.l.b16 %v7746_v18 }
 0x32e   : > { %v4506_v48 = vpack.c.bf16 %v7391_v24, %v7391_v24  ;;  %v3242_v11 = vpop.permute.xlu2 %3241 }
 0x32f   : > { %3311 = vst.msk [vmem:[#allocation3 + $0x6c] sm:$0xf] %vm3283_vm7, %v3242_v11 }
 0x330   : > { %4539 = vst.msk [vmem:[%s7217_s20 + $0x48] sm:$0xf] %vm4520_vm3, %v4506_v48 }
 0x331   : > { %v3801_v17 = vpop.permute.xlu0 %3800 }
 0x332   : > { %3871 = vst.msk [vmem:[#allocation3 + $0x68] sm:$0xf] %vm3844_vm8, %v3801_v17 }
 0x333   : > { %v3803_v28 = vpop.permute.xlu1 %3802 }
 0x334   : > { %3872 = vst.msk [vmem:[#allocation3 + $0x6c] sm:$0xf] %vm3844_vm8, %v3803_v28 }
 0x335   : > { %v7401_v35 = vpop.f32.mrf.mxu2 }
 0x336   : > { %v4507_v20 = vpack.c.bf16 %v7401_v35, %v7401_v35  ;;  %v4138_v45 = vpop.permute.xlu2 %4137 }
 0x337   : > { %4208 = vst.msk [vmem:[#allocation3 + $0x68] sm:$0xf] %vm4181_vm9, %v4138_v45  ;;  %v4423_v59 = vpop.f32.mrf.mxu0 }
 0x338   : > { %4540 = vst.msk [vmem:[%s7217_s20 + $0x4c] sm:$0xf] %vm4520_vm3, %v4507_v20  ;;  %v4494_v42 = vpack.c.bf16 %v4423_v59, %v4423_v59  ;;  %v4565_v30 = vsel %vm4553_vm5, %v4423_v59, 0.0  ;;  %v4631_v16 = vmul.f32 %v4423_v59, %v4423_v59 }
 0x339   : > { %v4140_v60 = vpop.permute.xlu0 %4139  ;;  %v4566_v52 = vadd.f32 %v4565_v30, %v4564_v39  ;;  %v4805_v39 = vpack.c.b16 %v4787_v7, %v4786_v19 }
 0x33a   : > { %4209 = vst.msk [vmem:[#allocation3 + $0x6c] sm:$0xf] %vm4181_vm9, %v4140_v60  ;;  %v4668_v22 = vsel %vm4553_vm5, %v4631_v16, 0.0  ;;  %v7749_v16 = vld [vmem:[#allocation9_spill] sm:$0xff] }
 0x33b   : > { %4527 = vst.msk [vmem:[%s7217_s20 + $0x18] sm:$0xf] %vm4520_vm3, %v4494_v42  ;;  %v3022_v51 = vpop.permute.xlu1 %3021  ;;  %v4669_v9 = vadd.f32 %v4668_v22, %v4667_v31  ;;  %5303 = vmatmul.msk.bf16.gmra.mxu1 %vm4808_vm12, %v4797_v50  ;;  %5311 = vmatmul.msk.bf16.gmra.mxu3 %vm4808_vm12, %v4805_v39  ;;  %v4773_v31 = vunpack.c.l.b16 %v5718_v47  ;;  %v4789_v47 = vunpack.c.l.b16 %v6029_v21  ;;  %v7747_v21 = vld [vmem:[#allocation5_spill] sm:$0xff]  ;;  %v7748_v42 = vld [vmem:[#allocation8_spill] sm:$0xff] }
 0x33c   : > { %3104 = vst.msk [vmem:[#allocation3 + $0x38] sm:$0xf] %vm3089_vm4, %v3022_v51  ;;  %v4775_v3 = vunpack.c.l.b16 %v7747_v21  ;;  %v4790_v30 = vunpack.c.l.b16 %v7748_v42 }
 0x33d   : > { %v4798_v27 = vpack.c.b16 %v4773_v31, %v4772_v0  ;;  %v4806_v54 = vpack.c.b16 %v4789_v47, %v4788_v44 }
 0x33e   : > { %v3024_v40 = vpop.permute.xlu2 %3023  ;;  %v4799_v33 = vpack.c.b16 %v4775_v3, %v4774_v14 }
 0x33f   : > { %3105 = vst.msk [vmem:[#allocation3 + $0x3c] sm:$0xf] %vm3089_vm4, %v3024_v40  ;;  %v4425_v1 = vpop.f32.mrf.mxu0 }
 0x340   : > { %v4495_v57 = vpack.c.bf16 %v4425_v1, %v4425_v1  ;;  %v4567_v53 = vsel %vm4553_vm5, %v4425_v1, 0.0  ;;  %v4632_v56 = vmul.f32 %v4425_v1, %v4425_v1 }
 0x341   : > { %v3216_v2 = vpop.permute.xlu0 %3215  ;;  %v5332_v23 = vld [vmem:[#allocation3 + $0x68] sm:$0xff]  ;;  %v4568_v29 = vadd.f32 %v4567_v53, %v4566_v52  ;;  %v4791_v52 = vunpack.c.l.b16 %v7749_v16 }
 0x342   : > { %3298 = vst.msk [vmem:[#allocation3 + $0x38] sm:$0xf] %vm3283_vm7, %v3216_v2  ;;  %v4670_v55 = vsel %vm4553_vm5, %v4632_v56, 0.0  ;;  %5295 = vmatmul.msk.bf16.gmra.mxu2 %vm4346_vm11, %v5332_v23  ;;  %v7750_v56 = vld [vmem:[#allocation6_spill] sm:$0xff] }
 0x343   : > { %4528 = vst.msk [vmem:[%s7217_s20 + $0x1c] sm:$0xf] %vm4520_vm3, %v4495_v57  ;;  %v3218_v5 = vpop.permute.xlu1 %3217  ;;  %v4671_v43 = vadd.f32 %v4670_v55, %v4669_v9  ;;  %v4807_v50 = vpack.c.b16 %v4791_v52, %v4790_v30  ;;  %v4776_v23 = vunpack.c.l.b16 %v7750_v56 }
 0x344   : > { %3299 = vst.msk [vmem:[#allocation3 + $0x3c] sm:$0xf] %vm3283_vm7, %v3218_v5 }
 0x346   : > { %v3777_v12 = vpop.permute.xlu2 %3776 }
 0x347   : > { %3859 = vst.msk [vmem:[#allocation3 + $0x38] sm:$0xf] %vm3844_vm8, %v3777_v12 }
 0x349   : > { %v3779_v32 = vpop.permute.xlu0 %3778 }
 0x34a   : > { %3860 = vst.msk [vmem:[#allocation3 + $0x3c] sm:$0xf] %vm3844_vm8, %v3779_v32 }
 0x34b   : > { %v4114_v62 = vpop.permute.xlu1 %4113  ;;  %5304 = vmatmul.msk.bf16.gmra.mxu1 %vm4808_vm12, %v4798_v27  ;;  %5312 = vmatmul.msk.bf16.gmra.mxu3 %vm4808_vm12, %v4806_v54 }
 0x34c   : > { %4196 = vst.msk [vmem:[#allocation3 + $0x38] sm:$0xf] %vm4181_vm9, %v4114_v62 }
 0x34e   : > { %v4116_v8 = vpop.permute.xlu2 %4115 }
 0x34f   : > { %4197 = vst.msk [vmem:[#allocation3 + $0x3c] sm:$0xf] %vm4181_vm9, %v4116_v8 }
 0x351   : > { %v3050_v10 = vpop.permute.xlu0 %3049 }
 0x352   : > { %3118 = vst.msk [vmem:[#allocation3 + $0x70] sm:$0xf] %vm3089_vm4, %v3050_v10  ;;  %v7439_v58 = vpop.f32.mrf.mxu2 }
 0x353   : > { %v3052_v13 = vpop.permute.xlu1 %3051  ;;  %v4508_v36 = vpack.c.bf16 %v7439_v58, %v7439_v58 }
 0x354   : > { %3119 = vst.msk [vmem:[#allocation3 + $0x74] sm:$0xf] %vm3089_vm4, %v3052_v13 }
 0x355   : > { %4541 = vst.msk [vmem:[%s7217_s20 + $0x50] sm:$0xf] %vm4520_vm3, %v4508_v36 }
 0x356   : > { %v3244_v38 = vpop.permute.xlu2 %3243  ;;  %v5326_v41 = vld [vmem:[#allocation3 + $0x38] sm:$0xff] }
 0x357   : > { %3312 = vst.msk [vmem:[#allocation3 + $0x70] sm:$0xf] %vm3283_vm7, %v3244_v38  ;;  %5289 = vmatmul.msk.bf16.gmra.mxu0 %vm4346_vm11, %v5326_v41 }
 0x359   : > { %v3246_v26 = vpop.permute.xlu0 %3245 }
 0x35a   : > { %3313 = vst.msk [vmem:[#allocation3 + $0x74] sm:$0xf] %vm3283_vm7, %v3246_v26  ;;  %v7454_v15 = vpop.f32.mrf.mxu2 }
 0x35b   : > { %v3805_v63 = vpop.permute.xlu1 %3804  ;;  %v4509_v37 = vpack.c.bf16 %v7454_v15, %v7454_v15  ;;  %5305 = vmatmul.msk.bf16.gmra.mxu1 %vm4808_vm12, %v4799_v33  ;;  %5313 = vmatmul.msk.bf16.gmra.mxu3 %vm4808_vm12, %v4807_v50 }
 0x35c   : > { %3873 = vst.msk [vmem:[#allocation3 + $0x70] sm:$0xf] %vm3844_vm8, %v3805_v63  ;;  %v4428_v48 = vpop.f32.mrf.mxu0 }
 0x35d   : > { %4542 = vst.msk [vmem:[%s7217_s20 + $0x54] sm:$0xf] %vm4520_vm3, %v4509_v37  ;;  %v4496_v11 = vpack.c.bf16 %v4428_v48, %v4428_v48  ;;  %v4569_v17 = vsel %vm4553_vm5, %v4428_v48, 0.0  ;;  %v4633_v28 = vmul.f32 %v4428_v48, %v4428_v48 }
 0x35e   : > { %v3807_v61 = vpop.permute.xlu2 %3806  ;;  %v4570_v6 = vadd.f32 %v4569_v17, %v4568_v29  ;;  %v7751_v29 = vld [vmem:[#allocation7_spill] sm:$0xff] }
 0x35f   : > { %3874 = vst.msk [vmem:[#allocation3 + $0x74] sm:$0xf] %vm3844_vm8, %v3807_v61  ;;  %v4672_v20 = vsel %vm4553_vm5, %v4633_v28, 0.0  ;;  %v4777_v55 = vunpack.c.l.b16 %v7751_v29 }
 0x360   : > { %4529 = vst.msk [vmem:[%s7217_s20 + $0x20] sm:$0xf] %vm4520_vm3, %v4496_v11  ;;  %v4673_v59 = vadd.f32 %v4672_v20, %v4671_v43 }
 0x361   : > { %v4142_v45 = vpop.permute.xlu0 %4141  ;;  %v4800_v19 = vpack.c.b16 %v4777_v55, %v4776_v23 }
 0x362   : > { %4210 = vst.msk [vmem:[#allocation3 + $0x70] sm:$0xf] %vm4181_vm9, %v4142_v45 }
 0x363   : > { %v4144_v46 = vpop.permute.xlu1 %4143 }
 0x364   : > { %4211 = vst.msk [vmem:[#allocation3 + $0x74] sm:$0xf] %vm4181_vm9, %v4144_v46  ;;  %v4430_v60 = vpop.f32.mrf.mxu0 }
 0x365   : > { %v4497_v22 = vpack.c.bf16 %v4430_v60, %v4430_v60  ;;  %v4571_v51 = vsel %vm4553_vm5, %v4430_v60, 0.0  ;;  %v4634_v9 = vmul.f32 %v4430_v60, %v4430_v60 }
 0x366   : > { %v3054_v34 = vpop.permute.xlu2 %3053  ;;  %v4572_v49 = vadd.f32 %v4571_v51, %v4570_v6 }
 0x367   : > { %3120 = vst.msk [vmem:[#allocation3 + $0x78] sm:$0xf] %vm3089_vm4, %v3054_v34  ;;  %v4674_v40 = vsel %vm4553_vm5, %v4634_v9, 0.0 }
 0x368   : > { %4530 = vst.msk [vmem:[%s7217_s20 + $0x24] sm:$0xf] %vm4520_vm3, %v4497_v22  ;;  %v4675_v2 = vadd.f32 %v4674_v40, %v4673_v59  ;;  %v4869_v5 = vpop.f32.mrf.mxu1 }
 0x369   : > { %v3056_v1 = vpop.permute.xlu0 %3055  ;;  %v4949_v43 = vpack.c.bf16 %v4869_v5, %v4869_v5 }
 0x36a   : > { %3121 = vst.msk [vmem:[#allocation3 + $0x7c] sm:$0xf] %vm3089_vm4, %v3056_v1 }
 0x36b   : > { %v3248_v57 = vpop.permute.xlu1 %3247  ;;  %v5333_v53 = vld [vmem:[#allocation3 + $0x70] sm:$0xff]  ;;  %5306 = vmatmul.msk.bf16.gmra.mxu1 %vm4808_vm12, %v4800_v19  ;;  %4981 = vst.msk [vmem:[%s7487_s25] sm:$0xf] %vm4520_vm3, %v4949_v43 }
 0x36c   : > { %3314 = vst.msk [vmem:[#allocation3 + $0x78] sm:$0xf] %vm3283_vm7, %v3248_v57  ;;  %5296 = vmatmul.msk.bf16.gmra.mxu2 %vm4346_vm11, %v5333_v53 }
 0x36e   : > { %v3250_v7 = vpop.permute.xlu2 %3249 }
 0x36f   : > { %3315 = vst.msk [vmem:[#allocation3 + $0x7c] sm:$0xf] %vm3283_vm7, %v3250_v7 }
 0x370   : > { %v4871_v32 = vpop.f32.mrf.mxu1 }
 0x371   : > { %v3809_v12 = vpop.permute.xlu0 %3808  ;;  %v4950_v62 = vpack.c.bf16 %v4871_v32, %v4871_v32 }
 0x372   : > { %3875 = vst.msk [vmem:[#allocation3 + $0x78] sm:$0xf] %vm3844_vm8, %v3809_v12 }
 0x373   : > { %v3811_v39 = vpop.permute.xlu1 %3810  ;;  %4982 = vst.msk [vmem:[%s7487_s25 + $0x4] sm:$0xf] %vm4520_vm3, %v4950_v62 }
 0x374   : > { %3876 = vst.msk [vmem:[#allocation3 + $0x7c] sm:$0xf] %vm3844_vm8, %v3811_v39 }
 0x376   : > { %v4146_v0 = vpop.permute.xlu2 %4145 }
 0x377   : > { %4212 = vst.msk [vmem:[#allocation3 + $0x78] sm:$0xf] %vm4181_vm9, %v4146_v0  ;;  %v7496_v31 = vpop.f32.mrf.mxu2 }
 0x378   : > { %v4510_v8 = vpack.c.bf16 %v7496_v31, %v7496_v31  ;;  %v4874_v10 = vpop.f32.mrf.mxu1 }
 0x379   : > { %v4148_v27 = vpop.permute.xlu0 %4147  ;;  %v4951_v13 = vpack.c.bf16 %v4874_v10, %v4874_v10 }
 0x37a   : > { %4213 = vst.msk [vmem:[#allocation3 + $0x7c] sm:$0xf] %vm4181_vm9, %v4148_v27 }
 0x37b   : > { %4543 = vst.msk [vmem:[%s7217_s20 + $0x58] sm:$0xf] %vm4520_vm3, %v4510_v8 }
 0x37c   : > { %4983 = vst.msk [vmem:[%s7487_s25 + $0x8] sm:$0xf] %vm4520_vm3, %v4951_v13 }
 0x37d   : > { %v4914_v6 = vpop.f32.mrf.mxu3 }
 0x37e   : > { %v4967_v59 = vpack.c.bf16 %v4914_v6, %v4914_v6 }
 0x37f   : > { %v7505_v36 = vpop.f32.mrf.mxu2 }
 0x380   : > { %v4511_v47 = vpack.c.bf16 %v7505_v36, %v7505_v36  ;;  %v4876_v14 = vpop.f32.mrf.mxu1  ;;  %4999 = vst.msk [vmem:[%s7487_s25 + $0x48] sm:$0xf] %vm4520_vm3, %v4967_v59 }
 0x381   : > { %v5334_v44 = vld [vmem:[#allocation3 + $0x78] sm:$0xff]  ;;  %v4433_v38 = vpop.f32.mrf.mxu0  ;;  %v4952_v3 = vpack.c.bf16 %v4876_v14, %v4876_v14 }
 0x382   : > { %5297 = vmatmul.msk.bf16.gmra.mxu2 %vm4346_vm11, %v5334_v44  ;;  %4544 = vst.msk [vmem:[%s7217_s20 + $0x5c] sm:$0xf] %vm4520_vm3, %v4511_v47  ;;  %v4498_v41 = vpack.c.bf16 %v4433_v38, %v4433_v38  ;;  %v4573_v54 = vsel %vm4553_vm5, %v4433_v38, 0.0  ;;  %v4635_v26 = vmul.f32 %v4433_v38, %v4433_v38 }
 0x383   : > { %v4574_v63 = vadd.f32 %v4573_v54, %v4572_v49  ;;  %4984 = vst.msk [vmem:[%s7487_s25 + $0xc] sm:$0xf] %vm4520_vm3, %v4952_v3 }
 0x384   : > { %4531 = vst.msk [vmem:[%s7217_s20 + $0x28] sm:$0xf] %vm4520_vm3, %v4498_v41  ;;  %v4676_v18 = vsel %vm4553_vm5, %v4635_v26, 0.0 }
 0x385   : > { %v4677_v21 = vadd.f32 %v4676_v18, %v4675_v2  ;;  %v4916_v60 = vpop.f32.mrf.mxu3 }
 0x386   : > { %v4968_v30 = vpack.c.bf16 %v4916_v60, %v4916_v60 }
 0x388   : > { %v4879_v61 = vpop.f32.mrf.mxu1  ;;  %5000 = vst.msk [vmem:[%s7487_s25 + $0x4c] sm:$0xf] %vm4520_vm3, %v4968_v30 }
 0x389   : > { %v4435_v37 = vpop.f32.mrf.mxu0  ;;  %v4953_v45 = vpack.c.bf16 %v4879_v61, %v4879_v61 }
 0x38a   : > { %v4499_v33 = vpack.c.bf16 %v4435_v37, %v4435_v37  ;;  %v4575_v48 = vsel %vm4553_vm5, %v4435_v37, 0.0  ;;  %v4636_v11 = vmul.f32 %v4435_v37, %v4435_v37 }
 0x38b   : > { %v7521_v17 = vadd.f32 %v4575_v48, %v4574_v63  ;;  %4985 = vst.msk [vmem:[%s7487_s25 + $0x10] sm:$0xf] %vm4520_vm3, %v4953_v45 }
 0x38c   : > { %4532 = vst.msk [vmem:[%s7217_s20 + $0x2c] sm:$0xf] %vm4520_vm3, %v4499_v33  ;;  %v4678_v28 = vsel %vm4553_vm5, %v4636_v11, 0.0 }
 0x38d   : > { %v7526_v20 = vadd.f32 %v4678_v28, %v4677_v21  ;;  %v4919_v52 = vpop.f32.mrf.mxu3 }
 0x38e   : > { %v4969_v9 = vpack.c.bf16 %v4919_v52, %v4919_v52 }
 0x390   : > { %v4881_v46 = vpop.f32.mrf.mxu1  ;;  %5001 = vst.msk [vmem:[%s7487_s25 + $0x50] sm:$0xf] %vm4520_vm3, %v4969_v9 }
 0x391   : > { %v4954_v42 = vpack.c.bf16 %v4881_v46, %v4881_v46 }
 0x393   : > { %4986 = vst.msk [vmem:[%s7487_s25 + $0x14] sm:$0xf] %vm4520_vm3, %v4954_v42 }
 0x395   : > { %v4921_v50 = vpop.f32.mrf.mxu3 }
 0x396   : > { %v4970_v2 = vpack.c.bf16 %v4921_v50, %v4921_v50 }
 0x398   : > { %v4884_v16 = vpop.f32.mrf.mxu1  ;;  %5002 = vst.msk [vmem:[%s7487_s25 + $0x54] sm:$0xf] %vm4520_vm3, %v4970_v2 }
 0x399   : > { %v4955_v51 = vpack.c.bf16 %v4884_v16, %v4884_v16 }
 0x39b   : > { %4987 = vst.msk [vmem:[%s7487_s25 + $0x18] sm:$0xf] %vm4520_vm3, %v4955_v51 }
 0x39d   : > { %v7536_v22 = vpop.f32.mrf.mxu2  ;;  %v4924_v29 = vpop.f32.mrf.mxu3 }
 0x39e   : > { %v4512_v34 = vpack.c.bf16 %v7536_v22, %v7536_v22  ;;  %v4971_v5 = vpack.c.bf16 %v4924_v29, %v4924_v29 }
 0x3a0   : > { %4545 = vst.msk [vmem:[%s7217_s20 + $0x60] sm:$0xf] %vm4520_vm3, %v4512_v34  ;;  %v4886_v49 = vpop.f32.mrf.mxu1 }
 0x3a1   : > { %v4956_v1 = vpack.c.bf16 %v4886_v49, %v4886_v49  ;;  %5003 = vst.msk [vmem:[%s7487_s25 + $0x58] sm:$0xf] %vm4520_vm3, %v4971_v5  ;;  %v4585_v5 = vsel %vm4553_vm5, %v7327_v25, 0.0 }
 0x3a3   : > { %4988 = vst.msk [vmem:[%s7487_s25 + $0x1c] sm:$0xf] %vm4520_vm3, %v4956_v1 }
 0x3a5   : > { %v7546_v40 = vpop.f32.mrf.mxu2  ;;  %v4926_v12 = vpop.f32.mrf.mxu3 }
 0x3a6   : > { %v4513_v57 = vpack.c.bf16 %v7546_v40, %v7546_v40  ;;  %v4972_v32 = vpack.c.bf16 %v4926_v12, %v4926_v12 }
 0x3a8   : > { %4546 = vst.msk [vmem:[%s7217_s20 + $0x64] sm:$0xf] %vm4520_vm3, %v4513_v57  ;;  %v4889_v23 = vpop.f32.mrf.mxu1 }
 0x3a9   : > { %v4438_v53 = vpop.f32.mrf.mxu0  ;;  %v4957_v55 = vpack.c.bf16 %v4889_v23, %v4889_v23  ;;  %5004 = vst.msk [vmem:[%s7487_s25 + $0x5c] sm:$0xf] %vm4520_vm3, %v4972_v32  ;;  %v4587_v32 = vsel %vm4553_vm5, %v7344_v4, 0.0 }
 0x3aa   : > { %v4500_v56 = vpack.c.bf16 %v4438_v53, %v4438_v53  ;;  %v4637_v3 = vmul.f32 %v4438_v53, %v4438_v53  ;;  %v4577_v61 = vsel %vm4553_vm5, %v4438_v53, 0.0  ;;  %v4641_v53 = vmul.f32 %v7327_v25, %v7327_v25 }
 0x3ab   : > { %4989 = vst.msk [vmem:[%s7487_s25 + $0x20] sm:$0xf] %vm4520_vm3, %v4957_v55  ;;  %v4578_v42 = vadd.f32 %v4577_v61, %v7521_v17  ;;  %v4647_v61 = vmul.f32 %v7496_v31, %v7496_v31 }
 0x3ac   : > { %4533 = vst.msk [vmem:[%s7217_s20 + $0x30] sm:$0xf] %vm4520_vm3, %v4500_v56  ;;  %v4680_v59 = vsel %vm4553_vm5, %v4637_v3, 0.0 }
 0x3ad   : > { %v4929_v0 = vpop.f32.mrf.mxu3  ;;  %v4681_v52 = vadd.f32 %v4680_v59, %v7526_v20  ;;  %v4597_v59 = vsel %vm4553_vm5, %v7496_v31, 0.0 }
 0x3ae   : > { %v4973_v8 = vpack.c.bf16 %v4929_v0, %v4929_v0 }
 0x3b0   : > { %v4891_v7 = vpop.f32.mrf.mxu1  ;;  %5005 = vst.msk [vmem:[%s7487_s25 + $0x60] sm:$0xf] %vm4520_vm3, %v4973_v8  ;;  %v4589_v8 = vsel %vm4553_vm5, %v7391_v24, 0.0 }
 0x3b1   : > { %v4440_v43 = vpop.f32.mrf.mxu0  ;;  %v4958_v39 = vpack.c.bf16 %v4891_v7, %v4891_v7 }
 0x3b2   : > { %v4501_v19 = vpack.c.bf16 %v4440_v43, %v4440_v43  ;;  %v4638_v6 = vmul.f32 %v4440_v43, %v4440_v43  ;;  %v4579_v46 = vsel %vm4553_vm5, %v4440_v43, 0.0  ;;  %v4642_v43 = vmul.f32 %v7344_v4, %v7344_v4 }
 0x3b3   : > { %4990 = vst.msk [vmem:[%s7487_s25 + $0x24] sm:$0xf] %vm4520_vm3, %v4958_v39  ;;  %v4580_v51 = vadd.f32 %v4579_v46, %v4578_v42  ;;  %v4688_v39 = vsel %vm4553_vm5, %v4641_v53, 0.0  ;;  %v4648_v46 = vmul.f32 %v7505_v36, %v7505_v36 }
 0x3b4   : > { %4534 = vst.msk [vmem:[%s7217_s20 + $0x34] sm:$0xf] %vm4520_vm3, %v4501_v19  ;;  %v4682_v30 = vsel %vm4553_vm5, %v4638_v6, 0.0 }
 0x3b5   : > { %v4931_v13 = vpop.f32.mrf.mxu3  ;;  %v4683_v50 = vadd.f32 %v4682_v30, %v4681_v52 }
 0x3b6   : > { %v4974_v38 = vpack.c.bf16 %v4931_v13, %v4931_v13 }
 0x3b8   : > { %v4894_v62 = vpop.f32.mrf.mxu1  ;;  %5006 = vst.msk [vmem:[%s7487_s25 + $0x64] sm:$0xf] %vm4520_vm3, %v4974_v38 }
 0x3b9   : > { %v4959_v27 = vpack.c.bf16 %v4894_v62, %v4894_v62  ;;  %v4643_v62 = vmul.f32 %v7391_v24, %v7391_v24 }
 0x3bb   : > { %4991 = vst.msk [vmem:[%s7487_s25 + $0x28] sm:$0xf] %vm4520_vm3, %v4959_v27  ;;  %v4690_v27 = vsel %vm4553_vm5, %v4642_v43, 0.0 }
 0x3be   : > { %v4934_v26 = vpop.f32.mrf.mxu3 }
 0x3bf   : > { %v4975_v14 = vpack.c.bf16 %v4934_v26, %v4934_v26  ;;  %v4692_v26 = vsel %vm4553_vm5, %v4643_v62, 0.0 }
 0x3c0   : > { %v4896_v10 = vpop.f32.mrf.mxu1 }
 0x3c1   : > { %v4960_v47 = vpack.c.bf16 %v4896_v10, %v4896_v10  ;;  %5007 = vst.msk [vmem:[%s7487_s25 + $0x68] sm:$0xf] %vm4520_vm3, %v4975_v14  ;;  %v4644_v10 = vmul.f32 %v7401_v35, %v7401_v35  ;;  %v4645_v14 = vmul.f32 %v7439_v58, %v7439_v58 }
 0x3c3   : > { %4992 = vst.msk [vmem:[%s7487_s25 + $0x2c] sm:$0xf] %vm4520_vm3, %v4960_v47  ;;  %v4694_v3 = vsel %vm4553_vm5, %v4644_v10, 0.0 }
 0x3c5   : > { %v7572_v44 = vpop.f32.mrf.mxu2 }
 0x3c6   : > { %v4514_v41 = vpack.c.bf16 %v7572_v44, %v7572_v44  ;;  %v4936_v33 = vpop.f32.mrf.mxu3 }
 0x3c7   : > { %v4976_v28 = vpack.c.bf16 %v4936_v33, %v4936_v33  ;;  %v4646_v33 = vmul.f32 %v7454_v15, %v7454_v15 }
 0x3c8   : > { %4547 = vst.msk [vmem:[%s7217_s20 + $0x68] sm:$0xf] %vm4520_vm3, %v4514_v41  ;;  %v4899_v54 = vpop.f32.mrf.mxu1 }
 0x3c9   : > { %v4961_v18 = vpack.c.bf16 %v4899_v54, %v4899_v54  ;;  %5008 = vst.msk [vmem:[%s7487_s25 + $0x6c] sm:$0xf] %vm4520_vm3, %v4976_v28  ;;  %v4595_v28 = vsel %vm4553_vm5, %v7454_v15, 0.0 }
 0x3cb   : > { %4993 = vst.msk [vmem:[%s7487_s25 + $0x30] sm:$0xf] %vm4520_vm3, %v4961_v18  ;;  %v4591_v18 = vsel %vm4553_vm5, %v7401_v35, 0.0  ;;  %v4696_v35 = vsel %vm4553_vm5, %v4645_v14, 0.0 }
 0x3cd   : > { %v7582_v63 = vpop.f32.mrf.mxu2 }
 0x3ce   : > { %v4515_v21 = vpack.c.bf16 %v7582_v63, %v7582_v63  ;;  %v4939_v49 = vpop.f32.mrf.mxu3 }
 0x3cf   : > { %v4977_v57 = vpack.c.bf16 %v4939_v49, %v4939_v49 }
 0x3d0   : > { %4548 = vst.msk [vmem:[%s7217_s20 + $0x6c] sm:$0xf] %vm4520_vm3, %v4515_v21  ;;  %v4901_v37 = vpop.f32.mrf.mxu1 }
 0x3d1   : > { %v4962_v11 = vpack.c.bf16 %v4901_v37, %v4901_v37  ;;  %5009 = vst.msk [vmem:[%s7487_s25 + $0x70] sm:$0xf] %vm4520_vm3, %v4977_v57  ;;  %v4593_v37 = vsel %vm4553_vm5, %v7439_v58, 0.0  ;;  %v4698_v58 = vsel %vm4553_vm5, %v4646_v33, 0.0 }
 0x3d3   : > { %4994 = vst.msk [vmem:[%s7487_s25 + $0x34] sm:$0xf] %vm4520_vm3, %v4962_v11 }
 0x3d4   : > { %v4443_v48 = vpop.f32.mrf.mxu0 }
 0x3d5   : > { %v4502_v45 = vpack.c.bf16 %v4443_v48, %v4443_v48  ;;  %v4639_v60 = vmul.f32 %v4443_v48, %v4443_v48  ;;  %v4581_v16 = vsel %vm4553_vm5, %v4443_v48, 0.0 }
 0x3d6   : > { %v4582_v1 = vadd.f32 %v4581_v16, %v4580_v51  ;;  %v4941_v47 = vpop.f32.mrf.mxu3  ;;  %v4700_v51 = vsel %vm4553_vm5, %v4647_v61, 0.0 }
 0x3d7   : > { %4535 = vst.msk [vmem:[%s7217_s20 + $0x38] sm:$0xf] %vm4520_vm3, %v4502_v45  ;;  %v4684_v9 = vsel %vm4553_vm5, %v4639_v60, 0.0  ;;  %v4978_v54 = vpack.c.bf16 %v4941_v47, %v4941_v47 }
 0x3d8   : > { %v4904_v34 = vpop.f32.mrf.mxu1  ;;  %v4685_v29 = vadd.f32 %v4684_v9, %v4683_v50  ;;  %v4599_v9 = vsel %vm4553_vm5, %v7505_v36, 0.0 }
 0x3d9   : > { %v4963_v17 = vpack.c.bf16 %v4904_v34, %v4904_v34  ;;  %5010 = vst.msk [vmem:[%s7487_s25 + $0x74] sm:$0xf] %vm4520_vm3, %v4978_v54  ;;  %v4649_v34 = vmul.f32 %v7536_v22, %v7536_v22 }
 0x3db   : > { %4995 = vst.msk [vmem:[%s7487_s25 + $0x38] sm:$0xf] %vm4520_vm3, %v4963_v17  ;;  %v4650_v17 = vmul.f32 %v7546_v40, %v7546_v40 }
 0x3dc   : > { %v4445_v2 = vpop.f32.mrf.mxu0 }
 0x3dd   : > { %v4503_v56 = vpack.c.bf16 %v4445_v2, %v4445_v2  ;;  %v4583_v23 = vsel %vm4553_vm5, %v4445_v2, 0.0  ;;  %v4640_v20 = vmul.f32 %v4445_v2, %v4445_v2  ;;  %v4601_v2 = vsel %vm4553_vm5, %v7536_v22, 0.0 }
 0x3de   : > { %v4584_v55 = vadd.f32 %v4583_v23, %v4582_v1  ;;  %v4944_v42 = vpop.f32.mrf.mxu3  ;;  %v4702_v1 = vsel %vm4553_vm5, %v4648_v46, 0.0  ;;  %v4603_v23 = vsel %vm4553_vm5, %v7546_v40, 0.0  ;;  %v4651_v40 = vmul.f32 %v7572_v44, %v7572_v44 }
 0x3df   : > { %4536 = vst.msk [vmem:[%s7217_s20 + $0x3c] sm:$0xf] %vm4520_vm3, %v4503_v56  ;;  %v4686_v19 = vsel %vm4553_vm5, %v4640_v20, 0.0  ;;  %v4979_v52 = vpack.c.bf16 %v4944_v42, %v4944_v42  ;;  %v4704_v56 = vsel %vm4553_vm5, %v4649_v34, 0.0 }
 0x3e0   : > { %v4586_v7 = vadd.f32 %v4585_v5, %v4584_v55  ;;  %v4687_v12 = vadd.f32 %v4686_v19, %v4685_v29  ;;  %v4906_v13 = vpop.f32.mrf.mxu1  ;;  %v4706_v29 = vsel %vm4553_vm5, %v4650_v17, 0.0 }
 0x3e1   : > { %v4964_v4 = vpack.c.bf16 %v4906_v13, %v4906_v13  ;;  %5011 = vst.msk [vmem:[%s7487_s25 + $0x78] sm:$0xf] %vm4520_vm3, %v4979_v52 }
 0x3e2   : > { %v4588_v25 = vadd.f32 %v4587_v32, %v4586_v7  ;;  %v4689_v0 = vadd.f32 %v4688_v39, %v4687_v12  ;;  %v4605_v32 = vsel %vm4553_vm5, %v7572_v44, 0.0 }
 0x3e3   : > { %4996 = vst.msk [vmem:[%s7487_s25 + $0x3c] sm:$0xf] %vm4520_vm3, %v4964_v4 }
 0x3e4   : > { %v4590_v38 = vadd.f32 %v4589_v8, %v4588_v25  ;;  %v4691_v41 = vadd.f32 %v4690_v27, %v4689_v0  ;;  %v4708_v25 = vsel %vm4553_vm5, %v4651_v40, 0.0  ;;  %v4652_v0 = vmul.f32 %v7582_v63, %v7582_v63 }
 0x3e5   : > { %v4607_v8 = vsel %vm4553_vm5, %v7582_v63, 0.0 }
 0x3e6   : > { %v4592_v21 = vadd.f32 %v4591_v18, %v4590_v38  ;;  %v4693_v24 = vadd.f32 %v4692_v26, %v4691_v41  ;;  %v4946_v5 = vpop.f32.mrf.mxu3  ;;  %v4710_v47 = vsel %vm4553_vm5, %v4652_v0, 0.0 }
 0x3e7   : > { %v4980_v7 = vpack.c.bf16 %v4946_v5, %v4946_v5 }
 0x3e8   : > { %v4594_v48 = vadd.f32 %v4593_v37, %v4592_v21  ;;  %v4695_v11 = vadd.f32 %v4694_v3, %v4693_v24  ;;  %v4909_v60 = vpop.f32.mrf.mxu1 }
 0x3e9   : > { %v4965_v15 = vpack.c.bf16 %v4909_v60, %v4909_v60  ;;  %5012 = vst.msk [vmem:[%s7487_s25 + $0x7c] sm:$0xf] %vm4520_vm3, %v4980_v7 }
 0x3ea   : > { %v4596_v6 = vadd.f32 %v4595_v28, %v4594_v48  ;;  %v4697_v45 = vadd.f32 %v4696_v35, %v4695_v11 }
 0x3eb   : > { %4997 = vst.msk [vmem:[%s7487_s25 + $0x40] sm:$0xf] %vm4520_vm3, %v4965_v15 }
 0x3ec   : > { %v4699_v30 = vadd.f32 %v4698_v58, %v4697_v45  ;;  %v4598_v16 = vadd.f32 %v4597_v59, %v4596_v6 }
 0x3ee   : > { %v4600_v49 = vadd.f32 %v4599_v9, %v4598_v16  ;;  %v4701_v50 = vadd.f32 %v4700_v51, %v4699_v30 }
 0x3ef   : > { %v4478_v31 = vpop.f32.mrf.mxu2 }
 0x3f0   : > { %v4516_v57 = vpack.c.bf16 %v4478_v31, %v4478_v31  ;;  %v4602_v36 = vadd.f32 %v4601_v2, %v4600_v49  ;;  %v4703_v53 = vadd.f32 %v4702_v1, %v4701_v50  ;;  %v4911_v55 = vpop.f32.mrf.mxu1  ;;  %v4653_v38 = vmul.f32 %v4478_v31, %v4478_v31 }
 0x3f1   : > { %v4966_v19 = vpack.c.bf16 %v4911_v55, %v4911_v55  ;;  %v4609_v44 = vsel %vm4553_vm5, %v4478_v31, 0.0 }
 0x3f2   : > { %4549 = vst.msk [vmem:[%s7217_s20 + $0x70] sm:$0xf] %vm4520_vm3, %v4516_v57  ;;  %v4604_v20 = vadd.f32 %v4603_v23, %v4602_v36  ;;  %v4705_v22 = vadd.f32 %v4704_v56, %v4703_v53  ;;  %v4712_v21 = vsel %vm4553_vm5, %v4653_v38, 0.0 }
 0x3f3   : > { %4998 = vst.msk [vmem:[%s7487_s25 + $0x44] sm:$0xf] %vm4520_vm3, %v4966_v19 }
 0x3f4   : > { %v4707_v43 = vadd.f32 %v4706_v29, %v4705_v22  ;;  %v4606_v62 = vadd.f32 %v4605_v32, %v4604_v20 }
 0x3f6   : > { %v4709_v27 = vadd.f32 %v4708_v25, %v4707_v43  ;;  %v4608_v10 = vadd.f32 %v4607_v8, %v4606_v62 }
 0x3f7   : > { %v4480_v12 = vpop.f32.mrf.mxu2 }
 0x3f8   : > { %v4517_v39 = vpack.c.bf16 %v4480_v12, %v4480_v12  ;;  %v4654_v41 = vmul.f32 %v4480_v12, %v4480_v12  ;;  %v4711_v54 = vadd.f32 %v4710_v47, %v4709_v27  ;;  %v4611_v26 = vsel %vm4553_vm5, %v4480_v12, 0.0 }
 0x3f9   : > { %v4610_v14 = vadd.f32 %v4609_v44, %v4608_v10 }
 0x3fa   : > { %4550 = vst.msk [vmem:[%s7217_s20 + $0x74] sm:$0xf] %vm4520_vm3, %v4517_v39  ;;  %v4714_v63 = vsel %vm4553_vm5, %v4654_v41, 0.0  ;;  %v4713_v3 = vadd.f32 %v4712_v21, %v4711_v54 }
 0x3fb   : > { %v4612_v37 = vadd.f32 %v4611_v26, %v4610_v14 }
 0x3fc   : > { %v4715_v48 = vadd.f32 %v4714_v63, %v4713_v3 }
 0x405   : > { %v4483_v13 = vpop.f32.mrf.mxu2 }
 0x406   : > { %v4518_v4 = vpack.c.bf16 %v4483_v13, %v4483_v13  ;;  %v4655_v18 = vmul.f32 %v4483_v13, %v4483_v13  ;;  %v4613_v24 = vsel %vm4553_vm5, %v4483_v13, 0.0 }
 0x407   : > { %v4614_v11 = vadd.f32 %v4613_v24, %v4612_v37 }
 0x408   : > { %4551 = vst.msk [vmem:[%s7217_s20 + $0x78] sm:$0xf] %vm4520_vm3, %v4518_v4  ;;  %v4716_v33 = vsel %vm4553_vm5, %v4655_v18, 0.0 }
 0x409   : > { %v4717_v45 = vadd.f32 %v4716_v33, %v4715_v48 }
 0x40d   : > { %v4485_v35 = vpop.f32.mrf.mxu2 }
 0x40e   : > { %v4519_v28 = vpack.c.bf16 %v4485_v35, %v4485_v35  ;;  %v4615_v61 = vsel %vm4553_vm5, %v4485_v35, 0.0  ;;  %v4656_v6 = vmul.f32 %v4485_v35, %v4485_v35 }
 0x40f   : > { %v4616_v58 = vadd.f32 %v4615_v61, %v4614_v11 }
 0x410   : > { %4552 = vst.msk [vmem:[%s7217_s20 + $0x7c] sm:$0xf] %vm4520_vm3, %v4519_v28  ;;  %v4718_v59 = vsel %vm4553_vm5, %v4656_v6, 0.0 }
 0x411   : > { %v4617_v46 = vrot.slane %v4616_v58, 4  ;;  %v4719_v60 = vadd.f32 %v4718_v59, %v4717_v45 }
 0x413   : > { %v4618_v42 = vadd.f32 %v4617_v46, %v4616_v58  ;;  %v4720_v30 = vrot.slane %v4719_v60, 4 }
 0x415   : > { %v4619_v16 = vrot.slane %v4618_v42, 2  ;;  %v4721_v15 = vadd.f32 %v4720_v30, %v4719_v60 }
 0x417   : > { %v4620_v52 = vadd.f32 %v4619_v16, %v4618_v42  ;;  %v4722_v51 = vrot.slane %v4721_v15, 2 }
 0x419   : > { %v4621_v9 = vrot.slane %v4620_v52, 1  ;;  %v4723_v34 = vadd.f32 %v4722_v51, %v4721_v15 }
 0x41b   : > { %v4622_v31 = vadd.f32 %v4621_v9, %v4620_v52  ;;  %v4724_v49 = vrot.slane %v4723_v34, 1 }
 0x41d   : > { %4624 = vst.msk [vmem:[%s331_s30] sm:$0x1] %vm4623_vm10, %v4622_v31  ;;  %v4725_v50 = vadd.f32 %v4724_v49, %v4723_v34 }
 0x41f   : > { %4726 = vst.msk [vmem:[%s334_s11] sm:$0x1] %vm4623_vm10, %v4725_v50 }
 0x420 PF: > { %s19_s27 = sadd.s32 1, %s5370_s27  }
 0x421   : > { %p16_p4 = scmp.ge.s32.totalorder %s19_s27, 4  }
 0x423   :  { %18 = sbr.rel (!%p16_p4) target bundleno = 1 (0x1), region = 109 }

// kernel: wide_resnet_block.5
= control target key start
LH: loop header
LB: loop body
LE: loop exit
PB: predicated region body
PF: predicated region fallthrough
CT: control target
= control target key end

     0   :  { %s5033_s18 = smov 0   ;;  %s6923_s0 = inlined_call_operand.vmem [shape: bf16[2,256,8], index: 0, kind: input, shape index: {}]   ;;  %s6924_s1 = inlined_call_operand.vmem [shape: bf16[2,256,8], index: 1, kind: input, shape index: {}]   ;;  %s6925_s2 = inlined_call_operand.vmem [shape: f32[1,8], index: 2, kind: input, shape index: {}]   ;;  %s6926_s3 = inlined_call_operand.vmem [shape: f32[1,8], index: 3, kind: input, shape index: {}]   ;;  %s6927_s4 = inlined_call_operand.vmem [shape: bf16[72,8], index: 4, kind: input, shape index: {}]   ;;  %s6928_s5 = inlined_call_operand.vmem [shape: f32[2,256,8], index: 5, kind: output, shape index: {}]  }
   0x1 LB: > { %s4610_s19 = sadd.s32 4294967295, %s4992_s18   ;;  %p4614_p0 = scmp.ge.s32.totalorder %s4992_s18, 1  ;;  %s4992_s18 = sphi %s5033_s18, %s15_s18  }
   0x2   : > { %p197_p1 = scmp.lt.s32.totalorder %s4992_s18, 3 }
   0x4   : > { %p198_p2 = pnand %p4614_p0, %p197_p1 }
   0x5   : > { %p230_p3 = scmp.lt.s32.totalorder (!%p198_p2), %s4610_s19, 1  ;;  %s4995_s28 = smov (!%p198_p2), 8  }
   0x6   : > { %201 = sbr.rel (%p198_p2) target bundleno = 1039 (0x40f), region = 40  ;;  %s4996_s8 = smov (!%p198_p2), 16  }
   0x7   : > { %s4997_s9 = smov (!%p198_p2), 24   ;;  %s4998_s14 = smov (!%p198_p2), 32  }
   0x8   : > { %s4999_s15 = smov (!%p198_p2), 40   ;;  %s5000_s16 = smov (!%p198_p2), 48  }
   0x9   : > { %s5001_s17 = smov (!%p198_p2), 56   ;;  %s5002_s21 = smov (!%p198_p2), 64  }
   0xb   : > { %vm446_vm0 = vcmask 60416   ;;  %vm449_vm1 = vcmask 57344   ;;  %vm456_vm2 = vsmask.f32 256  ;;  %v4994_v0 = vmov 0   ;;  %s6942_s19 = smov (!%p230_p3, %s4610_s19), 1 }
   0xc   : > { %448 = vst.msk [vmem:[#allocation2 + $0x4] sm:$0xf] %vm446_vm0, %v4994_v0  ;;  %vm5045_vm3 = vmand %vm449_vm1, %vm456_vm2  ;;  %vm512_vm4 = vsmask.f32 7938  ;;  %v461_v2 = vld [vmem:[#allocation2 + $0xc] sm:$0x1] }
   0xd   : > { %450 = vst.msk [vmem:[#allocation2 + $0x8] sm:$0x1] %vm449_vm1, %v4994_v0  ;;  %s4767_s20 = sshll.u32 %s6942_s19, 7  ;;  %v462_v3 = vsel %vm5045_vm3, 0, %v461_v2  ;;  %vm5060_vm5 = vmand %vm449_vm1, %vm512_vm4  ;;  %v5074_v5 = vld [vmem:[%s6925_s2] ss:$0 sm:$0xff] }
   0xe   : > { %447 = vst.msk [vmem:[#allocation2] sm:$0xf] %vm446_vm0, %v4994_v0  ;;  %s5069_s23 = scalar_lea.vmem %s6923_s0, %s4767_s20  ;;  %v467_v6 = vld [vmem:[#allocation2 + $0x24] sm:$0x1]  ;;  %v5080_v9 = vld [vmem:[%s6926_s3] ss:$0 sm:$0xff]  ;;  %vm5125_vm10 = vmand %vm446_vm0, %vm512_vm4 }
   0xf   : > { %452 = vst.msk [vmem:[#allocation2 + $0xcc] sm:$0xf] %vm446_vm0, %v4994_v0  ;;  %v4791_v8 = vld [vmem:[%s5069_s23] sm:$0xff]   ;;  %v468_v10 = vsel %vm5045_vm3, 0, %v467_v6  ;;  %vm1117_vm6 = vsmask.f32 3328 }
  0x10   : > { %453 = vst.msk [vmem:[#allocation2 + $0xd0] sm:$0xf] %vm446_vm0, %v4994_v0  ;;  %vm1118_vm7 = vsmask.f32 7440  ;;  %v4792_v14 = vunpack.c.l.bf16 %v4791_v8  ;;  %v4793_v15 = vunpack.c.h.bf16 %v4791_v8  ;;  %v4919_v16 = vld [vmem:[%s5069_s23 + $0x10] sm:$0xff]   ;;  %v4920_v17 = vld [vmem:[%s5069_s23 + $0x18] sm:$0xff]  }
  0x11   : > { %454 = vst.msk [vmem:[#allocation2 + $0xd4] sm:$0x1] %vm449_vm1, %v4994_v0  ;;  %v4800_v20 = vunpack.c.l.bf16 %v4919_v16  ;;  %v4801_v21 = vunpack.c.h.bf16 %v4919_v16  ;;  %v4804_v22 = vunpack.c.l.bf16 %v4920_v17  ;;  %vm568_vm8 = vsmask.f32 4368  ;;  %v517_v30 = vld [vmem:[#allocation2 + $0x14] sm:$0x1]  ;;  %vm5119_vm9 = vmor %vm1117_vm6, %vm1118_vm7 }
  0x12   : > { %463 = vst [vmem:[#allocation2 + $0xc] sm:$0x1] %v462_v3  ;;  %v314_v26 = vmul.f32 %v5074_v5, %v4792_v14  ;;  %v315_v27 = vmul.f32 %v5074_v5, %v4793_v15  ;;  %v4805_v31 = vunpack.c.h.bf16 %v4920_v17  ;;  %v526_v32 = vld [vmem:[#allocation2 + $0x38] sm:$0x1]  ;;  %v518_v35 = vsel %vm5060_vm5, 0, %v517_v30  ;;  %v5106_v42 = vld [vmem:[%s5069_s23 + $0x28] sm:$0xff]   ;;  %vm5133_vm11 = vmor %vm456_vm2, %vm568_vm8 }
  0x13   : > { %v1070_v7 = vld [vmem:[#allocation2 + $0x4] sm:$0xf]  ;;  %469 = vst [vmem:[#allocation2 + $0x24] sm:$0x1] %v468_v10  ;;  %v318_v28 = vmul.f32 %v5074_v5, %v4800_v20  ;;  %v319_v29 = vmul.f32 %v5074_v5, %v4801_v21  ;;  %v320_v36 = vmul.f32 %v5074_v5, %v4804_v22  ;;  %v523_v41 = vld [vmem:[#allocation2 + $0x2c] sm:$0x1]  ;;  %v4812_v54 = vunpack.c.l.bf16 %v5106_v42 }
  0x14   : > { %v514_v11 = vld [vmem:[#allocation2 + $0x8] sm:$0x1]  ;;  %v1130_v12 = vshll.u32 %v1070_v7, 16  ;;  %v1134_v13 = vshrl.u32 %v1070_v7, 16  ;;  %v350_v34 = vadd.f32 %v5080_v9, %v314_v26  ;;  %v351_v37 = vadd.f32 %v5080_v9, %v315_v27  ;;  %519 = vst [vmem:[#allocation2 + $0x14] sm:$0x1] %v518_v35 }
  0x15   : > { %v515_v18 = vsel %vm5060_vm5, 0, %v514_v11  ;;  %v458_v19 = vld [vmem:[#allocation2] sm:$0x1]  ;;  %v354_v38 = vadd.f32 %v5080_v9, %v318_v28  ;;  %v355_v39 = vadd.f32 %v5080_v9, %v319_v29  ;;  %v321_v40 = vmul.f32 %v5074_v5, %v4805_v31  ;;  %s4769_s10 = sshll.u32 %s6942_s19, 8 }
  0x16   : > { %516 = vst [vmem:[#allocation2 + $0x8] sm:$0x1] %v515_v18  ;;  %v5088_v23 = vrot.slane %v1130_v12, 5  ;;  %v1136_v24 = vrot.slane %v1134_v13, 4  ;;  %v459_v25 = vsel %vm5045_vm3, 0, %v458_v19  ;;  %v382_v44 = vmax.f32 %v350_v34, 0.0  ;;  %s6818_s12 = scalar_lea.vmem %s6928_s5, %s4769_s10 }
  0x17   : > { %460 = vst [vmem:[#allocation2] sm:$0x1] %v459_v25  ;;  %v356_v45 = vadd.f32 %v5080_v9, %v320_v36  ;;  %v527_v46 = vsel %vm5060_vm5, 0, %v526_v32  ;;  %v383_v47 = vmax.f32 %v351_v37, 0.0  ;;  %v386_v48 = vmax.f32 %v354_v38, 0.0 }
  0x18   : > { %v1137_v33 = vor.u32 %v1136_v24, %v5088_v23  ;;  %v387_v49 = vmax.f32 %v355_v39, 0.0  ;;  %v357_v50 = vadd.f32 %v5080_v9, %v321_v40  ;;  %528 = vst [vmem:[#allocation2 + $0x38] sm:$0x1] %v527_v46  ;;  %v414_v51 = vpack.c.bf16 %v382_v44, %v382_v44 }
  0x19   : > { %v388_v52 = vmax.f32 %v356_v45, 0.0  ;;  %v524_v53 = vsel %vm5060_vm5, 0, %v523_v41  ;;  %v415_v56 = vpack.c.bf16 %v383_v47, %v383_v47  ;;  %v418_v57 = vpack.c.bf16 %v386_v48, %v386_v48  ;;  %v893_v18 = vld [vmem:[#allocation2 + $0xc] sm:$0xf]  ;;  %v476_v47 = vld [vmem:[#allocation2 + $0x48] sm:$0x1] }
  0x1a   : > { %v1138_v43 = vrot.slane %v1137_v33, 4  ;;  %v419_v58 = vpack.c.bf16 %v387_v49, %v387_v49  ;;  %v389_v59 = vmax.f32 %v357_v50, 0.0  ;;  %525 = vst [vmem:[#allocation2 + $0x2c] sm:$0x1] %v524_v53  ;;  %v571_v62 = vshrl.u32 %v414_v51, 16  ;;  %v4918_v41 = vld [vmem:[%s5069_s23 + $0x8] sm:$0xff]  }
  0x1b   : > { %v574_v63 = vshll.u32 %v414_v51, 16  ;;  %v5115_v0 = vpack.c.bf16 %v388_v52, %v388_v52  ;;  %v579_v7 = vshrl.u32 %v415_v56, 16  ;;  %v582_v8 = vshll.u32 %v415_v56, 16  ;;  %v907_v30 = vld [vmem:[#allocation2 + $0x24] sm:$0xf] }
  0x1c   : > { %v573_v11 = vrot.slane %v571_v62, 7  ;;  %v605_v12 = vshrl.u32 %v418_v57, 16  ;;  %v608_v13 = vshll.u32 %v418_v57, 16  ;;  %v613_v19 = vshrl.u32 %v419_v58, 16  ;;  %v897_v31 = vld [vmem:[#allocation2 + $0x14] sm:$0x1] }
  0x1d   : > { %v1071_v55 = vld [vmem:[#allocation2 + $0x8] sm:$0x1]  ;;  %v581_v17 = vrot.slane %v579_v7, 7  ;;  %v616_v29 = vshll.u32 %v419_v58, 16  ;;  %v421_v39 = vpack.c.bf16 %v389_v59, %v389_v59  ;;  %v622_v45 = vshrl.u32 %v5115_v0, 16 }
  0x1e   : > { %v1140_v60 = vshll.u32 %v1071_v55, 16  ;;  %v1069_v61 = vld [vmem:[#allocation2] sm:$0xf]  ;;  %v576_v22 = vor.u32 %v574_v63, %v573_v11  ;;  %v577_v24 = vrot.slane %v573_v11, 4  ;;  %v607_v25 = vrot.slane %v605_v12, 7 }
  0x1f   : > { %v1121_v3 = vshrl.u32 %v1069_v61, 16  ;;  %v1124_v6 = vshll.u32 %v1069_v61, 16  ;;  %v584_v27 = vor.u32 %v582_v8, %v581_v17  ;;  %v615_v28 = vrot.slane %v613_v19, 7  ;;  %v464_v52 = vld [vmem:[#allocation2 + $0x18] sm:$0x1]  ;;  %v5166_v61 = vld [vmem:[%s5069_s23 + $0x20] sm:$0xff]  }
  0x20   : > { %v1142_v10 = vrot.slane %v1140_v60, 5  ;;  %v894_v32 = vsel %vm5125_vm10, %v576_v22, %v893_v18  ;;  %v610_v33 = vor.u32 %v608_v13, %v607_v25  ;;  %v611_v34 = vrot.slane %v607_v25, 4  ;;  %v918_v63 = vld [vmem:[#allocation2 + $0x38] sm:$0x1] }
  0x21   : > { %v1123_v15 = vrot.slane %v1121_v3, 4  ;;  %v1126_v16 = vrot.slane %v1124_v6, 5  ;;  %v586_v35 = vrot.slane %v581_v17, 4  ;;  %v585_v37 = vsel %vm5133_vm11, %v577_v24, %v584_v27  ;;  %895 = vst [vmem:[#allocation2 + $0xc] sm:$0xf] %v894_v32 }
  0x22   : > { %v1143_v20 = vsel %vm5119_vm9, %v1138_v43, %v1142_v10  ;;  %v618_v38 = vor.u32 %v616_v29, %v615_v28  ;;  %v911_v40 = vld [vmem:[#allocation2 + $0x2c] sm:$0x1]  ;;  %896 = vst.msk [vmem:[#allocation2 + $0x10] sm:$0xf] %vm446_vm0, %v585_v37  ;;  %v908_v43 = vsel %vm5125_vm10, %v610_v33, %v907_v30  ;;  %v620_v46 = vrot.slane %v615_v28, 4 }
  0x23   : > { %1506 = vrot.lane.b32.xlu0 %v1143_v20, %s4995_s28  ;;  %v1127_v26 = vor.u32 %v1126_v16, %v1123_v15  ;;  %v898_v44 = vsel %vm5045_vm3, %v586_v35, %v897_v31  ;;  %909 = vst [vmem:[#allocation2 + $0x24] sm:$0xf] %v908_v43  ;;  %v630_v50 = vshrl.u32 %v421_v39, 16  ;;  %v633_v51 = vshll.u32 %v421_v39, 16 }
  0x24   : > { %v619_v49 = vsel %vm5133_vm11, %v611_v34, %v618_v38  ;;  %v5155_v53 = vrot.slane %v622_v45, 7  ;;  %v912_v55 = vsel %vm5045_vm3, %v620_v46, %v911_v40  ;;  %v4813_v56 = vunpack.c.h.bf16 %v5106_v42  ;;  %899 = vst [vmem:[#allocation2 + $0x14] sm:$0x1] %v898_v44 }
  0x25   : > { %v1128_v36 = vrot.slane %v1127_v26, 4  ;;  %910 = vst.msk [vmem:[#allocation2 + $0x28] sm:$0xf] %vm446_vm0, %v619_v49  ;;  %v632_v57 = vrot.slane %v630_v50, 7  ;;  %v477_v58 = vsel %vm5045_vm3, 0, %v476_v47  ;;  %v4796_v59 = vunpack.c.l.bf16 %v4918_v41 }
  0x26   : > { %v4797_v60 = vunpack.c.h.bf16 %v4918_v41  ;;  %v628_v62 = vrot.slane %v5155_v53, 4  ;;  %913 = vst [vmem:[#allocation2 + $0x2c] sm:$0x1] %v912_v55  ;;  %v325_v3 = vmul.f32 %v5074_v5, %v4813_v56  ;;  %v465_v42 = vsel %vm5045_vm3, 0, %v464_v52 }
  0x27   : > { %v1133_v48 = vsel %vm5119_vm9, %v1128_v36, %v5088_v23  ;;  %v324_v23 = vmul.f32 %v5074_v5, %v4812_v54  ;;  %v635_v54 = vor.u32 %v633_v51, %v632_v57  ;;  %v637_v7 = vrot.slane %v632_v57, 4  ;;  %478 = vst [vmem:[#allocation2 + $0x48] sm:$0x1] %v477_v58 }
  0x28   : > { %v316_v8 = vmul.f32 %v5074_v5, %v4796_v59  ;;  %v5176_v10 = vmul.f32 %v5074_v5, %v4797_v60  ;;  %v1072_v11 = vld [vmem:[#allocation2 + $0xc] sm:$0xf]  ;;  %v361_v12 = vadd.f32 %v5080_v9, %v325_v3  ;;  %466 = vst [vmem:[#allocation2 + $0x18] sm:$0x1] %v465_v42  ;;  %v4808_v15 = vunpack.c.l.bf16 %v5166_v61 }
  0x29   : > { %v360_v6 = vadd.f32 %v5080_v9, %v324_v23  ;;  %v4809_v16 = vunpack.c.h.bf16 %v5166_v61  ;;  %v1073_v17 = vld [vmem:[#allocation2 + $0x10] sm:$0xf]  ;;  %v1145_v18 = vshrl.u32 %v1072_v11, 16  ;;  %v1148_v19 = vshll.u32 %v1072_v11, 16 }
  0x2a   : > { %v636_v20 = vsel %vm5133_vm11, %v628_v62, %v635_v54  ;;  %v919_v22 = vsel %vm5045_vm3, %v637_v7, %v918_v63  ;;  %v1154_v24 = vshll.u32 %v1073_v17, 16  ;;  %v1158_v25 = vshrl.u32 %v1073_v17, 16  ;;  %v1078_v26 = vld [vmem:[#allocation2 + $0x24] sm:$0xf] }
  0x2b   : > { %1504 = vrot.lane.b32.xlu0 %v1133_v48, %s4995_s28  ;;  %v392_v13 = vmax.f32 %v360_v6, 0.0  ;;  %917 = vst.msk [vmem:[#allocation2 + $0x34] sm:$0xf] %vm446_vm0, %v636_v20  ;;  %v5187_v28 = vadd.f32 %v5080_v9, %v316_v8  ;;  %v1147_v29 = vrot.slane %v1145_v18, 4  ;;  %v1150_v30 = vrot.slane %v1148_v19, 5 }
  0x2c   : > { %v1079_v31 = vld [vmem:[#allocation2 + $0x28] sm:$0xf]  ;;  %v1193_v32 = vshrl.u32 %v1078_v26, 16  ;;  %v1196_v33 = vshll.u32 %v1078_v26, 16  ;;  %v1156_v34 = vrot.slane %v1154_v24, 5  ;;  %v1160_v35 = vrot.slane %v1158_v25, 4 }
  0x2d   : > { %v424_v27 = vpack.c.bf16 %v392_v13, %v392_v13  ;;  %v1202_v36 = vshll.u32 %v1079_v31, 16  ;;  %v1206_v37 = vshrl.u32 %v1079_v31, 16  ;;  %v1074_v38 = vld [vmem:[#allocation2 + $0x14] sm:$0x1]  ;;  %v1151_v39 = vor.u32 %v1150_v30, %v1147_v29  ;;  %920 = vst [vmem:[#allocation2 + $0x38] sm:$0x1] %v919_v22 }
  0x2e   : > { %v1195_v40 = vrot.slane %v1193_v32, 4  ;;  %v1198_v41 = vrot.slane %v1196_v33, 5  ;;  %v1164_v43 = vshll.u32 %v1074_v38, 16  ;;  %v1161_v45 = vor.u32 %v1160_v35, %v1156_v34  ;;  %v1080_v46 = vld [vmem:[#allocation2 + $0x2c] sm:$0x1] }
  0x2f   : > { %v1204_v44 = vrot.slane %v1202_v36, 5  ;;  %v1208_v47 = vrot.slane %v1206_v37, 4  ;;  %v393_v48 = vmax.f32 %v361_v12, 0.0  ;;  %v1152_v49 = vrot.slane %v1151_v39, 4  ;;  %v928_v20 = vld [vmem:[#allocation2 + $0x48] sm:$0xf] }
  0x30   : > { %v1199_v50 = vor.u32 %v1198_v41, %v1195_v40  ;;  %v1166_v51 = vrot.slane %v1164_v43, 5  ;;  %v1212_v52 = vshll.u32 %v1080_v46, 16  ;;  %v1162_v55 = vrot.slane %v1161_v45, 4  ;;  %v473_v33 = vld [vmem:[#allocation2 + $0x3c] sm:$0x1] }
  0x31   : > { %v1209_v56 = vor.u32 %v1208_v47, %v1204_v44  ;;  %v425_v23 = vpack.c.bf16 %v393_v48, %v393_v48  ;;  %v656_v57 = vshrl.u32 %v424_v27, 16  ;;  %v1157_v58 = vsel %vm5119_vm9, %v1152_v49, %v1156_v34  ;;  %v4923_v34 = vld [vmem:[%s5069_s23 + $0x30] sm:$0xff]   ;;  %v535_v45 = vld [vmem:[#allocation2 + $0x5c] sm:$0x1]  ;;  %v520_v46 = vld [vmem:[#allocation2 + $0x20] sm:$0x1] }
  0x32   : > { %v1200_v59 = vrot.slane %v1199_v50, 4  ;;  %v1082_v60 = vld [vmem:[#allocation2 + $0x34] sm:$0xf]  ;;  %v5191_v62 = vrot.slane %v1212_v52, 5  ;;  %v659_v63 = vshll.u32 %v424_v27, 16  ;;  %1508 = vrot.lane.b32.xlu1 %v1157_v58, %s4995_s28  ;;  %v1167_v3 = vsel %vm5119_vm9, %v1162_v55, %v1166_v51 }
  0x33   : > { %v1226_v6 = vshll.u32 %v1082_v60, 16  ;;  %v1230_v42 = vshrl.u32 %v1082_v60, 16  ;;  %v5196_v54 = vrot.slane %v1209_v56, 4  ;;  %v658_v8 = vrot.slane %v656_v57, 7  ;;  %v900_v58 = vld [vmem:[#allocation2 + $0x18] sm:$0xf] }
  0x34   : > { %v1205_v7 = vsel %vm5119_vm9, %v1200_v59, %v1204_v44  ;;  %v664_v11 = vshrl.u32 %v425_v23, 16  ;;  %v667_v12 = vshll.u32 %v425_v23, 16  ;;  %v1083_v13 = vld [vmem:[#allocation2 + $0x38] sm:$0x1]  ;;  %v353_v22 = vadd.f32 %v5080_v9, %v5176_v10 }
  0x35   : > { %1516 = vrot.lane.b32.xlu0 %v1205_v7, %s4995_s28  ;;  %v5201_v17 = vrot.slane %v1226_v6, 5  ;;  %v1232_v18 = vrot.slane %v1230_v42, 4  ;;  %v1215_v19 = vsel %vm5119_vm9, %v5196_v54, %v5191_v62  ;;  %v1236_v24 = vshll.u32 %v1083_v13, 16  ;;  %v3266_v1 = vld [vmem:[#allocation2 + $0x38] sm:$0x1] }
  0x36   : > { %v661_v25 = vor.u32 %v659_v63, %v658_v8  ;;  %v662_v26 = vrot.slane %v658_v8, 4  ;;  %v5209_v27 = vrot.slane %v664_v11, 7  ;;  %v384_v30 = vmax.f32 %v5187_v28, 0.0  ;;  %v5242_v11 = vld [vmem:[%s5069_s23 + $0x40] sm:$0xff]  }
  0x37   : > { %v1233_v29 = vor.u32 %v1232_v18, %v5201_v17  ;;  %v385_v31 = vmax.f32 %v353_v22, 0.0  ;;  %v322_v32 = vmul.f32 %v5074_v5, %v4808_v15  ;;  %v1238_v35 = vrot.slane %v1236_v24, 5 }
  0x38   : > { %v669_v36 = vor.u32 %v667_v12, %v5209_v27  ;;  %v929_v10 = vsel %vm5125_vm10, %v661_v25, %v928_v20  ;;  %v323_v37 = vmul.f32 %v5074_v5, %v4809_v16  ;;  %v416_v28 = vpack.c.bf16 %v384_v30, %v384_v30  ;;  %v532_v30 = vld [vmem:[#allocation2 + $0x50] sm:$0x1] }
  0x39   : > { %v1234_v38 = vrot.slane %v1233_v29, 4  ;;  %930 = vst [vmem:[#allocation2 + $0x48] sm:$0xf] %v929_v10  ;;  %v417_v39 = vpack.c.bf16 %v385_v31, %v385_v31  ;;  %v358_v40 = vadd.f32 %v5080_v9, %v322_v32  ;;  %v474_v43 = vsel %vm5045_vm3, 0, %v473_v33 }
  0x3a   : > { %v670_v15 = vsel %vm5133_vm11, %v662_v26, %v669_v36  ;;  %v359_v41 = vadd.f32 %v5080_v9, %v323_v37  ;;  %v4816_v44 = vunpack.c.l.bf16 %v4923_v34  ;;  %1510 = vrot.lane.b32.xlu1 %v1167_v3, %s4995_s28  ;;  %v588_v16 = vshrl.u32 %v416_v28, 16  ;;  %475 = vst [vmem:[#allocation2 + $0x3c] sm:$0x1] %v474_v43 }
  0x3b   : > { %v1239_v61 = vsel %vm5119_vm9, %v1234_v38, %v1238_v35  ;;  %931 = vst.msk [vmem:[#allocation2 + $0x4c] sm:$0xf] %vm446_vm0, %v670_v15  ;;  %v591_v47 = vshll.u32 %v416_v28, 16  ;;  %v596_v48 = vshrl.u32 %v417_v39, 16  ;;  %v599_v49 = vshll.u32 %v417_v39, 16 }
  0x3c   : > { %v390_v50 = vmax.f32 %v358_v40, 0.0  ;;  %v391_v51 = vmax.f32 %v359_v41, 0.0  ;;  %v4817_v52 = vunpack.c.h.bf16 %v4923_v34  ;;  %v590_v55 = vrot.slane %v588_v16, 7 }
  0x3d   : > { %1522 = vrot.lane.b32.xlu0 %v1239_v61, %s4995_s28  ;;  %v598_v56 = vrot.slane %v596_v48, 7  ;;  %v326_v23 = vmul.f32 %v5074_v5, %v4816_v44  ;;  %v536_v57 = vsel %vm5060_vm5, 0, %v535_v45  ;;  %v521_v3 = vsel %vm5060_vm5, 0, %v520_v46 }
  0x3e   : > { %v422_v59 = vpack.c.bf16 %v390_v50, %v390_v50  ;;  %v423_v60 = vpack.c.bf16 %v391_v51, %v391_v51  ;;  %v327_v63 = vmul.f32 %v5074_v5, %v4817_v52  ;;  %537 = vst [vmem:[#allocation2 + $0x5c] sm:$0x1] %v536_v57  ;;  %v593_v6 = vor.u32 %v591_v47, %v590_v55  ;;  %v5269_v47 = vld [vmem:[%s5069_s23 + $0x38] sm:$0xff]  }
  0x3f   : > { %v594_v42 = vrot.slane %v590_v55, 4  ;;  %v601_v7 = vor.u32 %v599_v49, %v598_v56  ;;  %v362_v8 = vadd.f32 %v5080_v9, %v326_v23  ;;  %522 = vst [vmem:[#allocation2 + $0x20] sm:$0x1] %v521_v3  ;;  %v4824_v35 = vunpack.c.l.bf16 %v5242_v11 }
  0x40   : > { %v1087_v12 = vld [vmem:[#allocation2 + $0x48] sm:$0xf]  ;;  %v639_v13 = vshrl.u32 %v422_v59, 16  ;;  %v642_v18 = vshll.u32 %v422_v59, 16  ;;  %v647_v20 = vshrl.u32 %v423_v60, 16  ;;  %v650_v22 = vshll.u32 %v423_v60, 16 }
  0x41   : > { %v1265_v24 = vshrl.u32 %v1087_v12, 16  ;;  %v1268_v25 = vshll.u32 %v1087_v12, 16  ;;  %v602_v26 = vsel %vm5133_vm11, %v594_v42, %v601_v7  ;;  %v901_v29 = vsel %vm5125_vm10, %v593_v6, %v900_v58  ;;  %v921_v15 = vld [vmem:[#allocation2 + $0x3c] sm:$0xf] }
  0x42   : > { %v1088_v31 = vld [vmem:[#allocation2 + $0x4c] sm:$0xf]  ;;  %902 = vst [vmem:[#allocation2 + $0x18] sm:$0xf] %v901_v29  ;;  %v641_v32 = vrot.slane %v639_v13, 7  ;;  %v5248_v33 = vrot.slane %v647_v20, 7  ;;  %v363_v34 = vadd.f32 %v5080_v9, %v327_v63  ;;  %1518 = vrot.lane.b32.xlu1 %v1215_v19, %s4995_s28  ;;  %v330_v23 = vmul.f32 %v5074_v5, %v4824_v35 }
  0x43   : > { %v1267_v36 = vrot.slane %v1265_v24, 4  ;;  %v1270_v10 = vrot.slane %v1268_v25, 5  ;;  %v1274_v37 = vshll.u32 %v1088_v31, 16  ;;  %v1278_v38 = vshrl.u32 %v1088_v31, 16  ;;  %903 = vst.msk [vmem:[#allocation2 + $0x1c] sm:$0xf] %vm446_vm0, %v602_v26 }
  0x44   : > { %v644_v28 = vor.u32 %v642_v18, %v641_v32  ;;  %v645_v39 = vrot.slane %v641_v32, 4  ;;  %v652_v40 = vor.u32 %v650_v22, %v5248_v33  ;;  %v394_v41 = vmax.f32 %v362_v8, 0.0  ;;  %v485_v63 = vld [vmem:[#allocation2 + $0x6c] sm:$0x1] }
  0x45   : > { %v1271_v43 = vor.u32 %v1270_v10, %v1267_v36  ;;  %v1276_v44 = vrot.slane %v1274_v37, 5  ;;  %v395_v45 = vmax.f32 %v363_v34, 0.0  ;;  %v603_v46 = vrot.slane %v598_v56, 4  ;;  %v939_v26 = vld [vmem:[#allocation2 + $0x5c] sm:$0x1] }
  0x46   : > { %v653_v62 = vsel %vm5133_vm11, %v645_v39, %v652_v40  ;;  %v922_v54 = vsel %vm5125_vm10, %v644_v28, %v921_v15  ;;  %v5264_v19 = vpack.c.bf16 %v394_v41, %v394_v41  ;;  %v904_v61 = vld [vmem:[#allocation2 + $0x20] sm:$0x1]  ;;  %v533_v16 = vsel %vm5060_vm5, 0, %v532_v30 }
  0x47   : > { %v1272_v48 = vrot.slane %v1271_v43, 4  ;;  %923 = vst [vmem:[#allocation2 + $0x3c] sm:$0xf] %v922_v54  ;;  %v427_v49 = vpack.c.bf16 %v395_v45, %v395_v45  ;;  %v905_v50 = vsel %vm5045_vm3, %v603_v46, %v904_v61  ;;  %v671_v51 = vrot.slane %v5209_v27, 4  ;;  %v470_v43 = vld [vmem:[#allocation2 + $0x30] sm:$0x1] }
  0x48   : > { %924 = vst.msk [vmem:[#allocation2 + $0x40] sm:$0xf] %vm446_vm0, %v653_v62  ;;  %v673_v52 = vshrl.u32 %v5264_v19, 16  ;;  %v1280_v55 = vrot.slane %v1278_v38, 4  ;;  %v4825_v56 = vunpack.c.h.bf16 %v5242_v11  ;;  %v4820_v3 = vunpack.c.l.bf16 %v5269_v47 }
  0x49   : > { %v1277_v57 = vsel %vm5119_vm9, %v1272_v48, %v1276_v44  ;;  %v1075_v58 = vld [vmem:[#allocation2 + $0x18] sm:$0xf]  ;;  %v681_v59 = vshrl.u32 %v427_v49, 16  ;;  %v684_v60 = vshll.u32 %v427_v49, 16  ;;  %906 = vst [vmem:[#allocation2 + $0x20] sm:$0x1] %v905_v50  ;;  %v366_v10 = vadd.f32 %v5080_v9, %v330_v23 }
  0x4a   : > { %1528 = vrot.lane.b32.xlu0 %v1277_v57, %s4995_s28  ;;  %v1076_v6 = vld [vmem:[#allocation2 + $0x1c] sm:$0xf]  ;;  %v1169_v42 = vshrl.u32 %v1075_v58, 16  ;;  %v1172_v7 = vshll.u32 %v1075_v58, 16  ;;  %v5282_v8 = vrot.slane %v673_v52, 7  ;;  %v1281_v11 = vor.u32 %v1280_v55, %v1276_v44 }
  0x4b   : > { %v1178_v12 = vshll.u32 %v1076_v6, 16  ;;  %v1182_v13 = vshrl.u32 %v1076_v6, 16  ;;  %v683_v18 = vrot.slane %v681_v59, 7  ;;  %534 = vst [vmem:[#allocation2 + $0x50] sm:$0x1] %v533_v16  ;;  %v331_v20 = vmul.f32 %v5074_v5, %v4825_v56 }
  0x4c   : > { %v1171_v22 = vrot.slane %v1169_v42, 4  ;;  %v1174_v24 = vrot.slane %v1172_v7, 5  ;;  %v679_v25 = vrot.slane %v5282_v8, 4  ;;  %v5286_v29 = vrot.slane %v1281_v11, 4 }
  0x4d   : > { %v1180_v30 = vrot.slane %v1178_v12, 5  ;;  %v1184_v31 = vrot.slane %v1182_v13, 4  ;;  %v686_v32 = vor.u32 %v684_v60, %v683_v18  ;;  %v688_v34 = vrot.slane %v683_v18, 4  ;;  %v482_v60 = vld [vmem:[#allocation2 + $0x60] sm:$0x1] }
  0x4e   : > { %v1175_v35 = vor.u32 %v1174_v24, %v1171_v22  ;;  %v1084_v36 = vld [vmem:[#allocation2 + $0x3c] sm:$0xf]  ;;  %v367_v37 = vadd.f32 %v5080_v9, %v331_v20  ;;  %v486_v38 = vsel %vm5045_vm3, 0, %v485_v63  ;;  %v4821_v48 = vunpack.c.h.bf16 %v5269_v47 }
  0x4f   : > { %v5292_v28 = vld [vmem:[#allocation2 + $0x40] sm:$0xf]  ;;  %v1241_v39 = vshrl.u32 %v1084_v36, 16  ;;  %v1244_v40 = vshll.u32 %v1084_v36, 16  ;;  %v687_v15 = vsel %vm5133_vm11, %v679_v25, %v686_v32  ;;  %v940_v41 = vsel %vm5045_vm3, %v688_v34, %v939_v26  ;;  %487 = vst [vmem:[#allocation2 + $0x6c] sm:$0x1] %v486_v38 }
  0x50   : > { %v1176_v44 = vrot.slane %v1175_v35, 4  ;;  %v1250_v45 = vshll.u32 %v5292_v28, 16  ;;  %v1254_v46 = vshrl.u32 %v5292_v28, 16  ;;  %938 = vst.msk [vmem:[#allocation2 + $0x58] sm:$0xf] %vm446_vm0, %v687_v15  ;;  %v1185_v62 = vor.u32 %v1184_v31, %v1180_v30 }
  0x51   : > { %v1243_v54 = vrot.slane %v1241_v39, 4  ;;  %v1246_v61 = vrot.slane %v1244_v40, 5  ;;  %941 = vst [vmem:[#allocation2 + $0x5c] sm:$0x1] %v940_v41  ;;  %v1077_v16 = vld [vmem:[#allocation2 + $0x20] sm:$0x1]  ;;  %v328_v49 = vmul.f32 %v5074_v5, %v4820_v3  ;;  %v329_v42 = vmul.f32 %v5074_v5, %v4821_v48 }
  0x52   : > { %v1181_v50 = vsel %vm5119_vm9, %v1176_v44, %v1180_v30  ;;  %v5305_v52 = vrot.slane %v1250_v45, 5  ;;  %v1186_v55 = vrot.slane %v1185_v62, 4  ;;  %v1188_v56 = vshll.u32 %v1077_v16, 16  ;;  %v932_v23 = vld [vmem:[#allocation2 + $0x50] sm:$0x1]  ;;  %v4926_v30 = vld [vmem:[%s5069_s23 + $0x48] sm:$0xff]  }
  0x53   : > { %1512 = vrot.lane.b32.xlu2 %v1181_v50, %s4995_s28  ;;  %v1247_v57 = vor.u32 %v1246_v61, %v1243_v54  ;;  %v933_v58 = vsel %vm5045_vm3, %v671_v51, %v932_v23  ;;  %v398_v59 = vmax.f32 %v366_v10, 0.0  ;;  %v399_v47 = vmax.f32 %v367_v37, 0.0 }
  0x54   : > { %v1190_v63 = vrot.slane %v1188_v56, 5  ;;  %934 = vst [vmem:[#allocation2 + $0x50] sm:$0x1] %v933_v58  ;;  %v471_v3 = vsel %vm5045_vm3, 0, %v470_v43  ;;  %v625_v6 = vshll.u32 %v5115_v0, 16  ;;  %v364_v27 = vadd.f32 %v5080_v9, %v328_v49 }
  0x55   : > { %v1248_v7 = vrot.slane %v1247_v57, 4  ;;  %v430_v11 = vpack.c.bf16 %v398_v59, %v398_v59  ;;  %v431_v12 = vpack.c.bf16 %v399_v47, %v399_v47  ;;  %472 = vst [vmem:[#allocation2 + $0x30] sm:$0x1] %v471_v3  ;;  %v365_v18 = vadd.f32 %v5080_v9, %v329_v42  ;;  %v544_v56 = vld [vmem:[#allocation2 + $0x80] sm:$0x1] }
  0x56   : > { %v1191_v51 = vsel %vm5119_vm9, %v1186_v55, %v1190_v63  ;;  %v627_v13 = vor.u32 %v625_v6, %v5155_v53  ;;  %v483_v20 = vsel %vm5045_vm3, 0, %v482_v60  ;;  %v396_v35 = vmax.f32 %v364_v27, 0.0  ;;  %v949_v15 = vld [vmem:[#allocation2 + $0x6c] sm:$0xf]  ;;  %v529_v47 = vld [vmem:[#allocation2 + $0x44] sm:$0x1] }
  0x57   : > { %v1253_v0 = vsel %vm5119_vm9, %v1248_v7, %v5305_v52  ;;  %v1091_v22 = vld [vmem:[#allocation2 + $0x58] sm:$0xf]  ;;  %v707_v24 = vshrl.u32 %v430_v11, 16  ;;  %v710_v25 = vshll.u32 %v430_v11, 16  ;;  %v715_v26 = vshrl.u32 %v431_v12, 16 }
  0x58   : > { %1524 = vrot.lane.b32.xlu1 %v1253_v0, %s4995_s28  ;;  %v1092_v31 = vld [vmem:[#allocation2 + $0x5c] sm:$0x1]  ;;  %v1298_v32 = vshll.u32 %v1091_v22, 16  ;;  %v1302_v34 = vshrl.u32 %v1091_v22, 16  ;;  %v718_v53 = vshll.u32 %v431_v12, 16  ;;  %v397_v38 = vmax.f32 %v365_v18, 0.0 }
  0x59   : > { %v1308_v36 = vshll.u32 %v1092_v31, 16  ;;  %v709_v10 = vrot.slane %v707_v24, 7  ;;  %v5328_v37 = vrot.slane %v715_v26, 7  ;;  %484 = vst [vmem:[#allocation2 + $0x60] sm:$0x1] %v483_v20  ;;  %v428_v41 = vpack.c.bf16 %v396_v35, %v396_v35  ;;  %v5351_v22 = vld [vmem:[%s5069_s23 + $0x58] sm:$0xff]  }
  0x5a   : > { %v5330_v39 = vrot.slane %v1298_v32, 5  ;;  %v1304_v40 = vrot.slane %v1302_v34, 4  ;;  %v4828_v43 = vunpack.c.l.bf16 %v4926_v30  ;;  %v429_v50 = vpack.c.bf16 %v397_v38, %v397_v38  ;;  %v541_v27 = vld [vmem:[#allocation2 + $0x74] sm:$0x1] }
  0x5b   : > { %v1310_v44 = vrot.slane %v1308_v36, 5  ;;  %1514 = vrot.lane.b32.xlu2 %v1191_v51, %s4995_s28  ;;  %v1089_v45 = vld [vmem:[#allocation2 + $0x50] sm:$0x1]  ;;  %v712_v62 = vor.u32 %v710_v25, %v709_v10  ;;  %v713_v54 = vrot.slane %v709_v10, 4  ;;  %v720_v61 = vor.u32 %v718_v53, %v5328_v37  ;;  %v479_v53 = vld [vmem:[#allocation2 + $0x54] sm:$0x1] }
  0x5c   : > { %v1305_v16 = vor.u32 %v1304_v40, %v5330_v39  ;;  %v1284_v48 = vshll.u32 %v1089_v45, 16  ;;  %v914_v49 = vld [vmem:[#allocation2 + $0x30] sm:$0xf]  ;;  %v690_v55 = vshrl.u32 %v428_v41, 16  ;;  %v693_v59 = vshll.u32 %v428_v41, 16 }
  0x5d   : > { %v721_v23 = vsel %vm5133_vm11, %v713_v54, %v720_v61  ;;  %v950_v57 = vsel %vm5125_vm10, %v712_v62, %v949_v15  ;;  %v915_v58 = vsel %vm5125_vm10, %v627_v13, %v914_v49  ;;  %v698_v6 = vshrl.u32 %v429_v50, 16 }
  0x5e   : > { %v1306_v60 = vrot.slane %v1305_v16, 4  ;;  %v1286_v63 = vrot.slane %v1284_v48, 5  ;;  %951 = vst [vmem:[#allocation2 + $0x6c] sm:$0xf] %v950_v57  ;;  %v692_v3 = vrot.slane %v690_v55, 7  ;;  %v701_v42 = vshll.u32 %v429_v50, 16 }
  0x5f   : > { %952 = vst.msk [vmem:[#allocation2 + $0x70] sm:$0xf] %vm446_vm0, %v721_v23  ;;  %v4829_v7 = vunpack.c.h.bf16 %v4926_v30  ;;  %v332_v11 = vmul.f32 %v5074_v5, %v4828_v43  ;;  %v545_v12 = vsel %vm5060_vm5, 0, %v544_v56  ;;  %v5355_v24 = vrot.slane %v698_v6, 7  ;;  %v494_v30 = vld [vmem:[#allocation2 + $0x90] sm:$0x1] }
  0x60   : > { %v1311_v51 = vsel %vm5119_vm9, %v1306_v60, %v1310_v44  ;;  %v1287_v13 = vsel %vm5119_vm9, %v5286_v29, %v1286_v63  ;;  %916 = vst [vmem:[#allocation2 + $0x30] sm:$0xf] %v915_v58  ;;  %v695_v18 = vor.u32 %v693_v59, %v692_v3  ;;  %v696_v20 = vrot.slane %v692_v3, 4  ;;  %v942_v0 = vld [vmem:[#allocation2 + $0x60] sm:$0xf] }
  0x61   : > { %1534 = vrot.lane.b32.xlu0 %v1311_v51, %s4995_s28  ;;  %1530 = vrot.lane.b32.xlu1 %v1287_v13, %s4995_s28  ;;  %v333_v25 = vmul.f32 %v5074_v5, %v4829_v7  ;;  %v368_v26 = vadd.f32 %v5080_v9, %v332_v11  ;;  %546 = vst [vmem:[#allocation2 + $0x80] sm:$0x1] %v545_v12  ;;  %v530_v29 = vsel %vm5060_vm5, 0, %v529_v47  ;;  %v5365_v32 = vrot.slane %v1254_v46, 4 }
  0x62   : > { %v943_v31 = vsel %vm5125_vm10, %v695_v18, %v942_v0  ;;  %531 = vst [vmem:[#allocation2 + $0x44] sm:$0x1] %v530_v29  ;;  %v542_v34 = vsel %vm5060_vm5, 0, %v541_v27  ;;  %v703_v35 = vor.u32 %v701_v42, %v5355_v24  ;;  %v654_v38 = vrot.slane %v5248_v33, 4 }
  0x63   : > { %944 = vst [vmem:[#allocation2 + $0x60] sm:$0xf] %v943_v31  ;;  %v369_v36 = vadd.f32 %v5080_v9, %v333_v25  ;;  %v400_v10 = vmax.f32 %v368_v26, 0.0  ;;  %v1257_v40 = vor.u32 %v5365_v32, %v5305_v52  ;;  %v722_v28 = vrot.slane %v5328_v37, 4 }
  0x64   : > { %543 = vst [vmem:[#allocation2 + $0x74] sm:$0x1] %v542_v34  ;;  %v4836_v46 = vunpack.c.l.bf16 %v5351_v22  ;;  %v495_v15 = vsel %vm5045_vm3, 0, %v494_v30  ;;  %v704_v43 = vsel %vm5133_vm11, %v696_v20, %v703_v35  ;;  %v480_v33 = vsel %vm5045_vm3, 0, %v479_v53 }
  0x65   : > { %v1096_v41 = vld [vmem:[#allocation2 + $0x6c] sm:$0xf]  ;;  %v401_v44 = vmax.f32 %v369_v36, 0.0  ;;  %v5380_v9 = vpack.c.bf16 %v400_v10, %v400_v10  ;;  %496 = vst [vmem:[#allocation2 + $0x90] sm:$0x1] %v495_v15  ;;  %v4837_v37 = vunpack.c.h.bf16 %v5351_v22  ;;  %v1258_v10 = vrot.slane %v1257_v40, 4 }
  0x66   : > { %v1097_v52 = vld [vmem:[#allocation2 + $0x70] sm:$0xf]  ;;  %v1337_v45 = vshrl.u32 %v1096_v41, 16  ;;  %v1340_v62 = vshll.u32 %v1096_v41, 16  ;;  %945 = vst.msk [vmem:[#allocation2 + $0x64] sm:$0xf] %vm446_vm0, %v704_v43  ;;  %v336_v54 = vmul.f32 %v5074_v5, %v4836_v46 }
  0x67   : > { %v1346_v61 = vshll.u32 %v1097_v52, 16  ;;  %v1350_v16 = vshrl.u32 %v1097_v52, 16  ;;  %v1081_v48 = vld [vmem:[#allocation2 + $0x30] sm:$0xf]  ;;  %v433_v49 = vpack.c.bf16 %v401_v44, %v401_v44  ;;  %v724_v50 = vshrl.u32 %v5380_v9, 16  ;;  %v4929_v43 = vld [vmem:[%s5069_s23 + $0x60] sm:$0xff]  }
  0x68   : > { %v1339_v55 = vrot.slane %v1337_v45, 4  ;;  %v1342_v56 = vrot.slane %v1340_v62, 5  ;;  %v1217_v23 = vshrl.u32 %v1081_v48, 16  ;;  %v1220_v57 = vshll.u32 %v1081_v48, 16  ;;  %481 = vst [vmem:[#allocation2 + $0x54] sm:$0x1] %v480_v33 }
  0x69   : > { %v1348_v58 = vrot.slane %v1346_v61, 5  ;;  %v5388_v59 = vrot.slane %v724_v50, 7  ;;  %v732_v47 = vshrl.u32 %v433_v49, 16  ;;  %v735_v60 = vshll.u32 %v433_v49, 16  ;;  %v925_v63 = vld [vmem:[#allocation2 + $0x44] sm:$0x1] }
  0x6a   : > { %v1343_v3 = vor.u32 %v1342_v56, %v1339_v55  ;;  %v1219_v6 = vrot.slane %v1217_v23, 4  ;;  %v1222_v42 = vrot.slane %v1220_v57, 5  ;;  %v1093_v7 = vld [vmem:[#allocation2 + $0x60] sm:$0xf]  ;;  %v926_v11 = vsel %vm5045_vm3, %v654_v38, %v925_v63  ;;  %v4927_v38 = vld [vmem:[%s5069_s23 + $0x50] sm:$0xff]  }
  0x6b   : > { %v1313_v12 = vshrl.u32 %v1093_v7, 16  ;;  %v1316_v27 = vshll.u32 %v1093_v7, 16  ;;  %v730_v51 = vrot.slane %v5388_v59, 4  ;;  %v734_v13 = vrot.slane %v732_v47, 7  ;;  %927 = vst [vmem:[#allocation2 + $0x44] sm:$0x1] %v926_v11 }
  0x6c   : > { %v1344_v18 = vrot.slane %v1343_v3, 4  ;;  %v1223_v20 = vor.u32 %v1222_v42, %v1219_v6  ;;  %v960_v0 = vld [vmem:[#allocation2 + $0x80] sm:$0x1]  ;;  %v953_v22 = vld [vmem:[#allocation2 + $0x74] sm:$0x1]  ;;  %v1352_v25 = vrot.slane %v1350_v16, 4  ;;  %v337_v26 = vmul.f32 %v5074_v5, %v4837_v37 }
  0x6d   : > { %v5394_v29 = vld [vmem:[#allocation2 + $0x64] sm:$0xf]  ;;  %v1315_v30 = vrot.slane %v1313_v12, 4  ;;  %v1318_v31 = vrot.slane %v1316_v27, 5  ;;  %v737_v32 = vor.u32 %v735_v60, %v734_v13  ;;  %v739_v34 = vrot.slane %v734_v13, 4 }
  0x6e   : > { %v1349_v53 = vsel %vm5119_vm9, %v1344_v18, %v1348_v58  ;;  %v1224_v35 = vrot.slane %v1223_v20, 4  ;;  %v1322_v36 = vshll.u32 %v5394_v29, 16  ;;  %v954_v41 = vsel %vm5045_vm3, %v722_v28, %v953_v22  ;;  %v5417_v52 = vld [vmem:[%s6926_s3] ss:$0 sm:$0xff]  ;;  %v491_v62 = vld [vmem:[#allocation2 + $0x84] sm:$0x1] }
  0x6f   : > { %1540 = vrot.lane.b32.xlu0 %v1349_v53, %s4995_s28  ;;  %v1319_v46 = vor.u32 %v1318_v31, %v1315_v30  ;;  %v738_v5 = vsel %vm5133_vm11, %v730_v51, %v737_v32  ;;  %v961_v15 = vsel %vm5045_vm3, %v739_v34, %v960_v0  ;;  %v1353_v40 = vor.u32 %v1352_v25, %v1348_v58  ;;  %v935_v61 = vld [vmem:[#allocation2 + $0x54] sm:$0xf]  ;;  %v5433_v47 = vld [vmem:[%s6925_s2] ss:$0 sm:$0xff]  ;;  %v970_v22 = vld [vmem:[#allocation2 + $0x90] sm:$0xf] }
  0x70   : > { %v1229_v44 = vsel %vm5119_vm9, %v1224_v35, %v5201_v17  ;;  %v5411_v33 = vrot.slane %v1322_v36, 5  ;;  %959 = vst.msk [vmem:[#allocation2 + $0x7c] sm:$0xf] %vm446_vm0, %v738_v5  ;;  %v372_v45 = vadd.f32 %v5417_v52, %v336_v54  ;;  %v373_v37 = vadd.f32 %v5417_v52, %v337_v26 }
  0x71   : > { %1520 = vrot.lane.b32.xlu2 %v1229_v44, %s4995_s28  ;;  %v1320_v28 = vrot.slane %v1319_v46, 4  ;;  %962 = vst [vmem:[#allocation2 + $0x80] sm:$0x1] %v961_v15  ;;  %v676_v17 = vshll.u32 %v5264_v19, 16  ;;  %v4832_v16 = vunpack.c.l.bf16 %v4927_v38  ;;  %v5423_v49 = vrot.slane %v1353_v40, 4 }
  0x72   : > { %v1086_v48 = vld [vmem:[#allocation2 + $0x44] sm:$0x1]  ;;  %955 = vst [vmem:[#allocation2 + $0x74] sm:$0x1] %v954_v41  ;;  %v404_v50 = vmax.f32 %v372_v45, 0.0  ;;  %v4833_v55 = vunpack.c.h.bf16 %v4927_v38  ;;  %v4840_v56 = vunpack.c.l.bf16 %v4929_v43  ;;  %v405_v57 = vmax.f32 %v373_v37, 0.0 }
  0x73   : > { %v1325_v54 = vsel %vm5119_vm9, %v1320_v28, %v5411_v33  ;;  %v1260_v23 = vshll.u32 %v1086_v48, 16  ;;  %v678_v58 = vor.u32 %v676_v17, %v5282_v8  ;;  %v334_v60 = vmul.f32 %v5433_v47, %v4832_v16 }
  0x74   : > { %1536 = vrot.lane.b32.xlu1 %v1325_v54, %s4995_s28  ;;  %v436_v19 = vpack.c.bf16 %v404_v50, %v404_v50  ;;  %v335_v63 = vmul.f32 %v5433_v47, %v4833_v55  ;;  %v492_v3 = vsel %vm5045_vm3, 0, %v491_v62  ;;  %v437_v42 = vpack.c.bf16 %v405_v57, %v405_v57 }
  0x75   : > { %v1262_v6 = vrot.slane %v1260_v23, 5  ;;  %v936_v8 = vsel %vm5125_vm10, %v678_v58, %v935_v61  ;;  %493 = vst [vmem:[#allocation2 + $0x84] sm:$0x1] %v492_v3  ;;  %v4841_v7 = vunpack.c.h.bf16 %v4929_v43  ;;  %v370_v27 = vadd.f32 %v5417_v52, %v334_v60 }
  0x76   : > { %v758_v11 = vshrl.u32 %v436_v19, 16  ;;  %v761_v12 = vshll.u32 %v436_v19, 16  ;;  %937 = vst [vmem:[#allocation2 + $0x54] sm:$0xf] %v936_v8  ;;  %v371_v51 = vadd.f32 %v5417_v52, %v335_v63  ;;  %v766_v20 = vshrl.u32 %v437_v42, 16 }
  0x77   : > { %v1100_v13 = vld [vmem:[#allocation2 + $0x7c] sm:$0xf]  ;;  %v1263_v18 = vsel %vm5119_vm9, %v1258_v10, %v1262_v6  ;;  %v769_v0 = vshll.u32 %v437_v42, 16  ;;  %v338_v25 = vmul.f32 %v5433_v47, %v4840_v56  ;;  %v402_v34 = vmax.f32 %v370_v27, 0.0  ;;  %v553_v56 = vld [vmem:[#allocation2 + $0xa4] sm:$0x1] }
  0x78   : > { %v1101_v26 = vld [vmem:[#allocation2 + $0x80] sm:$0x1]  ;;  %v1370_v30 = vshll.u32 %v1100_v13, 16  ;;  %v1374_v31 = vshrl.u32 %v1100_v13, 16  ;;  %v760_v32 = vrot.slane %v758_v11, 7  ;;  %v5447_v36 = vrot.slane %v766_v20, 7 }
  0x79   : > { %v1380_v53 = vshll.u32 %v1101_v26, 16  ;;  %1526 = vrot.lane.b32.xlu2 %v1263_v18, %s4995_s28  ;;  %v1098_v35 = vld [vmem:[#allocation2 + $0x74] sm:$0x1]  ;;  %v403_v38 = vmax.f32 %v371_v51, 0.0  ;;  %v339_v46 = vmul.f32 %v5433_v47, %v4841_v7  ;;  %v434_v45 = vpack.c.bf16 %v402_v34, %v402_v34  ;;  %v538_v6 = vld [vmem:[#allocation2 + $0x68] sm:$0x1] }
  0x7a   : > { %v5450_v10 = vrot.slane %v1370_v30, 5  ;;  %v1376_v5 = vrot.slane %v1374_v31, 4  ;;  %v1356_v15 = vshll.u32 %v1098_v35, 16  ;;  %v763_v41 = vor.u32 %v761_v12, %v760_v32  ;;  %v4931_v18 = vld [vmem:[%s5069_s23 + $0x70] sm:$0xff]   ;;  %v550_v34 = vld [vmem:[#allocation2 + $0x98] sm:$0x1] }
  0x7b   : > { %v1382_v43 = vrot.slane %v1380_v53, 5  ;;  %v764_v44 = vrot.slane %v760_v32, 4  ;;  %v771_v40 = vor.u32 %v769_v0, %v5447_v36  ;;  %v435_v17 = vpack.c.bf16 %v403_v38, %v403_v38 }
  0x7c   : > { %v1377_v62 = vor.u32 %v1376_v5, %v5450_v10  ;;  %v1358_v28 = vrot.slane %v1356_v15, 5  ;;  %v971_v37 = vsel %vm5125_vm10, %v763_v41, %v970_v22  ;;  %v741_v48 = vshrl.u32 %v434_v45, 16  ;;  %v963_v11 = vld [vmem:[#allocation2 + $0x84] sm:$0xf] }
  0x7d   : > { %v772_v61 = vsel %vm5133_vm11, %v764_v44, %v771_v40  ;;  %972 = vst [vmem:[#allocation2 + $0x90] sm:$0xf] %v971_v37  ;;  %v1090_v16 = vld [vmem:[#allocation2 + $0x54] sm:$0xf]  ;;  %v744_v50 = vshll.u32 %v434_v45, 16  ;;  %v374_v55 = vadd.f32 %v5417_v52, %v338_v25  ;;  %v749_v60 = vshrl.u32 %v435_v17, 16 }
  0x7e   : > { %v1378_v54 = vrot.slane %v1377_v62, 4  ;;  %v1359_v23 = vsel %vm5119_vm9, %v5423_v49, %v1358_v28  ;;  %973 = vst.msk [vmem:[#allocation2 + $0x94] sm:$0xf] %vm446_vm0, %v772_v61  ;;  %v1289_v57 = vshrl.u32 %v1090_v16, 16  ;;  %v1292_v58 = vshll.u32 %v1090_v16, 16 }
  0x7f   : > { %1542 = vrot.lane.b32.xlu1 %v1359_v23, %s4995_s28  ;;  %v743_v19 = vrot.slane %v741_v48, 7  ;;  %v752_v63 = vshll.u32 %v435_v17, 16  ;;  %v375_v3 = vadd.f32 %v5417_v52, %v339_v46  ;;  %v406_v49 = vmax.f32 %v374_v55, 0.0 }
  0x80   : > { %v1383_v42 = vsel %vm5119_vm9, %v1378_v54, %v1382_v43  ;;  %v1291_v8 = vrot.slane %v1289_v57, 4  ;;  %v1294_v7 = vrot.slane %v1292_v58, 5  ;;  %v5468_v51 = vrot.slane %v749_v60, 7  ;;  %v503_v57 = vld [vmem:[#allocation2 + $0xb4] sm:$0x1] }
  0x81   : > { %1546 = vrot.lane.b32.xlu0 %v1383_v42, %s4995_s28  ;;  %v746_v12 = vor.u32 %v744_v50, %v743_v19  ;;  %v747_v27 = vrot.slane %v743_v19, 4  ;;  %v407_v13 = vmax.f32 %v375_v3, 0.0  ;;  %v1326_v20 = vshrl.u32 %v5394_v29, 16 }
  0x82   : > { %v1295_v0 = vor.u32 %v1294_v7, %v1291_v8  ;;  %v5472_v22 = vpack.c.bf16 %v406_v49, %v406_v49  ;;  %v554_v25 = vsel %vm5060_vm5, 0, %v553_v56  ;;  %v754_v26 = vor.u32 %v752_v63, %v5468_v51 }
  0x83   : > { %v964_v30 = vsel %vm5125_vm10, %v746_v12, %v963_v11  ;;  %v439_v31 = vpack.c.bf16 %v407_v13, %v407_v13  ;;  %555 = vst [vmem:[#allocation2 + $0xa4] sm:$0x1] %v554_v25  ;;  %v539_v32 = vsel %vm5060_vm5, 0, %v538_v6  ;;  %v4848_v38 = vunpack.c.l.bf16 %v4931_v18  ;;  %v488_v11 = vld [vmem:[#allocation2 + $0x78] sm:$0x1] }
  0x84   : > { %v1105_v53 = vld [vmem:[#allocation2 + $0x90] sm:$0xf]  ;;  %v1296_v35 = vrot.slane %v1295_v0, 4  ;;  %965 = vst [vmem:[#allocation2 + $0x84] sm:$0xf] %v964_v30  ;;  %v775_v29 = vshrl.u32 %v5472_v22, 16  ;;  %v4849_v46 = vunpack.c.h.bf16 %v4931_v18  ;;  %v755_v43 = vsel %vm5133_vm11, %v747_v27, %v754_v26 }
  0x85   : > { %v1106_v5 = vld [vmem:[#allocation2 + $0x94] sm:$0xf]  ;;  %v1409_v15 = vshrl.u32 %v1105_v53, 16  ;;  %v1412_v41 = vshll.u32 %v1105_v53, 16  ;;  %v783_v44 = vshrl.u32 %v439_v31, 16  ;;  %v786_v16 = vshll.u32 %v439_v31, 16 }
  0x86   : > { %v1418_v40 = vshll.u32 %v1106_v5, 16  ;;  %v1422_v45 = vshrl.u32 %v1106_v5, 16  ;;  %v1301_v62 = vsel %vm5119_vm9, %v1296_v35, %v5330_v39  ;;  %966 = vst.msk [vmem:[#allocation2 + $0x88] sm:$0xf] %vm446_vm0, %v755_v43  ;;  %v5488_v28 = vrot.slane %v775_v29, 7  ;;  %v4930_v26 = vld [vmem:[%s5069_s23 + $0x68] sm:$0xff]  }
  0x87   : > { %v1411_v37 = vrot.slane %v1409_v15, 4  ;;  %v1414_v17 = vrot.slane %v1412_v41, 5  ;;  %1532 = vrot.lane.b32.xlu2 %v1301_v62, %s4995_s28  ;;  %v785_v61 = vrot.slane %v783_v44, 7  ;;  %540 = vst [vmem:[#allocation2 + $0x68] sm:$0x1] %v539_v32  ;;  %v551_v55 = vsel %vm5060_vm5, 0, %v550_v34 }
  0x88   : > { %v5491_v48 = vrot.slane %v1418_v40, 5  ;;  %v781_v50 = vrot.slane %v5488_v28, 4  ;;  %v5496_v23 = vrot.slane %v1326_v20, 4  ;;  %552 = vst [vmem:[#allocation2 + $0x98] sm:$0x1] %v551_v55  ;;  %v705_v19 = vrot.slane %v5355_v24, 4 }
  0x89   : > { %v1415_v56 = vor.u32 %v1414_v17, %v1411_v37  ;;  %v788_v39 = vor.u32 %v786_v16, %v785_v61  ;;  %v790_v54 = vrot.slane %v785_v61, 4  ;;  %v342_v60 = vmul.f32 %v5433_v47, %v4848_v38  ;;  %v500_v38 = vld [vmem:[#allocation2 + $0xa8] sm:$0x1] }
  0x8a   : > { %v981_v58 = vld [vmem:[#allocation2 + $0xa4] sm:$0x1]  ;;  %v343_v63 = vmul.f32 %v5433_v47, %v4849_v46  ;;  %v5505_v7 = vrot.slane %v1422_v45, 4  ;;  %v773_v24 = vrot.slane %v5447_v36, 4  ;;  %v504_v27 = vsel %vm5045_vm3, 0, %v503_v57 }
  0x8b   : > { %v1416_v3 = vrot.slane %v1415_v56, 4  ;;  %v1102_v6 = vld [vmem:[#allocation2 + $0x84] sm:$0xf]  ;;  %v789_v42 = vsel %vm5133_vm11, %v781_v50, %v788_v39  ;;  %v982_v8 = vsel %vm5045_vm3, %v790_v54, %v981_v58  ;;  %v1329_v20 = vor.u32 %v5496_v23, %v5411_v33  ;;  %505 = vst [vmem:[#allocation2 + $0xb4] sm:$0x1] %v504_v27 }
  0x8c   : > { %v1385_v49 = vshrl.u32 %v1102_v6, 16  ;;  %v1388_v12 = vshll.u32 %v1102_v6, 16  ;;  %980 = vst.msk [vmem:[#allocation2 + $0xa0] sm:$0xf] %vm446_vm0, %v789_v42  ;;  %v378_v0 = vadd.f32 %v5417_v52, %v342_v60  ;;  %v379_v25 = vadd.f32 %v5417_v52, %v343_v63 }
  0x8d   : > { %v1421_v13 = vsel %vm5119_vm9, %v1416_v3, %v5491_v48  ;;  %v5514_v18 = vld [vmem:[#allocation2 + $0x88] sm:$0xf]  ;;  %983 = vst [vmem:[#allocation2 + $0xa4] sm:$0x1] %v982_v8  ;;  %v489_v34 = vsel %vm5045_vm3, 0, %v488_v11  ;;  %v1425_v33 = vor.u32 %v5505_v7, %v5491_v48  ;;  %v727_v41 = vshll.u32 %v5380_v9, 16 }
  0x8e   : > { %1552 = vrot.lane.b32.xlu0 %v1421_v13, %s4995_s28  ;;  %v1387_v36 = vrot.slane %v1385_v49, 4  ;;  %v1390_v30 = vrot.slane %v1388_v12, 5  ;;  %v1394_v31 = vshll.u32 %v5514_v18, 16  ;;  %v946_v32 = vld [vmem:[#allocation2 + $0x68] sm:$0x1]  ;;  %v410_v35 = vmax.f32 %v378_v0, 0.0 }
  0x8f   : > { %v947_v53 = vsel %vm5045_vm3, %v705_v19, %v946_v32  ;;  %v411_v29 = vmax.f32 %v379_v25, 0.0  ;;  %v974_v15 = vld [vmem:[#allocation2 + $0x98] sm:$0x1]  ;;  %v4844_v43 = vunpack.c.l.bf16 %v4930_v26  ;;  %490 = vst [vmem:[#allocation2 + $0x78] sm:$0x1] %v489_v34  ;;  %v4845_v62 = vunpack.c.h.bf16 %v4930_v26 }
  0x90   : > { %v1391_v46 = vor.u32 %v1390_v30, %v1387_v36  ;;  %v5529_v5 = vrot.slane %v1394_v31, 5  ;;  %948 = vst [vmem:[#allocation2 + $0x68] sm:$0x1] %v947_v53  ;;  %v975_v44 = vsel %vm5045_vm3, %v773_v24, %v974_v15  ;;  %v442_v40 = vpack.c.bf16 %v410_v35, %v410_v35 }
  0x91   : > { %v443_v45 = vpack.c.bf16 %v411_v29, %v411_v29  ;;  %976 = vst [vmem:[#allocation2 + $0x98] sm:$0x1] %v975_v44  ;;  %v729_v17 = vor.u32 %v727_v41, %v5388_v59  ;;  %v340_v61 = vmul.f32 %v5433_v47, %v4844_v43  ;;  %v501_v16 = vsel %vm5045_vm3, 0, %v500_v38  ;;  %v547_v38 = vld [vmem:[#allocation2 + $0x8c] sm:$0x1] }
  0x92   : > { %v1392_v37 = vrot.slane %v1391_v46, 4  ;;  %v809_v50 = vshrl.u32 %v442_v40, 16  ;;  %v812_v9 = vshll.u32 %v442_v40, 16  ;;  %v341_v58 = vmul.f32 %v5433_v47, %v4845_v62  ;;  %502 = vst [vmem:[#allocation2 + $0xa8] sm:$0x1] %v501_v16 }
  0x93   : > { %v1109_v48 = vld [vmem:[#allocation2 + $0xa0] sm:$0xf]  ;;  %v817_v55 = vshrl.u32 %v443_v45, 16  ;;  %v820_v56 = vshll.u32 %v443_v45, 16  ;;  %v376_v63 = vadd.f32 %v5417_v52, %v340_v61  ;;  %v1330_v42 = vrot.slane %v1329_v20, 4 }
  0x94   : > { %v1397_v39 = vsel %vm5119_vm9, %v1392_v37, %v5529_v5  ;;  %v1110_v54 = vld [vmem:[#allocation2 + $0xa4] sm:$0x1]  ;;  %v1442_v23 = vshll.u32 %v1109_v48, 16  ;;  %v1446_v57 = vshrl.u32 %v1109_v48, 16  ;;  %v811_v19 = vrot.slane %v809_v50, 7 }
  0x95   : > { %1548 = vrot.lane.b32.xlu1 %v1397_v39, %s4995_s28  ;;  %v1452_v59 = vshll.u32 %v1110_v54, 16  ;;  %v5543_v60 = vrot.slane %v817_v55, 7  ;;  %v991_v8 = vld [vmem:[#allocation2 + $0xb4] sm:$0xf]  ;;  %v377_v7 = vadd.f32 %v5417_v52, %v341_v58  ;;  %v408_v25 = vmax.f32 %v376_v63, 0.0 }
  0x96   : > { %v5546_v3 = vrot.slane %v1442_v23, 5  ;;  %v1448_v6 = vrot.slane %v1446_v57, 4  ;;  %v814_v12 = vor.u32 %v812_v9, %v811_v19  ;;  %v815_v47 = vrot.slane %v811_v19, 4  ;;  %v956_v0 = vld [vmem:[#allocation2 + $0x78] sm:$0xf] }
  0x97   : > { %v1454_v11 = vrot.slane %v1452_v59, 5  ;;  %v1095_v49 = vld [vmem:[#allocation2 + $0x68] sm:$0x1]  ;;  %v822_v24 = vor.u32 %v820_v56, %v5543_v60  ;;  %v409_v26 = vmax.f32 %v377_v7, 0.0  ;;  %v1426_v30 = vrot.slane %v1425_v33, 4 }
  0x98   : > { %v1449_v27 = vor.u32 %v1448_v6, %v5546_v3  ;;  %v1332_v13 = vshll.u32 %v1095_v49, 16  ;;  %v1107_v36 = vld [vmem:[#allocation2 + $0x98] sm:$0x1]  ;;  %v992_v52 = vsel %vm5125_vm10, %v814_v12, %v991_v8  ;;  %v957_v31 = vsel %vm5125_vm10, %v729_v17, %v956_v0  ;;  %v559_v43 = vld [vmem:[#allocation2 + $0xbc] sm:$0x1] }
  0x99   : > { %v823_v20 = vsel %vm5133_vm11, %v815_v47, %v822_v24  ;;  %v1428_v53 = vshll.u32 %v1107_v36, 16  ;;  %993 = vst [vmem:[#allocation2 + $0xb4] sm:$0xf] %v992_v52  ;;  %v440_v35 = vpack.c.bf16 %v408_v25, %v408_v25  ;;  %v441_v29 = vpack.c.bf16 %v409_v26, %v409_v26  ;;  %v497_v61 = vld [vmem:[#allocation2 + $0x9c] sm:$0x1] }
  0x9a   : > { %v1450_v32 = vrot.slane %v1449_v27, 4  ;;  %v1334_v34 = vrot.slane %v1332_v13, 5  ;;  %994 = vst.msk [vmem:[#allocation2 + $0xb8] sm:$0xf] %vm446_vm0, %v823_v20  ;;  %v548_v17 = vsel %vm5060_vm5, 0, %v547_v38  ;;  %v560_v50 = vsel %vm5060_vm5, 0, %v559_v43 }
  0x9b   : > { %v1430_v15 = vrot.slane %v1428_v53, 5  ;;  %958 = vst [vmem:[#allocation2 + $0x78] sm:$0xf] %v957_v31  ;;  %v792_v41 = vshrl.u32 %v440_v35, 16  ;;  %v795_v44 = vshll.u32 %v440_v35, 16  ;;  %v800_v40 = vshrl.u32 %v441_v29, 16 }
  0x9c   : > { %v1455_v33 = vsel %vm5119_vm9, %v1450_v32, %v1454_v11  ;;  %v1335_v46 = vsel %vm5119_vm9, %v1330_v42, %v1334_v34  ;;  %v803_v45 = vshll.u32 %v441_v29, 16  ;;  %v984_v48 = vld [vmem:[#allocation2 + $0xa8] sm:$0xf]  ;;  %549 = vst [vmem:[#allocation2 + $0x8c] sm:$0x1] %v548_v17  ;;  %v1398_v56 = vshrl.u32 %v5514_v18, 16 }
  0x9d   : > { %1558 = vrot.lane.b32.xlu0 %v1455_v33, %s4995_s28  ;;  %1538 = vrot.lane.b32.xlu2 %v1335_v46, %s4995_s28  ;;  %v1431_v62 = vsel %vm5119_vm9, %v1426_v30, %v1430_v15  ;;  %v794_v37 = vrot.slane %v792_v41, 7  ;;  %v5569_v16 = vrot.slane %v800_v40, 7  ;;  %561 = vst [vmem:[#allocation2 + $0xbc] sm:$0x1] %v560_v50  ;;  %v756_v23 = vrot.slane %v5468_v51, 4 }
  0x9e   : > { %1554 = vrot.lane.b32.xlu1 %v1431_v62, %s4995_s28  ;;  %v498_v57 = vsel %vm5045_vm3, 0, %v497_v61  ;;  %v824_v8 = vrot.slane %v5543_v60, 4  ;;  %v5584_v12 = vld [vmem:[#allocation2 + $0x4] sm:$0xf]  ;;  %v778_v47 = vshll.u32 %v5472_v22, 16  ;;  %v1400_v60 = vrot.slane %v1398_v56, 4 }
  0x9f   : > { %v797_v9 = vor.u32 %v795_v44, %v794_v37  ;;  %v798_v55 = vrot.slane %v794_v37, 4  ;;  %v805_v54 = vor.u32 %v803_v45, %v5569_v16  ;;  %499 = vst [vmem:[#allocation2 + $0x9c] sm:$0x1] %v498_v57  ;;  %v1635_v31 = vld [vmem:[#allocation2 + $0x8] sm:$0x1]  ;;  %v1734_v32 = vrot.slane %v5584_v12, 5 }
  0xa0   : > { %v1114_v39 = vld [vmem:[#allocation2 + $0xb4] sm:$0xf]  ;;  %v780_v30 = vor.u32 %v778_v47, %v5488_v28  ;;  %vm1729_vm12 = vcmask 1042432   ;;  %vm1730_vm13 = vcmask 1046532   ;;  %v556_v33 = vld [vmem:[#allocation2 + $0xb0] sm:$0x1]  ;;  %v1401_v43 = vor.u32 %v1400_v60, %v5529_v5 }
  0xa1   : > { %v1115_v58 = vld [vmem:[#allocation2 + $0xb8] sm:$0xf]  ;;  %v1481_v59 = vshrl.u32 %v1114_v39, 16  ;;  %v1484_v19 = vshll.u32 %v1114_v39, 16  ;;  %v985_v63 = vsel %vm5125_vm10, %v797_v9, %v984_v48  ;;  %v806_v18 = vsel %vm5133_vm11, %v798_v55, %v805_v54  ;;  %vm5610_vm14 = vmor %vm1729_vm12, %vm1730_vm13  ;;  %v1006_v50 = vld [vmem:[#allocation2 + $0x4] sm:$0xf] }
  0xa2   : > { %v1490_v6 = vshll.u32 %v1115_v58, 16  ;;  %v1099_v42 = vld [vmem:[#allocation2 + $0x78] sm:$0xf]  ;;  %986 = vst [vmem:[#allocation2 + $0xa8] sm:$0xf] %v985_v63  ;;  %v1494_v34 = vshrl.u32 %v1115_v58, 16 }
  0xa3   : > { %v1483_v7 = vrot.slane %v1481_v59, 4  ;;  %v1486_v51 = vrot.slane %v1484_v19, 5  ;;  %v1361_v11 = vshrl.u32 %v1099_v42, 16  ;;  %v1364_v49 = vshll.u32 %v1099_v42, 16  ;;  %987 = vst.msk [vmem:[#allocation2 + $0xac] sm:$0xf] %vm446_vm0, %v806_v18 }
  0xa4   : > { %v5587_v27 = vrot.slane %v1490_v6, 5  ;;  %v967_v25 = vld [vmem:[#allocation2 + $0x8c] sm:$0x1]  ;;  %v995_v36 = vld [vmem:[#allocation2 + $0xbc] sm:$0x1]  ;;  %v1736_v45 = vrot.slane %v1734_v32, 4 }
  0xa5   : > { %v1487_v24 = vor.u32 %v1486_v51, %v1483_v7  ;;  %v1363_v13 = vrot.slane %v1361_v11, 4  ;;  %v1366_v0 = vrot.slane %v1364_v49, 5  ;;  %v968_v26 = vsel %vm5045_vm3, %v756_v23, %v967_v25  ;;  %v1639_v54 = vld [vmem:[#allocation2 + $0x18] sm:$0xe]  ;;  %1038 = vst.msk [vmem:[#allocation3 + $0x4] sm:$0xf] %vm446_vm0, %v1006_v50 }
  0xa6   : > { %969 = vst [vmem:[#allocation2 + $0x8c] sm:$0x1] %v968_v26  ;;  %v996_v22 = vsel %vm5045_vm3, %v824_v8, %v995_v36  ;;  %v977_v53 = vld [vmem:[#allocation2 + $0x9c] sm:$0xf]  ;;  %v1737_v62 = vrot.slane %v1635_v31, 5  ;;  %v1496_v5 = vrot.slane %v1494_v34, 4 }
  0xa7   : > { %v1488_v20 = vrot.slane %v1487_v24, 4  ;;  %v1367_v52 = vor.u32 %v1366_v0, %v1363_v13  ;;  %997 = vst [vmem:[#allocation2 + $0xbc] sm:$0x1] %v996_v22  ;;  %v978_v28 = vsel %vm5125_vm10, %v780_v30, %v977_v53  ;;  %v557_v48 = vsel %vm5060_vm5, 0, %v556_v33  ;;  %v5622_v6 = vld [vmem:[#allocation2 + $0x1c] sm:$0xf] }
  0xa8   : > { %979 = vst [vmem:[#allocation2 + $0x9c] sm:$0xf] %v978_v28  ;;  %v1402_v39 = vrot.slane %v1401_v43, 4  ;;  %v1738_v23 = vsel %vm5610_vm14, %v1736_v45, %v1737_v62  ;;  %vm1600_vm15 = vcmask 126016   ;;  %v1497_v19 = vor.u32 %v1496_v5, %v5587_v27  ;;  %v5634_v13 = vld [vmem:[#allocation2 + $0x28] sm:$0xf]  ;;  %v1509_v62 = vpop.permute.xlu1 %1508 }
  0xa9   : > { %v1493_v35 = vsel %vm5119_vm9, %v1488_v20, %v5587_v27  ;;  %v1368_v29 = vrot.slane %v1367_v52, 4  ;;  %v1111_v38 = vld [vmem:[#allocation2 + $0xa8] sm:$0xf]  ;;  %558 = vst [vmem:[#allocation2 + $0xb0] sm:$0x1] %v557_v48  ;;  %v807_v8 = vrot.slane %v5569_v16, 4 }
  0xaa   : > { %1564 = vrot.lane.b32.xlu0 %v1493_v35, %s4995_s28  ;;  %v1112_v46 = vld [vmem:[#allocation2 + $0xac] sm:$0xf]  ;;  %v1457_v15 = vshrl.u32 %v1111_v38, 16  ;;  %v1460_v41 = vshll.u32 %v1111_v38, 16  ;;  %v4623_v24 = vrot.slane %v1639_v54, 9  ;;  %v1748_v27 = vrot.slane %v5622_v6, 5 }
  0xab   : > { %v1373_v44 = vsel %vm5119_vm9, %v1368_v29, %v5450_v10  ;;  %v1466_v40 = vshll.u32 %v1112_v46, 16  ;;  %v1507_v10 = vpop.permute.xlu0 %1506  ;;  %v1470_v51 = vshrl.u32 %v1112_v46, 16  ;;  %v1498_v16 = vrot.slane %v1497_v19, 4  ;;  %v1005_v20 = vld [vmem:[#allocation2] sm:$0xf] }
  0xac   : > { %1544 = vrot.lane.b32.xlu2 %v1373_v44, %s4995_s28  ;;  %v1459_v37 = vrot.slane %v1457_v15, 4  ;;  %v1462_v17 = vrot.slane %v1460_v41, 5  ;;  %1602 = vst.msk [vmem:[#allocation3 + $0x4] sm:$0xf] %vm1600_vm15, %v1507_v10  ;;  %v1009_v34 = vld [vmem:[#allocation2 + $0x18] sm:$0xf]  ;;  %v1749_v53 = vsel %vm5610_vm14, %v4623_v24, %v1748_v27 }
  0xad   : > { %v5616_v55 = vrot.slane %v1466_v40, 5  ;;  %v1104_v56 = vld [vmem:[#allocation2 + $0x8c] sm:$0x1]  ;;  %v1472_v31 = vrot.slane %v1470_v51, 4  ;;  %v1513_v22 = vpop.permute.xlu2 %1512  ;;  %v1755_v35 = vrot.slane %v5634_v13, 5  ;;  %v1750_v19 = vrot.slane %v1748_v27, 4 }
  0xae   : > { %v1463_v9 = vor.u32 %v1462_v17, %v1459_v37  ;;  %v1404_v57 = vshll.u32 %v1104_v56, 16  ;;  %v1116_v58 = vld [vmem:[#allocation2 + $0xbc] sm:$0x1]  ;;  %1037 = vst.msk [vmem:[#allocation3] sm:$0xf] %vm446_vm0, %v1005_v20  ;;  %vm1940_vm1 = vcmask 191616  }
  0xaf   : > { %v1500_v63 = vshll.u32 %v1116_v58, 16  ;;  %v1108_v18 = vld [vmem:[#allocation2 + $0x9c] sm:$0xf]  ;;  %v1644_v28 = vld [vmem:[#allocation2 + $0x2c] sm:$0x1]  ;;  %v1473_v41 = vor.u32 %v1472_v31, %v5616_v55  ;;  %v1757_v43 = vrot.slane %v1755_v35, 4 }
  0xb0   : > { %v1464_v59 = vrot.slane %v1463_v9, 4  ;;  %v1406_v42 = vrot.slane %v1404_v57, 5  ;;  %v1433_v11 = vshrl.u32 %v1108_v18, 16  ;;  %v1436_v49 = vshll.u32 %v1108_v18, 16  ;;  %v988_v60 = vld [vmem:[#allocation2 + $0xb0] sm:$0x1] }
  0xb1   : > { %v1502_v0 = vrot.slane %v1500_v63, 5  ;;  %v989_v30 = vsel %vm5045_vm3, %v807_v8, %v988_v60  ;;  %v1636_v33 = vld [vmem:[#allocation2 + $0xc] sm:$0xe]  ;;  %v5646_v46 = vld [vmem:[#allocation2 + $0x10] sm:$0xf]  ;;  %v1758_v44 = vrot.slane %v1644_v28, 5 }
  0xb2   : > { %v1469_v7 = vsel %vm5119_vm9, %v1464_v59, %v5616_v55  ;;  %1846 = vrot.lane.b32.xlu0 %v1738_v23, %s4996_s8  ;;  %v1407_v47 = vsel %vm5119_vm9, %v1402_v39, %v1406_v42  ;;  %v1435_v25 = vrot.slane %v1433_v11, 4  ;;  %v1438_v26 = vrot.slane %v1436_v49, 5  ;;  %990 = vst [vmem:[#allocation2 + $0xb0] sm:$0x1] %v989_v30  ;;  %v1007_v37 = vld [vmem:[#allocation2 + $0xc] sm:$0xf] }
  0xb3   : > { %1560 = vrot.lane.b32.xlu1 %v1469_v7, %s4995_s28  ;;  %v1505_v36 = vpop.permute.xlu0 %1504  ;;  %v1503_v29 = vsel %vm5119_vm9, %v1498_v16, %v1502_v0  ;;  %1041 = vst.msk [vmem:[#allocation3 + $0x10] sm:$0xf] %vm446_vm0, %v1009_v34  ;;  %v4622_v40 = vrot.slane %v1636_v33, 9  ;;  %v1741_v45 = vrot.slane %v5646_v46, 5  ;;  %v1011_v5 = vld [vmem:[#allocation2 + $0x24] sm:$0xf]  ;;  %v1759_v9 = vsel %vm5610_vm14, %v1757_v43, %v1758_v44  ;;  %v1511_v7 = vpop.permute.xlu1 %1510 }
  0xb4   : > { %1550 = vrot.lane.b32.xlu2 %v1407_v47, %s4995_s28  ;;  %v1439_v52 = vor.u32 %v1438_v26, %v1435_v25  ;;  %1601 = vst.msk [vmem:[#allocation3] sm:$0xf] %vm1600_vm15, %v1505_v36  ;;  %v1474_v48 = vrot.slane %v1473_v41, 4  ;;  %v1010_v50 = vld [vmem:[#allocation2 + $0x1c] sm:$0xf]  ;;  %vm2694_vm2 = vcmask 322816  }
  0xb5   : > { %1605 = vst.msk [vmem:[#allocation3 + $0x10] sm:$0xf] %vm1600_vm15, %v1513_v22  ;;  %v1641_v55 = vld [vmem:[#allocation2 + $0x20] sm:$0x1]  ;;  %v1648_v56 = vld [vmem:[#allocation2 + $0x3c] sm:$0xe]  ;;  %v1742_v39 = vsel %vm5610_vm14, %v4622_v40, %v1741_v45  ;;  %v1515_v57 = vpop.permute.xlu2 %1514 }
  0xb6   : > { %v1440_v38 = vrot.slane %v1439_v52, 4  ;;  %1039 = vst.msk [vmem:[#allocation3 + $0x8] sm:$0xf] %vm446_vm0, %v1007_v37  ;;  %v5667_v23 = vld [vmem:[#allocation2 + $0x40] sm:$0xf]  ;;  %v1751_v63 = vrot.slane %v1641_v55, 5 }
  0xb7   : > { %1603 = vst.msk [vmem:[#allocation3 + $0x8] sm:$0xf] %vm1600_vm15, %v1509_v62  ;;  %v1633_v59 = vld [vmem:[#allocation2] sm:$0xe]  ;;  %v4626_v6 = vrot.slane %v1648_v56, 9  ;;  %v1769_v42 = vrot.slane %v5667_v23, 5 }
  0xb8   : > { %v1445_v15 = vsel %vm5119_vm9, %v1440_v38, %v5546_v3  ;;  %1043 = vst.msk [vmem:[#allocation3 + $0x18] sm:$0xf] %vm446_vm0, %v1011_v5  ;;  %v5678_v18 = vld [vmem:[#allocation2 + $0x4c] sm:$0xf]  ;;  %v1008_v8 = vld [vmem:[#allocation2 + $0x10] sm:$0xf]  ;;  %v1752_v16 = vsel %vm5610_vm14, %v1750_v19, %v1751_v63 }
  0xb9   : > { %v1113_v3 = vld [vmem:[#allocation2 + $0xb0] sm:$0x1]  ;;  %1042 = vst.msk [vmem:[#allocation3 + $0x14] sm:$0xf] %vm446_vm0, %v1010_v50  ;;  %v1014_v51 = vld [vmem:[#allocation2 + $0x34] sm:$0xf]  ;;  %v1770_v24 = vsel %vm5610_vm14, %v4626_v6, %v1769_v42 }
  0xba   : > { %1852 = vrot.lane.b32.xlu0 %v1749_v53, %s4996_s8  ;;  %v1476_v10 = vshll.u32 %v1113_v3, 16  ;;  %1606 = vst.msk [vmem:[#allocation3 + $0x14] sm:$0xf] %vm1600_vm15, %v1515_v57  ;;  %v4621_v49 = vrot.slane %v1633_v59, 9  ;;  %v1013_v47 = vld [vmem:[#allocation2 + $0x30] sm:$0xf] }
  0xbb   : > { %1566 = vrot.lane.b32.xlu1 %v1503_v29, %s4995_s28  ;;  %v1517_v17 = vpop.permute.xlu0 %1516  ;;  %1040 = vst.msk [vmem:[#allocation3 + $0xc] sm:$0xf] %vm446_vm0, %v1008_v8  ;;  %v1776_v27 = vrot.slane %v5678_v18, 5  ;;  %v1653_v0 = vld [vmem:[#allocation2 + $0x50] sm:$0x1]  ;;  %v1519_v22 = vpop.permute.xlu1 %1518  ;;  %v1743_v53 = vrot.slane %v1741_v45, 4 }
  0xbc   : > { %1556 = vrot.lane.b32.xlu2 %v1445_v15, %s4995_s28  ;;  %v1478_v54 = vrot.slane %v1476_v10, 5  ;;  %1607 = vst.msk [vmem:[#allocation3 + $0x18] sm:$0xf] %vm1600_vm15, %v1517_v17  ;;  %v1735_v25 = vsel %vm5610_vm14, %v4621_v49, %v1734_v32  ;;  %v1645_v26 = vld [vmem:[#allocation2 + $0x30] sm:$0xe]  ;;  %v1779_v52 = vrot.slane %v1653_v0, 5 }
  0xbd   : > { %1604 = vst.msk [vmem:[#allocation3 + $0xc] sm:$0xf] %vm1600_vm15, %v1511_v7  ;;  %v5693_v60 = vld [vmem:[#allocation2 + $0x34] sm:$0xf]  ;;  %v1778_v20 = vrot.slane %v1776_v27, 4  ;;  %v4625_v12 = vrot.slane %v1645_v26, 9 }
  0xbe   : > { %v1479_v58 = vsel %vm5119_vm9, %v1474_v48, %v1478_v54  ;;  %1046 = vst.msk [vmem:[#allocation3 + $0x24] sm:$0xf] %vm446_vm0, %v1014_v51  ;;  %v1638_v36 = vld [vmem:[#allocation2 + $0x14] sm:$0x1]  ;;  %v1762_v32 = vrot.slane %v5693_v60, 5  ;;  %v1771_v62 = vrot.slane %v1769_v42, 4 }
  0xbf   : > { %1045 = vst.msk [vmem:[#allocation3 + $0x20] sm:$0xf] %vm446_vm0, %v1013_v47  ;;  %v1012_v31 = vld [vmem:[#allocation2 + $0x28] sm:$0xf]  ;;  %v1744_v29 = vrot.slane %v1638_v36, 5  ;;  %v1780_v33 = vsel %vm5610_vm14, %v1778_v20, %v1779_v52  ;;  %vm3031_vm4 = vcmask 388416  }
  0xc0   : > { %v1017_v34 = vld [vmem:[#allocation2 + $0x48] sm:$0xf]  ;;  %1044 = vst.msk [vmem:[#allocation3 + $0x1c] sm:$0xf] %vm446_vm0, %v1012_v31  ;;  %v1016_v28 = vld [vmem:[#allocation2 + $0x40] sm:$0xf]  ;;  %v1763_v15 = vsel %vm5610_vm14, %v4625_v12, %v1762_v32 }
  0xc1   : > { %1608 = vst.msk [vmem:[#allocation3 + $0x1c] sm:$0xf] %vm1600_vm15, %v1519_v22  ;;  %v1650_v46 = vld [vmem:[#allocation2 + $0x44] sm:$0x1]  ;;  %v1657_v41 = vld [vmem:[#allocation2 + $0x60] sm:$0xe]  ;;  %v1745_v44 = vsel %vm5610_vm14, %v1743_v53, %v1744_v29 }
  0xc2   : > { %1858 = vrot.lane.b32.xlu0 %v1759_v9, %s4996_s8  ;;  %1049 = vst.msk [vmem:[#allocation3 + $0x30] sm:$0xf] %vm446_vm0, %v1017_v34  ;;  %v5710_v43 = vld [vmem:[#allocation2 + $0x64] sm:$0xf]  ;;  %v1772_v37 = vrot.slane %v1650_v46, 5  ;;  %v4629_v17 = vrot.slane %v1657_v41, 9 }
  0xc3   : > { %1848 = vrot.lane.b32.xlu1 %v1742_v39, %s4996_s8  ;;  %v1523_v11 = vpop.permute.xlu0 %1522  ;;  %1048 = vst.msk [vmem:[#allocation3 + $0x2c] sm:$0xf] %vm446_vm0, %v1016_v28  ;;  %v1642_v40 = vld [vmem:[#allocation2 + $0x24] sm:$0xe]  ;;  %v1790_v5 = vrot.slane %v5710_v43, 5  ;;  %vm3225_vm6 = vcmask 454016  }
  0xc4   : > { %1562 = vrot.lane.b32.xlu2 %v1479_v58, %s4995_s28  ;;  %1610 = vst.msk [vmem:[#allocation3 + $0x24] sm:$0xf] %vm1600_vm15, %v1523_v11  ;;  %v5721_v3 = vld [vmem:[#allocation2 + $0x70] sm:$0xf]  ;;  %v1015_v48 = vld [vmem:[#allocation2 + $0x3c] sm:$0xf]  ;;  %v1773_v23 = vsel %vm5610_vm14, %v1771_v62, %v1772_v37 }
  0xc5   : > { %v1020_v50 = vld [vmem:[#allocation2 + $0x58] sm:$0xf]  ;;  %v4624_v9 = vrot.slane %v1642_v40, 9  ;;  %1047 = vst.msk [vmem:[#allocation3 + $0x28] sm:$0xf] %vm446_vm0, %v1015_v48  ;;  %v1791_v56 = vsel %vm5610_vm14, %v4629_v17, %v1790_v5  ;;  %v1797_v39 = vrot.slane %v5721_v3, 5 }
  0xc6   : > { %v1019_v55 = vld [vmem:[#allocation2 + $0x54] sm:$0xf]  ;;  %1052 = vst.msk [vmem:[#allocation3 + $0x3c] sm:$0xf] %vm446_vm0, %v1020_v50  ;;  %v5736_v19 = vld [vmem:[#allocation2 + $0x58] sm:$0xf] }
  0xc7   : > { %v1662_v57 = vld [vmem:[#allocation2 + $0x74] sm:$0x1]  ;;  %v1756_v58 = vsel %vm5610_vm14, %v4624_v9, %v1755_v35  ;;  %v1654_v59 = vld [vmem:[#allocation2 + $0x54] sm:$0xe]  ;;  %1051 = vst.msk [vmem:[#allocation3 + $0x38] sm:$0xf] %vm446_vm0, %v1019_v55 }
  0xc8   : > { %v1647_v63 = vld [vmem:[#allocation2 + $0x38] sm:$0x1]  ;;  %v1799_v6 = vrot.slane %v1797_v39, 4  ;;  %v1800_v42 = vrot.slane %v1662_v57, 5  ;;  %v4628_v13 = vrot.slane %v1654_v59, 9  ;;  %v1783_v8 = vrot.slane %v5736_v19, 5 }
  0xc9   : > { %v1018_v35 = vld [vmem:[#allocation2 + $0x4c] sm:$0xf]  ;;  %v1764_v11 = vrot.slane %v1762_v32, 4  ;;  %v1765_v49 = vrot.slane %v1647_v63, 5  ;;  %v1022_v47 = vld [vmem:[#allocation2 + $0x64] sm:$0xf] }
  0xca   : > { %1864 = vrot.lane.b32.xlu0 %v1770_v24, %s4996_s8  ;;  %v1525_v10 = vpop.permute.xlu1 %1524  ;;  %v1023_v51 = vld [vmem:[#allocation2 + $0x6c] sm:$0xf]  ;;  %1050 = vst.msk [vmem:[#allocation3 + $0x34] sm:$0xf] %vm446_vm0, %v1018_v35  ;;  %v1801_v24 = vsel %vm5610_vm14, %v1799_v6, %v1800_v42  ;;  %v1784_v0 = vsel %vm5610_vm14, %v4628_v13, %v1783_v8  ;;  %v1667_v26 = vld [vmem:[#allocation2 + $0x88] sm:$0xf] }
  0xcb   : > { %v1521_v30 = vpop.permute.xlu2 %1520  ;;  %1854 = vrot.lane.b32.xlu1 %v1752_v16, %s4996_s8  ;;  %v1529_v38 = vpop.permute.xlu0 %1528  ;;  %1611 = vst.msk [vmem:[#allocation3 + $0x28] sm:$0xf] %vm1600_vm15, %v1525_v10  ;;  %v1659_v16 = vld [vmem:[#allocation2 + $0x68] sm:$0x1]  ;;  %v1766_v36 = vsel %vm5610_vm14, %v1764_v11, %v1765_v49  ;;  %v1651_v20 = vld [vmem:[#allocation2 + $0x48] sm:$0xe] }
  0xcc   : > { %1609 = vst.msk [vmem:[#allocation3 + $0x20] sm:$0xf] %vm1600_vm15, %v1521_v30  ;;  %1844 = vrot.lane.b32.xlu2 %v1735_v25, %s4996_s8  ;;  %v1666_v25 = vld [vmem:[#allocation2 + $0x84] sm:$0xe]  ;;  %v1792_v52 = vrot.slane %v1790_v5, 4  ;;  %v1793_v12 = vrot.slane %v1659_v16, 5 }
  0xcd   : > { %1613 = vst.msk [vmem:[#allocation3 + $0x30] sm:$0xf] %vm1600_vm15, %v1529_v38  ;;  %v4632_v32 = vrot.slane %v1666_v25, 9  ;;  %v1811_v31 = vrot.slane %v1667_v26, 5  ;;  %v5760_v22 = vld [vmem:[#allocation2 + $0x94] sm:$0xf] }
  0xce   : > { %1055 = vst.msk [vmem:[#allocation3 + $0x48] sm:$0xf] %vm446_vm0, %v1023_v51  ;;  %v1021_v34 = vld [vmem:[#allocation2 + $0x60] sm:$0xf]  ;;  %v1026_v53 = vld [vmem:[#allocation2 + $0x7c] sm:$0xf]  ;;  %v1794_v41 = vsel %vm5610_vm14, %v1792_v52, %v1793_v12 }
  0xcf   : > { %1054 = vst.msk [vmem:[#allocation3 + $0x44] sm:$0xf] %vm446_vm0, %v1022_v47  ;;  %v4627_v29 = vrot.slane %v1651_v20, 9  ;;  %v1025_v28 = vld [vmem:[#allocation2 + $0x78] sm:$0xf]  ;;  %v1785_v50 = vrot.slane %v1783_v8, 4 }
  0xd0   : > { %1053 = vst.msk [vmem:[#allocation3 + $0x40] sm:$0xf] %vm446_vm0, %v1021_v34  ;;  %v1663_v46 = vld [vmem:[#allocation2 + $0x78] sm:$0xe]  ;;  %v5770_v43 = vld [vmem:[#allocation2 + $0x7c] sm:$0xf] }
  0xd1   : > { %1058 = vst.msk [vmem:[#allocation3 + $0x54] sm:$0xf] %vm446_vm0, %v1026_v53  ;;  %v1777_v40 = vsel %vm5610_vm14, %v4627_v29, %v1776_v27  ;;  %v4631_v62 = vrot.slane %v1663_v46, 9  ;;  %v1804_v37 = vrot.slane %v5770_v43, 5  ;;  %v1024_v48 = vld [vmem:[#allocation2 + $0x70] sm:$0xf] }
  0xd2   : > { %1870 = vrot.lane.b32.xlu0 %v1780_v33, %s4996_s8  ;;  %v1812_v33 = vsel %vm5610_vm14, %v4632_v32, %v1811_v31  ;;  %1057 = vst.msk [vmem:[#allocation3 + $0x50] sm:$0xf] %vm446_vm0, %v1025_v28  ;;  %v1029_v10 = vld [vmem:[#allocation2 + $0x90] sm:$0xf]  ;;  %v1028_v18 = vld [vmem:[#allocation2 + $0x88] sm:$0xf] }
  0xd3   : > { %v1527_v45 = vpop.permute.xlu2 %1526  ;;  %1860 = vrot.lane.b32.xlu1 %v1763_v15, %s4996_s8  ;;  %v1535_v54 = vpop.permute.xlu0 %1534  ;;  %v1818_v15 = vrot.slane %v5760_v22, 5  ;;  %1056 = vst.msk [vmem:[#allocation3 + $0x4c] sm:$0xf] %vm446_vm0, %v1024_v48  ;;  %v1805_v55 = vsel %vm5610_vm14, %v4631_v62, %v1804_v37  ;;  %v1660_v59 = vld [vmem:[#allocation2 + $0x6c] sm:$0xe]  ;;  %v1813_v63 = vrot.slane %v1811_v31, 4 }
  0xd4   : > { %1612 = vst.msk [vmem:[#allocation3 + $0x2c] sm:$0xf] %vm1600_vm15, %v1527_v45  ;;  %1850 = vrot.lane.b32.xlu2 %v1745_v44, %s4996_s8  ;;  %v1531_v7 = vpop.permute.xlu1 %1530  ;;  %v1671_v44 = vld [vmem:[#allocation2 + $0x98] sm:$0x1]  ;;  %v1656_v45 = vld [vmem:[#allocation2 + $0x5c] sm:$0x1] }
  0xd5   : > { %1616 = vst.msk [vmem:[#allocation3 + $0x3c] sm:$0xf] %vm1600_vm15, %v1535_v54  ;;  %v1820_v17 = vrot.slane %v1818_v15, 4  ;;  %v1821_v5 = vrot.slane %v1671_v44, 5  ;;  %v1786_v9 = vrot.slane %v1656_v45, 5  ;;  %v4630_v51 = vrot.slane %v1660_v59, 9 }
  0xd6   : > { %1614 = vst.msk [vmem:[#allocation3 + $0x34] sm:$0xf] %vm1600_vm15, %v1531_v7  ;;  %v1675_v54 = vld [vmem:[#allocation2 + $0xa8] sm:$0xe]  ;;  %v5797_v8 = vld [vmem:[#allocation2 + $0xb8] sm:$0xf] }
  0xd7   : > { %1061 = vst.msk [vmem:[#allocation3 + $0x60] sm:$0xf] %vm446_vm0, %v1029_v10  ;;  %v1822_v27 = vsel %vm5610_vm14, %v1820_v17, %v1821_v5  ;;  %v4635_v42 = vrot.slane %v1675_v54, 9  ;;  %v1027_v35 = vld [vmem:[#allocation2 + $0x84] sm:$0xf]  ;;  %v1798_v25 = vsel %vm5610_vm14, %v4630_v51, %v1797_v39  ;;  %v1806_v31 = vrot.slane %v1804_v37, 4 }
  0xd8   : > { %1060 = vst.msk [vmem:[#allocation3 + $0x5c] sm:$0xf] %vm446_vm0, %v1028_v18  ;;  %v1032_v7 = vld [vmem:[#allocation2 + $0xa0] sm:$0xf]  ;;  %v1031_v11 = vld [vmem:[#allocation2 + $0x9c] sm:$0xf] }
  0xd9   : > { %1059 = vst.msk [vmem:[#allocation3 + $0x58] sm:$0xf] %vm446_vm0, %v1027_v35  ;;  %v1672_v26 = vld [vmem:[#allocation2 + $0x9c] sm:$0xe]  ;;  %v1030_v32 = vld [vmem:[#allocation2 + $0x94] sm:$0xf] }
  0xda   : > { %1876 = vrot.lane.b32.xlu0 %v1791_v56, %s4996_s8  ;;  %v1668_v56 = vld [vmem:[#allocation2 + $0x8c] sm:$0x1]  ;;  %1064 = vst.msk [vmem:[#allocation3 + $0x6c] sm:$0xf] %vm446_vm0, %v1032_v7  ;;  %v4634_v52 = vrot.slane %v1672_v26, 9  ;;  %vm4417_vm7 = vcmask 1043456  }
  0xdb   : > { %1866 = vrot.lane.b32.xlu1 %v1773_v23, %s4996_s8  ;;  %v1676_v23 = vld [vmem:[#allocation2 + $0xac] sm:$0xf]  ;;  %v1814_v6 = vrot.slane %v1668_v56, 5  ;;  %1063 = vst.msk [vmem:[#allocation3 + $0x68] sm:$0xf] %vm446_vm0, %v1031_v11  ;;  %vm3786_vm8 = vcmask 519616  }
  0xdc   : > { %1856 = vrot.lane.b32.xlu2 %v1756_v58, %s4996_s8  ;;  %v1787_v58 = vsel %vm5610_vm14, %v1785_v50, %v1786_v9  ;;  %v1832_v13 = vrot.slane %v1676_v23, 5  ;;  %v1035_v3 = vld [vmem:[#allocation2 + $0xb4] sm:$0xf]  ;;  %1062 = vst.msk [vmem:[#allocation3 + $0x64] sm:$0xf] %vm446_vm0, %v1030_v32 }
  0xdd   : > { %v1815_v16 = vsel %vm5610_vm14, %v1813_v63, %v1814_v6  ;;  %v1034_v39 = vld [vmem:[#allocation2 + $0xac] sm:$0xf]  ;;  %1067 = vst.msk [vmem:[#allocation3 + $0x78] sm:$0xf] %vm446_vm0, %v1035_v3  ;;  %v1669_v46 = vld [vmem:[#allocation2 + $0x90] sm:$0xe] }
  0xde   : > { %v1833_v47 = vsel %vm5610_vm14, %v4635_v42, %v1832_v13  ;;  %1066 = vst.msk [vmem:[#allocation3 + $0x74] sm:$0xf] %vm446_vm0, %v1034_v39  ;;  %v1033_v44 = vld [vmem:[#allocation2 + $0xa8] sm:$0xf]  ;;  %v1975_v37 = vld [vmem:[#allocation2 + $0x18] sm:$0xf] }
  0xdf   : > { %1065 = vst.msk [vmem:[#allocation3 + $0x70] sm:$0xf] %vm446_vm0, %v1033_v44  ;;  %v1674_v48 = vld [vmem:[#allocation2 + $0xa4] sm:$0x1]  ;;  %v1036_v10 = vld [vmem:[#allocation2 + $0xb8] sm:$0xf] }
  0xe0   : > { %v1828_v50 = vrot.slane %v1674_v48, 5  ;;  %1068 = vst.msk [vmem:[#allocation3 + $0x7c] sm:$0xf] %vm446_vm0, %v1036_v10  ;;  %v1978_v22 = vld [vmem:[#allocation2 + $0x28] sm:$0xf] }
  0xe1   : > { %v1533_v60 = vpop.permute.xlu2 %1532  ;;  %v1541_v30 = vpop.permute.xlu0 %1540  ;;  %v1678_v54 = vld [vmem:[#allocation2 + $0xb4] sm:$0xe]  ;;  %v1976_v59 = vld [vmem:[#allocation2 + $0x1c] sm:$0xf]  ;;  %v1984_v42 = vld [vmem:[#allocation2 + $0x4c] sm:$0xf] }
  0xe2   : > { %1615 = vst.msk [vmem:[#allocation3 + $0x38] sm:$0xf] %vm1600_vm15, %v1533_v60  ;;  %1882 = vrot.lane.b32.xlu0 %v1801_v24, %s4996_s8  ;;  %v1839_v24 = vrot.slane %v5797_v8, 5  ;;  %v1673_v60 = vld [vmem:[#allocation2 + $0xa0] sm:$0xf]  ;;  %v4636_v23 = vrot.slane %v1678_v54, 9 }
  0xe3   : > { %1619 = vst.msk [vmem:[#allocation3 + $0x48] sm:$0xf] %vm1600_vm15, %v1541_v30  ;;  %1872 = vrot.lane.b32.xlu1 %v1784_v0, %s4996_s8  ;;  %v1680_v0 = vld [vmem:[#allocation2 + $0xbc] sm:$0x1]  ;;  %v1825_v12 = vrot.slane %v1673_v60, 5 }
  0xe4   : > { %1862 = vrot.lane.b32.xlu2 %v1766_v36, %s4996_s8  ;;  %v1665_v36 = vld [vmem:[#allocation2 + $0x80] sm:$0x1]  ;;  %v1841_v30 = vrot.slane %v1839_v24, 4  ;;  %v1842_v20 = vrot.slane %v1680_v0, 5  ;;  %v1974_v35 = vld [vmem:[#allocation2 + $0x10] sm:$0xf] }
  0xe5   : > { %v1807_v34 = vrot.slane %v1665_v36, 5  ;;  %v1827_v18 = vrot.slane %v1825_v12, 4  ;;  %v1987_v11 = vld [vmem:[#allocation2 + $0x60] sm:$0xf]  ;;  %v1991_v14 = vld [vmem:[#allocation2 + $0x78] sm:$0xf] }
  0xe6   : > { %v1537_v38 = vpop.permute.xlu1 %1536  ;;  %v1843_v53 = vsel %vm5610_vm14, %v1841_v30, %v1842_v20  ;;  %v4985_v30 = vld [vmem:[%s6926_s3] ss:$0 sm:$0xff] }
  0xe7   : > { %1617 = vst.msk [vmem:[#allocation3 + $0x40] sm:$0xf] %vm1600_vm15, %v1537_v38  ;;  %v1826_v38 = vsel %vm5610_vm14, %v4634_v52, %v1825_v12  ;;  %v1808_v28 = vsel %vm5610_vm14, %v1806_v31, %v1807_v34  ;;  %v1829_v56 = vsel %vm5610_vm14, %v1827_v18, %v1828_v50  ;;  %v1990_v52 = vld [vmem:[#allocation2 + $0x70] sm:$0xf]  ;;  %v1985_v12 = vld [vmem:[#allocation2 + $0x54] sm:$0xf] }
  0xe8   : > { %v506_v3 = vld [vmem:[#allocation2 + $0xc0] sm:$0x1]  ;;  %v1980_v31 = vld [vmem:[#allocation2 + $0x34] sm:$0xf] }
  0xe9   : > { %v507_v34 = vsel %vm5045_vm3, 0, %v506_v3  ;;  %v1996_v18 = vld [vmem:[#allocation2 + $0x94] sm:$0xf] }
  0xea   : > { %1888 = vrot.lane.b32.xlu0 %v1812_v33, %s4996_s8  ;;  %v1677_v33 = vld [vmem:[#allocation2 + $0xb0] sm:$0x1]  ;;  %508 = vst [vmem:[#allocation2 + $0xc0] sm:$0x1] %v507_v34 }
  0xeb   : > { %1878 = vrot.lane.b32.xlu1 %v1794_v41, %s4996_s8  ;;  %v1834_v41 = vrot.slane %v1832_v13, 4  ;;  %v1835_v43 = vrot.slane %v1677_v33, 5  ;;  %v1979_v13 = vld [vmem:[#allocation2 + $0x30] sm:$0xf] }
  0xec   : > { %1868 = vrot.lane.b32.xlu2 %v1777_v40, %s4996_s8  ;;  %v4633_v40 = vrot.slane %v1669_v46, 9  ;;  %v2175_v34 = vld [vmem:[#allocation2 + $0x30] sm:$0xf] }
  0xed   : > { %v1836_v17 = vsel %vm5610_vm14, %v1834_v41, %v1835_v43  ;;  %v1993_v41 = vld [vmem:[#allocation2 + $0x84] sm:$0xf] }
  0xee   : > { %v1819_v5 = vsel %vm5610_vm14, %v4633_v40, %v1818_v15  ;;  %v1988_v43 = vld [vmem:[#allocation2 + $0x64] sm:$0xf]  ;;  %v1983_v40 = vld [vmem:[#allocation2 + $0x48] sm:$0xf] }
  0xf1   : > { %v1543_v57 = vpop.permute.xlu1 %1542 }
  0xf2   : > { %1620 = vst.msk [vmem:[#allocation3 + $0x4c] sm:$0xf] %vm1600_vm15, %v1543_v57  ;;  %1894 = vrot.lane.b32.xlu0 %v1822_v27, %s4996_s8 }
  0xf3   : > { %v1547_v19 = vpop.permute.xlu0 %1546  ;;  %1884 = vrot.lane.b32.xlu1 %v1805_v55, %s4996_s8  ;;  %v1973_v55 = vld [vmem:[#allocation2 + $0xc] sm:$0xf] }
  0xf4   : > { %1622 = vst.msk [vmem:[#allocation3 + $0x54] sm:$0xf] %vm1600_vm15, %v1547_v19  ;;  %1874 = vrot.lane.b32.xlu2 %v1787_v58, %s4996_s8  ;;  %v1981_v58 = vld [vmem:[#allocation2 + $0x3c] sm:$0xf]  ;;  %v1840_v19 = vsel %vm5610_vm14, %v4636_v23, %v1839_v24 }
  0xf5   : > { %v4932_v24 = vld [vmem:[%s5069_s23 + $0x78] sm:$0xff]  }
  0xf7   : > { %v1539_v49 = vpop.permute.xlu2 %1538 }
  0xf8   : > { %1618 = vst.msk [vmem:[#allocation3 + $0x44] sm:$0xf] %vm1600_vm15, %v1539_v49  ;;  %v1982_v49 = vld [vmem:[#allocation2 + $0x40] sm:$0xf] }
  0xfa   : > { %1900 = vrot.lane.b32.xlu0 %v1833_v47, %s4996_s8  ;;  %v1977_v47 = vld [vmem:[#allocation2 + $0x24] sm:$0xf] }
  0xfb   : > { %1890 = vrot.lane.b32.xlu1 %v1815_v16, %s4996_s8  ;;  %v4852_v16 = vunpack.c.l.bf16 %v4932_v24 }
  0xfc   : > { %1880 = vrot.lane.b32.xlu2 %v1798_v25, %s4996_s8  ;;  %v4984_v25 = vld [vmem:[%s6925_s2] ss:$0 sm:$0xff] }
  0xfd   : > { %v344_v26 = vmul.f32 %v4984_v25, %v4852_v16 }
  0xff   : > { %v380_v20 = vadd.f32 %v4985_v30, %v344_v26  ;;  %v2002_v26 = vld [vmem:[#allocation2 + $0xb8] sm:$0xf] }
 0x100   : > { %v1553_v29 = vpop.permute.xlu0 %1552 }
 0x101   : > { %1625 = vst.msk [vmem:[#allocation3 + $0x60] sm:$0xf] %vm1600_vm15, %v1553_v29  ;;  %v412_v32 = vmax.f32 %v380_v20, 0.0  ;;  %v1992_v20 = vld [vmem:[#allocation2 + $0x7c] sm:$0xf] }
 0x102   : > { %1906 = vrot.lane.b32.xlu0 %v1843_v53, %s4996_s8 }
 0x103   : > { %1896 = vrot.lane.b32.xlu1 %v1826_v38, %s4996_s8  ;;  %v444_v39 = vpack.c.bf16 %v412_v32, %v412_v32 }
 0x104   : > { %1886 = vrot.lane.b32.xlu2 %v1808_v28, %s4996_s8 }
 0x105   : > { %v826_v29 = vshrl.u32 %v444_v39, 16  ;;  %v829_v46 = vshll.u32 %v444_v39, 16 }
 0x106   : > { %v1545_v45 = vpop.permute.xlu2 %1544 }
 0x107   : > { %v1549_v62 = vpop.permute.xlu1 %1548  ;;  %1621 = vst.msk [vmem:[#allocation3 + $0x50] sm:$0xf] %vm1600_vm15, %v1545_v45  ;;  %v828_v33 = vrot.slane %v826_v29, 7  ;;  %v998_v45 = vld [vmem:[#allocation2 + $0xc0] sm:$0xf] }
 0x108   : > { %1623 = vst.msk [vmem:[#allocation3 + $0x58] sm:$0xf] %vm1600_vm15, %v1549_v62 }
 0x109   : > { %v831_v44 = vor.u32 %v829_v46, %v828_v33  ;;  %v2290_v46 = vshll.u32 %v2175_v34, 16 }
 0x10a   : > { %2041 = vrot.lane.b32.xlu0 %v1975_v37, %s4997_s9  ;;  %v4853_v37 = vunpack.c.h.bf16 %v4932_v24 }
 0x10b   : > { %1902 = vrot.lane.b32.xlu1 %v1836_v17, %s4996_s8  ;;  %v999_v62 = vsel %vm5125_vm10, %v831_v44, %v998_v45  ;;  %v1995_v44 = vld [vmem:[#allocation2 + $0x90] sm:$0xf]  ;;  %vm4123_vm10 = vcmask 585216  }
 0x10c   : > { %1892 = vrot.lane.b32.xlu2 %v1819_v5, %s4996_s8  ;;  %1000 = vst [vmem:[#allocation2 + $0xc0] sm:$0xf] %v999_v62  ;;  %v345_v48 = vmul.f32 %v4984_v25, %v4853_v37 }
 0x10e   : > { %v1551_v9 = vpop.permute.xlu2 %1550  ;;  %v381_v50 = vadd.f32 %v4985_v30, %v345_v48  ;;  %v1997_v30 = vld [vmem:[#allocation2 + $0x9c] sm:$0xf]  ;;  %v2168_v48 = vld [vmem:[#allocation2 + $0x14] sm:$0x1] }
 0x10f   : > { %1624 = vst.msk [vmem:[#allocation3 + $0x5c] sm:$0xf] %vm1600_vm15, %v1551_v9  ;;  %v1559_v27 = vpop.permute.xlu0 %1558  ;;  %v1986_v9 = vld [vmem:[#allocation2 + $0x58] sm:$0xf] }
 0x110   : > { %1628 = vst.msk [vmem:[#allocation3 + $0x6c] sm:$0xf] %vm1600_vm15, %v1559_v27  ;;  %v1555_v15 = vpop.permute.xlu1 %1554  ;;  %v2166_v27 = vld [vmem:[#allocation2 + $0xc] sm:$0xf] }
 0x111   : > { %1626 = vst.msk [vmem:[#allocation3 + $0x64] sm:$0xf] %vm1600_vm15, %v1555_v15  ;;  %v2215_v23 = vshrl.u32 %v2166_v27, 16 }
 0x112   : > { %2047 = vrot.lane.b32.xlu0 %v1978_v22, %s4997_s9  ;;  %v413_v22 = vmax.f32 %v381_v50, 0.0 }
 0x113   : > { %2037 = vrot.lane.b32.xlu1 %v1973_v55, %s4997_s9 }
 0x114   : > { %1898 = vrot.lane.b32.xlu2 %v1829_v56, %s4996_s8  ;;  %v445_v55 = vpack.c.bf16 %v413_v22, %v413_v22 }
 0x116   : > { %v1557_v57 = vpop.permute.xlu2 %1556 }
 0x117   : > { %1627 = vst.msk [vmem:[#allocation3 + $0x68] sm:$0xf] %vm1600_vm15, %v1557_v57  ;;  %v2218_v57 = vshll.u32 %v2166_v27, 16 }
 0x11a   : > { %2053 = vrot.lane.b32.xlu0 %v1981_v58, %s4997_s9  ;;  %v834_v58 = vshrl.u32 %v445_v55, 16 }
 0x11b   : > { %2043 = vrot.lane.b32.xlu1 %v1976_v59, %s4997_s9  ;;  %v1999_v59 = vld [vmem:[#allocation2 + $0xa8] sm:$0xf] }
 0x11c   : > { %1904 = vrot.lane.b32.xlu2 %v1840_v19, %s4996_s8  ;;  %v1565_v63 = vpop.permute.xlu0 %1564  ;;  %v837_v19 = vshll.u32 %v445_v55, 16 }
 0x11d   : > { %1631 = vst.msk [vmem:[#allocation3 + $0x78] sm:$0xf] %vm1600_vm15, %v1565_v63  ;;  %v1994_v63 = vld [vmem:[#allocation2 + $0x88] sm:$0xf] }
 0x11e   : > { %v1563_v6 = vpop.permute.xlu2 %1562 }
 0x11f   : > { %1630 = vst.msk [vmem:[#allocation3 + $0x74] sm:$0xf] %vm1600_vm15, %v1563_v6  ;;  %v5902_v6 = vrot.slane %v834_v58, 7 }
 0x122   : > { %2059 = vrot.lane.b32.xlu0 %v1984_v42, %s4997_s9  ;;  %v1989_v42 = vld [vmem:[#allocation2 + $0x6c] sm:$0xf] }
 0x123   : > { %2049 = vrot.lane.b32.xlu1 %v1979_v13, %s4997_s9  ;;  %v832_v13 = vrot.slane %v828_v33, 4  ;;  %v2287_v33 = vshrl.u32 %v2175_v34, 16 }
 0x124   : > { %2039 = vrot.lane.b32.xlu2 %v1974_v35, %s4997_s9  ;;  %v1847_v8 = vpop.permute.xlu0 %1846  ;;  %v2217_v35 = vrot.slane %v2215_v23, 4 }
 0x125   : > { %v1561_v7 = vpop.permute.xlu1 %1560  ;;  %1942 = vst.msk [vmem:[#allocation3 + $0x4] sm:$0xf] %vm1940_vm1, %v1847_v8  ;;  %v2220_v8 = vrot.slane %v2218_v57, 5  ;;  %v2289_v37 = vrot.slane %v2287_v33, 4  ;;  %v2234_v57 = vshll.u32 %v2168_v48, 16 }
 0x126   : > { %1629 = vst.msk [vmem:[#allocation3 + $0x70] sm:$0xf] %vm1600_vm15, %v1561_v7  ;;  %v1845_v51 = vpop.permute.xlu2 %1844  ;;  %v839_v7 = vor.u32 %v837_v19, %v5902_v6  ;;  %v1998_v19 = vld [vmem:[#allocation2 + $0xa0] sm:$0xf]  ;;  %v2181_v48 = vld [vmem:[#allocation2 + $0x48] sm:$0xf] }
 0x127   : > { %1941 = vst.msk [vmem:[#allocation3] sm:$0xf] %vm1940_vm1, %v1845_v51  ;;  %v2167_v51 = vld [vmem:[#allocation2 + $0x10] sm:$0xf] }
 0x128   : > { %v840_v24 = vsel %vm5133_vm11, %v832_v13, %v839_v7  ;;  %v2224_v25 = vshll.u32 %v2167_v51, 16  ;;  %v2169_v7 = vld [vmem:[#allocation2 + $0x18] sm:$0xf] }
 0x129   : > { %1001 = vst.msk [vmem:[#allocation2 + $0xc4] sm:$0xf] %vm446_vm0, %v840_v24  ;;  %vm2133_vm0 = vcmask 257216  }
 0x12a   : > { %2065 = vrot.lane.b32.xlu0 %v1987_v11, %s4997_s9 }
 0x12b   : > { %2055 = vrot.lane.b32.xlu1 %v1982_v49, %s4997_s9  ;;  %v2170_v49 = vld [vmem:[#allocation2 + $0x1c] sm:$0xf] }
 0x12c   : > { %2045 = vrot.lane.b32.xlu2 %v1977_v47, %s4997_s9  ;;  %v1853_v0 = vpop.permute.xlu0 %1852 }
 0x12d   : > { %v1567_v60 = vpop.permute.xlu1 %1566  ;;  %1945 = vst.msk [vmem:[#allocation3 + $0x10] sm:$0xf] %vm1940_vm1, %v1853_v0  ;;  %v2221_v0 = vor.u32 %v2220_v8, %v2217_v35  ;;  %v2180_v8 = vld [vmem:[#allocation2 + $0x44] sm:$0x1] }
 0x12e   : > { %1632 = vst.msk [vmem:[#allocation3 + $0x7c] sm:$0xf] %vm1600_vm15, %v1567_v60  ;;  %v1851_v36 = vpop.permute.xlu2 %1850  ;;  %v2248_v60 = vshll.u32 %v2170_v49, 16 }
 0x12f   : > { %1944 = vst.msk [vmem:[#allocation3 + $0xc] sm:$0xf] %vm1940_vm1, %v1851_v36  ;;  %v2252_v36 = vshrl.u32 %v2170_v49, 16  ;;  %v2236_v49 = vrot.slane %v2234_v57, 5  ;;  %v2338_v57 = vshll.u32 %v2181_v48, 16 }
 0x130   : > { %v5916_v21 = vrot.slane %v2248_v60, 5 }
 0x131   : > { %v2254_v32 = vrot.slane %v2252_v36, 4 }
 0x132   : > { %2071 = vrot.lane.b32.xlu0 %v1990_v52, %s4997_s9  ;;  %v2222_v52 = vrot.slane %v2221_v0, 4 }
 0x133   : > { %2061 = vrot.lane.b32.xlu1 %v1985_v12, %s4997_s9  ;;  %v2226_v12 = vrot.slane %v2224_v25, 5  ;;  %v5941_v25 = vld [vmem:[#allocation2 + $0x28] sm:$0xf] }
 0x134   : > { %2051 = vrot.lane.b32.xlu2 %v1980_v31, %s4997_s9  ;;  %v1859_v53 = vpop.permute.xlu0 %1858  ;;  %v2171_v31 = vld [vmem:[#allocation2 + $0x20] sm:$0x1] }
 0x135   : > { %v1849_v38 = vpop.permute.xlu1 %1848  ;;  %1948 = vst.msk [vmem:[#allocation3 + $0x1c] sm:$0xf] %vm1940_vm1, %v1859_v53  ;;  %v2227_v29 = vsel %vm5119_vm9, %v2222_v52, %v2226_v12  ;;  %v2242_v52 = vshll.u32 %v2169_v7, 16 }
 0x136   : > { %1943 = vst.msk [vmem:[#allocation3 + $0x8] sm:$0xf] %vm1940_vm1, %v1849_v38  ;;  %v1857_v28 = vpop.permute.xlu2 %1856  ;;  %v2255_v38 = vor.u32 %v2254_v32, %v5916_v21 }
 0x137   : > { %1947 = vst.msk [vmem:[#allocation3 + $0x18] sm:$0xf] %vm1940_vm1, %v1857_v28  ;;  %v2258_v28 = vshll.u32 %v2171_v31, 16 }
 0x138   : > { %v2256_v45 = vrot.slane %v2255_v38, 4 }
 0x139   : > { %v2260_v62 = vrot.slane %v2258_v28, 5 }
 0x13a   : > { %2077 = vrot.lane.b32.xlu0 %v1993_v41, %s4997_s9  ;;  %v2000_v41 = vld [vmem:[#allocation2 + $0xac] sm:$0xf] }
 0x13b   : > { %2067 = vrot.lane.b32.xlu1 %v1988_v43, %s4997_s9  ;;  %v2228_v43 = vshrl.u32 %v2167_v51, 16  ;;  %v2261_v55 = vsel %vm5119_vm9, %v2256_v45, %v2260_v62 }
 0x13c   : > { %2057 = vrot.lane.b32.xlu2 %v1983_v40, %s4997_s9  ;;  %v1865_v17 = vpop.permute.xlu0 %1864  ;;  %v2179_v40 = vld [vmem:[#allocation2 + $0x40] sm:$0xf] }
 0x13d   : > { %v1855_v5 = vpop.permute.xlu1 %1854  ;;  %1951 = vst.msk [vmem:[#allocation3 + $0x28] sm:$0xf] %vm1940_vm1, %v1865_v17  ;;  %v2292_v17 = vrot.slane %v2290_v46, 5  ;;  %v2324_v22 = vshrl.u32 %v2179_v40, 16  ;;  %v2244_v46 = vrot.slane %v2242_v52, 5 }
 0x13e   : > { %1946 = vst.msk [vmem:[#allocation3 + $0x14] sm:$0xf] %vm1940_vm1, %v1855_v5  ;;  %v1863_v10 = vpop.permute.xlu2 %1862 }
 0x13f   : > { %1950 = vst.msk [vmem:[#allocation3 + $0x24] sm:$0xf] %vm1940_vm1, %v1863_v10  ;;  %v2230_v10 = vrot.slane %v2228_v43, 4 }
 0x141   : > { %v2231_v23 = vor.u32 %v2230_v10, %v2226_v12 }
 0x142   : > { %2083 = vrot.lane.b32.xlu0 %v1996_v18, %s4997_s9  ;;  %v2176_v18 = vld [vmem:[#allocation2 + $0x34] sm:$0xf] }
 0x143   : > { %2073 = vrot.lane.b32.xlu1 %v1991_v14, %s4997_s9  ;;  %v2172_v14 = vld [vmem:[#allocation2 + $0x24] sm:$0xf]  ;;  %v2300_v36 = vshrl.u32 %v2176_v18, 16 }
 0x144   : > { %2063 = vrot.lane.b32.xlu2 %v1986_v9, %s4997_s9  ;;  %v1871_v15 = vpop.permute.xlu0 %1870  ;;  %v2320_v9 = vshll.u32 %v2179_v40, 16  ;;  %v2263_v58 = vshrl.u32 %v2172_v14, 16 }
 0x145   : > { %v1861_v56 = vpop.permute.xlu1 %1860  ;;  %1954 = vst.msk [vmem:[#allocation3 + $0x34] sm:$0xf] %vm1940_vm1, %v1871_v15  ;;  %v2293_v15 = vor.u32 %v2292_v17, %v2289_v37  ;;  %v2302_v28 = vrot.slane %v2300_v36, 4  ;;  %v2185_v37 = vld [vmem:[#allocation2 + $0x58] sm:$0xf] }
 0x146   : > { %1949 = vst.msk [vmem:[#allocation3 + $0x20] sm:$0xf] %vm1940_vm1, %v1861_v56  ;;  %v1869_v54 = vpop.permute.xlu2 %1868  ;;  %v2296_v56 = vshll.u32 %v2176_v18, 16  ;;  %v2188_v17 = vld [vmem:[#allocation2 + $0x64] sm:$0xf] }
 0x147   : > { %1953 = vst.msk [vmem:[#allocation3 + $0x30] sm:$0xf] %vm1940_vm1, %v1869_v54  ;;  %v2003_v54 = vld [vmem:[#allocation2 + $0xc0] sm:$0xf]  ;;  %v2294_v13 = vrot.slane %v2293_v15, 4  ;;  %v2396_v15 = vshrl.u32 %v2188_v17, 16 }
 0x148   : > { %v5937_v35 = vrot.slane %v2296_v56, 5 }
 0x14a   : > { %2089 = vrot.lane.b32.xlu0 %v1999_v59, %s4997_s9  ;;  %v2266_v59 = vshll.u32 %v2172_v14, 16  ;;  %v2299_v12 = vsel %vm5119_vm9, %v2294_v13, %v5937_v35 }
 0x14b   : > { %2079 = vrot.lane.b32.xlu1 %v1994_v63, %s4997_s9  ;;  %v5933_v63 = vrot.slane %v2320_v9, 5 }
 0x14c   : > { %2069 = vrot.lane.b32.xlu2 %v1989_v42, %s4997_s9  ;;  %v1877_v11 = vpop.permute.xlu0 %1876  ;;  %v2326_v42 = vrot.slane %v2324_v22, 4  ;;  %v2268_v24 = vrot.slane %v2266_v59, 5 }
 0x14d   : > { %v1867_v47 = vpop.permute.xlu1 %1866  ;;  %1957 = vst.msk [vmem:[#allocation3 + $0x40] sm:$0xf] %vm1940_vm1, %v1877_v11  ;;  %v2232_v11 = vrot.slane %v2231_v23, 4  ;;  %v2335_v23 = vshrl.u32 %v2181_v48, 16 }
 0x14e   : > { %1952 = vst.msk [vmem:[#allocation3 + $0x2c] sm:$0xf] %vm1940_vm1, %v1867_v47  ;;  %v1875_v16 = vpop.permute.xlu2 %1874  ;;  %v2265_v47 = vrot.slane %v2263_v58, 4  ;;  %v2004_v58 = vld [vmem:[#allocation2 + $0xc4] sm:$0xf] }
 0x14f   : > { %1956 = vst.msk [vmem:[#allocation3 + $0x3c] sm:$0xf] %vm1940_vm1, %v1875_v16  ;;  %v2184_v16 = vld [vmem:[#allocation2 + $0x54] sm:$0xf]  ;;  %v2237_v31 = vsel %vm5119_vm9, %v2232_v11, %v2236_v49  ;;  %v2372_v49 = vshrl.u32 %v2185_v37, 16 }
 0x150   : > { %v2359_v32 = vshrl.u32 %v2184_v16, 16  ;;  %v2269_v34 = vor.u32 %v2268_v24, %v2265_v47  ;;  %v2337_v47 = vrot.slane %v2335_v23, 4  ;;  %v2340_v24 = vrot.slane %v2338_v57, 5 }
 0x152   : > { %2095 = vrot.lane.b32.xlu0 %v2002_v26, %s4997_s9  ;;  %v2327_v26 = vor.u32 %v2326_v42, %v5933_v63  ;;  %v2361_v43 = vrot.slane %v2359_v32, 4  ;;  %v2270_v45 = vrot.slane %v2269_v34, 4  ;;  %v2341_v34 = vor.u32 %v2340_v24, %v2337_v47 }
 0x153   : > { %2085 = vrot.lane.b32.xlu1 %v1997_v30, %s4997_s9  ;;  %v2330_v30 = vshll.u32 %v2180_v8, 16 }
 0x154   : > { %2075 = vrot.lane.b32.xlu2 %v1992_v20, %s4997_s9  ;;  %v1883_v3 = vpop.permute.xlu0 %1882  ;;  %v2239_v20 = vshrl.u32 %v2169_v7, 16  ;;  %v2398_v7 = vrot.slane %v2396_v15, 4 }
 0x155   : > { %v1873_v39 = vpop.permute.xlu1 %1872  ;;  %1960 = vst.msk [vmem:[#allocation3 + $0x4c] sm:$0xf] %vm1940_vm1, %v1883_v3  ;;  %v2362_v3 = vshll.u32 %v2184_v16, 16  ;;  %v2332_v38 = vrot.slane %v2330_v30, 5  ;;  %v2178_v30 = vld [vmem:[#allocation2 + $0x3c] sm:$0xf] }
 0x156   : > { %1955 = vst.msk [vmem:[#allocation3 + $0x38] sm:$0xf] %vm1940_vm1, %v1873_v39  ;;  %v1881_v53 = vpop.permute.xlu2 %1880  ;;  %v2272_v39 = vshll.u32 %v5941_v25, 16  ;;  %v2241_v33 = vrot.slane %v2239_v20, 4 }
 0x157   : > { %1959 = vst.msk [vmem:[#allocation3 + $0x48] sm:$0xf] %vm1940_vm1, %v1881_v53  ;;  %v2001_v53 = vld [vmem:[#allocation2 + $0xb4] sm:$0xf] }
 0x158   : > { %v5955_v62 = vrot.slane %v2272_v39, 5  ;;  %v2245_v9 = vor.u32 %v2244_v46, %v2241_v33  ;;  %v2311_v33 = vshrl.u32 %v2178_v30, 16  ;;  %v2314_v46 = vshll.u32 %v2178_v30, 16 }
 0x15a   : > { %2598 = vrot.lane.b32.xlu0 %v2227_v29, %s4998_s14  ;;  %v2328_v29 = vrot.slane %v2327_v26, 4  ;;  %v2275_v56 = vsel %vm5119_vm9, %v2270_v45, %v5955_v62  ;;  %v2246_v42 = vrot.slane %v2245_v9, 4  ;;  %v5975_v26 = vld [vmem:[#allocation2 + $0x4c] sm:$0xf]  ;;  %v5992_v45 = vld [vmem:[#allocation2 + $0x7c] sm:$0xf] }
 0x15b   : > { %2091 = vrot.lane.b32.xlu1 %v2000_v41, %s4997_s9  ;;  %v2177_v41 = vld [vmem:[#allocation2 + $0x38] sm:$0x1]  ;;  %v2344_v39 = vshll.u32 %v5975_v26, 16  ;;  %v2313_v9 = vrot.slane %v2311_v33, 4  ;;  %v2440_v15 = vshll.u32 %v5992_v45, 16 }
 0x15c   : > { %2081 = vrot.lane.b32.xlu2 %v1995_v44, %s4997_s9  ;;  %v1889_v5 = vpop.permute.xlu0 %1888  ;;  %v2364_v44 = vrot.slane %v2362_v3, 5  ;;  %v2333_v18 = vsel %vm5119_vm9, %v2328_v29, %v2332_v38  ;;  %v2306_v14 = vshll.u32 %v2177_v41, 16  ;;  %v2251_v38 = vsel %vm5119_vm9, %v2246_v42, %v5916_v21 }
 0x15d   : > { %v1879_v50 = vpop.permute.xlu1 %1878  ;;  %1963 = vst.msk [vmem:[#allocation3 + $0x58] sm:$0xf] %vm1940_vm1, %v1889_v5  ;;  %v5995_v21 = vrot.slane %v2344_v39, 5  ;;  %v2187_v39 = vld [vmem:[#allocation2 + $0x60] sm:$0xf] }
 0x15e   : > { %1958 = vst.msk [vmem:[#allocation3 + $0x44] sm:$0xf] %vm1940_vm1, %v1879_v50  ;;  %v1887_v27 = vpop.permute.xlu2 %1886  ;;  %v2303_v50 = vor.u32 %v2302_v28, %v5937_v35  ;;  %v2365_v22 = vor.u32 %v2364_v44, %v2361_v43  ;;  %v2374_v28 = vrot.slane %v2372_v49, 4 }
 0x15f   : > { %1962 = vst.msk [vmem:[#allocation3 + $0x54] sm:$0xf] %vm1940_vm1, %v1887_v27  ;;  %v2368_v27 = vshll.u32 %v2185_v37, 16 }
 0x160   : > { %v2304_v59 = vrot.slane %v2303_v50, 4  ;;  %v2366_v13 = vrot.slane %v2365_v22, 4  ;;  %v2186_v50 = vld [vmem:[#allocation2 + $0x5c] sm:$0x1]  ;;  %v2316_v22 = vrot.slane %v2314_v46, 5 }
 0x161   : > { %v5969_v35 = vrot.slane %v2368_v27, 5  ;;  %v2378_v42 = vshll.u32 %v2186_v50, 16 }
 0x162   : > { %2604 = vrot.lane.b32.xlu0 %v2261_v55, %s4998_s14  ;;  %v2392_v55 = vshll.u32 %v2188_v17, 16  ;;  %v2342_v17 = vrot.slane %v2341_v34, 4 }
 0x163   : > { %2097 = vrot.lane.b32.xlu1 %v2003_v54, %s4997_s9  ;;  %v2276_v54 = vshrl.u32 %v5941_v25, 16  ;;  %v2371_v32 = vsel %vm5119_vm9, %v2366_v13, %v5969_v35 }
 0x164   : > { %2087 = vrot.lane.b32.xlu2 %v1998_v19, %s4997_s9  ;;  %v1895_v51 = vpop.permute.xlu0 %1894  ;;  %v2308_v19 = vrot.slane %v2306_v14, 5  ;;  %v5971_v8 = vrot.slane %v2392_v55, 5  ;;  %v2375_v14 = vor.u32 %v2374_v28, %v5969_v35 }
 0x165   : > { %v1885_v0 = vpop.permute.xlu1 %1884  ;;  %1966 = vst.msk [vmem:[#allocation3 + $0x64] sm:$0xf] %vm1940_vm1, %v1895_v51  ;;  %v2193_v51 = vld [vmem:[#allocation2 + $0x78] sm:$0xf]  ;;  %v2278_v16 = vrot.slane %v2276_v54, 4 }
 0x166   : > { %1961 = vst.msk [vmem:[#allocation3 + $0x50] sm:$0xf] %vm1940_vm1, %v1885_v0  ;;  %v1893_v60 = vpop.permute.xlu2 %1892  ;;  %v2189_v0 = vld [vmem:[#allocation2 + $0x68] sm:$0x1]  ;;  %v2431_v20 = vshrl.u32 %v2193_v51, 16  ;;  %v2434_v52 = vshll.u32 %v2193_v51, 16  ;;  %v2399_v3 = vor.u32 %v2398_v7, %v5971_v8  ;;  %v2317_v7 = vor.u32 %v2316_v22, %v2313_v9 }
 0x167   : > { %1965 = vst.msk [vmem:[#allocation3 + $0x60] sm:$0xf] %vm1940_vm1, %v1893_v60  ;;  %v2174_v60 = vld [vmem:[#allocation2 + $0x2c] sm:$0x1]  ;;  %v2376_v35 = vrot.slane %v2375_v14, 4 }
 0x168   : > { %v2282_v29 = vshll.u32 %v2174_v60, 16  ;;  %v2433_v41 = vrot.slane %v2431_v20, 4  ;;  %v2436_v43 = vrot.slane %v2434_v52, 5  ;;  %v2400_v44 = vrot.slane %v2399_v3, 4  ;;  %v2198_v20 = vld [vmem:[#allocation2 + $0x8c] sm:$0x1] }
 0x169   : > { %v2380_v60 = vrot.slane %v2378_v42, 5  ;;  %v2474_v46 = vshll.u32 %v2198_v20, 16  ;;  %v2206_v14 = vld [vmem:[#allocation2 + $0xac] sm:$0xf]  ;;  %v2195_v22 = vld [vmem:[#allocation2 + $0x80] sm:$0x1] }
 0x16a   : > { %2610 = vrot.lane.b32.xlu0 %v2299_v12, %s4998_s14  ;;  %v2309_v12 = vsel %vm5119_vm9, %v2304_v59, %v2308_v19  ;;  %v2284_v48 = vrot.slane %v2282_v29, 5  ;;  %v2437_v55 = vor.u32 %v2436_v43, %v2433_v41  ;;  %v2347_v59 = vsel %vm5119_vm9, %v2342_v17, %v5995_v21 }
 0x16b   : > { %2600 = vrot.lane.b32.xlu1 %v2237_v31, %s4998_s14  ;;  %v2402_v31 = vshll.u32 %v2189_v0, 16  ;;  %v2348_v19 = vshrl.u32 %v5975_v26, 16  ;;  %v2202_v0 = vld [vmem:[#allocation2 + $0x9c] sm:$0xf]  ;;  %v2381_v41 = vsel %vm5119_vm9, %v2376_v35, %v2380_v60  ;;  %v2444_v43 = vshrl.u32 %v5992_v45, 16 }
 0x16c   : > { %2093 = vrot.lane.b32.xlu2 %v2001_v53, %s4997_s9  ;;  %v1901_v40 = vpop.permute.xlu0 %1900  ;;  %v2279_v53 = vor.u32 %v2278_v16, %v5955_v62  ;;  %v2190_v62 = vld [vmem:[#allocation2 + $0x6c] sm:$0xf]  ;;  %v2438_v51 = vrot.slane %v2437_v55, 4  ;;  %v2506_v29 = vshll.u32 %v2202_v0, 16  ;;  %v2386_v17 = vshll.u32 %v2187_v39, 16 }
 0x16d   : > { %v1891_v5 = vpop.permute.xlu1 %1890  ;;  %1969 = vst.msk [vmem:[#allocation3 + $0x70] sm:$0xf] %vm1940_vm1, %v1901_v40  ;;  %v2404_v40 = vrot.slane %v2402_v31, 5  ;;  %v2410_v54 = vshll.u32 %v2190_v62, 16  ;;  %v2350_v30 = vrot.slane %v2348_v19, 4  ;;  %v2476_v50 = vrot.slane %v2474_v46, 5 }
 0x16e   : > { %1964 = vst.msk [vmem:[#allocation3 + $0x5c] sm:$0xf] %vm1940_vm1, %v1891_v5  ;;  %v1899_v10 = vpop.permute.xlu2 %1898  ;;  %v2280_v5 = vrot.slane %v2279_v53, 4  ;;  %v2503_v53 = vshrl.u32 %v2202_v0, 16  ;;  %v2199_v55 = vld [vmem:[#allocation2 + $0x90] sm:$0xf] }
 0x16f   : > { %1968 = vst.msk [vmem:[#allocation3 + $0x6c] sm:$0xf] %vm1940_vm1, %v1899_v10  ;;  %v2197_v10 = vld [vmem:[#allocation2 + $0x88] sm:$0xf]  ;;  %v2405_v23 = vsel %vm5119_vm9, %v2400_v44, %v2404_v40  ;;  %v2412_v47 = vrot.slane %v2410_v54, 5  ;;  %v2351_v44 = vor.u32 %v2350_v30, %v5995_v21  ;;  %v2536_v42 = vshll.u32 %v2206_v14, 16 }
 0x170   : > { %v2464_v57 = vshll.u32 %v2197_v10, 16  ;;  %v2285_v13 = vsel %vm5119_vm9, %v2280_v5, %v2284_v48  ;;  %v6037_v5 = vld [vmem:[#allocation2 + $0xa0] sm:$0xf]  ;;  %v2505_v48 = vrot.slane %v2503_v53, 4 }
 0x171   : > { %v2352_v9 = vrot.slane %v2351_v44, 4  ;;  %v6060_v20 = vrot.slane %v2536_v42, 5  ;;  %v2211_v53 = vld [vmem:[#allocation2 + $0xc0] sm:$0xf]  ;;  %v2192_v44 = vld [vmem:[#allocation2 + $0x74] sm:$0x1] }
 0x172   : > { %2616 = vrot.lane.b32.xlu0 %v2333_v18, %s4998_s14  ;;  %v6014_v24 = vrot.slane %v2464_v57, 5  ;;  %v2512_v57 = vshll.u32 %v6037_v5, 16 }
 0x173   : > { %2606 = vrot.lane.b32.xlu1 %v2275_v56, %s4998_s14  ;;  %v2407_v56 = vshrl.u32 %v2190_v62, 16 }
 0x174   : > { %2099 = vrot.lane.b32.xlu2 %v2004_v58, %s4997_s9  ;;  %v1907_v11 = vpop.permute.xlu0 %1906  ;;  %v2468_v58 = vshrl.u32 %v2197_v10, 16  ;;  %v2508_v10 = vrot.slane %v2506_v29, 5  ;;  %s6807_s9 = scalar_lea.vmem %s6924_s1, %s4767_s20 }
 0x175   : > { %v1897_v25 = vpop.permute.xlu1 %1896  ;;  %1972 = vst.msk [vmem:[#allocation3 + $0x7c] sm:$0xf] %vm1940_vm1, %v1907_v11  ;;  %v6011_v11 = vrot.slane %v2440_v15, 5  ;;  %v2409_v49 = vrot.slane %v2407_v56, 4 }
 0x176   : > { %1967 = vst.msk [vmem:[#allocation3 + $0x68] sm:$0xf] %vm1940_vm1, %v1897_v25  ;;  %v1905_v36 = vpop.permute.xlu2 %1904  ;;  %v2470_v16 = vrot.slane %v2468_v58, 4  ;;  %v562_v25 = vld [vmem:[#allocation2 + $0xc8] sm:$0x1]  ;;  %v841_v58 = vrot.slane %v5902_v6, 4  ;;  %v2509_v19 = vor.u32 %v2508_v10, %v2505_v48 }
 0x177   : > { %1971 = vst.msk [vmem:[#allocation3 + $0x78] sm:$0xf] %vm1940_vm1, %v1905_v36  ;;  %v6017_v36 = vld [vmem:[#allocation2 + $0x70] sm:$0xf]  ;;  %v563_v3 = vsel %vm5060_vm5, 0, %v562_v25  ;;  %v2443_v34 = vsel %vm5119_vm9, %v2438_v51, %v6011_v11  ;;  %v2482_v51 = vshll.u32 %v2199_v55, 16 }
 0x178   : > { %v2416_v28 = vshll.u32 %v6017_v36, 16  ;;  %v2471_v33 = vor.u32 %v2470_v16, %v6014_v24  ;;  %564 = vst [vmem:[#allocation2 + $0xc8] sm:$0x1] %v563_v3  ;;  %v2450_v6 = vshll.u32 %v2195_v22, 16  ;;  %v2420_v16 = vshrl.u32 %v6017_v36, 16 }
 0x179   : > { %v2510_v30 = vrot.slane %v2509_v19, 4  ;;  %v2484_v36 = vrot.slane %v2482_v51, 5  ;;  %v2575_v48 = vshrl.u32 %v2211_v53, 16  ;;  %v2578_v10 = vshll.u32 %v2211_v53, 16  ;;  %v6108_v53 = vld [vmem:[#allocation2 + $0x10] sm:$0xf] }
 0x17a   : > { %2622 = vrot.lane.b32.xlu0 %v2371_v32, %s4998_s14  ;;  %v2183_v32 = vld [vmem:[#allocation2 + $0x50] sm:$0x1]  ;;  %v6040_v45 = vrot.slane %v2416_v28, 5  ;;  %v2472_v21 = vrot.slane %v2471_v33, 4  ;;  %v2422_v28 = vrot.slane %v2420_v16, 4 }
 0x17b   : > { %2612 = vrot.lane.b32.xlu1 %v2309_v12, %s4998_s14  ;;  %v2318_v12 = vrot.slane %v2317_v7, 4  ;;  %v2354_v62 = vshll.u32 %v2183_v32, 16  ;;  %v2479_v7 = vshrl.u32 %v2199_v55, 16  ;;  %v2207_v32 = vld [vmem:[#allocation2 + $0xb0] sm:$0x1] }
 0x17c   : > { %2602 = vrot.lane.b32.xlu2 %v2251_v38, %s4998_s14  ;;  %v2042_v37 = vpop.permute.xlu0 %2041  ;;  %v2413_v38 = vor.u32 %v2412_v47, %v2409_v49  ;;  %v2477_v35 = vsel %vm5119_vm9, %v2472_v21, %v2476_v50  ;;  %v2196_v33 = vld [vmem:[#allocation2 + $0x84] sm:$0xf] }
 0x17d   : > { %v1903_v18 = vpop.permute.xlu1 %1902  ;;  %2136 = vst.msk [vmem:[#allocation3 + $0x8] sm:$0xf] %vm2133_vm0, %v2042_v37  ;;  %v2323_v40 = vsel %vm5119_vm9, %v2318_v12, %v5933_v63  ;;  %v2383_v37 = vshrl.u32 %v2187_v39, 16  ;;  %v2356_v56 = vrot.slane %v2354_v62, 5  ;;  %v6066_v39 = vld [vmem:[#allocation2 + $0x94] sm:$0xf] }
 0x17e   : > { %1970 = vst.msk [vmem:[#allocation3 + $0x74] sm:$0xf] %vm1940_vm1, %v1903_v18  ;;  %v2040_v27 = vpop.permute.xlu2 %2039  ;;  %v2414_v18 = vrot.slane %v2413_v38, 4  ;;  %v2546_v62 = vshll.u32 %v2207_v32, 16  ;;  %v2455_v21 = vshrl.u32 %v2196_v33, 16  ;;  %v2458_v50 = vshll.u32 %v2196_v33, 16 }
 0x17f   : > { %2135 = vst.msk [vmem:[#allocation3 + $0x4] sm:$0xf] %vm2133_vm0, %v2040_v27  ;;  %v2446_v27 = vrot.slane %v2444_v43, 4  ;;  %v2385_v54 = vrot.slane %v2383_v37, 4  ;;  %v2357_v0 = vsel %vm5119_vm9, %v2352_v9, %v2356_v56  ;;  %v1002_v60 = vld [vmem:[#allocation2 + $0xc8] sm:$0x1] }
 0x180   : > { %v2419_v49 = vsel %vm5119_vm9, %v2414_v18, %v6040_v45  ;;  %v1003_v12 = vsel %vm5045_vm3, %v841_v58, %v1002_v60  ;;  %v2516_v43 = vshrl.u32 %v6037_v5, 16  ;;  %v2548_v22 = vrot.slane %v2546_v62, 5  ;;  %v2204_v56 = vld [vmem:[#allocation2 + $0xa4] sm:$0x1] }
 0x181   : > { %v2447_v47 = vor.u32 %v2446_v27, %v6011_v11  ;;  %v2481_v11 = vrot.slane %v2479_v7, 4  ;;  %1004 = vst [vmem:[#allocation2 + $0xc8] sm:$0x1] %v1003_v12  ;;  %v2460_v58 = vrot.slane %v2458_v50, 5  ;;  %v2492_v60 = vshrl.u32 %v6066_v39, 16 }
 0x182   : > { %2628 = vrot.lane.b32.xlu0 %v2405_v23, %s4998_s14  ;;  %v2388_v23 = vrot.slane %v2386_v17, 5  ;;  %v2488_v17 = vshll.u32 %v6066_v39, 16  ;;  %v2518_v27 = vrot.slane %v2516_v43, 4 }
 0x183   : > { %2618 = vrot.lane.b32.xlu1 %v2347_v59, %s4998_s14  ;;  %v2485_v37 = vor.u32 %v2484_v36, %v2481_v11  ;;  %v2494_v39 = vrot.slane %v2492_v60, 4 }
 0x184   : > { %2608 = vrot.lane.b32.xlu2 %v2285_v13, %s4998_s14  ;;  %v2048_v26 = vpop.permute.xlu0 %2047  ;;  %v2540_v13 = vshrl.u32 %v2206_v14, 16  ;;  %v2389_v25 = vor.u32 %v2388_v23, %v2385_v54  ;;  %v2423_v14 = vor.u32 %v2422_v28, %v6040_v45  ;;  %v2577_v54 = vrot.slane %v2575_v48, 4  ;;  %v6088_v45 = vld [vmem:[#allocation2 + $0xc4] sm:$0xf]  ;;  %v2201_v28 = vld [vmem:[#allocation2 + $0x98] sm:$0x1] }
 0x185   : > { %v2038_v52 = vpop.permute.xlu1 %2037  ;;  %2139 = vst.msk [vmem:[#allocation3 + $0x14] sm:$0xf] %vm2133_vm0, %v2048_v26  ;;  %v6057_v26 = vrot.slane %v2512_v57, 5  ;;  %v2486_v55 = vrot.slane %v2485_v37, 4  ;;  %v2580_v23 = vrot.slane %v2578_v10, 5  ;;  %v2588_v62 = vshrl.u32 %v6088_v45, 16 }
 0x186   : > { %2134 = vst.msk [vmem:[#allocation3] sm:$0xf] %vm2133_vm0, %v2038_v52  ;;  %v2046_v31 = vpop.permute.xlu2 %2045  ;;  %v2542_v52 = vrot.slane %v2540_v13, 4  ;;  %v2390_v38 = vrot.slane %v2389_v25, 4  ;;  %v2424_v42 = vrot.slane %v2423_v14, 4  ;;  %v2498_v48 = vshll.u32 %v2201_v28, 16 }
 0x187   : > { %2138 = vst.msk [vmem:[#allocation3 + $0x10] sm:$0xf] %vm2133_vm0, %v2046_v31  ;;  %v2448_v31 = vrot.slane %v2447_v47, 4  ;;  %v2519_v51 = vor.u32 %v2518_v27, %v6057_v26  ;;  %v2581_v47 = vor.u32 %v2580_v23, %v2577_v54  ;;  %v2729_v10 = vld [vmem:[#allocation2 + $0x14] sm:$0x1] }
 0x188   : > { %v2395_v5 = vsel %vm5119_vm9, %v2390_v38, %v5971_v8  ;;  %v2457_v8 = vrot.slane %v2455_v21, 4  ;;  %v2209_v38 = vld [vmem:[#allocation2 + $0xb8] sm:$0xf] }
 0x189   : > { %v2582_v11 = vrot.slane %v2581_v47, 4  ;;  %v2560_v37 = vshll.u32 %v2209_v38, 16 }
 0x18a   : > { %2634 = vrot.lane.b32.xlu0 %v2443_v34, %s4998_s14  ;;  %v2452_v34 = vrot.slane %v2450_v6, 5  ;;  %v2584_v6 = vshll.u32 %v6088_v45, 16 }
 0x18b   : > { %2624 = vrot.lane.b32.xlu1 %v2381_v41, %s4998_s14  ;;  %v2515_v41 = vsel %vm5119_vm9, %v2510_v30, %v6057_v26  ;;  %v2461_v30 = vor.u32 %v2460_v58, %v2457_v8  ;;  %v2520_v26 = vrot.slane %v2519_v51, 4 }
 0x18c   : > { %2614 = vrot.lane.b32.xlu2 %v2323_v40, %s4998_s14  ;;  %v2054_v63 = vpop.permute.xlu0 %2053  ;;  %v2543_v40 = vor.u32 %v2542_v52, %v6060_v20  ;;  %v2453_v18 = vsel %vm5119_vm9, %v2448_v31, %v2452_v34  ;;  %v6105_v36 = vrot.slane %v2584_v6, 5 }
 0x18d   : > { %v2044_v15 = vpop.permute.xlu1 %2043  ;;  %2142 = vst.msk [vmem:[#allocation3 + $0x20] sm:$0xf] %vm2133_vm0, %v2054_v63  ;;  %v2426_v63 = vshll.u32 %v2192_v44, 16  ;;  %v2462_v34 = vrot.slane %v2461_v30, 4 }
 0x18e   : > { %2137 = vst.msk [vmem:[#allocation3 + $0xc] sm:$0xf] %vm2133_vm0, %v2044_v15  ;;  %v2052_v59 = vpop.permute.xlu2 %2051  ;;  %v2544_v9 = vrot.slane %v2543_v40, 4  ;;  %v6085_v15 = vrot.slane %v2488_v17, 5  ;;  %v2587_v43 = vsel %vm5119_vm9, %v2582_v11, %v6105_v36  ;;  %v2825_v40 = vrot.slane %v6108_v53, 5 }
 0x18f   : > { %2141 = vst.msk [vmem:[#allocation3 + $0x1c] sm:$0xf] %vm2133_vm0, %v2052_v59  ;;  %v2208_v59 = vld [vmem:[#allocation2 + $0xb4] sm:$0xf]  ;;  %v2428_v13 = vrot.slane %v2426_v63, 5  ;;  %v2828_v63 = vrot.slane %v2729_v10, 5 }
 0x190   : > { %v2549_v7 = vsel %vm5119_vm9, %v2544_v9, %v2548_v22  ;;  %v2551_v16 = vshrl.u32 %v2208_v59, 16  ;;  %v2491_v25 = vsel %vm5119_vm9, %v2486_v55, %v6085_v15  ;;  %v2495_v17 = vor.u32 %v2494_v39, %v6085_v15  ;;  %v2743_v10 = vld [vmem:[#allocation2 + $0x4c] sm:$0xf] }
 0x191   : > { %v2429_v52 = vsel %vm5119_vm9, %v2424_v42, %v2428_v13  ;;  %v2827_v14 = vrot.slane %v2825_v40, 4  ;;  %v2562_v22 = vrot.slane %v2560_v37, 5  ;;  %v2500_v55 = vrot.slane %v2498_v48, 5  ;;  %v2734_v42 = vld [vmem:[#allocation2 + $0x28] sm:$0xf] }
 0x192   : > { %2640 = vrot.lane.b32.xlu0 %v2477_v35, %s4998_s14  ;;  %v2553_v32 = vrot.slane %v2551_v16, 4  ;;  %v2496_v27 = vrot.slane %v2495_v17, 4  ;;  %v2590_v15 = vrot.slane %v2588_v62, 4  ;;  %v2564_v13 = vshrl.u32 %v2209_v38, 16  ;;  %v2742_v48 = vld [vmem:[#allocation2 + $0x48] sm:$0xe] }
 0x193   : > { %2630 = vrot.lane.b32.xlu1 %v2419_v49, %s4998_s14  ;;  %v2522_v49 = vshll.u32 %v2204_v56, 16  ;;  %v2829_v8 = vsel %vm5610_vm14, %v2827_v14, %v2828_v63  ;;  %v2860_v14 = vrot.slane %v2743_v10, 5 }
 0x194   : > { %2620 = vrot.lane.b32.xlu2 %v2357_v0, %s4998_s14  ;;  %v2060_v3 = vpop.permute.xlu0 %2059  ;;  %v2554_v0 = vshll.u32 %v2208_v59, 16  ;;  %v2591_v45 = vor.u32 %v2590_v15, %v6105_v36  ;;  %v2566_v30 = vrot.slane %v2564_v13, 4 }
 0x195   : > { %v2050_v29 = vpop.permute.xlu1 %2049  ;;  %2145 = vst.msk [vmem:[#allocation3 + $0x2c] sm:$0xf] %vm2133_vm0, %v2060_v3  ;;  %v2524_v12 = vrot.slane %v2522_v49, 5  ;;  %v2839_v49 = vrot.slane %v2734_v42, 5 }
 0x196   : > { %2140 = vst.msk [vmem:[#allocation3 + $0x18] sm:$0xf] %vm2133_vm0, %v2050_v29  ;;  %v2058_v46 = vpop.permute.xlu2 %2057  ;;  %v2556_v3 = vrot.slane %v2554_v0, 5  ;;  %v2592_v6 = vrot.slane %v2591_v45, 4  ;;  %v6142_v0 = vld [vmem:[#allocation2 + $0x34] sm:$0xf]  ;;  %v2567_v39 = vor.u32 %v2566_v30, %v2562_v22 }
 0x197   : > { %2144 = vst.msk [vmem:[#allocation3 + $0x28] sm:$0xf] %vm2133_vm0, %v2058_v46  ;;  %v2205_v46 = vld [vmem:[#allocation2 + $0xa8] sm:$0xf]  ;;  %v2846_v11 = vrot.slane %v6142_v0, 5 }
 0x198   : > { %v2557_v44 = vor.u32 %v2556_v3, %v2553_v32  ;;  %v2527_v21 = vshrl.u32 %v2205_v46, 16  ;;  %v2530_v50 = vshll.u32 %v2205_v46, 16  ;;  %v2738_v32 = vld [vmem:[#allocation2 + $0x38] sm:$0x1]  ;;  %v2740_v45 = vld [vmem:[#allocation2 + $0x40] sm:$0xf] }
 0x199   : > { %v2848_v38 = vrot.slane %v2846_v11, 4  ;;  %v2849_v28 = vrot.slane %v2738_v32, 5  ;;  %v2853_v53 = vrot.slane %v2740_v45, 5  ;;  %v2744_v30 = vld [vmem:[#allocation2 + $0x50] sm:$0x1]  ;;  %v2862_v32 = vrot.slane %v2860_v14, 4 }
 0x19a   : > { %2646 = vrot.lane.b32.xlu0 %v2515_v41, %s4998_s14  ;;  %v2525_v41 = vsel %vm5119_vm9, %v2520_v26, %v2524_v12  ;;  %v2529_v54 = vrot.slane %v2527_v21, 4  ;;  %v2532_v23 = vrot.slane %v2530_v50, 5  ;;  %v2210_v26 = vld [vmem:[#allocation2 + $0xbc] sm:$0x1]  ;;  %v2735_v21 = vld [vmem:[#allocation2 + $0x2c] sm:$0x1] }
 0x19b   : > { %2636 = vrot.lane.b32.xlu1 %v2453_v18, %s4998_s14  ;;  %v2467_v18 = vsel %vm5119_vm9, %v2462_v34, %v6014_v24  ;;  %v2213_v24 = vld [vmem:[#allocation2 + $0xc8] sm:$0x1]  ;;  %v2731_v34 = vld [vmem:[#allocation2 + $0x1c] sm:$0xf]  ;;  %v2850_v37 = vsel %vm5610_vm14, %v2848_v38, %v2849_v28  ;;  %v2727_v50 = vld [vmem:[#allocation2 + $0xc] sm:$0xe] }
 0x19c   : > { %2626 = vrot.lane.b32.xlu2 %v2395_v5, %s4998_s14  ;;  %v2066_v57 = vpop.permute.xlu0 %2065  ;;  %v2558_v5 = vrot.slane %v2557_v44, 4  ;;  %v2594_v59 = vshll.u32 %v2213_v24, 16  ;;  %v4637_v15 = vrot.slane %v2727_v50, 9 }
 0x19d   : > { %v2056_v19 = vpop.permute.xlu1 %2055  ;;  %2148 = vst.msk [vmem:[#allocation3 + $0x38] sm:$0xf] %vm2133_vm0, %v2066_v57 }
 0x19e   : > { %2143 = vst.msk [vmem:[#allocation3 + $0x24] sm:$0xf] %vm2133_vm0, %v2056_v19  ;;  %v2064_v35 = vpop.permute.xlu2 %2063  ;;  %v2563_v58 = vsel %vm5119_vm9, %v2558_v5, %v2562_v22  ;;  %v2733_v19 = vld [vmem:[#allocation2 + $0x24] sm:$0xe]  ;;  %v2596_v16 = vrot.slane %v2594_v59, 5  ;;  %v4642_v5 = vrot.slane %v2742_v48, 9 }
 0x19f   : > { %2147 = vst.msk [vmem:[#allocation3 + $0x34] sm:$0xf] %vm2133_vm0, %v2064_v35  ;;  %v2501_v35 = vsel %vm5119_vm9, %v2496_v27, %v2500_v55  ;;  %v4639_v51 = vrot.slane %v2733_v19, 9  ;;  %v2842_v22 = vrot.slane %v2735_v21, 5  ;;  %v6172_v27 = vld [vmem:[#allocation2 + $0x58] sm:$0xf] }
 0x1a0   : > { %v2597_v36 = vsel %vm5119_vm9, %v2592_v6, %v2596_v16  ;;  %v2861_v24 = vsel %vm5610_vm14, %v4642_v5, %v2860_v14  ;;  %v2732_v59 = vld [vmem:[#allocation2 + $0x20] sm:$0x1]  ;;  %v2751_v16 = vld [vmem:[#allocation2 + $0x6c] sm:$0xe]  ;;  %v2760_v14 = vld [vmem:[#allocation2 + $0x90] sm:$0xe] }
 0x1a1   : > { %v2840_v12 = vsel %vm5610_vm14, %v4639_v51, %v2839_v49  ;;  %v2835_v51 = vrot.slane %v2732_v59, 5 }
 0x1a2   : > { %2652 = vrot.lane.b32.xlu0 %v2549_v7, %s4998_s14  ;;  %v2533_v7 = vor.u32 %v2532_v23, %v2529_v54  ;;  %v2867_v54 = vrot.slane %v6172_v27, 5 }
 0x1a3   : > { %2642 = vrot.lane.b32.xlu1 %v2491_v25, %s4998_s14 }
 0x1a4   : > { %2632 = vrot.lane.b32.xlu2 %v2429_v52, %s4998_s14  ;;  %v2072_v31 = vpop.permute.xlu0 %2071  ;;  %v2534_v60 = vrot.slane %v2533_v7, 4  ;;  %v2869_v19 = vrot.slane %v2867_v54, 4 }
 0x1a5   : > { %v2062_v29 = vpop.permute.xlu1 %2061  ;;  %2151 = vst.msk [vmem:[#allocation3 + $0x44] sm:$0xf] %vm2133_vm0, %v2072_v31  ;;  %v2730_v31 = vld [vmem:[#allocation2 + $0x18] sm:$0xe] }
 0x1a6   : > { %2146 = vst.msk [vmem:[#allocation3 + $0x30] sm:$0xf] %vm2133_vm0, %v2062_v29  ;;  %v2070_v33 = vpop.permute.xlu2 %2069  ;;  %v2539_v3 = vsel %vm5119_vm9, %v2534_v60, %v6060_v20  ;;  %v2570_v29 = vshll.u32 %v2210_v26, 16  ;;  %v4638_v46 = vrot.slane %v2730_v31, 9  ;;  %v2568_v20 = vrot.slane %v2567_v39, 4 }
 0x1a7   : > { %2150 = vst.msk [vmem:[#allocation3 + $0x40] sm:$0xf] %vm2133_vm0, %v2070_v33  ;;  %v4645_v26 = vrot.slane %v2751_v16, 9  ;;  %v6203_v31 = vld [vmem:[#allocation2 + $0x7c] sm:$0xf] }
 0x1a8   : > { %v2572_v44 = vrot.slane %v2570_v29, 5  ;;  %v2888_v28 = vrot.slane %v6203_v31, 5 }
 0x1aa   : > { %2658 = vrot.lane.b32.xlu0 %v2587_v43, %s4998_s14 }
 0x1ab   : > { %2648 = vrot.lane.b32.xlu1 %v2525_v41, %s4998_s14  ;;  %v2832_v41 = vrot.slane %v2731_v34, 5 }
 0x1ac   : > { %2638 = vrot.lane.b32.xlu2 %v2467_v18, %s4998_s14  ;;  %v2078_v9 = vpop.permute.xlu0 %2077  ;;  %v2573_v18 = vsel %vm5119_vm9, %v2568_v20, %v2572_v44  ;;  %v2749_v20 = vld [vmem:[#allocation2 + $0x64] sm:$0xf] }
 0x1ad   : > { %v2068_v56 = vpop.permute.xlu1 %2067  ;;  %2154 = vst.msk [vmem:[#allocation3 + $0x50] sm:$0xf] %vm2133_vm0, %v2078_v9  ;;  %v2833_v17 = vsel %vm5610_vm14, %v4638_v46, %v2832_v41  ;;  %v2841_v9 = vrot.slane %v2839_v49, 4  ;;  %v2756_v46 = vld [vmem:[#allocation2 + $0x80] sm:$0x1]  ;;  %v2874_v10 = vrot.slane %v2749_v20, 5 }
 0x1ae   : > { %2149 = vst.msk [vmem:[#allocation3 + $0x3c] sm:$0xf] %vm2133_vm0, %v2068_v56  ;;  %v2076_v57 = vpop.permute.xlu2 %2075  ;;  %v2741_v44 = vld [vmem:[#allocation2 + $0x44] sm:$0x1] }
 0x1af   : > { %2153 = vst.msk [vmem:[#allocation3 + $0x4c] sm:$0xf] %vm2133_vm0, %v2076_v57  ;;  %v2843_v23 = vsel %vm5610_vm14, %v2841_v9, %v2842_v22  ;;  %v2747_v57 = vld [vmem:[#allocation2 + $0x5c] sm:$0x1]  ;;  %v2753_v22 = vld [vmem:[#allocation2 + $0x74] sm:$0x1] }
 0x1b0   : > { %v2870_v42 = vrot.slane %v2747_v57, 5  ;;  %v2884_v57 = vrot.slane %v2753_v22, 5 }
 0x1b2   : > { %2937 = vrot.lane.b32.xlu0 %v2829_v8, %s4999_s15  ;;  %v2826_v8 = vsel %vm5610_vm14, %v4637_v15, %v2825_v40  ;;  %v2834_v40 = vrot.slane %v2832_v41, 4  ;;  %v4648_v15 = vrot.slane %v2760_v14, 9 }
 0x1b3   : > { %2654 = vrot.lane.b32.xlu1 %v2563_v58, %s4998_s14  ;;  %v2739_v58 = vld [vmem:[#allocation2 + $0x3c] sm:$0xe] }
 0x1b4   : > { %2644 = vrot.lane.b32.xlu2 %v2501_v35, %s4998_s14  ;;  %v2084_v47 = vpop.permute.xlu0 %2083  ;;  %v4641_v35 = vrot.slane %v2739_v58, 9  ;;  %v2836_v60 = vsel %vm5610_vm14, %v2834_v40, %v2835_v51  ;;  %v2758_v40 = vld [vmem:[#allocation2 + $0x88] sm:$0xf] }
 0x1b5   : > { %v2074_v25 = vpop.permute.xlu1 %2073  ;;  %2157 = vst.msk [vmem:[#allocation3 + $0x5c] sm:$0xf] %vm2133_vm0, %v2084_v47  ;;  %v2871_v47 = vsel %vm5610_vm14, %v2869_v19, %v2870_v42  ;;  %v2750_v51 = vld [vmem:[#allocation2 + $0x68] sm:$0x1] }
 0x1b6   : > { %2152 = vst.msk [vmem:[#allocation3 + $0x48] sm:$0xf] %vm2133_vm0, %v2074_v25  ;;  %v2082_v52 = vpop.permute.xlu2 %2081  ;;  %v2854_v6 = vsel %vm5610_vm14, %v4641_v35, %v2853_v53  ;;  %v2752_v25 = vld [vmem:[#allocation2 + $0x70] sm:$0xf]  ;;  %v2765_v35 = vld [vmem:[#allocation2 + $0xa4] sm:$0x1] }
 0x1b7   : > { %2156 = vst.msk [vmem:[#allocation3 + $0x58] sm:$0xf] %vm2133_vm0, %v2082_v52  ;;  %v2736_v52 = vld [vmem:[#allocation2 + $0x30] sm:$0xe] }
 0x1b8   : > { %v4640_v39 = vrot.slane %v2736_v52, 9 }
 0x1ba   : > { %2943 = vrot.lane.b32.xlu0 %v2840_v12, %s4999_s15  ;;  %v2881_v12 = vrot.slane %v2752_v25, 5  ;;  %v2847_v41 = vsel %vm5610_vm14, %v4640_v39, %v2846_v11  ;;  %v2855_v11 = vrot.slane %v2853_v53, 4  ;;  %v2895_v25 = vrot.slane %v2758_v40, 5  ;;  %v2768_v40 = vld [vmem:[#allocation2 + $0xb0] sm:$0x1] }
 0x1bb   : > { %2660 = vrot.lane.b32.xlu1 %v2597_v36, %s4998_s14 }
 0x1bc   : > { %2650 = vrot.lane.b32.xlu2 %v2539_v3, %s4998_s14  ;;  %v2090_v33 = vpop.permute.xlu0 %2089  ;;  %v2863_v3 = vrot.slane %v2744_v30, 5  ;;  %v2882_v38 = vsel %vm5610_vm14, %v4645_v26, %v2881_v12 }
 0x1bd   : > { %v2080_v43 = vpop.permute.xlu1 %2079  ;;  %2160 = vst.msk [vmem:[#allocation3 + $0x68] sm:$0xf] %vm2133_vm0, %v2090_v33 }
 0x1be   : > { %2155 = vst.msk [vmem:[#allocation3 + $0x54] sm:$0xf] %vm2133_vm0, %v2080_v43  ;;  %v2088_v62 = vpop.permute.xlu2 %2087  ;;  %v2864_v33 = vsel %vm5610_vm14, %v2862_v32, %v2863_v3  ;;  %v2748_v43 = vld [vmem:[#allocation2 + $0x60] sm:$0xe]  ;;  %v2762_v3 = vld [vmem:[#allocation2 + $0x98] sm:$0x1] }
 0x1bf   : > { %2159 = vst.msk [vmem:[#allocation3 + $0x64] sm:$0xf] %vm2133_vm0, %v2088_v62  ;;  %v2890_v62 = vrot.slane %v2888_v28, 4  ;;  %v4644_v48 = vrot.slane %v2748_v43, 9 }
 0x1c1   : > { %v2875_v5 = vsel %vm5610_vm14, %v4644_v48, %v2874_v10  ;;  %v2774_v48 = vld [vmem:[#allocation2 + $0xc8] sm:$0x1] }
 0x1c2   : > { %2949 = vrot.lane.b32.xlu0 %v2850_v37, %s4999_s15  ;;  %v2891_v37 = vrot.slane %v2756_v46, 5  ;;  %v2905_v46 = vrot.slane %v2762_v3, 5 }
 0x1c3   : > { %2939 = vrot.lane.b32.xlu1 %v2833_v17, %s4999_s15 }
 0x1c4   : > { %2656 = vrot.lane.b32.xlu2 %v2573_v18, %s4998_s14  ;;  %v2096_v63 = vpop.permute.xlu0 %2095  ;;  %v2856_v18 = vrot.slane %v2741_v44, 5  ;;  %v2892_v50 = vsel %vm5610_vm14, %v2890_v62, %v2891_v37 }
 0x1c5   : > { %v2086_v55 = vpop.permute.xlu1 %2085  ;;  %2163 = vst.msk [vmem:[#allocation3 + $0x74] sm:$0xf] %vm2133_vm0, %v2096_v63  ;;  %v2761_v63 = vld [vmem:[#allocation2 + $0x94] sm:$0xf] }
 0x1c6   : > { %2158 = vst.msk [vmem:[#allocation3 + $0x60] sm:$0xf] %vm2133_vm0, %v2086_v55  ;;  %v2094_v56 = vpop.permute.xlu2 %2093  ;;  %v2857_v9 = vsel %vm5610_vm14, %v2855_v11, %v2856_v18  ;;  %v2745_v55 = vld [vmem:[#allocation2 + $0x54] sm:$0xe]  ;;  %v2767_v11 = vld [vmem:[#allocation2 + $0xac] sm:$0xf] }
 0x1c7   : > { %2162 = vst.msk [vmem:[#allocation3 + $0x70] sm:$0xf] %vm2133_vm0, %v2094_v56  ;;  %v2902_v56 = vrot.slane %v2761_v63, 5  ;;  %v4643_v45 = vrot.slane %v2745_v55, 9  ;;  %v2759_v18 = vld [vmem:[#allocation2 + $0x8c] sm:$0x1] }
 0x1c8   : > { %v2916_v63 = vrot.slane %v2767_v11, 5  ;;  %v3283_v11 = vld [vmem:[#allocation2 + $0x7c] sm:$0xf] }
 0x1c9   : > { %v2903_v19 = vsel %vm5610_vm14, %v4648_v15, %v2902_v56  ;;  %v2868_v53 = vsel %vm5610_vm14, %v4643_v45, %v2867_v54  ;;  %v2876_v54 = vrot.slane %v2874_v10, 4 }
 0x1ca   : > { %2955 = vrot.lane.b32.xlu0 %v2861_v24, %s4999_s15 }
 0x1cb   : > { %2945 = vrot.lane.b32.xlu1 %v2843_v23, %s4999_s15  ;;  %v2883_v23 = vrot.slane %v2881_v12, 4  ;;  %v2769_v12 = vld [vmem:[#allocation2 + $0xb4] sm:$0xe] }
 0x1cc   : > { %2935 = vrot.lane.b32.xlu2 %v2826_v8, %s4999_s15  ;;  %v2599_v13 = vpop.permute.xlu0 %2598  ;;  %v6234_v8 = vld [vmem:[#allocation2 + $0xa0] sm:$0xf]  ;;  %v4651_v39 = vrot.slane %v2769_v12, 9  ;;  %v3068_v12 = vld [vmem:[#allocation2 + $0x28] sm:$0xf] }
 0x1cd   : > { %v2092_v7 = vpop.permute.xlu1 %2091  ;;  %2695 = vst.msk [vmem:[#allocation3] sm:$0xf] %vm2694_vm2, %v2599_v13  ;;  %v2909_v42 = vrot.slane %v6234_v8, 5  ;;  %v2885_v13 = vsel %vm5610_vm14, %v2883_v23, %v2884_v57  ;;  %v2763_v23 = vld [vmem:[#allocation2 + $0x9c] sm:$0xe] }
 0x1ce   : > { %2161 = vst.msk [vmem:[#allocation3 + $0x6c] sm:$0xf] %vm2133_vm0, %v2092_v7  ;;  %v2100_v49 = vpop.permute.xlu2 %2099  ;;  %v2757_v7 = vld [vmem:[#allocation2 + $0x84] sm:$0xe] }
 0x1cf   : > { %2165 = vst.msk [vmem:[#allocation3 + $0x7c] sm:$0xf] %vm2133_vm0, %v2100_v49  ;;  %v2911_v49 = vrot.slane %v2909_v42, 4  ;;  %v4647_v16 = vrot.slane %v2757_v7, 9 }
 0x1d1   : > { %v2896_v26 = vsel %vm5610_vm14, %v4647_v16, %v2895_v25  ;;  %v3065_v16 = vld [vmem:[#allocation2 + $0x18] sm:$0xf] }
 0x1d2   : > { %2961 = vrot.lane.b32.xlu0 %v2871_v47, %s4999_s15  ;;  %v2912_v47 = vrot.slane %v2765_v35, 5  ;;  %v3067_v35 = vld [vmem:[#allocation2 + $0x24] sm:$0xf] }
 0x1d3   : > { %2951 = vrot.lane.b32.xlu1 %v2854_v6, %s4999_s15 }
 0x1d4   : > { %2941 = vrot.lane.b32.xlu2 %v2836_v60, %s4999_s15  ;;  %v2605_v36 = vpop.permute.xlu0 %2604  ;;  %v2877_v60 = vrot.slane %v2750_v51, 5  ;;  %v2913_v52 = vsel %vm5610_vm14, %v2911_v49, %v2912_v47  ;;  %v2918_v47 = vrot.slane %v2916_v63, 4 }
 0x1d5   : > { %v2098_v34 = vpop.permute.xlu1 %2097  ;;  %2698 = vst.msk [vmem:[#allocation3 + $0xc] sm:$0xf] %vm2694_vm2, %v2605_v36  ;;  %v2770_v36 = vld [vmem:[#allocation2 + $0xb8] sm:$0xf] }
 0x1d6   : > { %2164 = vst.msk [vmem:[#allocation3 + $0x78] sm:$0xf] %vm2133_vm0, %v2098_v34  ;;  %v2603_v29 = vpop.permute.xlu2 %2602  ;;  %v2878_v32 = vsel %vm5610_vm14, %v2876_v54, %v2877_v60  ;;  %v2754_v34 = vld [vmem:[#allocation2 + $0x78] sm:$0xe] }
 0x1d7   : > { %2697 = vst.msk [vmem:[#allocation3 + $0x8] sm:$0xf] %vm2694_vm2, %v2603_v29  ;;  %v2923_v29 = vrot.slane %v2770_v36, 5  ;;  %v4646_v20 = vrot.slane %v2754_v34, 9 }
 0x1d9   : > { %v2924_v62 = vsel %vm5610_vm14, %v4651_v39, %v2923_v29  ;;  %v2889_v10 = vsel %vm5610_vm14, %v4646_v20, %v2888_v28  ;;  %v2897_v28 = vrot.slane %v2895_v25, 4  ;;  %v3076_v39 = vld [vmem:[#allocation2 + $0x58] sm:$0xf]  ;;  %v3079_v20 = vld [vmem:[#allocation2 + $0x6c] sm:$0xf] }
 0x1da   : > { %2967 = vrot.lane.b32.xlu0 %v2882_v38, %s4999_s15 }
 0x1db   : > { %2957 = vrot.lane.b32.xlu1 %v2864_v33, %s4999_s15  ;;  %v2904_v33 = vrot.slane %v2902_v56, 4 }
 0x1dc   : > { %2947 = vrot.lane.b32.xlu2 %v2847_v41, %s4999_s15  ;;  %v2611_v17 = vpop.permute.xlu0 %2610  ;;  %v6265_v41 = vld [vmem:[#allocation2 + $0xc4] sm:$0xf] }
 0x1dd   : > { %v2601_v0 = vpop.permute.xlu1 %2600  ;;  %2701 = vst.msk [vmem:[#allocation3 + $0x18] sm:$0xf] %vm2694_vm2, %v2611_v17  ;;  %v2930_v37 = vrot.slane %v6265_v41, 5  ;;  %v2906_v17 = vsel %vm5610_vm14, %v2904_v33, %v2905_v46  ;;  %v3282_v46 = vld [vmem:[#allocation2 + $0x78] sm:$0xf] }
 0x1de   : > { %2696 = vst.msk [vmem:[#allocation3 + $0x4] sm:$0xf] %vm2694_vm2, %v2601_v0  ;;  %v2609_v21 = vpop.permute.xlu2 %2608  ;;  %v2766_v0 = vld [vmem:[#allocation2 + $0xa8] sm:$0xe] }
 0x1df   : > { %2700 = vst.msk [vmem:[#allocation3 + $0x14] sm:$0xf] %vm2694_vm2, %v2609_v21  ;;  %v2932_v21 = vrot.slane %v2930_v37, 4  ;;  %v4650_v14 = vrot.slane %v2766_v0, 9 }
 0x1e1   : > { %v2917_v15 = vsel %vm5610_vm14, %v4650_v14, %v2916_v63  ;;  %v3508_v63 = vshll.u32 %v3283_v11, 16 }
 0x1e2   : > { %2973 = vrot.lane.b32.xlu0 %v2892_v50, %s4999_s15  ;;  %v2933_v50 = vrot.slane %v2774_v48, 5 }
 0x1e3   : > { %2963 = vrot.lane.b32.xlu1 %v2875_v5, %s4999_s15 }
 0x1e4   : > { %2953 = vrot.lane.b32.xlu2 %v2857_v9, %s4999_s15  ;;  %v2617_v24 = vpop.permute.xlu0 %2616  ;;  %v2898_v9 = vrot.slane %v2759_v18, 5  ;;  %v2934_v55 = vsel %vm5610_vm14, %v2932_v21, %v2933_v50  ;;  %v3295_v18 = vld [vmem:[#allocation2 + $0xac] sm:$0xf] }
 0x1e5   : > { %v2607_v58 = vpop.permute.xlu1 %2606  ;;  %2704 = vst.msk [vmem:[#allocation3 + $0x24] sm:$0xf] %vm2694_vm2, %v2617_v24  ;;  %v2771_v24 = vld [vmem:[#allocation2 + $0xbc] sm:$0x1] }
 0x1e6   : > { %2699 = vst.msk [vmem:[#allocation3 + $0x10] sm:$0xf] %vm2694_vm2, %v2607_v58  ;;  %v2615_v59 = vpop.permute.xlu2 %2614  ;;  %v2899_v56 = vsel %vm5610_vm14, %v2897_v28, %v2898_v9  ;;  %v2925_v58 = vrot.slane %v2923_v29, 4  ;;  %v2926_v45 = vrot.slane %v2771_v24, 5  ;;  %v3071_v29 = vld [vmem:[#allocation2 + $0x3c] sm:$0xf] }
 0x1e7   : > { %2703 = vst.msk [vmem:[#allocation3 + $0x20] sm:$0xf] %vm2694_vm2, %v2615_v59  ;;  %v3608_v28 = vshrl.u32 %v3295_v18, 16  ;;  %v3077_v9 = vld [vmem:[#allocation2 + $0x60] sm:$0xf] }
 0x1e9   : > { %v3610_v24 = vrot.slane %v3608_v28, 4 }
 0x1ea   : > { %2979 = vrot.lane.b32.xlu0 %v2903_v19, %s4999_s15  ;;  %v4649_v19 = vrot.slane %v2763_v23, 9 }
 0x1eb   : > { %2969 = vrot.lane.b32.xlu1 %v2885_v13, %s4999_s15 }
 0x1ec   : > { %2959 = vrot.lane.b32.xlu2 %v2868_v53, %s4999_s15  ;;  %v2623_v6 = vpop.permute.xlu0 %2622  ;;  %v2927_v53 = vsel %vm5610_vm14, %v2925_v58, %v2926_v45  ;;  %v2910_v7 = vsel %vm5610_vm14, %v4649_v19, %v2909_v42  ;;  %v3070_v42 = vld [vmem:[#allocation2 + $0x34] sm:$0xf] }
 0x1ed   : > { %v2613_v27 = vpop.permute.xlu1 %2612  ;;  %2707 = vst.msk [vmem:[#allocation3 + $0x30] sm:$0xf] %vm2694_vm2, %v2623_v6  ;;  %v2919_v6 = vrot.slane %v2768_v40, 5 }
 0x1ee   : > { %2702 = vst.msk [vmem:[#allocation3 + $0x1c] sm:$0xf] %vm2694_vm2, %v2613_v27  ;;  %v2621_v30 = vpop.permute.xlu2 %2620  ;;  %v2772_v27 = vld [vmem:[#allocation2 + $0xc0] sm:$0xe] }
 0x1ef   : > { %2706 = vst.msk [vmem:[#allocation3 + $0x2c] sm:$0xf] %vm2694_vm2, %v2621_v30  ;;  %v2920_v25 = vsel %vm5610_vm14, %v2918_v47, %v2919_v6  ;;  %v4652_v30 = vrot.slane %v2772_v27, 9  ;;  %v3259_v6 = vld [vmem:[#allocation2 + $0x1c] sm:$0xf] }
 0x1f1   : > { %v2931_v36 = vsel %vm5610_vm14, %v4652_v30, %v2930_v37  ;;  %v3074_v37 = vld [vmem:[#allocation2 + $0x4c] sm:$0xf] }
 0x1f2   : > { %2985 = vrot.lane.b32.xlu0 %v2913_v52, %s4999_s15 }
 0x1f3   : > { %2975 = vrot.lane.b32.xlu1 %v2896_v26, %s4999_s15  ;;  %v3073_v26 = vld [vmem:[#allocation2 + $0x48] sm:$0xf] }
 0x1f4   : > { %2965 = vrot.lane.b32.xlu2 %v2878_v32, %s4999_s15  ;;  %v2629_v38 = vpop.permute.xlu0 %2628 }
 0x1f5   : > { %v2619_v43 = vpop.permute.xlu1 %2618  ;;  %2710 = vst.msk [vmem:[#allocation3 + $0x3c] sm:$0xf] %vm2694_vm2, %v2629_v38  ;;  %v3066_v38 = vld [vmem:[#allocation2 + $0x1c] sm:$0xf] }
 0x1f6   : > { %2705 = vst.msk [vmem:[#allocation3 + $0x28] sm:$0xf] %vm2694_vm2, %v2619_v43  ;;  %v2627_v44 = vpop.permute.xlu2 %2626 }
 0x1f7   : > { %2709 = vst.msk [vmem:[#allocation3 + $0x38] sm:$0xf] %vm2694_vm2, %v2627_v44  ;;  %v3499_v44 = vshrl.u32 %v3282_v46, 16 }
 0x1f9   : > { %v3501_v48 = vrot.slane %v3499_v44, 4 }
 0x1fa   : > { %2991 = vrot.lane.b32.xlu0 %v2924_v62, %s4999_s15  ;;  %v3502_v62 = vshll.u32 %v3282_v46, 16  ;;  %v3260_v46 = vld [vmem:[#allocation2 + $0x20] sm:$0x1] }
 0x1fb   : > { %2981 = vrot.lane.b32.xlu1 %v2906_v17, %s4999_s15  ;;  %v3069_v17 = vld [vmem:[#allocation2 + $0x30] sm:$0xf] }
 0x1fc   : > { %2971 = vrot.lane.b32.xlu2 %v2889_v10, %s4999_s15  ;;  %v2635_v5 = vpop.permute.xlu0 %2634  ;;  %v3504_v10 = vrot.slane %v3502_v62, 5 }
 0x1fd   : > { %v2625_v31 = vpop.permute.xlu1 %2624  ;;  %2713 = vst.msk [vmem:[#allocation3 + $0x48] sm:$0xf] %vm2694_vm2, %v2635_v5  ;;  %v3082_v5 = vld [vmem:[#allocation2 + $0x7c] sm:$0xf] }
 0x1fe   : > { %2708 = vst.msk [vmem:[#allocation3 + $0x34] sm:$0xf] %vm2694_vm2, %v2625_v31  ;;  %v2633_v22 = vpop.permute.xlu2 %2632  ;;  %v3505_v14 = vor.u32 %v3504_v10, %v3501_v48  ;;  %v3604_v31 = vshll.u32 %v3295_v18, 16  ;;  %v3081_v48 = vld [vmem:[#allocation2 + $0x78] sm:$0xf] }
 0x1ff   : > { %2712 = vst.msk [vmem:[#allocation3 + $0x44] sm:$0xf] %vm2694_vm2, %v2633_v22  ;;  %v3072_v22 = vld [vmem:[#allocation2 + $0x40] sm:$0xf]  ;;  %v3843_v10 = vld [vmem:[#allocation2 + $0x78] sm:$0xe] }
 0x202   : > { %2997 = vrot.lane.b32.xlu0 %v2934_v55, %s4999_s15  ;;  %v3506_v55 = vrot.slane %v3505_v14, 4  ;;  %v4661_v14 = vrot.slane %v3843_v10, 9 }
 0x203   : > { %2987 = vrot.lane.b32.xlu1 %v2917_v15, %s4999_s15  ;;  %v3510_v15 = vrot.slane %v3508_v63, 5 }
 0x204   : > { %2977 = vrot.lane.b32.xlu2 %v2899_v56, %s4999_s15  ;;  %v2641_v57 = vpop.permute.xlu0 %2640  ;;  %v6343_v56 = vrot.slane %v3604_v31, 5 }
 0x205   : > { %v2631_v59 = vpop.permute.xlu1 %2630  ;;  %2716 = vst.msk [vmem:[#allocation3 + $0x54] sm:$0xf] %vm2694_vm2, %v2641_v57  ;;  %v3296_v57 = vld [vmem:[#allocation2 + $0xb0] sm:$0x1] }
 0x206   : > { %2711 = vst.msk [vmem:[#allocation3 + $0x40] sm:$0xf] %vm2694_vm2, %v2631_v59  ;;  %v2639_v13 = vpop.permute.xlu2 %2638  ;;  %v3511_v59 = vsel %vm5119_vm9, %v3506_v55, %v3510_v15  ;;  %v3611_v19 = vor.u32 %v3610_v24, %v6343_v56 }
 0x207   : > { %2715 = vst.msk [vmem:[#allocation3 + $0x50] sm:$0xf] %vm2694_vm2, %v2639_v13  ;;  %v3614_v13 = vshll.u32 %v3296_v57, 16  ;;  %v6386_v57 = vld [vmem:[#allocation2 + $0x1c] sm:$0xf] }
 0x208   : > { %v3612_v40 = vrot.slane %v3611_v19, 4  ;;  %v3857_v19 = vld [vmem:[#allocation2 + $0xb0] sm:$0x1] }
 0x20a   : > { %3133 = vrot.lane.b32.xlu0 %v3067_v35, %s5000_s16  ;;  %v3080_v35 = vld [vmem:[#allocation2 + $0x70] sm:$0xf] }
 0x20b   : > { %2993 = vrot.lane.b32.xlu1 %v2927_v53, %s4999_s15  ;;  %v3512_v53 = vshrl.u32 %v3283_v11, 16 }
 0x20c   : > { %2983 = vrot.lane.b32.xlu2 %v2910_v7, %s4999_s15  ;;  %v2647_v51 = vpop.permute.xlu0 %2646  ;;  %v3075_v7 = vld [vmem:[#allocation2 + $0x54] sm:$0xf] }
 0x20d   : > { %v2637_v49 = vpop.permute.xlu1 %2636  ;;  %2719 = vst.msk [vmem:[#allocation3 + $0x60] sm:$0xf] %vm2694_vm2, %v2647_v51  ;;  %v3616_v51 = vrot.slane %v3614_v13, 5  ;;  %v3514_v47 = vrot.slane %v3512_v53, 4  ;;  %v3917_v53 = vrot.slane %v6386_v57, 5 }
 0x20e   : > { %2714 = vst.msk [vmem:[#allocation3 + $0x4c] sm:$0xf] %vm2694_vm2, %v2637_v49  ;;  %v2645_v8 = vpop.permute.xlu2 %2644  ;;  %v3272_v57 = vld [vmem:[#allocation2 + $0x50] sm:$0x1] }
 0x20f   : > { %2718 = vst.msk [vmem:[#allocation3 + $0x5c] sm:$0xf] %vm2694_vm2, %v2645_v8  ;;  %v3617_v27 = vsel %vm5119_vm9, %v3612_v40, %v3616_v51  ;;  %v3515_v30 = vor.u32 %v3514_v47, %v3510_v15  ;;  %v4004_v51 = vrot.slane %v3857_v19, 5 }
 0x212   : > { %3139 = vrot.lane.b32.xlu0 %v3070_v42, %s5000_s16  ;;  %v3284_v42 = vld [vmem:[#allocation2 + $0x80] sm:$0x1] }
 0x213   : > { %3129 = vrot.lane.b32.xlu1 %v3065_v16, %s5000_s16 }
 0x214   : > { %2989 = vrot.lane.b32.xlu2 %v2920_v25, %s4999_s15  ;;  %v2653_v54 = vpop.permute.xlu0 %2652  ;;  %v3089_v25 = vld [vmem:[#allocation2 + $0xa8] sm:$0xf] }
 0x215   : > { %v2643_v60 = vpop.permute.xlu1 %2642  ;;  %2722 = vst.msk [vmem:[#allocation3 + $0x6c] sm:$0xf] %vm2694_vm2, %v2653_v54  ;;  %v3316_v54 = vshll.u32 %v3259_v6, 16 }
 0x216   : > { %2717 = vst.msk [vmem:[#allocation3 + $0x58] sm:$0xf] %vm2694_vm2, %v2643_v60  ;;  %v2651_v52 = vpop.permute.xlu2 %2650  ;;  %v3320_v60 = vshrl.u32 %v3259_v6, 16  ;;  %v6392_v6 = vld [vmem:[#allocation2 + $0x4c] sm:$0xf] }
 0x217   : > { %2721 = vst.msk [vmem:[#allocation3 + $0x68] sm:$0xf] %vm2694_vm2, %v2651_v52  ;;  %v3518_v52 = vshll.u32 %v3284_v42, 16 }
 0x21a   : > { %3145 = vrot.lane.b32.xlu0 %v3073_v26, %s5000_s16  ;;  %v3855_v26 = vld [vmem:[#allocation2 + $0xa8] sm:$0xe] }
 0x21b   : > { %3135 = vrot.lane.b32.xlu1 %v3068_v12, %s5000_s16  ;;  %v3856_v12 = vld [vmem:[#allocation2 + $0xac] sm:$0xf] }
 0x21c   : > { %2995 = vrot.lane.b32.xlu2 %v2931_v36, %s4999_s15  ;;  %v2659_v32 = vpop.permute.xlu0 %2658  ;;  %v3078_v36 = vld [vmem:[#allocation2 + $0x64] sm:$0xf] }
 0x21d   : > { %v2649_v3 = vpop.permute.xlu1 %2648  ;;  %2725 = vst.msk [vmem:[#allocation3 + $0x78] sm:$0xf] %vm2694_vm2, %v2659_v32  ;;  %v4665_v32 = vrot.slane %v3855_v26, 9 }
 0x21e   : > { %2720 = vst.msk [vmem:[#allocation3 + $0x64] sm:$0xf] %vm2694_vm2, %v2649_v3  ;;  %v2657_v34 = vpop.permute.xlu2 %2656  ;;  %v4001_v3 = vrot.slane %v3856_v12, 5  ;;  %v3833_v12 = vld [vmem:[#allocation2 + $0x50] sm:$0x1] }
 0x21f   : > { %2724 = vst.msk [vmem:[#allocation3 + $0x74] sm:$0xf] %vm2694_vm2, %v2657_v34  ;;  %v6362_v34 = vrot.slane %v3316_v54, 5 }
 0x220   : > { %v4002_v44 = vsel %vm5610_vm14, %v4665_v32, %v4001_v3  ;;  %v4003_v40 = vrot.slane %v4001_v3, 4 }
 0x222   : > { %3151 = vrot.lane.b32.xlu0 %v3076_v39, %s5000_s16  ;;  %v3322_v39 = vrot.slane %v3320_v60, 4  ;;  %v3945_v60 = vrot.slane %v6392_v6, 5 }
 0x223   : > { %3141 = vrot.lane.b32.xlu1 %v3071_v29, %s5000_s16 }
 0x224   : > { %3131 = vrot.lane.b32.xlu2 %v3066_v38, %s5000_s16  ;;  %v2938_v33 = vpop.permute.xlu0 %2937  ;;  %v3516_v38 = vrot.slane %v3515_v30, 4  ;;  %v3323_v62 = vor.u32 %v3322_v39, %v6362_v34  ;;  %v4005_v30 = vsel %vm5610_vm14, %v4003_v40, %v4004_v51  ;;  %v3845_v39 = vld [vmem:[#allocation2 + $0x80] sm:$0x1] }
 0x225   : > { %v2655_v41 = vpop.permute.xlu1 %2654  ;;  %3033 = vst.msk [vmem:[#allocation3 + $0x4] sm:$0xf] %vm3031_vm4, %v2938_v33  ;;  %v3520_v33 = vrot.slane %v3518_v52, 5 }
 0x226   : > { %2723 = vst.msk [vmem:[#allocation3 + $0x70] sm:$0xf] %vm2694_vm2, %v2655_v41  ;;  %v2936_v43 = vpop.permute.xlu2 %2935 }
 0x227   : > { %3032 = vst.msk [vmem:[#allocation3] sm:$0xf] %vm3031_vm4, %v2936_v43 }
 0x22a   : > { %3157 = vrot.lane.b32.xlu0 %v3079_v20, %s5000_s16  ;;  %v3294_v20 = vld [vmem:[#allocation2 + $0xa8] sm:$0xf] }
 0x22b   : > { %3147 = vrot.lane.b32.xlu1 %v3074_v37, %s5000_s16  ;;  %v3326_v37 = vshll.u32 %v3260_v46, 16  ;;  %v3595_v11 = vshrl.u32 %v3294_v20, 16  ;;  %v3598_v18 = vshll.u32 %v3294_v20, 16 }
 0x22c   : > { %3137 = vrot.lane.b32.xlu2 %v3069_v17, %s5000_s16  ;;  %v2944_v0 = vpop.permute.xlu0 %2943  ;;  %v3521_v17 = vsel %vm5119_vm9, %v3516_v38, %v3520_v33  ;;  %v3948_v38 = vrot.slane %v3833_v12, 5  ;;  %v3831_v12 = vld [vmem:[#allocation2 + $0x48] sm:$0xe] }
 0x22d   : > { %v2661_v21 = vpop.permute.xlu1 %2660  ;;  %3036 = vst.msk [vmem:[#allocation3 + $0x10] sm:$0xf] %vm3031_vm4, %v2944_v0  ;;  %v6373_v0 = vld [vmem:[#allocation2 + $0x7c] sm:$0xf]  ;;  %v3597_v28 = vrot.slane %v3595_v11, 4 }
 0x22e   : > { %2726 = vst.msk [vmem:[#allocation3 + $0x7c] sm:$0xf] %vm2694_vm2, %v2661_v21  ;;  %v2942_v50 = vpop.permute.xlu2 %2941  ;;  %v3324_v21 = vrot.slane %v3323_v62, 4  ;;  %v3973_v63 = vrot.slane %v6373_v0, 5 }
 0x22f   : > { %3035 = vst.msk [vmem:[#allocation3 + $0xc] sm:$0xf] %vm3031_vm4, %v2942_v50  ;;  %v3328_v50 = vrot.slane %v3326_v37, 5 }
 0x230   : > { %v3974_v24 = vsel %vm5610_vm14, %v4661_v14, %v3973_v63 }
 0x231   : > { %v3329_v15 = vsel %vm5119_vm9, %v3324_v21, %v3328_v50  ;;  %v3821_v50 = vld [vmem:[#allocation2 + $0x20] sm:$0x1] }
 0x232   : > { %3163 = vrot.lane.b32.xlu0 %v3082_v5, %s5000_s16 }
 0x233   : > { %3153 = vrot.lane.b32.xlu1 %v3077_v9, %s5000_s16  ;;  %v3600_v9 = vrot.slane %v3598_v18, 5 }
 0x234   : > { %3143 = vrot.lane.b32.xlu2 %v3072_v22, %s5000_s16  ;;  %v2950_v23 = vpop.permute.xlu0 %2949  ;;  %v3270_v22 = vld [vmem:[#allocation2 + $0x48] sm:$0xf] }
 0x235   : > { %v2940_v58 = vpop.permute.xlu1 %2939  ;;  %3039 = vst.msk [vmem:[#allocation3 + $0x1c] sm:$0xf] %vm3031_vm4, %v2950_v23  ;;  %v3819_v23 = vld [vmem:[#allocation2 + $0x18] sm:$0xe]  ;;  %v3601_v13 = vor.u32 %v3600_v9, %v3597_v28  ;;  %v3919_v28 = vrot.slane %v3917_v53, 4  ;;  %v3920_v9 = vrot.slane %v3821_v50, 5 }
 0x236   : > { %3034 = vst.msk [vmem:[#allocation3 + $0x8] sm:$0xf] %vm3031_vm4, %v2940_v58  ;;  %v2948_v45 = vpop.permute.xlu2 %2947  ;;  %v3403_v58 = vshrl.u32 %v3270_v22, 16 }
 0x237   : > { %3038 = vst.msk [vmem:[#allocation3 + $0x18] sm:$0xf] %vm3031_vm4, %v2948_v45  ;;  %v3406_v45 = vshll.u32 %v3270_v22, 16  ;;  %v3602_v42 = vrot.slane %v3601_v13, 4  ;;  %v3287_v22 = vld [vmem:[#allocation2 + $0x8c] sm:$0x1]  ;;  %v3921_v19 = vsel %vm5610_vm14, %v3919_v28, %v3920_v9 }
 0x239   : > { %v3408_v47 = vrot.slane %v3406_v45, 5 }
 0x23a   : > { %3722 = vrot.lane.b32.xlu0 %v3511_v59, %s5001_s17  ;;  %v3090_v59 = vld [vmem:[#allocation2 + $0xac] sm:$0xf] }
 0x23b   : > { %3159 = vrot.lane.b32.xlu1 %v3080_v35, %s5000_s16  ;;  %v4653_v35 = vrot.slane %v3819_v23, 9 }
 0x23c   : > { %3149 = vrot.lane.b32.xlu2 %v3075_v7, %s5000_s16  ;;  %v2956_v49 = vpop.permute.xlu0 %2955 }
 0x23d   : > { %v2946_v8 = vpop.permute.xlu1 %2945  ;;  %3042 = vst.msk [vmem:[#allocation3 + $0x28] sm:$0xf] %vm3031_vm4, %v2956_v49  ;;  %v3405_v49 = vrot.slane %v3403_v58, 4  ;;  %v3918_v54 = vsel %vm5610_vm14, %v4653_v35, %v3917_v53  ;;  %v3091_v58 = vld [vmem:[#allocation2 + $0xb4] sm:$0xf]  ;;  %v3422_v53 = vshll.u32 %v3272_v57, 16 }
 0x23e   : > { %3037 = vst.msk [vmem:[#allocation3 + $0x14] sm:$0xf] %vm3031_vm4, %v2946_v8  ;;  %v2954_v16 = vpop.permute.xlu2 %2953 }
 0x23f   : > { %3041 = vst.msk [vmem:[#allocation3 + $0x24] sm:$0xf] %vm3031_vm4, %v2954_v16  ;;  %v3271_v16 = vld [vmem:[#allocation2 + $0x4c] sm:$0xf]  ;;  %v3409_v52 = vor.u32 %v3408_v47, %v3405_v49 }
 0x240   : > { %v3412_v26 = vshll.u32 %v3271_v16, 16  ;;  %v3416_v18 = vshrl.u32 %v3271_v16, 16  ;;  %v3083_v16 = vld [vmem:[#allocation2 + $0x84] sm:$0xf] }
 0x241   : > { %v3410_v46 = vrot.slane %v3409_v52, 4 }
 0x242   : > { %3740 = vrot.lane.b32.xlu0 %v3617_v27, %s5001_s17  ;;  %v3258_v27 = vld [vmem:[#allocation2 + $0x18] sm:$0xf] }
 0x243   : > { %3177 = vrot.lane.b32.xlu1 %v3089_v25, %s5000_s16  ;;  %v3307_v32 = vshrl.u32 %v3258_v27, 16  ;;  %v3310_v3 = vshll.u32 %v3258_v27, 16  ;;  %v3846_v27 = vld [vmem:[#allocation2 + $0x84] sm:$0xe] }
 0x244   : > { %3155 = vrot.lane.b32.xlu2 %v3078_v36, %s5000_s16  ;;  %v2962_v29 = vpop.permute.xlu0 %2961  ;;  %v3607_v36 = vsel %vm5119_vm9, %v3602_v42, %v6343_v56  ;;  %v3975_v56 = vrot.slane %v3973_v63, 4  ;;  %v3297_v42 = vld [vmem:[#allocation2 + $0xb4] sm:$0xf] }
 0x245   : > { %v2952_v41 = vpop.permute.xlu1 %2951  ;;  %3045 = vst.msk [vmem:[#allocation3 + $0x34] sm:$0xf] %vm3031_vm4, %v2962_v29  ;;  %v3947_v29 = vrot.slane %v3945_v60, 4  ;;  %v3309_v62 = vrot.slane %v3307_v32, 4  ;;  %v3312_v37 = vrot.slane %v3310_v3, 5  ;;  %v3622_v52 = vshll.u32 %v3297_v42, 16 }
 0x246   : > { %3040 = vst.msk [vmem:[#allocation3 + $0x20] sm:$0xf] %vm3031_vm4, %v2952_v41  ;;  %v2960_v43 = vpop.permute.xlu2 %2959  ;;  %v3414_v41 = vrot.slane %v3412_v26, 5 }
 0x247   : > { %3044 = vst.msk [vmem:[#allocation3 + $0x30] sm:$0xf] %vm3031_vm4, %v2960_v43  ;;  %v3286_v43 = vld [vmem:[#allocation2 + $0x88] sm:$0xf] }
 0x248   : > { %v3532_v10 = vshll.u32 %v3286_v43, 16  ;;  %v3536_v0 = vshrl.u32 %v3286_v43, 16  ;;  %v3415_v11 = vsel %vm5119_vm9, %v3410_v46, %v3414_v41  ;;  %v3298_v43 = vld [vmem:[#allocation2 + $0xb8] sm:$0xf] }
 0x24a   : > { %4075 = vrot.lane.b32.xlu0 %v4002_v44, %s5002_s21  ;;  %v3976_v44 = vrot.slane %v3845_v39, 5  ;;  %v6421_v14 = vrot.slane %v3532_v10, 5  ;;  %v3538_v63 = vrot.slane %v3536_v0, 4  ;;  %v3628_v0 = vshll.u32 %v3298_v43, 16 }
 0x24b   : > { %3724 = vrot.lane.b32.xlu1 %v3521_v17, %s5001_s17 }
 0x24c   : > { %3161 = vrot.lane.b32.xlu2 %v3081_v48, %s5000_s16  ;;  %v2968_v5 = vpop.permute.xlu0 %2967  ;;  %v3949_v48 = vsel %vm5610_vm14, %v3947_v29, %v3948_v38  ;;  %v3977_v21 = vsel %vm5610_vm14, %v3975_v56, %v3976_v44  ;;  %v3539_v45 = vor.u32 %v3538_v63, %v6421_v14  ;;  %v3624_v29 = vrot.slane %v3622_v52, 5  ;;  %v6449_v38 = vld [vmem:[#allocation2 + $0xb8] sm:$0xf]  ;;  %v3285_v56 = vld [vmem:[#allocation2 + $0x84] sm:$0xf] }
 0x24d   : > { %v2958_v31 = vpop.permute.xlu1 %2957  ;;  %3048 = vst.msk [vmem:[#allocation3 + $0x40] sm:$0xf] %vm3031_vm4, %v2968_v5  ;;  %v3313_v5 = vor.u32 %v3312_v37, %v3309_v62  ;;  %v4008_v62 = vrot.slane %v6449_v38, 5  ;;  %v3526_v50 = vshll.u32 %v3285_v56, 16  ;;  %v3262_v52 = vld [vmem:[#allocation2 + $0x28] sm:$0xf] }
 0x24e   : > { %3043 = vst.msk [vmem:[#allocation3 + $0x2c] sm:$0xf] %vm3031_vm4, %v2958_v31  ;;  %v2966_v55 = vpop.permute.xlu2 %2965 }
 0x24f   : > { %3047 = vst.msk [vmem:[#allocation3 + $0x3c] sm:$0xf] %vm3031_vm4, %v2966_v55 }
 0x252   : > { %3692 = vrot.lane.b32.xlu0 %v3329_v15, %s5001_s17  ;;  %v3314_v15 = vrot.slane %v3313_v5, 4  ;;  %v4010_v5 = vrot.slane %v4008_v62, 4 }
 0x253   : > { %4059 = vrot.lane.b32.xlu1 %v3974_v24, %s5002_s21  ;;  %v3418_v24 = vrot.slane %v3416_v18, 4 }
 0x254   : > { %3179 = vrot.lane.b32.xlu2 %v3090_v59, %s5000_s16  ;;  %v2974_v7 = vpop.permute.xlu0 %2973  ;;  %v3542_v59 = vshll.u32 %v3287_v22, 16  ;;  %v3319_v13 = vsel %vm5119_vm9, %v3314_v15, %v6362_v34  ;;  %v3630_v22 = vrot.slane %v3628_v0, 5 }
 0x255   : > { %v2964_v8 = vpop.permute.xlu1 %2963  ;;  %3051 = vst.msk [vmem:[#allocation3 + $0x4c] sm:$0xf] %vm3031_vm4, %v2974_v7  ;;  %v3419_v35 = vor.u32 %v3418_v24, %v3414_v41  ;;  %v3540_v7 = vrot.slane %v3539_v45, 4  ;;  %v4657_v41 = vrot.slane %v3831_v12, 9  ;;  %v3528_v24 = vrot.slane %v3526_v50, 5 }
 0x256   : > { %3046 = vst.msk [vmem:[#allocation3 + $0x38] sm:$0xf] %vm3031_vm4, %v2964_v8  ;;  %v2972_v25 = vpop.permute.xlu2 %2971  ;;  %v3544_v40 = vrot.slane %v3542_v59, 5  ;;  %v3424_v8 = vrot.slane %v3422_v53, 5  ;;  %v3632_v53 = vshrl.u32 %v3298_v43, 16 }
 0x257   : > { %3050 = vst.msk [vmem:[#allocation3 + $0x48] sm:$0xf] %vm3031_vm4, %v2972_v25  ;;  %v3420_v47 = vrot.slane %v3419_v35, 4  ;;  %v3946_v18 = vsel %vm5610_vm14, %v4657_v41, %v3945_v60  ;;  %v3824_v41 = vld [vmem:[#allocation2 + $0x2c] sm:$0x1] }
 0x258   : > { %v3545_v25 = vsel %vm5119_vm9, %v3540_v7, %v3544_v40  ;;  %v3084_v7 = vld [vmem:[#allocation2 + $0x88] sm:$0xf]  ;;  %v3848_v40 = vld [vmem:[#allocation2 + $0x8c] sm:$0x1] }
 0x259   : > { %v3425_v26 = vsel %vm5119_vm9, %v3420_v47, %v3424_v8 }
 0x25a   : > { %4027 = vrot.lane.b32.xlu0 %v3918_v54, %s5002_s21  ;;  %v6441_v54 = vld [vmem:[#allocation2 + $0x88] sm:$0xf] }
 0x25b   : > { %4077 = vrot.lane.b32.xlu1 %v4005_v30, %s5002_s21  ;;  %v3619_v30 = vshrl.u32 %v3297_v42, 16  ;;  %v3980_v32 = vrot.slane %v6441_v54, 5 }
 0x25c   : > { %3738 = vrot.lane.b32.xlu2 %v3607_v36, %s5001_s17  ;;  %v2980_v33 = vpop.permute.xlu0 %2979  ;;  %v4662_v36 = vrot.slane %v3846_v27, 9  ;;  %v6476_v27 = vld [vmem:[#allocation2 + $0x28] sm:$0xf] }
 0x25d   : > { %v2970_v20 = vpop.permute.xlu1 %2969  ;;  %3054 = vst.msk [vmem:[#allocation3 + $0x58] sm:$0xf] %vm3031_vm4, %v2980_v33  ;;  %v3621_v39 = vrot.slane %v3619_v30, 4  ;;  %v3273_v33 = vld [vmem:[#allocation2 + $0x54] sm:$0xf]  ;;  %v3982_v42 = vrot.slane %v3980_v32, 4 }
 0x25e   : > { %3049 = vst.msk [vmem:[#allocation3 + $0x44] sm:$0xf] %vm3031_vm4, %v2970_v20  ;;  %v2978_v17 = vpop.permute.xlu2 %2977  ;;  %v3981_v44 = vsel %vm5610_vm14, %v4662_v36, %v3980_v32  ;;  %v3427_v37 = vshrl.u32 %v3273_v33, 16  ;;  %v3299_v36 = vld [vmem:[#allocation2 + $0xbc] sm:$0x1] }
 0x25f   : > { %3053 = vst.msk [vmem:[#allocation3 + $0x54] sm:$0xf] %vm3031_vm4, %v2978_v17  ;;  %v3430_v17 = vshll.u32 %v3273_v33, 16  ;;  %v3625_v10 = vor.u32 %v3624_v29, %v3621_v39 }
 0x261   : > { %v3432_v28 = vrot.slane %v3430_v17, 5  ;;  %v3626_v6 = vrot.slane %v3625_v10, 4 }
 0x262   : > { %4045 = vrot.lane.b32.xlu0 %v3949_v48, %s5002_s21  ;;  %v3092_v48 = vld [vmem:[#allocation2 + $0xb8] sm:$0xf] }
 0x263   : > { %3706 = vrot.lane.b32.xlu1 %v3415_v11, %s5001_s17  ;;  %v3860_v11 = vld [vmem:[#allocation2 + $0xbc] sm:$0x1] }
 0x264   : > { %4061 = vrot.lane.b32.xlu2 %v3977_v21, %s5002_s21  ;;  %v2986_v31 = vpop.permute.xlu0 %2985  ;;  %v3523_v21 = vshrl.u32 %v3285_v56, 16  ;;  %v4011_v63 = vrot.slane %v3860_v11, 5  ;;  %v3638_v56 = vshll.u32 %v3299_v36, 16 }
 0x265   : > { %v2976_v55 = vpop.permute.xlu1 %2975  ;;  %3057 = vst.msk [vmem:[#allocation3 + $0x64] sm:$0xf] %vm3031_vm4, %v2986_v31  ;;  %v3429_v31 = vrot.slane %v3427_v37, 4  ;;  %v3927_v37 = vrot.slane %v3824_v41, 5 }
 0x266   : > { %3052 = vst.msk [vmem:[#allocation3 + $0x50] sm:$0xf] %vm3031_vm4, %v2976_v55  ;;  %v2984_v23 = vpop.permute.xlu2 %2983  ;;  %v3274_v55 = vld [vmem:[#allocation2 + $0x58] sm:$0xf]  ;;  %v3525_v15 = vrot.slane %v3523_v21, 4 }
 0x267   : > { %3056 = vst.msk [vmem:[#allocation3 + $0x60] sm:$0xf] %vm3031_vm4, %v2984_v23  ;;  %v3261_v23 = vld [vmem:[#allocation2 + $0x24] sm:$0xf]  ;;  %v3433_v45 = vor.u32 %v3432_v28, %v3429_v31  ;;  %v3436_v59 = vshll.u32 %v3274_v55, 16  ;;  %v3440_v29 = vshrl.u32 %v3274_v55, 16 }
 0x268   : > { %v3334_v35 = vshll.u32 %v3261_v23, 16  ;;  %v3275_v21 = vld [vmem:[#allocation2 + $0x5c] sm:$0x1] }
 0x269   : > { %v3438_v47 = vrot.slane %v3436_v59, 5  ;;  %v3442_v0 = vrot.slane %v3440_v29, 4  ;;  %v3446_v28 = vshll.u32 %v3275_v21, 16  ;;  %v3085_v59 = vld [vmem:[#allocation2 + $0x90] sm:$0xf] }
 0x26a   : > { %3181 = vrot.lane.b32.xlu0 %v3091_v58, %s5000_s16  ;;  %v4012_v58 = vsel %vm5610_vm14, %v4010_v5, %v4011_v63  ;;  %v3094_v29 = vld [vmem:[#allocation2 + $0xc4] sm:$0xf]  ;;  %v3264_v21 = vld [vmem:[#allocation2 + $0x30] sm:$0xf] }
 0x26b   : > { %4029 = vrot.lane.b32.xlu1 %v3921_v19, %s5002_s21  ;;  %v3631_v19 = vsel %vm5119_vm9, %v3626_v6, %v3630_v22  ;;  %v3443_v31 = vor.u32 %v3442_v0, %v3438_v47 }
 0x26c   : > { %3690 = vrot.lane.b32.xlu2 %v3319_v13, %s5001_s17  ;;  %v2992_v51 = vpop.permute.xlu0 %2991  ;;  %v3331_v13 = vshrl.u32 %v3261_v23, 16 }
 0x26d   : > { %v2982_v49 = vpop.permute.xlu1 %2981  ;;  %3060 = vst.msk [vmem:[#allocation3 + $0x70] sm:$0xf] %vm3031_vm4, %v2992_v51  ;;  %v3529_v51 = vor.u32 %v3528_v24, %v3525_v15  ;;  %v3448_v15 = vrot.slane %v3446_v28, 5  ;;  %v3300_v24 = vld [vmem:[#allocation2 + $0xc0] sm:$0xf] }
 0x26e   : > { %3055 = vst.msk [vmem:[#allocation3 + $0x5c] sm:$0xf] %vm3031_vm4, %v2982_v49  ;;  %v2990_v34 = vpop.permute.xlu2 %2989  ;;  %v3434_v49 = vrot.slane %v3433_v45, 4 }
 0x26f   : > { %3059 = vst.msk [vmem:[#allocation3 + $0x6c] sm:$0xf] %vm3031_vm4, %v2990_v34  ;;  %v3983_v34 = vrot.slane %v3848_v40, 5  ;;  %v3530_v30 = vrot.slane %v3529_v51, 4  ;;  %v3834_v40 = vld [vmem:[#allocation2 + $0x54] sm:$0xe] }
 0x270   : > { %v3439_v32 = vsel %vm5119_vm9, %v3434_v49, %v3438_v47  ;;  %v6518_v47 = vld [vmem:[#allocation2 + $0x58] sm:$0xf] }
 0x271   : > { %v3984_v39 = vsel %vm5610_vm14, %v3982_v42, %v3983_v34  ;;  %v3535_v43 = vsel %vm5119_vm9, %v3530_v30, %v6421_v14  ;;  %v3952_v38 = vrot.slane %v6518_v47, 5 }
 0x272   : > { %3728 = vrot.lane.b32.xlu0 %v3545_v25, %s5001_s17  ;;  %v3336_v25 = vrot.slane %v3334_v35, 5  ;;  %v3646_v35 = vshll.u32 %v3300_v24, 16 }
 0x273   : > { %3165 = vrot.lane.b32.xlu1 %v3083_v16, %s5000_s16  ;;  %v3333_v16 = vrot.slane %v3331_v13, 4  ;;  %v3643_v13 = vshrl.u32 %v3300_v24, 16  ;;  %v3086_v24 = vld [vmem:[#allocation2 + $0x94] sm:$0xf] }
 0x274   : > { %3708 = vrot.lane.b32.xlu2 %v3425_v26, %s5001_s17  ;;  %v2998_v3 = vpop.permute.xlu0 %2997  ;;  %v3634_v26 = vrot.slane %v3632_v53, 4  ;;  %v4196_v53 = vld [vmem:[%s6927_s4 + $0x20] sm:$0xf] }
 0x275   : > { %v2988_v46 = vpop.permute.xlu1 %2987  ;;  %3063 = vst.msk [vmem:[#allocation3 + $0x7c] sm:$0xf] %vm3031_vm4, %v2998_v3  ;;  %v3924_v3 = vrot.slane %v6476_v27, 5  ;;  %v3337_v33 = vor.u32 %v3336_v25, %v3333_v16  ;;  %v4358_v51 = vunpack.c.l.b16 %v4196_v53  ;;  %v4658_v16 = vrot.slane %v3834_v40, 9 }
 0x276   : > { %3058 = vst.msk [vmem:[#allocation3 + $0x68] sm:$0xf] %vm3031_vm4, %v2988_v46  ;;  %v2996_v20 = vpop.permute.xlu2 %2995  ;;  %v3340_v46 = vshll.u32 %v3262_v52, 16  ;;  %v3645_v25 = vrot.slane %v3643_v13, 4  ;;  %v4786_v13 = vld [vmem:[%s6927_s4] sm:$0xff] }
 0x277   : > { %3062 = vst.msk [vmem:[#allocation3 + $0x78] sm:$0xf] %vm3031_vm4, %v2996_v20  ;;  %v3635_v20 = vor.u32 %v3634_v26, %v3630_v22  ;;  %v3858_v22 = vld [vmem:[#allocation2 + $0xb4] sm:$0xe]  ;;  %v4363_v34 = vpack.c.b16 %v4358_v51, %v4358_v51 }
 0x278   : > { %v3342_v10 = vrot.slane %v3340_v46, 5  ;;  %v6577_v51 = vld [vmem:[#allocation2 + $0x34] sm:$0xf] }
 0x279   : > { %v3636_v14 = vrot.slane %v3635_v20, 4  ;;  %v4419_v26 = vsel %vm4417_vm7, %v4363_v34, 0 }
 0x27a   : > { %4063 = vrot.lane.b32.xlu0 %v3981_v44, %s5002_s21  ;;  %v3926_v44 = vrot.slane %v3924_v3, 4  ;;  %4949 = vmatpush.bf16.msra.mxu2 %v4419_v26 }
 0x27b   : > { %3183 = vrot.lane.b32.xlu1 %v3092_v48, %s5000_s16  ;;  %v3338_v48 = vrot.slane %v3337_v33, 4  ;;  %4950 = vmatpush.bf16.msra.mxu3 %v4419_v26  ;;  %v4789_v33 = vld [vmem:[%s6927_s4 + $0x18] sm:$0xff] }
 0x27c   : > { %4043 = vrot.lane.b32.xlu2 %v3946_v18, %s5002_s21  ;;  %v3134_v9 = vpop.permute.xlu0 %3133  ;;  %v3640_v18 = vrot.slane %v3638_v56, 5  ;;  %v3928_v5 = vsel %vm5610_vm14, %v3926_v44, %v3927_v37  ;;  %4948 = vmatpush.bf16.msra.mxu1 %v4419_v26  ;;  %v3953_v56 = vsel %vm5610_vm14, %v4658_v16, %v3952_v38  ;;  %v3822_v37 = vld [vmem:[#allocation2 + $0x24] sm:$0xe]  ;;  %v3302_v16 = vld [vmem:[#allocation2 + $0xc8] sm:$0x1] }
 0x27d   : > { %v2994_v60 = vpop.permute.xlu1 %2993  ;;  %3228 = vst.msk [vmem:[#allocation3 + $0x8] sm:$0xf] %vm3225_vm6, %v3134_v9  ;;  %v3343_v63 = vsel %vm5119_vm9, %v3338_v48, %v3342_v10  ;;  %v3344_v9 = vshrl.u32 %v3262_v52, 16  ;;  %v6524_v52 = vld [vmem:[#allocation2 + $0xc4] sm:$0xf]  ;;  %4424 = vmatpush.bf16.msra.mxu0 %v4419_v26 }
 0x27e   : > { %3061 = vst.msk [vmem:[#allocation3 + $0x74] sm:$0xf] %vm3031_vm4, %v2994_v60  ;;  %v3132_v57 = vpop.permute.xlu2 %3131  ;;  %v3641_v6 = vsel %vm5119_vm9, %v3636_v14, %v3640_v18  ;;  %v3444_v60 = vrot.slane %v3443_v31, 4  ;;  %v3652_v41 = vshll.u32 %v6524_v52, 16  ;;  %4952 = vmatpush.bf16.msra.mxu2 %v4789_v33  ;;  %v6546_v14 = vld [vmem:[#allocation2 + $0x94] sm:$0xf] }
 0x27f   : > { %3227 = vst.msk [vmem:[#allocation3 + $0x4] sm:$0xf] %vm3225_vm6, %v3132_v57  ;;  %v4666_v57 = vrot.slane %v3858_v22, 9  ;;  %4953 = vmatpush.bf16.msra.mxu3 %v4789_v33  ;;  %v3987_v28 = vrot.slane %v6546_v14, 5 }
 0x280   : > { %4951 = vmatpush.bf16.msra.mxu1 %v4789_v33 }
 0x281   : > { %v4009_v49 = vsel %vm5610_vm14, %v4666_v57, %v4008_v62  ;;  %v3288_v62 = vld [vmem:[#allocation2 + $0x90] sm:$0xf]  ;;  %4425 = vmatpush.bf16.msra.mxu0 %v4789_v33 }
 0x282   : > { %4081 = vrot.lane.b32.xlu0 %v4012_v58, %s5002_s21  ;;  %v3346_v58 = vrot.slane %v3344_v9, 4  ;;  %v3550_v20 = vshll.u32 %v3288_v62, 16  ;;  %v4787_v9 = vld [vmem:[%s6927_s4 + $0x8] sm:$0xff] }
 0x283   : > { %3742 = vrot.lane.b32.xlu1 %v3631_v19, %s5001_s17  ;;  %v3263_v19 = vld [vmem:[#allocation2 + $0x2c] sm:$0x1] }
 0x284   : > { %3167 = vrot.lane.b32.xlu2 %v3084_v7, %s5000_s16  ;;  %v3140_v8 = vpop.permute.xlu0 %3139  ;;  %v3449_v7 = vsel %vm5119_vm9, %v3444_v60, %v3448_v15  ;;  %v3350_v42 = vshll.u32 %v3263_v19, 16  ;;  %v3355_v60 = vshrl.u32 %v3264_v21, 16  ;;  %v3358_v15 = vshll.u32 %v3264_v21, 16 }
 0x285   : > { %v3130_v54 = vpop.permute.xlu1 %3129  ;;  %3231 = vst.msk [vmem:[#allocation3 + $0x14] sm:$0xf] %vm3225_vm6, %v3140_v8  ;;  %v3347_v8 = vor.u32 %v3346_v58, %v3342_v10  ;;  %v6544_v10 = vrot.slane %v3652_v41, 5 }
 0x286   : > { %3226 = vst.msk [vmem:[#allocation3] sm:$0xf] %vm3225_vm6, %v3130_v54  ;;  %v3138_v12 = vpop.permute.xlu2 %3137  ;;  %v3648_v54 = vrot.slane %v3646_v35, 5  ;;  %v3357_v35 = vrot.slane %v3355_v60, 4 }
 0x287   : > { %3230 = vst.msk [vmem:[#allocation3 + $0x10] sm:$0xf] %vm3225_vm6, %v3138_v12  ;;  %v3348_v36 = vrot.slane %v3347_v8, 4 }
 0x288   : > { %v3649_v46 = vor.u32 %v3648_v54, %v3645_v25 }
 0x28a   : > { %3710 = vrot.lane.b32.xlu0 %v3439_v32, %s5001_s17  ;;  %v3352_v32 = vrot.slane %v3350_v42, 5  ;;  %v3650_v48 = vrot.slane %v3649_v46, 4  ;;  %v3954_v42 = vrot.slane %v3952_v38, 4 }
 0x28b   : > { %4065 = vrot.lane.b32.xlu1 %v3984_v39, %s5002_s21 }
 0x28c   : > { %3726 = vrot.lane.b32.xlu2 %v3535_v43, %s5001_s17  ;;  %v3146_v17 = vpop.permute.xlu0 %3145  ;;  %v3547_v43 = vshrl.u32 %v3288_v62, 16  ;;  %v3353_v44 = vsel %vm5119_vm9, %v3348_v36, %v3352_v32 }
 0x28d   : > { %v3136_v11 = vpop.permute.xlu1 %3135  ;;  %3234 = vst.msk [vmem:[#allocation3 + $0x20] sm:$0xf] %vm3225_vm6, %v3146_v17  ;;  %v4788_v17 = vld [vmem:[%s6927_s4 + $0x10] sm:$0xff] }
 0x28e   : > { %3229 = vst.msk [vmem:[#allocation3 + $0xc] sm:$0xf] %vm3225_vm6, %v3136_v11  ;;  %v3144_v50 = vpop.permute.xlu2 %3143  ;;  %v3549_v0 = vrot.slane %v3547_v43, 4  ;;  %v3552_v11 = vrot.slane %v3550_v20, 5  ;;  %4955 = vmatpush.bf16.msra.mxu2 %v4788_v17  ;;  %4956 = vmatpush.bf16.msra.mxu3 %v4788_v17 }
 0x28f   : > { %3233 = vst.msk [vmem:[#allocation3 + $0x1c] sm:$0xf] %vm3225_vm6, %v3144_v50  ;;  %4954 = vmatpush.bf16.msra.mxu1 %v4788_v17  ;;  %4426 = vmatpush.bf16.msra.mxu0 %v4788_v17 }
 0x290   : > { %v3553_v22 = vor.u32 %v3552_v11, %v3549_v0 }
 0x292   : > { %4033 = vrot.lane.b32.xlu0 %v3928_v5, %s5002_s21  ;;  %v4654_v5 = vrot.slane %v3822_v37, 9  ;;  %4958 = vmatpush.bf16.msra.mxu2 %v4787_v9  ;;  %v3554_v27 = vrot.slane %v3553_v22, 4  ;;  %v509_v22 = vld [vmem:[#allocation2 + $0xcc] sm:$0x1] }
 0x293   : > { %3694 = vrot.lane.b32.xlu1 %v3343_v63, %s5001_s17  ;;  %v6550_v63 = vld [vmem:[#allocation2 + $0x94] sm:$0xf]  ;;  %4959 = vmatpush.bf16.msra.mxu3 %v4787_v9  ;;  %v510_v60 = vsel %vm5045_vm3, 0, %v509_v22  ;;  %vm4368_vm3 = vcmask 588800  }
 0x294   : > { %3744 = vrot.lane.b32.xlu2 %v3641_v6, %s5001_s17  ;;  %v3152_v55 = vpop.permute.xlu0 %3151  ;;  %v3655_v6 = vsel %vm5119_vm9, %v3650_v48, %v6544_v10  ;;  %v3556_v57 = vshll.u32 %v6550_v63, 16  ;;  %v3925_v58 = vsel %vm5610_vm14, %v4654_v5, %v3924_v3  ;;  %4957 = vmatpush.bf16.msra.mxu1 %v4787_v9  ;;  %v3360_v3 = vrot.slane %v3358_v15, 5  ;;  %v3290_v48 = vld [vmem:[#allocation2 + $0x98] sm:$0x1]  ;;  %v3861_v5 = vld [vmem:[#allocation2 + $0xc0] sm:$0xe] }
 0x295   : > { %v3142_v23 = vpop.permute.xlu1 %3141  ;;  %3237 = vst.msk [vmem:[#allocation3 + $0x2c] sm:$0xf] %vm3225_vm6, %v3152_v55  ;;  %v3851_v55 = vld [vmem:[#allocation2 + $0x98] sm:$0x1]  ;;  %4427 = vmatpush.bf16.msra.mxu0 %v4787_v9  ;;  %v3560_v36 = vshrl.u32 %v6550_v63, 16 }
 0x296   : > { %3232 = vst.msk [vmem:[#allocation3 + $0x18] sm:$0xf] %vm3225_vm6, %v3142_v23  ;;  %v3150_v45 = vpop.permute.xlu2 %3149  ;;  %v3656_v23 = vshrl.u32 %v6524_v52, 16  ;;  %v3990_v19 = vrot.slane %v3851_v55, 5  ;;  %4961 = vmatpush.bf16.msra.mxu2 %v4786_v13  ;;  %v3364_v52 = vshll.u32 %v6577_v51, 16 }
 0x297   : > { %3236 = vst.msk [vmem:[#allocation3 + $0x28] sm:$0xf] %vm3225_vm6, %v3150_v45  ;;  %v3836_v45 = vld [vmem:[#allocation2 + $0x5c] sm:$0x1]  ;;  %4962 = vmatpush.bf16.msra.mxu3 %v4786_v13  ;;  %v3562_v37 = vrot.slane %v3560_v36, 4 }
 0x298   : > { %v3658_v40 = vrot.slane %v3656_v23, 4  ;;  %v3955_v34 = vrot.slane %v3836_v45, 5  ;;  %4960 = vmatpush.bf16.msra.mxu1 %v4786_v13  ;;  %v565_v63 = vld [vmem:[#allocation2 + $0xd4] sm:$0x1]  ;;  %511 = vst [vmem:[#allocation2 + $0xcc] sm:$0x1] %v510_v60 }
 0x299   : > { %4428 = vmatpush.bf16.msra.mxu0 %v4786_v13  ;;  %v566_v55 = vsel %vm5060_vm5, 0, %v565_v63  ;;  %v3839_v60 = vld [vmem:[#allocation2 + $0x68] sm:$0x1]  ;;  %vm4510_vm5 = vcmask 64512  }
 0x29a   : > { %3169 = vrot.lane.b32.xlu0 %v3085_v59, %s5000_s16  ;;  %v3989_v59 = vrot.slane %v3987_v28, 4  ;;  %v3659_v38 = vor.u32 %v3658_v40, %v6544_v10  ;;  %v3956_v32 = vsel %vm5610_vm14, %v3954_v42, %v3955_v34  ;;  %v3093_v10 = vld [vmem:[#allocation2 + $0xc0] sm:$0xf]  ;;  %567 = vst [vmem:[#allocation2 + $0xd4] sm:$0x1] %v566_v55 }
 0x29b   : > { %3712 = vrot.lane.b32.xlu1 %v3449_v7, %s5001_s17  ;;  %v6575_v7 = vrot.slane %v3556_v57, 5  ;;  %v4667_v57 = vrot.slane %v3861_v5, 9  ;;  %v6630_v40 = vld [vmem:[#allocation2 + $0x64] sm:$0xf]  ;;  %v3088_v5 = vld [vmem:[#allocation2 + $0xa0] sm:$0xf] }
 0x29c   : > { %4079 = vrot.lane.b32.xlu2 %v4009_v49, %s5002_s21  ;;  %v3158_v30 = vpop.permute.xlu0 %3157  ;;  %v3277_v49 = vld [vmem:[#allocation2 + $0x64] sm:$0xf]  ;;  %v3991_v54 = vsel %vm5610_vm14, %v3989_v59, %v3990_v19  ;;  %v3660_v43 = vrot.slane %v3659_v38, 4  ;;  %v3959_v42 = vrot.slane %v6630_v40, 5 }
 0x29d   : > { %v3148_v12 = vpop.permute.xlu1 %3147  ;;  %3240 = vst.msk [vmem:[#allocation3 + $0x38] sm:$0xf] %vm3225_vm6, %v3158_v30  ;;  %v3361_v30 = vor.u32 %v3360_v3, %v3357_v35  ;;  %v3460_v62 = vshll.u32 %v3277_v49, 16  ;;  %v3464_v26 = vshrl.u32 %v3277_v49, 16  ;;  %v3559_v47 = vsel %vm5119_vm9, %v3554_v27, %v6575_v7  ;;  %v3849_v49 = vld [vmem:[#allocation2 + $0x90] sm:$0xe] }
 0x29e   : > { %3235 = vst.msk [vmem:[#allocation3 + $0x24] sm:$0xf] %vm3225_vm6, %v3148_v12  ;;  %v3156_v39 = vpop.permute.xlu2 %3155  ;;  %v3662_v12 = vshll.u32 %v3302_v16, 16  ;;  %v3563_v9 = vor.u32 %v3562_v37, %v6575_v7  ;;  %v3837_v7 = vld [vmem:[#allocation2 + $0x60] sm:$0xe] }
 0x29f   : > { %3239 = vst.msk [vmem:[#allocation3 + $0x34] sm:$0xf] %vm3225_vm6, %v3156_v39  ;;  %v3362_v39 = vrot.slane %v3361_v30, 4  ;;  %v6598_v33 = vrot.slane %v3460_v62, 5  ;;  %v3466_v46 = vrot.slane %v3464_v26, 4 }
 0x2a0   : > { %v3664_v20 = vrot.slane %v3662_v12, 5  ;;  %v3564_v59 = vrot.slane %v3563_v9, 4  ;;  %v3276_v26 = vld [vmem:[#allocation2 + $0x60] sm:$0xf] }
 0x2a1   : > { %v3467_v11 = vor.u32 %v3466_v46, %v6598_v33  ;;  %v3451_v46 = vshrl.u32 %v3276_v26, 16 }
 0x2a2   : > { %3187 = vrot.lane.b32.xlu0 %v3094_v29, %s5000_s16  ;;  %v6596_v29 = vrot.slane %v3364_v52, 5  ;;  %v3665_v21 = vsel %vm5119_vm9, %v3660_v43, %v3664_v20  ;;  %v4663_v52 = vrot.slane %v3849_v49, 9  ;;  %v3863_v43 = vld [vmem:[#allocation2 + $0xc8] sm:$0x1] }
 0x2a3   : > { %4047 = vrot.lane.b32.xlu1 %v3953_v56, %s5002_s21  ;;  %v3278_v56 = vld [vmem:[#allocation2 + $0x68] sm:$0x1]  ;;  %v3468_v15 = vrot.slane %v3467_v11, 4  ;;  %v4018_v11 = vrot.slane %v3863_v43, 5 }
 0x2a4   : > { %3696 = vrot.lane.b32.xlu2 %v3353_v44, %s5001_s17  ;;  %v3164_v18 = vpop.permute.xlu0 %3163  ;;  %v3367_v0 = vsel %vm5119_vm9, %v3362_v39, %v6596_v29  ;;  %v3988_v39 = vsel %vm5610_vm14, %v4663_v52, %v3987_v28  ;;  %v3292_v28 = vld [vmem:[#allocation2 + $0xa0] sm:$0xf] }
 0x2a5   : > { %v3154_v50 = vpop.permute.xlu1 %3153  ;;  %3243 = vst.msk [vmem:[#allocation3 + $0x44] sm:$0xf] %vm3225_vm6, %v3164_v18  ;;  %v3470_v18 = vshll.u32 %v3278_v56, 16 }
 0x2a6   : > { %3238 = vst.msk [vmem:[#allocation3 + $0x30] sm:$0xf] %vm3225_vm6, %v3154_v50  ;;  %v3162_v31 = vpop.permute.xlu2 %3161  ;;  %v3368_v50 = vshrl.u32 %v6577_v51, 16 }
 0x2a7   : > { %3242 = vst.msk [vmem:[#allocation3 + $0x40] sm:$0xf] %vm3225_vm6, %v3162_v31  ;;  %v6611_v31 = vld [vmem:[#allocation2 + $0xc4] sm:$0xf] }
 0x2a8   : > { %v3370_v4 = vrot.slane %v3368_v50, 4 }
 0x2aa   : > { %3746 = vrot.lane.b32.xlu0 %v3655_v6, %s5001_s17  ;;  %v3566_v6 = vshll.u32 %v3290_v48, 16  ;;  %v3371_v3 = vor.u32 %v3370_v4, %v6596_v29  ;;  %v6649_v29 = vld [vmem:[#allocation2 + $0x34] sm:$0xf]  ;;  %v3304_v48 = vld [vmem:[#allocation2 + $0xd0] sm:$0xf] }
 0x2ab   : > { %3171 = vrot.lane.b32.xlu1 %v3086_v24, %s5000_s16  ;;  %v3472_v24 = vrot.slane %v3470_v18, 5  ;;  %v3931_v14 = vrot.slane %v6649_v29, 5  ;;  %v3453_v18 = vrot.slane %v3451_v46, 4  ;;  %v3676_v9 = vshll.u32 %v3304_v48, 16  ;;  %v3864_v46 = vld [vmem:[#allocation2 + $0xcc] sm:$0xe] }
 0x2ac   : > { %4031 = vrot.lane.b32.xlu2 %v3925_v58, %s5002_s21  ;;  %v3723_v53 = vpop.permute.xlu0 %3722  ;;  %v4015_v58 = vrot.slane %v6611_v31, 5  ;;  %v3568_v19 = vrot.slane %v3566_v6, 5  ;;  %v3372_v16 = vrot.slane %v3371_v3, 4  ;;  %v3580_v31 = vshll.u32 %v3292_v28, 16 }
 0x2ad   : > { %v3160_v8 = vpop.permute.xlu1 %3159  ;;  %3803 = vst.msk [vmem:[#allocation3 + $0x40] sm:$0xf] %vm3786_vm8, %v3723_v53  ;;  %v3473_v27 = vsel %vm5119_vm9, %v3468_v15, %v3472_v24  ;;  %v3374_v53 = vshll.u32 %v3266_v1, 16  ;;  %v3680_v6 = vshrl.u32 %v3304_v48, 16  ;;  %v3933_v52 = vrot.slane %v3931_v14, 4 }
 0x2ae   : > { %3241 = vst.msk [vmem:[#allocation3 + $0x3c] sm:$0xf] %vm3225_vm6, %v3160_v8  ;;  %v3180_v25 = vpop.permute.xlu2 %3179  ;;  %v4016_v35 = vsel %vm5610_vm14, %v4667_v57, %v4015_v58  ;;  %v3569_v51 = vsel %vm5119_vm9, %v3564_v59, %v3568_v19  ;;  %v4659_v8 = vrot.slane %v3837_v7, 9  ;;  %v6665_v57 = vrot.slane %v3676_v9, 5  ;;  %v3305_v19 = vld [vmem:[#allocation2 + $0xd4] sm:$0x1] }
 0x2af   : > { %3251 = vst.msk [vmem:[#allocation3 + $0x64] sm:$0xf] %vm3225_vm6, %v3180_v25  ;;  %v3376_v25 = vrot.slane %v3374_v53, 5  ;;  %v3962_v59 = vrot.slane %v3839_v60, 5  ;;  %v3686_v7 = vshll.u32 %v3305_v19, 16 }
 0x2b0   : > { %v3269_v48 = vld [vmem:[#allocation2 + $0x44] sm:$0x1]  ;;  %v3852_v9 = vld [vmem:[#allocation2 + $0x9c] sm:$0xe]  ;;  %v3279_v19 = vld [vmem:[#allocation2 + $0x6c] sm:$0xf] }
 0x2b1   : > { %v3377_v36 = vsel %vm5119_vm9, %v3372_v16, %v3376_v25 }
 0x2b2   : > { %4069 = vrot.lane.b32.xlu0 %v3991_v54, %s5002_s21  ;;  %v3291_v54 = vld [vmem:[#allocation2 + $0x9c] sm:$0xf] }
 0x2b3   : > { %3730 = vrot.lane.b32.xlu1 %v3559_v47, %s5001_s17  ;;  %v3960_v47 = vsel %vm5610_vm14, %v4659_v8, %v3959_v42  ;;  %v3571_v38 = vshrl.u32 %v3291_v54, 16  ;;  %v3574_v12 = vshll.u32 %v3291_v54, 16  ;;  %v3827_v8 = vld [vmem:[#allocation2 + $0x38] sm:$0x1]  ;;  %v3268_v54 = vld [vmem:[#allocation2 + $0x40] sm:$0xf] }
 0x2b4   : > { %4049 = vrot.lane.b32.xlu2 %v3956_v32, %s5002_s21  ;;  %v3741_v41 = vpop.permute.xlu0 %3740  ;;  %v3825_v32 = vld [vmem:[#allocation2 + $0x30] sm:$0xe] }
 0x2b5   : > { %v3178_v44 = vpop.permute.xlu1 %3177  ;;  %3812 = vst.msk [vmem:[#allocation3 + $0x64] sm:$0xf] %vm3786_vm8, %v3741_v41  ;;  %v3454_v41 = vshll.u32 %v3276_v26, 16  ;;  %v4655_v20 = vrot.slane %v3825_v32, 9  ;;  %v3573_v56 = vrot.slane %v3571_v38, 4  ;;  %v3392_v32 = vshrl.u32 %v3268_v54, 16 }
 0x2b6   : > { %3250 = vst.msk [vmem:[#allocation3 + $0x60] sm:$0xf] %vm3225_vm6, %v3178_v44  ;;  %v3739_v17 = vpop.permute.xlu2 %3738  ;;  %v3576_v44 = vrot.slane %v3574_v12, 5  ;;  %v3293_v26 = vld [vmem:[#allocation2 + $0xa4] sm:$0x1] }
 0x2b7   : > { %3811 = vst.msk [vmem:[#allocation3 + $0x60] sm:$0xf] %vm3786_vm8, %v3739_v17  ;;  %v4017_v17 = vrot.slane %v4015_v58, 4  ;;  %v3932_v22 = vsel %vm5610_vm14, %v4655_v20, %v3931_v14  ;;  %v3682_v58 = vrot.slane %v3680_v6, 4  ;;  %v3095_v38 = vld [vmem:[#allocation2 + $0xcc] sm:$0xf] }
 0x2b8   : > { %v3577_v63 = vor.u32 %v3576_v44, %v3573_v56  ;;  %v3590_v29 = vshll.u32 %v3293_v26, 16  ;;  %v4668_v20 = vrot.slane %v3864_v46, 9  ;;  %v6705_v6 = vld [vmem:[#allocation2 + $0xa0] sm:$0xf]  ;;  %v3842_v46 = vld [vmem:[#allocation2 + $0x74] sm:$0x1] }
 0x2b9   : > { %v4019_v55 = vsel %vm5610_vm14, %v4017_v17, %v4018_v11  ;;  %v3683_v53 = vor.u32 %v3682_v58, %v6665_v57  ;;  %v3994_v58 = vrot.slane %v6705_v6, 5  ;;  %v3830_v6 = vld [vmem:[#allocation2 + $0x44] sm:$0x1] }
 0x2ba   : > { %3698 = vrot.lane.b32.xlu0 %v3367_v0, %s5001_s17  ;;  %v3578_v24 = vrot.slane %v3577_v63, 4 }
 0x2bb   : > { %3748 = vrot.lane.b32.xlu1 %v3665_v21, %s5001_s17  ;;  %v3456_v21 = vrot.slane %v3454_v41, 5  ;;  %v3865_v41 = vld [vmem:[#allocation2 + $0xd0] sm:$0xf] }
 0x2bc   : > { %3185 = vrot.lane.b32.xlu2 %v3093_v10, %s5000_s16  ;;  %v4076_v23 = vpop.permute.xlu0 %4075  ;;  %v4022_v56 = vrot.slane %v3865_v41, 5 }
 0x2bd   : > { %v3725_v45 = vpop.permute.xlu1 %3724  ;;  %4148 = vst.msk [vmem:[#allocation3 + $0x60] sm:$0xf] %vm4123_vm10, %v4076_v23  ;;  %v3457_v15 = vor.u32 %v3456_v21, %v3453_v18  ;;  %v3582_v23 = vrot.slane %v3580_v31, 5  ;;  %v3303_v18 = vld [vmem:[#allocation2 + $0xcc] sm:$0xf] }
 0x2be   : > { %3804 = vst.msk [vmem:[#allocation3 + $0x44] sm:$0xf] %vm3786_vm8, %v3725_v45  ;;  %v4062_v13 = vpop.permute.xlu2 %4061  ;;  %v3961_v45 = vrot.slane %v3959_v42, 4  ;;  %v3684_v42 = vrot.slane %v3683_v53, 4  ;;  %v4023_v21 = vsel %vm5610_vm14, %v4668_v20, %v4022_v56  ;;  %v3087_v31 = vld [vmem:[#allocation2 + $0x9c] sm:$0xf] }
 0x2bf   : > { %4141 = vst.msk [vmem:[#allocation3 + $0x44] sm:$0xf] %vm4123_vm10, %v4062_v13  ;;  %v3583_v3 = vsel %vm5119_vm9, %v3578_v24, %v3582_v23  ;;  %v3475_v53 = vshrl.u32 %v3279_v19, 16 }
 0x2c0   : > { %v3963_v40 = vsel %vm5610_vm14, %v3961_v45, %v3962_v59 }
 0x2c2   : > { %3716 = vrot.lane.b32.xlu0 %v3473_v27, %s5001_s17  ;;  %v3458_v27 = vrot.slane %v3457_v15, 4 }
 0x2c3   : > { %4083 = vrot.lane.b32.xlu1 %v4016_v35, %s5002_s21 }
 0x2c4   : > { %3732 = vrot.lane.b32.xlu2 %v3569_v51, %s5001_s17  ;;  %v3693_v34 = vpop.permute.xlu0 %3692  ;;  %v3584_v51 = vshrl.u32 %v3292_v28, 16  ;;  %v3463_v49 = vsel %vm5119_vm9, %v3458_v27, %v6598_v33  ;;  %v3592_v28 = vrot.slane %v3590_v29, 5 }
 0x2c5   : > { %v4060_v30 = vpop.permute.xlu1 %4059  ;;  %3788 = vst.msk [vmem:[#allocation3 + $0x4] sm:$0xf] %vm3786_vm8, %v3693_v34  ;;  %v3688_v34 = vrot.slane %v3686_v7, 5  ;;  %v3478_v7 = vshll.u32 %v3279_v19, 16 }
 0x2c6   : > { %4140 = vst.msk [vmem:[#allocation3 + $0x40] sm:$0xf] %vm4123_vm10, %v4060_v30  ;;  %v3691_v62 = vpop.permute.xlu2 %3690  ;;  %v3586_v25 = vrot.slane %v3584_v51, 4  ;;  %v3866_v51 = vld [vmem:[#allocation2 + $0xd4] sm:$0x1] }
 0x2c7   : > { %3787 = vst.msk [vmem:[#allocation3] sm:$0xf] %vm3786_vm8, %v3691_v62  ;;  %v3934_v62 = vrot.slane %v3827_v8, 5  ;;  %v3689_v12 = vsel %vm5119_vm9, %v3684_v42, %v3688_v34 }
 0x2c9   : > { %v3935_v43 = vsel %vm5610_vm14, %v3933_v52, %v3934_v62  ;;  %v6724_v52 = vld [vmem:[#allocation2 + $0x70] sm:$0xf] }
 0x2ca   : > { %4051 = vrot.lane.b32.xlu0 %v3960_v47, %s5002_s21 }
 0x2cb   : > { %3700 = vrot.lane.b32.xlu1 %v3377_v36, %s5001_s17  ;;  %v3388_v36 = vshll.u32 %v3268_v54, 16  ;;  %v3477_v54 = vrot.slane %v3475_v53, 4 }
 0x2cc   : > { %4067 = vrot.lane.b32.xlu2 %v3988_v39, %s5002_s21  ;;  %v4028_v37 = vpop.permute.xlu0 %4027  ;;  %v3587_v39 = vor.u32 %v3586_v25, %v3582_v23  ;;  %v4664_v23 = vrot.slane %v3852_v9, 9  ;;  %v4025_v25 = vrot.slane %v3866_v51, 5 }
 0x2cd   : > { %v4078_v10 = vpop.permute.xlu1 %4077  ;;  %4124 = vst.msk [vmem:[#allocation3] sm:$0xf] %vm4123_vm10, %v4028_v37  ;;  %v4778_v0 = vld [vmem:[#allocation3 + $0x40] sm:$0xff]  ;;  %v6693_v44 = vrot.slane %v3388_v36, 5  ;;  %v3394_v37 = vrot.slane %v3392_v32, 4  ;;  %v3966_v36 = vrot.slane %v6724_v52, 5 }
 0x2ce   : > { %4149 = vst.msk [vmem:[#allocation3 + $0x64] sm:$0xf] %vm4123_vm10, %v4078_v10  ;;  %v3709_v50 = vpop.permute.xlu2 %3708  ;;  %4757 = vmatmul.msk.bf16.vlgmr.msra.gmra.mxu2 %vm4368_vm3, %v4778_v0  ;;  %v3588_v17 = vrot.slane %v3587_v39, 4  ;;  %v3995_v27 = vsel %vm5610_vm14, %v4664_v23, %v3994_v58 }
 0x2cf   : > { %3796 = vst.msk [vmem:[#allocation3 + $0x24] sm:$0xf] %vm3786_vm8, %v3709_v50  ;;  %v3395_v50 = vor.u32 %v3394_v37, %v6693_v44  ;;  %v3968_v37 = vrot.slane %v3966_v36, 4 }
 0x2d0   : > { %v3593_v63 = vsel %vm5119_vm9, %v3588_v17, %v3592_v28 }
 0x2d1   : > { %v3396_v60 = vrot.slane %v3395_v50, 4 }
 0x2d2   : > { %3175 = vrot.lane.b32.xlu0 %v3088_v5, %s5000_s16  ;;  %v3398_v5 = vshll.u32 %v3269_v48, 16 }
 0x2d3   : > { %4035 = vrot.lane.b32.xlu1 %v3932_v22, %s5002_s21  ;;  %v3667_v22 = vshrl.u32 %v3303_v18, 16 }
 0x2d4   : > { %4085 = vrot.lane.b32.xlu2 %v4019_v55, %s5002_s21  ;;  %v4046_v4 = vpop.permute.xlu0 %4045  ;;  %v3670_v55 = vshll.u32 %v3303_v18, 16  ;;  %v3400_v15 = vrot.slane %v3398_v5, 5 }
 0x2d5   : > { %v3707_v1 = vpop.permute.xlu1 %3706  ;;  %4133 = vst.msk [vmem:[#allocation3 + $0x24] sm:$0xf] %vm4123_vm10, %v4046_v4  ;;  %v4782_v13 = vld [vmem:[#allocation3 + $0x60] sm:$0xff]  ;;  %v3669_v45 = vrot.slane %v3667_v22, 4 }
 0x2d6   : > { %3795 = vst.msk [vmem:[#allocation3 + $0x20] sm:$0xf] %vm3786_vm8, %v3707_v1  ;;  %v4044_v35 = vpop.permute.xlu2 %4043  ;;  %4761 = vmatmul.msk.bf16.vlgmr.msra.gmra.mxu3 %vm4368_vm3, %v4782_v13  ;;  %v3672_v59 = vrot.slane %v3670_v55, 5  ;;  %v3401_v13 = vsel %vm5119_vm9, %v3396_v60, %v3400_v15  ;;  %v3941_v15 = vrot.slane %v3830_v6, 5  ;;  %v4936_v6 = vld [vmem:[%s6807_s9 + $0x20] sm:$0xff]  }
 0x2d7   : > { %4132 = vst.msk [vmem:[#allocation3 + $0x20] sm:$0xf] %vm4123_vm10, %v4044_v35  ;;  %v3828_v35 = vld [vmem:[#allocation2 + $0x3c] sm:$0xe] }
 0x2d8   : > { %v4656_v8 = vrot.slane %v3828_v35, 9 }
 0x2da   : > { %3734 = vrot.lane.b32.xlu0 %v3583_v3, %s5001_s17  ;;  %v6718_v3 = vld [vmem:[#allocation2 + $0x40] sm:$0xf] }
 0x2db   : > { %4053 = vrot.lane.b32.xlu1 %v3963_v40, %s5002_s21  ;;  %v3096_v40 = vld [vmem:[#allocation2 + $0xd0] sm:$0xf]  ;;  %v3938_v42 = vrot.slane %v6718_v3, 5 }
 0x2dc   : > { %3714 = vrot.lane.b32.xlu2 %v3463_v49, %s5001_s17  ;;  %v3182_v16 = vpop.permute.xlu0 %3181  ;;  %v3673_v49 = vor.u32 %v3672_v59, %v3669_v45  ;;  %v3281_v59 = vld [vmem:[#allocation2 + $0x74] sm:$0x1] }
 0x2dd   : > { %v4030_v30 = vpop.permute.xlu1 %4029  ;;  %3252 = vst.msk [vmem:[#allocation3 + $0x68] sm:$0xf] %vm3225_vm6, %v3182_v16  ;;  %v4024_v16 = vrot.slane %v4022_v56, 4  ;;  %v3854_v56 = vld [vmem:[#allocation2 + $0xa4] sm:$0x1]  ;;  %v3940_v60 = vrot.slane %v3938_v42, 4 }
 0x2de   : > { %4125 = vst.msk [vmem:[#allocation3 + $0x4] sm:$0xf] %vm4123_vm10, %v4030_v30  ;;  %v3168_v33 = vpop.permute.xlu2 %3167  ;;  %v4774_v47 = vld [vmem:[#allocation3 + $0x20] sm:$0xff]  ;;  %v3480_v30 = vrot.slane %v3478_v7, 5  ;;  %v3674_v26 = vrot.slane %v3673_v49, 4 }
 0x2df   : > { %3245 = vst.msk [vmem:[#allocation3 + $0x4c] sm:$0xf] %vm3225_vm6, %v3168_v33  ;;  %4753 = vmatmul.msk.bf16.vlgmr.msra.gmra.mxu1 %vm4368_vm3, %v4774_v47  ;;  %v3280_v33 = vld [vmem:[#allocation2 + $0x70] sm:$0xf]  ;;  %v4026_v32 = vsel %vm5610_vm14, %v4024_v16, %v4025_v25  ;;  %v3942_v19 = vsel %vm5610_vm14, %v3940_v60, %v3941_v15  ;;  %v3840_v49 = vld [vmem:[#allocation2 + $0x6c] sm:$0xe]  ;;  %v4872_v60 = vunpack.c.l.bf16 %v4936_v6 }
 0x2e0   : > { %v3481_v39 = vor.u32 %v3480_v30, %v3477_v54  ;;  %v3484_v29 = vshll.u32 %v3280_v33, 16  ;;  %v3679_v41 = vsel %vm5119_vm9, %v3674_v26, %v6665_v57  ;;  %v3996_v57 = vrot.slane %v3994_v58, 4 }
 0x2e2   : > { %3752 = vrot.lane.b32.xlu0 %v3689_v12, %s5001_s17  ;;  %v3939_v12 = vsel %vm5610_vm14, %v4656_v8, %v3938_v42  ;;  %v3482_v28 = vrot.slane %v3481_v39, 4  ;;  %v3486_v48 = vrot.slane %v3484_v29, 5 }
 0x2e3   : > { %3189 = vrot.lane.b32.xlu1 %v3095_v38, %s5000_s16  ;;  %v3267_v38 = vld [vmem:[#allocation2 + $0x3c] sm:$0xf] }
 0x2e4   : > { %4037 = vrot.lane.b32.xlu2 %v3935_v43, %s5002_s21  ;;  %v3729_v14 = vpop.permute.xlu0 %3728  ;;  %v3379_v43 = vshrl.u32 %v3267_v38, 16  ;;  %v3382_v20 = vshll.u32 %v3267_v38, 16 }
 0x2e5   : > { %v3166_v10 = vpop.permute.xlu1 %3165  ;;  %3806 = vst.msk [vmem:[#allocation3 + $0x4c] sm:$0xf] %vm3786_vm8, %v3729_v14  ;;  %v4770_v0 = vld [vmem:[#allocation3] sm:$0xff]  ;;  %v3969_v14 = vrot.slane %v3842_v46, 5 }
 0x2e6   : > { %3244 = vst.msk [vmem:[#allocation3 + $0x48] sm:$0xf] %vm3225_vm6, %v3166_v10  ;;  %v3727_v11 = vpop.permute.xlu2 %3726  ;;  %4749 = vmatmul.msk.bf16.vlgmr.msra.gmra.mxu0 %vm4368_vm3, %v4770_v0  ;;  %v3997_v0 = vrot.slane %v3854_v56, 5  ;;  %v3384_v18 = vrot.slane %v3382_v20, 5 }
 0x2e7   : > { %3805 = vst.msk [vmem:[#allocation3 + $0x48] sm:$0xf] %vm3786_vm8, %v3727_v11  ;;  %v3381_v11 = vrot.slane %v3379_v43, 4  ;;  %v3970_v5 = vsel %vm5610_vm14, %v3968_v37, %v3969_v14 }
 0x2e8   : > { %v3998_v9 = vsel %vm5610_vm14, %v3996_v57, %v3997_v0 }
 0x2e9   : > { %v3385_v22 = vor.u32 %v3384_v18, %v3381_v11 }
 0x2ea   : > { %4087 = vrot.lane.b32.xlu0 %v4023_v21, %s5002_s21 }
 0x2eb   : > { %3736 = vrot.lane.b32.xlu1 %v3593_v63, %s5001_s17  ;;  %v3487_v63 = vsel %vm5119_vm9, %v3482_v28, %v3486_v48  ;;  %v3386_v58 = vrot.slane %v3385_v22, 4 }
 0x2ec   : > { %3173 = vrot.lane.b32.xlu2 %v3087_v31, %s5000_s16  ;;  %v4064_v24 = vpop.permute.xlu0 %4063  ;;  %v3488_v31 = vshrl.u32 %v3280_v33, 16 }
 0x2ed   : > { %v3184_v4 = vpop.permute.xlu1 %3183  ;;  %4142 = vst.msk [vmem:[#allocation3 + $0x48] sm:$0xf] %vm4123_vm10, %v4064_v24 }
 0x2ee   : > { %3253 = vst.msk [vmem:[#allocation3 + $0x6c] sm:$0xf] %vm3225_vm6, %v3184_v4  ;;  %v3745_v1 = vpop.permute.xlu2 %3744  ;;  %v3490_v4 = vrot.slane %v3488_v31, 4 }
 0x2ef   : > { %3814 = vst.msk [vmem:[#allocation3 + $0x6c] sm:$0xf] %vm3786_vm8, %v3745_v1  ;;  %v3391_v1 = vsel %vm5119_vm9, %v3386_v58, %v6693_v44 }
 0x2f2   : > { %3704 = vrot.lane.b32.xlu0 %v3401_v13, %s5001_s17  ;;  %v3491_v13 = vor.u32 %v3490_v4, %v3486_v48 }
 0x2f3   : > { %4071 = vrot.lane.b32.xlu1 %v3995_v27, %s5002_s21  ;;  %v3494_v27 = vshll.u32 %v3281_v59, 16 }
 0x2f4   : > { %3191 = vrot.lane.b32.xlu2 %v3096_v40, %s5000_s16  ;;  %v4082_v34 = vpop.permute.xlu0 %4081  ;;  %v3492_v53 = vrot.slane %v3491_v13, 4 }
 0x2f5   : > { %v3743_v62 = vpop.permute.xlu1 %3742  ;;  %4151 = vst.msk [vmem:[#allocation3 + $0x6c] sm:$0xf] %vm4123_vm10, %v4082_v34  ;;  %v3496_v7 = vrot.slane %v3494_v27, 5  ;;  %v4660_v34 = vrot.slane %v3840_v49, 9 }
 0x2f6   : > { %3813 = vst.msk [vmem:[#allocation3 + $0x68] sm:$0xf] %vm3786_vm8, %v3743_v62  ;;  %v4080_v47 = vpop.permute.xlu2 %4079 }
 0x2f7   : > { %4150 = vst.msk [vmem:[#allocation3 + $0x68] sm:$0xf] %vm4123_vm10, %v4080_v47  ;;  %v3497_v44 = vsel %vm5119_vm9, %v3492_v53, %v3496_v7  ;;  %v3967_v25 = vsel %vm5610_vm14, %v4660_v34, %v3966_v36 }
 0x2fa   : > { %4039 = vrot.lane.b32.xlu0 %v3939_v12, %s5002_s21 }
 0x2fb   : > { %4089 = vrot.lane.b32.xlu1 %v4026_v32, %s5002_s21 }
 0x2fc   : > { %3750 = vrot.lane.b32.xlu2 %v3679_v41, %s5001_s17  ;;  %v3711_v17 = vpop.permute.xlu0 %3710 }
 0x2fd   : > { %v4066_v10 = vpop.permute.xlu1 %4065  ;;  %3797 = vst.msk [vmem:[#allocation3 + $0x28] sm:$0xf] %vm3786_vm8, %v3711_v17  ;;  %v4940_v17 = vld [vmem:[%s6807_s9 + $0x40] sm:$0xff]  }
 0x2fe   : > { %4143 = vst.msk [vmem:[#allocation3 + $0x4c] sm:$0xf] %vm4123_vm10, %v4066_v10  ;;  %v3697_v21 = vpop.permute.xlu2 %3696  ;;  %v4783_v50 = vld [vmem:[#allocation3 + $0x68] sm:$0xff]  ;;  %v4888_v57 = vunpack.c.l.bf16 %v4940_v17  ;;  %v4889_v31 = vunpack.c.h.bf16 %v4940_v17 }
 0x2ff   : > { %3790 = vst.msk [vmem:[#allocation3 + $0xc] sm:$0xf] %vm3786_vm8, %v3697_v21  ;;  %4762 = vmatmul.msk.bf16.gmra.mxu3 %vm4368_vm3, %v4783_v50  ;;  %v4944_v21 = vld [vmem:[%s6807_s9 + $0x60] sm:$0xff]  }
 0x302   : > { %4057 = vrot.lane.b32.xlu0 %v3970_v5, %s5002_s21 }
 0x303   : > { %3718 = vrot.lane.b32.xlu1 %v3487_v63, %s5001_s17 }
 0x304   : > { %4073 = vrot.lane.b32.xlu2 %v3998_v9, %s5002_s21  ;;  %v4034_v55 = vpop.permute.xlu0 %4033  ;;  %v4904_v9 = vunpack.c.l.bf16 %v4944_v21 }
 0x305   : > { %v3695_v24 = vpop.permute.xlu1 %3694  ;;  %4127 = vst.msk [vmem:[#allocation3 + $0xc] sm:$0xf] %vm4123_vm10, %v4034_v55  ;;  %v4779_v23 = vld [vmem:[#allocation3 + $0x48] sm:$0xff] }
 0x306   : > { %3789 = vst.msk [vmem:[#allocation3 + $0x8] sm:$0xf] %vm3786_vm8, %v3695_v24  ;;  %v4032_v45 = vpop.permute.xlu2 %4031  ;;  %4758 = vmatmul.msk.bf16.gmra.mxu2 %vm4368_vm3, %v4779_v23 }
 0x307   : > { %4126 = vst.msk [vmem:[#allocation3 + $0x8] sm:$0xf] %vm4123_vm10, %v4032_v45 }
 0x30b   : > { %4041 = vrot.lane.b32.xlu1 %v3942_v19, %s5002_s21  ;;  %v4855_v19 = vld [vmem:[%s6807_s9] sm:$0xff]  }
 0x30c   : > { %3702 = vrot.lane.b32.xlu2 %v3391_v1, %s5001_s17  ;;  %v3170_v35 = vpop.permute.xlu0 %3169  ;;  %v4905_v1 = vunpack.c.h.bf16 %v4944_v21  ;;  %v4856_v13 = vunpack.c.l.bf16 %v4855_v19 }
 0x30d   : > { %v3713_v3 = vpop.permute.xlu1 %3712  ;;  %3246 = vst.msk [vmem:[#allocation3 + $0x50] sm:$0xf] %vm3225_vm6, %v3170_v35  ;;  %v4873_v35 = vunpack.c.h.bf16 %v4936_v6 }
 0x30e   : > { %3798 = vst.msk [vmem:[#allocation3 + $0x2c] sm:$0xf] %vm3786_vm8, %v3713_v3  ;;  %v4050_v40 = vpop.permute.xlu2 %4049  ;;  %v4771_v51 = vld [vmem:[#allocation3 + $0x8] sm:$0xff] }
 0x30f   : > { %4135 = vst.msk [vmem:[#allocation3 + $0x2c] sm:$0xf] %vm4123_vm10, %v4050_v40  ;;  %4750 = vmatmul.msk.bf16.gmra.mxu0 %vm4368_vm3, %v4771_v51 }
 0x314   : > { %3720 = vrot.lane.b32.xlu2 %v3497_v44, %s5001_s17  ;;  %v3188_v8 = vpop.permute.xlu0 %3187 }
 0x315   : > { %v4048_v42 = vpop.permute.xlu1 %4047  ;;  %3255 = vst.msk [vmem:[#allocation3 + $0x74] sm:$0xf] %vm3225_vm6, %v3188_v8 }
 0x316   : > { %4134 = vst.msk [vmem:[#allocation3 + $0x28] sm:$0xf] %vm4123_vm10, %v4048_v42  ;;  %v3186_v16 = vpop.permute.xlu2 %3185  ;;  %v4857_v42 = vunpack.c.h.bf16 %v4855_v19 }
 0x317   : > { %3254 = vst.msk [vmem:[#allocation3 + $0x70] sm:$0xf] %vm3225_vm6, %v3186_v16 }
 0x31c   : > { %4055 = vrot.lane.b32.xlu2 %v3967_v25, %s5002_s21  ;;  %v3747_v2 = vpop.permute.xlu0 %3746 }
 0x31d   : > { %v3172_v54 = vpop.permute.xlu1 %3171  ;;  %3815 = vst.msk [vmem:[#allocation3 + $0x70] sm:$0xf] %vm3786_vm8, %v3747_v2  ;;  %v4775_v30 = vld [vmem:[#allocation3 + $0x28] sm:$0xff] }
 0x31e   : > { %3247 = vst.msk [vmem:[#allocation3 + $0x54] sm:$0xf] %vm3225_vm6, %v3172_v54  ;;  %v3733_v62 = vpop.permute.xlu2 %3732  ;;  %4754 = vmatmul.msk.bf16.gmra.mxu1 %vm4368_vm3, %v4775_v30 }
 0x31f   : > { %3808 = vst.msk [vmem:[#allocation3 + $0x54] sm:$0xf] %vm3786_vm8, %v3733_v62 }
 0x324   : > { %v4070_v26 = vpop.permute.xlu0 %4069 }
 0x325   : > { %v3731_v33 = vpop.permute.xlu1 %3730  ;;  %4145 = vst.msk [vmem:[#allocation3 + $0x54] sm:$0xf] %vm4123_vm10, %v4070_v26 }
 0x326   : > { %3807 = vst.msk [vmem:[#allocation3 + $0x50] sm:$0xf] %vm3786_vm8, %v3731_v33  ;;  %v4068_v61 = vpop.permute.xlu2 %4067 }
 0x327   : > { %4144 = vst.msk [vmem:[#allocation3 + $0x50] sm:$0xf] %vm4123_vm10, %v4068_v61 }
 0x32c   : > { %v3699_v52 = vpop.permute.xlu0 %3698 }
 0x32d   : > { %v3749_v47 = vpop.permute.xlu1 %3748  ;;  %3791 = vst.msk [vmem:[#allocation3 + $0x10] sm:$0xf] %vm3786_vm8, %v3699_v52 }
 0x32e   : > { %3816 = vst.msk [vmem:[#allocation3 + $0x74] sm:$0xf] %vm3786_vm8, %v3749_v47  ;;  %v4086_v38 = vpop.permute.xlu2 %4085  ;;  %v4780_v12 = vld [vmem:[#allocation3 + $0x50] sm:$0xff] }
 0x32f   : > { %4153 = vst.msk [vmem:[#allocation3 + $0x74] sm:$0xf] %vm4123_vm10, %v4086_v38  ;;  %4759 = vmatmul.msk.bf16.gmra.mxu2 %vm4368_vm3, %v4780_v12  ;;  %v4945_v47 = vld [vmem:[%s6807_s9 + $0x68] sm:$0xff]  }
 0x330   : > { %v4908_v12 = vunpack.c.l.bf16 %v4945_v47 }
 0x334   : > { %v3717_v36 = vpop.permute.xlu0 %3716 }
 0x335   : > { %v4084_v32 = vpop.permute.xlu1 %4083  ;;  %3800 = vst.msk [vmem:[#allocation3 + $0x34] sm:$0xf] %vm3786_vm8, %v3717_v36 }
 0x336   : > { %4152 = vst.msk [vmem:[#allocation3 + $0x70] sm:$0xf] %vm4123_vm10, %v4084_v32  ;;  %v3715_v39 = vpop.permute.xlu2 %3714 }
 0x337   : > { %3799 = vst.msk [vmem:[#allocation3 + $0x30] sm:$0xf] %vm3786_vm8, %v3715_v39  ;;  %v4941_v39 = vld [vmem:[%s6807_s9 + $0x48] sm:$0xff]  }
 0x33c   : > { %v4052_v29 = vpop.permute.xlu0 %4051 }
 0x33d   : > { %v3701_v46 = vpop.permute.xlu1 %3700  ;;  %4136 = vst.msk [vmem:[#allocation3 + $0x30] sm:$0xf] %vm4123_vm10, %v4052_v29  ;;  %v4784_v41 = vld [vmem:[#allocation3 + $0x70] sm:$0xff] }
 0x33e   : > { %3792 = vst.msk [vmem:[#allocation3 + $0x14] sm:$0xf] %vm3786_vm8, %v3701_v46  ;;  %v4038_v43 = vpop.permute.xlu2 %4037  ;;  %4763 = vmatmul.msk.bf16.gmra.mxu3 %vm4368_vm3, %v4784_v41  ;;  %v4892_v46 = vunpack.c.l.bf16 %v4941_v39  ;;  %v4933_v41 = vld [vmem:[%s6807_s9 + $0x8] sm:$0xff]  }
 0x33f   : > { %4129 = vst.msk [vmem:[#allocation3 + $0x14] sm:$0xf] %vm4123_vm10, %v4038_v43  ;;  %v4909_v43 = vunpack.c.h.bf16 %v4945_v47 }
 0x344   : > { %v3176_v20 = vpop.permute.xlu0 %3175 }
 0x345   : > { %v4036_v56 = vpop.permute.xlu1 %4035  ;;  %3249 = vst.msk [vmem:[#allocation3 + $0x5c] sm:$0xf] %vm3225_vm6, %v3176_v20 }
 0x346   : > { %4128 = vst.msk [vmem:[#allocation3 + $0x10] sm:$0xf] %vm4123_vm10, %v4036_v56  ;;  %v3174_v37 = vpop.permute.xlu2 %3173  ;;  %v4860_v56 = vunpack.c.l.bf16 %v4933_v41 }
 0x347   : > { %3248 = vst.msk [vmem:[#allocation3 + $0x58] sm:$0xf] %vm3225_vm6, %v3174_v37 }
 0x34c   : > { %v3735_v14 = vpop.permute.xlu0 %3734 }
 0x34d   : > { %v4054_v28 = vpop.permute.xlu1 %4053  ;;  %3809 = vst.msk [vmem:[#allocation3 + $0x58] sm:$0xf] %vm3786_vm8, %v3735_v14  ;;  %v4772_v48 = vld [vmem:[#allocation3 + $0x10] sm:$0xff] }
 0x34e   : > { %4137 = vst.msk [vmem:[#allocation3 + $0x34] sm:$0xf] %vm4123_vm10, %v4054_v28  ;;  %v3192_v10 = vpop.permute.xlu2 %3191  ;;  %4751 = vmatmul.msk.bf16.gmra.mxu0 %vm4368_vm3, %v4772_v48 }
 0x34f   : > { %3257 = vst.msk [vmem:[#allocation3 + $0x7c] sm:$0xf] %vm3225_vm6, %v3192_v10  ;;  %v4893_v10 = vunpack.c.h.bf16 %v4941_v39 }
 0x351   : > { %v4470_v0 = vpop.f32.mrf.mxu2 }
 0x352   : > { %v4471_v11 = vadd.f32 %v4888_v57, %v4470_v0  ;;  %v4861_v0 = vunpack.c.h.bf16 %v4933_v41 }
 0x354   : > { %v3753_v18 = vpop.permute.xlu0 %3752  ;;  %4527 = vst.msk [vmem:[%s6818_s12 + $0x80] sm:$0xff] %vm4510_vm5, %v4471_v11 }
 0x355   : > { %v3190_v50 = vpop.permute.xlu1 %3189  ;;  %v4776_v5 = vld [vmem:[#allocation3 + $0x30] sm:$0xff]  ;;  %3818 = vst.msk [vmem:[#allocation3 + $0x7c] sm:$0xf] %vm3786_vm8, %v3753_v18 }
 0x356   : > { %3256 = vst.msk [vmem:[#allocation3 + $0x78] sm:$0xf] %vm3225_vm6, %v3190_v50  ;;  %v3751_v63 = vpop.permute.xlu2 %3750  ;;  %4755 = vmatmul.msk.bf16.gmra.mxu1 %vm4368_vm3, %v4776_v5  ;;  %v4937_v50 = vld [vmem:[%s6807_s9 + $0x28] sm:$0xff]  }
 0x357   : > { %3817 = vst.msk [vmem:[#allocation3 + $0x78] sm:$0xf] %vm3786_vm8, %v3751_v63  ;;  %v4876_v5 = vunpack.c.l.bf16 %v4937_v50 }
 0x359   : > { %v4472_v22 = vpop.f32.mrf.mxu2  ;;  %v4490_v55 = vpop.f32.mrf.mxu3 }
 0x35a   : > { %v4473_v15 = vadd.f32 %v4889_v31, %v4472_v22  ;;  %v4491_v24 = vadd.f32 %v4904_v9, %v4490_v55  ;;  %v4877_v9 = vunpack.c.h.bf16 %v4937_v50  ;;  %v4942_v55 = vld [vmem:[%s6807_s9 + $0x50] sm:$0xff]  }
 0x35c   : > { %v4088_v23 = vpop.permute.xlu0 %4087  ;;  %4528 = vst.msk [vmem:[%s6818_s12 + $0x88] sm:$0xff] %vm4510_vm5, %v4473_v15  ;;  %v4450_v4 = vpop.f32.mrf.mxu1 }
 0x35d   : > { %v3737_v58 = vpop.permute.xlu1 %3736  ;;  %4535 = vst.msk [vmem:[%s6818_s12 + $0xc0] sm:$0xff] %vm4510_vm5, %v4491_v24  ;;  %v4451_v59 = vadd.f32 %v4872_v60, %v4450_v4  ;;  %v4896_v60 = vunpack.c.l.bf16 %v4942_v55 }
 0x35e   : > { %v4074_v45 = vpop.permute.xlu2 %4073  ;;  %3810 = vst.msk [vmem:[#allocation3 + $0x5c] sm:$0xf] %vm3786_vm8, %v3737_v58 }
 0x35f   : > { %4147 = vst.msk [vmem:[#allocation3 + $0x5c] sm:$0xf] %vm4123_vm10, %v4074_v45  ;;  %v4946_v45 = vld [vmem:[%s6807_s9 + $0x70] sm:$0xff]  }
 0x360   : > { %4154 = vst.msk [vmem:[#allocation3 + $0x78] sm:$0xf] %vm4123_vm10, %v4088_v23  ;;  %v4897_v23 = vunpack.c.h.bf16 %v4942_v55 }
 0x361   : > { %4519 = vst.msk [vmem:[%s6818_s12 + $0x40] sm:$0xff] %vm4510_vm5, %v4451_v59  ;;  %v4492_v27 = vpop.f32.mrf.mxu3  ;;  %v4912_v59 = vunpack.c.l.bf16 %v4946_v45 }
 0x362   : > { %v4493_v3 = vadd.f32 %v4905_v1, %v4492_v27  ;;  %v4913_v27 = vunpack.c.h.bf16 %v4946_v45 }
 0x363   : > { %v4430_v53 = vpop.f32.mrf.mxu0 }
 0x364   : > { %v3705_v7 = vpop.permute.xlu0 %3704  ;;  %4536 = vst.msk [vmem:[%s6818_s12 + $0xc8] sm:$0xff] %vm4510_vm5, %v4493_v3  ;;  %v4431_v40 = vadd.f32 %v4856_v13, %v4430_v53  ;;  %v4452_v44 = vpop.f32.mrf.mxu1  ;;  %v4934_v13 = vld [vmem:[%s6807_s9 + $0x10] sm:$0xff]  }
 0x365   : > { %v4072_v51 = vpop.permute.xlu1 %4071  ;;  %v4453_v8 = vadd.f32 %v4873_v35, %v4452_v44  ;;  %3794 = vst.msk [vmem:[#allocation3 + $0x1c] sm:$0xf] %vm3786_vm8, %v3705_v7  ;;  %v4864_v35 = vunpack.c.l.bf16 %v4934_v13  ;;  %v4865_v44 = vunpack.c.h.bf16 %v4934_v13 }
 0x366   : > { %4146 = vst.msk [vmem:[#allocation3 + $0x58] sm:$0xf] %vm4123_vm10, %v4072_v51  ;;  %v3703_v49 = vpop.permute.xlu2 %3702  ;;  %v4938_v51 = vld [vmem:[%s6807_s9 + $0x30] sm:$0xff]  }
 0x367   : > { %4511 = vst.msk [vmem:[%s6818_s12] sm:$0xff] %vm4510_vm5, %v4431_v40 }
 0x368   : > { %3793 = vst.msk [vmem:[#allocation3 + $0x18] sm:$0xf] %vm3786_vm8, %v3703_v49  ;;  %v4880_v49 = vunpack.c.l.bf16 %v4938_v51 }
 0x369   : > { %4520 = vst.msk [vmem:[%s6818_s12 + $0x48] sm:$0xff] %vm4510_vm5, %v4453_v8 }
 0x36b   : > { %v4432_v34 = vpop.f32.mrf.mxu0 }
 0x36c   : > { %v4040_v16 = vpop.permute.xlu0 %4039  ;;  %v4433_v25 = vadd.f32 %v4857_v42, %v4432_v34 }
 0x36d   : > { %v4090_v2 = vpop.permute.xlu1 %4089  ;;  %4130 = vst.msk [vmem:[#allocation3 + $0x18] sm:$0xf] %vm4123_vm10, %v4040_v16  ;;  %v4781_v54 = vld [vmem:[#allocation3 + $0x58] sm:$0xff] }
 0x36e   : > { %4155 = vst.msk [vmem:[#allocation3 + $0x7c] sm:$0xf] %vm4123_vm10, %v4090_v2  ;;  %v3721_v30 = vpop.permute.xlu2 %3720  ;;  %4760 = vmatmul.msk.bf16.gmra.mxu2 %vm4368_vm3, %v4781_v54 }
 0x36f   : > { %4512 = vst.msk [vmem:[%s6818_s12 + $0x8] sm:$0xff] %vm4510_vm5, %v4433_v25  ;;  %v4881_v25 = vunpack.c.h.bf16 %v4938_v51 }
 0x370   : > { %3802 = vst.msk [vmem:[#allocation3 + $0x3c] sm:$0xf] %vm3786_vm8, %v3721_v30  ;;  %v4943_v30 = vld [vmem:[%s6807_s9 + $0x58] sm:$0xff]  }
 0x374   : > { %v4058_v62 = vpop.permute.xlu0 %4057 }
 0x375   : > { %v3719_v26 = vpop.permute.xlu1 %3718  ;;  %4139 = vst.msk [vmem:[#allocation3 + $0x3c] sm:$0xf] %vm4123_vm10, %v4058_v62  ;;  %v4785_v33 = vld [vmem:[#allocation3 + $0x78] sm:$0xff]  ;;  %v4900_v62 = vunpack.c.l.bf16 %v4943_v30 }
 0x376   : > { %3801 = vst.msk [vmem:[#allocation3 + $0x38] sm:$0xf] %vm3786_vm8, %v3719_v26  ;;  %v4056_v61 = vpop.permute.xlu2 %4055  ;;  %4764 = vmatmul.msk.bf16.gmra.mxu3 %vm4368_vm3, %v4785_v33 }
 0x377   : > { %4138 = vst.msk [vmem:[#allocation3 + $0x38] sm:$0xf] %vm4123_vm10, %v4056_v61  ;;  %v4947_v61 = vld [vmem:[%s6807_s9 + $0x78] sm:$0xff]  }
 0x378   : > { %v4916_v47 = vunpack.c.l.bf16 %v4947_v61 }
 0x37d   : > { %v4042_v52 = vpop.permute.xlu1 %4041 }
 0x37e   : > { %4131 = vst.msk [vmem:[#allocation3 + $0x1c] sm:$0xf] %vm4123_vm10, %v4042_v52  ;;  %v4777_v38 = vld [vmem:[#allocation3 + $0x38] sm:$0xff]  ;;  %v4901_v52 = vunpack.c.h.bf16 %v4943_v30 }
 0x37f   : > { %4756 = vmatmul.msk.bf16.gmra.mxu1 %vm4368_vm3, %v4777_v38  ;;  %v4939_v38 = vld [vmem:[%s6807_s9 + $0x38] sm:$0xff]  }
 0x382   : > { %v4495_v36 = vpop.f32.mrf.mxu3 }
 0x383   : > { %v4496_v32 = vadd.f32 %v4908_v12, %v4495_v36 }
 0x385   : > { %v4773_v29 = vld [vmem:[#allocation3 + $0x18] sm:$0xff]  ;;  %4537 = vst.msk [vmem:[%s6818_s12 + $0xd0] sm:$0xff] %vm4510_vm5, %v4496_v32  ;;  %v4884_v32 = vunpack.c.l.bf16 %v4939_v38 }
 0x386   : > { %4752 = vmatmul.msk.bf16.gmra.mxu0 %vm4368_vm3, %v4773_v29 }
 0x389   : > { %v4475_v20 = vpop.f32.mrf.mxu2 }
 0x38a   : > { %v4476_v37 = vadd.f32 %v4892_v46, %v4475_v20  ;;  %v4497_v14 = vpop.f32.mrf.mxu3  ;;  %v4917_v20 = vunpack.c.h.bf16 %v4947_v61 }
 0x38b   : > { %v4498_v17 = vadd.f32 %v4909_v43, %v4497_v14  ;;  %v4935_v43 = vld [vmem:[%s6807_s9 + $0x18] sm:$0xff]   ;;  %v4885_v14 = vunpack.c.h.bf16 %v4939_v38 }
 0x38c   : > { %4529 = vst.msk [vmem:[%s6818_s12 + $0x90] sm:$0xff] %vm4510_vm5, %v4476_v37  ;;  %v4435_v28 = vpop.f32.mrf.mxu0 }
 0x38d   : > { %4538 = vst.msk [vmem:[%s6818_s12 + $0xd8] sm:$0xff] %vm4510_vm5, %v4498_v17  ;;  %v4436_v48 = vadd.f32 %v4860_v56, %v4435_v28  ;;  %v4868_v56 = vunpack.c.l.bf16 %v4935_v43 }
 0x38f   : > { %4513 = vst.msk [vmem:[%s6818_s12 + $0x10] sm:$0xff] %vm4510_vm5, %v4436_v48 }
 0x391   : > { %v4477_v57 = vpop.f32.mrf.mxu2 }
 0x392   : > { %v4478_v11 = vadd.f32 %v4893_v10, %v4477_v57 }
 0x394   : > { %4530 = vst.msk [vmem:[%s6818_s12 + $0x98] sm:$0xff] %vm4510_vm5, %v4478_v11  ;;  %v4437_v18 = vpop.f32.mrf.mxu0 }
 0x395   : > { %v4438_v21 = vadd.f32 %v4861_v0, %v4437_v18  ;;  %v4869_v0 = vunpack.c.h.bf16 %v4935_v43 }
 0x397   : > { %4514 = vst.msk [vmem:[%s6818_s12 + $0x18] sm:$0xff] %vm4510_vm5, %v4438_v21 }
 0x39b   : > { %v4455_v63 = vpop.f32.mrf.mxu1 }
 0x39c   : > { %v4456_v31 = vadd.f32 %v4876_v5, %v4455_v63 }
 0x39e   : > { %4521 = vst.msk [vmem:[%s6818_s12 + $0x50] sm:$0xff] %vm4510_vm5, %v4456_v31 }
 0x3a3   : > { %v4457_v6 = vpop.f32.mrf.mxu1 }
 0x3a4   : > { %v4458_v22 = vadd.f32 %v4877_v9, %v4457_v6 }
 0x3a6   : > { %4522 = vst.msk [vmem:[%s6818_s12 + $0x58] sm:$0xff] %vm4510_vm5, %v4458_v22 }
 0x3b2   : > { %v4480_v15 = vpop.f32.mrf.mxu2 }
 0x3b3   : > { %v4481_v24 = vadd.f32 %v4896_v60, %v4480_v15 }
 0x3b5   : > { %4531 = vst.msk [vmem:[%s6818_s12 + $0xa0] sm:$0xff] %vm4510_vm5, %v4481_v24 }
 0x3ba   : > { %v4482_v58 = vpop.f32.mrf.mxu2 }
 0x3bb   : > { %v4483_v4 = vadd.f32 %v4897_v23, %v4482_v58 }
 0x3bd   : > { %4532 = vst.msk [vmem:[%s6818_s12 + $0xa8] sm:$0xff] %vm4510_vm5, %v4483_v4 }
 0x3c1   : > { %v4500_v19 = vpop.f32.mrf.mxu3 }
 0x3c2   : > { %v4501_v1 = vadd.f32 %v4912_v59, %v4500_v19 }
 0x3c4   : > { %4539 = vst.msk [vmem:[%s6818_s12 + $0xe0] sm:$0xff] %vm4510_vm5, %v4501_v1 }
 0x3c9   : > { %v4502_v3 = vpop.f32.mrf.mxu3 }
 0x3ca   : > { %v4503_v53 = vadd.f32 %v4913_v27, %v4502_v3 }
 0x3cb   : > { %v4440_v7 = vpop.f32.mrf.mxu0 }
 0x3cc   : > { %4540 = vst.msk [vmem:[%s6818_s12 + $0xe8] sm:$0xff] %vm4510_vm5, %v4503_v53  ;;  %v4441_v40 = vadd.f32 %v4864_v35, %v4440_v7 }
 0x3ce   : > { %4515 = vst.msk [vmem:[%s6818_s12 + $0x20] sm:$0xff] %vm4510_vm5, %v4441_v40 }
 0x3d3   : > { %v4442_v8 = vpop.f32.mrf.mxu0  ;;  %v4460_v42 = vpop.f32.mrf.mxu1 }
 0x3d4   : > { %v4443_v34 = vadd.f32 %v4865_v44, %v4442_v8  ;;  %v4461_v16 = vadd.f32 %v4880_v49, %v4460_v42 }
 0x3d6   : > { %4516 = vst.msk [vmem:[%s6818_s12 + $0x28] sm:$0xff] %vm4510_vm5, %v4443_v34 }
 0x3d7   : > { %4523 = vst.msk [vmem:[%s6818_s12 + $0x60] sm:$0xff] %vm4510_vm5, %v4461_v16 }
 0x3db   : > { %v4462_v2 = vpop.f32.mrf.mxu1 }
 0x3dc   : > { %v4463_v54 = vadd.f32 %v4881_v25, %v4462_v2 }
 0x3de   : > { %4524 = vst.msk [vmem:[%s6818_s12 + $0x68] sm:$0xff] %vm4510_vm5, %v4463_v54 }
 0x3f1   : > { %v4485_v26 = vpop.f32.mrf.mxu2 }
 0x3f2   : > { %v4486_v33 = vadd.f32 %v4900_v62, %v4485_v26 }
 0x3f4   : > { %4533 = vst.msk [vmem:[%s6818_s12 + $0xb0] sm:$0xff] %vm4510_vm5, %v4486_v33 }
 0x3f9   : > { %v4487_v12 = vpop.f32.mrf.mxu2  ;;  %v4505_v36 = vpop.f32.mrf.mxu3 }
 0x3fa   : > { %v4488_v39 = vadd.f32 %v4901_v52, %v4487_v12  ;;  %v4506_v29 = vadd.f32 %v4916_v47, %v4505_v36 }
 0x3fc   : > { %4534 = vst.msk [vmem:[%s6818_s12 + $0xb8] sm:$0xff] %vm4510_vm5, %v4488_v39  ;;  %v4465_v46 = vpop.f32.mrf.mxu1 }
 0x3fd   : > { %4541 = vst.msk [vmem:[%s6818_s12 + $0xf0] sm:$0xff] %vm4510_vm5, %v4506_v29  ;;  %v4466_v41 = vadd.f32 %v4884_v32, %v4465_v46 }
 0x3ff   : > { %4525 = vst.msk [vmem:[%s6818_s12 + $0x70] sm:$0xff] %vm4510_vm5, %v4466_v41 }
 0x401   : > { %v4507_v37 = vpop.f32.mrf.mxu3 }
 0x402   : > { %v4508_v17 = vadd.f32 %v4917_v20, %v4507_v37 }
 0x403   : > { %v4445_v28 = vpop.f32.mrf.mxu0 }
 0x404   : > { %4542 = vst.msk [vmem:[%s6818_s12 + $0xf8] sm:$0xff] %vm4510_vm5, %v4508_v17  ;;  %v4446_v48 = vadd.f32 %v4868_v56, %v4445_v28  ;;  %v4467_v10 = vpop.f32.mrf.mxu1 }
 0x405   : > { %v4468_v57 = vadd.f32 %v4885_v14, %v4467_v10 }
 0x406   : > { %4517 = vst.msk [vmem:[%s6818_s12 + $0x30] sm:$0xff] %vm4510_vm5, %v4446_v48 }
 0x407   : > { %4526 = vst.msk [vmem:[%s6818_s12 + $0x78] sm:$0xff] %vm4510_vm5, %v4468_v57 }
 0x40b   : > { %v4447_v11 = vpop.f32.mrf.mxu0 }
 0x40c   : > { %v4448_v18 = vadd.f32 %v4869_v0, %v4447_v11 }
 0x40e   : > { %4518 = vst.msk [vmem:[%s6818_s12 + $0x38] sm:$0xff] %vm4510_vm5, %v4448_v18 }
 0x40f PF: > { %s15_s18 = sadd.s32 1, %s4992_s18  }
 0x410   : > { %p12_p4 = scmp.ge.s32.totalorder %s15_s18, 4  }
 0x412   :  { %14 = sbr.rel (!%p12_p4) target bundleno = 1 (0x1), region = 76 }

</bundles_post_ra>
